<compile_context>
chip_gen: v6e
topology: v6e:2x2x1
jax: 0.10.0
libtpu: 0.0.40
codegen_flags: <defaults>
</compile_context>

<pallas_src>
import functools
import math

import jax
import jax.numpy as jnp
from jax.experimental import pallas as pl
from jax.experimental.pallas import tpu as pltpu


def silu(x):
    return x * jax.nn.sigmoid(x)


# ---------------------------------------------------------------------------
# Fused Pallas kernel: embedding + all E_GCL_vel layers for G graphs per step.
# ---------------------------------------------------------------------------
def egnn_vel_kernel(h0_ref, coord_ref, vel_ref,
                    gath_ref, diff_ref, scat_ref, scatm_ref,
                    embw_ref, embb_ref,
                    we1_ref, wvn_ref, wsq_ref, bias_ref,
                    out_ref, *, coords_weight):
    f32 = jnp.float32
    # DEFAULT MXU precision (review item 1): f32 accumulation, no HIGHEST multi-pass.
    dot = lambda a, b: jnp.dot(a, b, preferred_element_type=f32)

    G, N, Fin = h0_ref.shape
    E = diff_ref.shape[0]
    H = embw_ref.shape[1]
    L = we1_ref.shape[0]
    GN, GE = G * N, G * E

    gath = gath_ref[...]       # [2E, N]  (row one-hot ; col one-hot)
    diff_op = diff_ref[...]    # [E, N]   row1h - col1h  -> coord_diff in one matmul
    scat = scat_ref[...]       # [N, E]   col1h^T        -> scatter-sum (by col)
    scat_m = scatm_ref[...]    # [N, E]   col1h^T / max(in-degree, 1) -> scatter-mean

    # ----- embedding (in_node_nf == 1 -> broadcast multiply, no MXU matmul) -----
    h0 = h0_ref[...].reshape(GN, Fin)
    emb_w = embw_ref[...]
    if Fin == 1:
        h = h0 * emb_w[0:1, :] + embb_ref[...]
    else:
        h = dot(h0, emb_w) + embb_ref[...]              # [GN, H]

    coord = coord_ref[...].reshape(GN, 3)               # [GN, 3]
    vel = vel_ref[...].reshape(GN, 3)                   # same vel fed to every layer
    new_vel = jnp.zeros_like(vel)

    # Static (fully unrolled) layer loop: L is small, weight-slab indexing is static,
    # nothing leaves VMEM between layers.
    for l in range(L):
        we1 = we1_ref[l]                    # [2H, H] = [w1a ; w1b]
        w1a, w1b = we1[:H], we1[H:]
        wvn = wvn_ref[l]                    # [H, 2H] = [w_v1 | w_n1a] (shared-LHS fusion)
        wsq = wsq_ref[l]                    # [4H, H] = [w_e2 ; w_c1 ; w_n1b ; w_n2]
        w_e2 = wsq[0 * H:1 * H]
        w_c1 = wsq[1 * H:2 * H]
        w_n1b = wsq[2 * H:3 * H]
        w_n2 = wsq[3 * H:4 * H]
        bl = bias_ref[l]                    # [10, H]
        b_e1, b_e2 = bl[0:1], bl[1:2]
        b_c1, b_v1 = bl[2:3], bl[3:4]
        b_n1, b_n2 = bl[4:5], bl[5:6]
        w_e1c = bl[6:7]                     # radial column of edge_mlp layer 1
        w_c2, w_v2 = bl[7:8], bl[8:9]       # H -> 1 projections stored as rows
        b_v2 = bl[9:10, 0:1]                # scalar bias of coord_mlp_vel tail

        # --- per-graph one-hot gather (MXU), results row-stacked over graphs ---
        hr_parts, hc_parts, cd_parts = [], [], []
        for g in range(G):
            h_g = h[g * N:(g + 1) * N]              # [N, H]
            c_g = coord[g * N:(g + 1) * N]          # [N, 3]
            hg = dot(gath, h_g)                     # [2E, H] = [h_row ; h_col]
            hr_parts.append(hg[:E])
            hc_parts.append(hg[E:])
            cd_parts.append(dot(diff_op, c_g))      # [E, 3] = coord[row] - coord[col]
        h_row = jnp.concatenate(hr_parts, axis=0)       # [GE, H]
        h_col = jnp.concatenate(hc_parts, axis=0)       # [GE, H]
        coord_diff = jnp.concatenate(cd_parts, axis=0)  # [GE, 3]

        radial = jnp.sum(coord_diff * coord_diff, axis=-1, keepdims=True)   # [GE, 1]

        # --- edge_model: edge_mlp(cat([src, tgt, radial])) as a sum of dots ---
        eh = silu(dot(h_row, w1a) + dot(h_col, w1b) + radial * w_e1c + b_e1)
        edge_feat = silu(dot(eh, w_e2) + b_e2)                              # [GE, H]

        # --- coord_model: trans = coord_diff * coord_mlp(edge_feat), clamp ±100 ---
        t = silu(dot(edge_feat, w_c1) + b_c1)                               # [GE, H]
        cm = jnp.sum(t * w_c2, axis=-1, keepdims=True)                      # VPU + XLU
        trans = jnp.clip(coord_diff * cm, -100.0, 100.0)                    # [GE, 3]

        # --- coord_mlp_vel & node_mlp first layer share LHS h: one fused dot ---
        hv = dot(h, wvn)                                                    # [GN, 2H]
        tv = silu(hv[:, :H] + b_v1)
        vscale = jnp.sum(tv * w_v2, axis=-1, keepdims=True) + b_v2          # [GN, 1]
        n_h_part = hv[:, H:]                                                # [GN, H]

        # --- per-graph one-hot scatter (sum for edge_feat, mean for trans) ---
        aggs_parts, aggm_parts = [], []
        for g in range(G):
            ef_g = edge_feat[g * E:(g + 1) * E]
            tr_g = trans[g * E:(g + 1) * E]
            aggs_parts.append(dot(scat, ef_g))          # [N, H]  scatter-sum by col
            aggm_parts.append(dot(scat_m, tr_g))        # [N, 3]  scatter-mean by col
        agg_sum = jnp.concatenate(aggs_parts, axis=0)    # [GN, H]
        agg_mean = jnp.concatenate(aggm_parts, axis=0)   # [GN, 3]

        new_vel = agg_mean * coords_weight + vscale * vel
        coord = coord + new_vel

        # --- node_model: node_mlp(cat([h, agg_sum])) + residual (recurrent) ---
        nh = silu(n_h_part + dot(agg_sum, w_n1b) + b_n1)
        h = dot(nh, w_n2) + b_n2 + h

    # ----- lane-dense output slab: [h | coord | vel | zero-pad] -----
    out_w = out_ref.shape[-1]
    pad = out_w - (H + 6)
    parts = [h, coord, new_vel]
    if pad > 0:
        parts.append(jnp.zeros((GN, pad), f32))
    out_ref[...] = jnp.concatenate(parts, axis=-1).reshape(G, N, out_w)


# ---------------------------------------------------------------------------
# Parameter packing + wrapper
# ---------------------------------------------------------------------------
def pack_layer_params(layers):
    """Stack per-layer params into 4 slabs indexed by layer."""
    H = layers[0]['w2'].shape[0]
    we1 = jnp.stack([jnp.concatenate([p['w1a'], p['w1b']], axis=0)
                     for p in layers])                                 # [L, 2H, H]
    wvn = jnp.stack([jnp.concatenate([p['wv1'], p['wn1a']], axis=1)
                     for p in layers])                                 # [L, H, 2H]
    wsq = jnp.stack([jnp.concatenate([p['w2'], p['wc1'], p['wn1b'], p['wn2']],
                                     axis=0) for p in layers])         # [L, 4H, H]
    bias = jnp.stack([jnp.concatenate(
        [p['b1'], p['b2'], p['bc1'], p['bv1'], p['bn1'], p['bn2'],
         p['w1c'], p['wc2'].T, p['wv2'].T, jnp.broadcast_to(p['bv2'], (1, H))],
        axis=0) for p in layers])                                      # [L, 10, H]
    return we1, wvn, wsq, bias


def _pick_graphs_per_step(B, E, N):
    """Largest G dividing B that keeps >=2 grid steps (v7x 2-TC balance) and
    bounds the row-stacked per-step intermediates."""
    best = 1
    for g in range(1, B + 1):
        if B % g:
            continue
        if B >= 2 and B // g < 2:
            continue
        if g * max(2 * E, N) > 4096:
            continue
        best = g
    return best


def egnn_vel_forward(params, h, x, edges, vel, coords_weight=1.0,
                     graphs_per_step=None):
    """Full EGNN_vel forward (embedding + n_layers E_GCL_vel) in one pallas_call."""
    B, N, _ = h.shape
    H = params['emb_w'].shape[1]
    row, col = edges
    E = int(row.shape[0])

    G = graphs_per_step or _pick_graphs_per_step(B, E, N)
    assert B % G == 0, "batch must be divisible by graphs_per_step"
    steps = B // G

    # Dense graph operators, shared across the batch (DMA'd into VMEM once).
    row1h = jax.nn.one_hot(row, N, dtype=jnp.float32)        # [E, N]
    col1h = jax.nn.one_hot(col, N, dtype=jnp.float32)        # [E, N]
    gath = jnp.concatenate([row1h, col1h], axis=0)           # [2E, N]
    diff_op = row1h - col1h                                  # [E, N]
    scat = col1h.T                                           # [N, E] scatter-sum by col
    inv_cnt = 1.0 / jnp.maximum(jnp.sum(scat, axis=1, keepdims=True), 1.0)
    scat_mean = scat * inv_cnt                               # [N, E] scatter-mean by col

    we1, wvn, wsq, bias = pack_layer_params(params['layers'])

    out_w = max(128, ((H + 6 + 127) // 128) * 128)           # lane-dense output slab

    def shared(a):      # constant index_map -> copied once, reused every grid step
        return pl.BlockSpec(a.shape, lambda b: (0,) * a.ndim)

    def per_step(a):    # G graphs per grid step
        return pl.BlockSpec((G,) + tuple(a.shape[1:]), lambda b: (b, 0, 0))

    kernel = functools.partial(egnn_vel_kernel, coords_weight=float(coords_weight))
    out = pl.pallas_call(
        kernel,
        grid=(steps,),
        in_specs=[per_step(h), per_step(x), per_step(vel),
                  shared(gath), shared(diff_op), shared(scat), shared(scat_mean),
                  shared(params['emb_w']), shared(params['emb_b']),
                  shared(we1), shared(wvn), shared(wsq), shared(bias)],
        out_specs=pl.BlockSpec((G, N, out_w), lambda b: (b, 0, 0)),
        out_shape=jax.ShapeDtypeStruct((B, N, out_w), jnp.float32),
        compiler_params=pltpu.CompilerParams(
            dimension_semantics=("parallel",),
            vmem_limit_bytes=32 * 1024 * 1024),
    )(h, x, vel, gath, diff_op, scat, scat_mean,
      params['emb_w'], params['emb_b'], we1, wvn, wsq, bias)

    return out[:, :, :H], out[:, :, H:H + 3], out[:, :, H + 3:H + 6]


# ---------------------------------------------------------------------------
# Deterministic parameter init (mirrors nn.Linear default + xavier(0.001))
# ---------------------------------------------------------------------------
def _uniform(key, shape, bound):
    return jax.random.uniform(key, shape, jnp.float32, -bound, bound)


def init_egcl_params(key, H):
    ks = jax.random.split(key, 20)
    p = {}
    # edge_mlp layer 1: fan_in = 2H + 1 (source | target | radial)
    b0 = 1.0 / math.sqrt(2 * H + 1)
    p['w1a'] = _uniform(ks[0], (H, H), b0)
    p['w1b'] = _uniform(ks[1], (H, H), b0)
    p['w1c'] = _uniform(ks[2], (1, H), b0)
    p['b1'] = _uniform(ks[3], (1, H), b0)
    # edge_mlp layer 2
    b1 = 1.0 / math.sqrt(H)
    p['w2'] = _uniform(ks[4], (H, H), b1)
    p['b2'] = _uniform(ks[5], (1, H), b1)
    # coord_mlp: Linear(H,H) -> act -> Linear(H,1,bias=False) xavier gain 1e-3
    p['wc1'] = _uniform(ks[6], (H, H), b1)
    p['bc1'] = _uniform(ks[7], (1, H), b1)
    xb = 0.001 * math.sqrt(6.0 / (H + 1))
    p['wc2'] = _uniform(ks[8], (H, 1), xb)
    # coord_mlp_vel: Linear(H,H) -> act -> Linear(H,1)
    p['wv1'] = _uniform(ks[9], (H, H), b1)
    p['bv1'] = _uniform(ks[10], (1, H), b1)
    p['wv2'] = _uniform(ks[11], (H, 1), b1)
    p['bv2'] = _uniform(ks[12], (1, 1), b1)
    # node_mlp layer 1: fan_in = 2H (h | agg)
    b2 = 1.0 / math.sqrt(2 * H)
    p['wn1a'] = _uniform(ks[13], (H, H), b2)
    p['wn1b'] = _uniform(ks[14], (H, H), b2)
    p['bn1'] = _uniform(ks[15], (1, H), b2)
    # node_mlp layer 2
    p['wn2'] = _uniform(ks[16], (H, H), b1)
    p['bn2'] = _uniform(ks[17], (1, H), b1)
    return p


def init_egnn_params(key, in_node_nf, H, n_layers):
    ks = jax.random.split(key, n_layers + 1)
    be = 1.0 / math.sqrt(in_node_nf)
    return {
        'emb_w': _uniform(ks[0], (in_node_nf, H), be),
        'emb_b': _uniform(jax.random.fold_in(ks[0], 1), (1, H), be),
        'layers': [init_egcl_params(ks[i + 1], H) for i in range(n_layers)],
    }


# ---------------------------------------------------------------------------
# Pure-JAX reference (self-check of the Pallas kernel; default matmul precision)
# ---------------------------------------------------------------------------
def egcl_ref(h, coord, vel, row, col, p, coords_weight=1.0):
    B, N, H = h.shape
    h_row, h_col = h[:, row], h[:, col]
    c_diff = coord[:, row] - coord[:, col]
    radial = jnp.sum(c_diff ** 2, -1, keepdims=True)
    eh = silu(h_row @ p['w1a'] + h_col @ p['w1b'] + radial * p['w1c'] + p['b1'])
    ef = silu(eh @ p['w2'] + p['b2'])
    cm = silu(ef @ p['wc1'] + p['bc1']) @ p['wc2']
    trans = jnp.clip(c_diff * cm, -100.0, 100.0)
    counts = jnp.maximum(jnp.zeros((N,)).at[col].add(1.0), 1.0)
    agg_mean = jnp.zeros((B, N, 3)).at[:, col].add(trans) / counts[None, :, None]
    vscale = silu(h @ p['wv1'] + p['bv1']) @ p['wv2'] + p['bv2']
    new_vel = agg_mean * coords_weight + vscale * vel
    new_coord = coord + new_vel
    agg_sum = jnp.zeros((B, N, H)).at[:, col].add(ef)
    nh = silu(h @ p['wn1a'] + agg_sum @ p['wn1b'] + p['bn1'])
    h_new = nh @ p['wn2'] + p['bn2'] + h
    return h_new, new_coord, new_vel


def egnn_vel_ref(params, h, x, edges, vel, coords_weight=1.0):
    row, col = edges
    h = h @ params['emb_w'] + params['emb_b']
    v = jnp.zeros_like(vel)
    for lp in params['layers']:
        # As in the PyTorch module, every layer receives the ORIGINAL vel.
        h, x, v = egcl_ref(h, x, vel, row, col, lp, coords_weight=coords_weight)
    return h, x, v


# ---------------------------------------------------------------------------
if __name__ == "__main__":
    B, N, in_node_nf, H, n_layers = 4, 8, 1, 32, 4

    key = jax.random.PRNGKey(0)
    k_h, k_x, k_v, k_p = jax.random.split(key, 4)

    h = jax.random.normal(k_h, (B, N, in_node_nf), jnp.float32)
    x = jax.random.normal(k_x, (B, N, 3), jnp.float32)
    vel = jax.random.normal(k_v, (B, N, 3), jnp.float32)

    # fully-connected graph without self loops: E = N*(N-1)
    rows, cols = [], []
    for i in range(N):
        for j in range(N):
            if i != j:
                rows.append(i)
                cols.append(j)
    row = jnp.array(rows, dtype=jnp.int32)
    col = jnp.array(cols, dtype=jnp.int32)
    edges = (row, col)

    params = init_egnn_params(k_p, in_node_nf, H, n_layers)

    h_out, x_out, v_out = egnn_vel_forward(params, h, x, edges, vel)
    jax.block_until_ready((h_out, x_out, v_out))

    # Self-check against a pure-JAX reference.  Tolerances are loosened vs the old
    # Precision.HIGHEST version because the kernel's MXU dots now use DEFAULT
    # precision (bf16-class passes with f32 accumulation).
    h_ref, x_ref, v_ref = egnn_vel_ref(params, h, x, edges, vel)
    assert jnp.allclose(h_out, h_ref, atol=5e-2, rtol=5e-2), \
        float(jnp.max(jnp.abs(h_out - h_ref)))
    assert jnp.allclose(x_out, x_ref, atol=5e-2, rtol=5e-2), \
        float(jnp.max(jnp.abs(x_out - x_ref)))
    assert jnp.allclose(v_out, v_ref, atol=5e-2, rtol=5e-2), \
        float(jnp.max(jnp.abs(v_out - v_ref)))

    print("KERNEL_OK")
</pallas_src>

<mosaic_0001>
module attributes {stable_mosaic.version = 11 : i64} {
  func.func @egnn_vel_kernel(%arg0: i32, %arg1: memref<2x8x1xf32, #tpu.memory_space<vmem>>, %arg2: memref<2x8x3xf32, #tpu.memory_space<vmem>>, %arg3: memref<2x8x3xf32, #tpu.memory_space<vmem>>, %arg4: memref<112x8xf32, #tpu.memory_space<vmem>>, %arg5: memref<56x8xf32, #tpu.memory_space<vmem>>, %arg6: memref<8x56xf32, #tpu.memory_space<vmem>>, %arg7: memref<8x56xf32, #tpu.memory_space<vmem>>, %arg8: memref<1x32xf32, #tpu.memory_space<vmem>>, %arg9: memref<1x32xf32, #tpu.memory_space<vmem>>, %arg10: memref<4x64x32xf32, #tpu.memory_space<vmem>>, %arg11: memref<4x32x64xf32, #tpu.memory_space<vmem>>, %arg12: memref<4x128x32xf32, #tpu.memory_space<vmem>>, %arg13: memref<4x10x32xf32, #tpu.memory_space<vmem>>, %arg14: memref<2x8x128xf32, #tpu.memory_space<vmem>>) attributes {dimension_semantics = [#tpu.dimension_semantics<parallel>], iteration_bounds = array<i64: 2>, scalar_prefetch = 0 : i64, scratch_operands = 0 : i64, tpu.core_type = #tpu.core_type<tc>, window_params = [{transform_indices = @transform_0, window_bounds = array<i64: 2, 8, 1>}, {transform_indices = @transform_1, window_bounds = array<i64: 2, 8, 3>}, {transform_indices = @transform_2, window_bounds = array<i64: 2, 8, 3>}, {pipeline_mode = #tpu.pipeline_mode<synchronous>, transform_indices = @transform_3, window_bounds = array<i64: 112, 8>}, {pipeline_mode = #tpu.pipeline_mode<synchronous>, transform_indices = @transform_4, window_bounds = array<i64: 56, 8>}, {pipeline_mode = #tpu.pipeline_mode<synchronous>, transform_indices = @transform_5, window_bounds = array<i64: 8, 56>}, {pipeline_mode = #tpu.pipeline_mode<synchronous>, transform_indices = @transform_6, window_bounds = array<i64: 8, 56>}, {pipeline_mode = #tpu.pipeline_mode<synchronous>, transform_indices = @transform_7, window_bounds = array<i64: 1, 32>}, {pipeline_mode = #tpu.pipeline_mode<synchronous>, transform_indices = @transform_8, window_bounds = array<i64: 1, 32>}, {pipeline_mode = #tpu.pipeline_mode<synchronous>, transform_indices = @transform_9, window_bounds = array<i64: 4, 64, 32>}, {pipeline_mode = #tpu.pipeline_mode<synchronous>, transform_indices = @transform_10, window_bounds = array<i64: 4, 32, 64>}, {pipeline_mode = #tpu.pipeline_mode<synchronous>, transform_indices = @transform_11, window_bounds = array<i64: 4, 128, 32>}, {pipeline_mode = #tpu.pipeline_mode<synchronous>, transform_indices = @transform_12, window_bounds = array<i64: 4, 10, 32>}, {transform_indices = @transform_13, window_bounds = array<i64: 2, 8, 128>}]} {
    %c0 = arith.constant 0 : index
    %c0_0 = arith.constant 0 : index
    %0 = vector.load %arg4[%c0, %c0_0] : memref<112x8xf32, #tpu.memory_space<vmem>>, vector<112x8xf32>
    %c0_1 = arith.constant 0 : index
    %c0_2 = arith.constant 0 : index
    %1 = vector.load %arg5[%c0_1, %c0_2] : memref<56x8xf32, #tpu.memory_space<vmem>>, vector<56x8xf32>
    %c0_3 = arith.constant 0 : index
    %c0_4 = arith.constant 0 : index
    %2 = vector.load %arg6[%c0_3, %c0_4] : memref<8x56xf32, #tpu.memory_space<vmem>>, vector<8x56xf32>
    %c0_5 = arith.constant 0 : index
    %c0_6 = arith.constant 0 : index
    %3 = vector.load %arg7[%c0_5, %c0_6] : memref<8x56xf32, #tpu.memory_space<vmem>>, vector<8x56xf32>
    %c0_7 = arith.constant 0 : index
    %c0_8 = arith.constant 0 : index
    %c0_9 = arith.constant 0 : index
    %4 = vector.load %arg1[%c0_7, %c0_8, %c0_9] : memref<2x8x1xf32, #tpu.memory_space<vmem>>, vector<2x8x1xf32>
    %5 = vector.shape_cast %4 : vector<2x8x1xf32> to vector<16x1xf32>
    %c0_10 = arith.constant 0 : index
    %c0_11 = arith.constant 0 : index
    %6 = vector.load %arg8[%c0_10, %c0_11] : memref<1x32xf32, #tpu.memory_space<vmem>>, vector<1x32xf32>
    %7 = vector.broadcast %5 : vector<16x1xf32> to vector<16x32xf32>
    %8 = vector.broadcast %6 : vector<1x32xf32> to vector<16x32xf32>
    %9 = arith.mulf %7, %8 : vector<16x32xf32>
    %c0_12 = arith.constant 0 : index
    %c0_13 = arith.constant 0 : index
    %10 = vector.load %arg9[%c0_12, %c0_13] : memref<1x32xf32, #tpu.memory_space<vmem>>, vector<1x32xf32>
    %11 = vector.broadcast %10 : vector<1x32xf32> to vector<16x32xf32>
    %12 = arith.addf %9, %11 : vector<16x32xf32>
    %c0_14 = arith.constant 0 : index
    %c0_15 = arith.constant 0 : index
    %c0_16 = arith.constant 0 : index
    %13 = vector.load %arg2[%c0_14, %c0_15, %c0_16] : memref<2x8x3xf32, #tpu.memory_space<vmem>>, vector<2x8x3xf32>
    %14 = vector.shape_cast %13 : vector<2x8x3xf32> to vector<16x3xf32>
    %c0_17 = arith.constant 0 : index
    %c0_18 = arith.constant 0 : index
    %c0_19 = arith.constant 0 : index
    %15 = vector.load %arg3[%c0_17, %c0_18, %c0_19] : memref<2x8x3xf32, #tpu.memory_space<vmem>>, vector<2x8x3xf32>
    %16 = vector.shape_cast %15 : vector<2x8x3xf32> to vector<16x3xf32>
    %c0_20 = arith.constant 0 : index
    %c0_21 = arith.constant 0 : index
    %c0_22 = arith.constant 0 : index
    %17 = vector.load %arg10[%c0_20, %c0_21, %c0_22] : memref<4x64x32xf32, #tpu.memory_space<vmem>>, vector<1x64x32xf32>
    %18 = vector.shape_cast %17 : vector<1x64x32xf32> to vector<64x32xf32>
    %19 = vector.extract_strided_slice %18 {offsets = [0, 0], sizes = [32, 32], strides = [1, 1]} : vector<64x32xf32> to vector<32x32xf32>
    %20 = vector.extract_strided_slice %18 {offsets = [32, 0], sizes = [32, 32], strides = [1, 1]} : vector<64x32xf32> to vector<32x32xf32>
    %c0_23 = arith.constant 0 : index
    %c0_24 = arith.constant 0 : index
    %c0_25 = arith.constant 0 : index
    %21 = vector.load %arg11[%c0_23, %c0_24, %c0_25] : memref<4x32x64xf32, #tpu.memory_space<vmem>>, vector<1x32x64xf32>
    %22 = vector.shape_cast %21 : vector<1x32x64xf32> to vector<32x64xf32>
    %c0_26 = arith.constant 0 : index
    %c0_27 = arith.constant 0 : index
    %c0_28 = arith.constant 0 : index
    %23 = vector.load %arg12[%c0_26, %c0_27, %c0_28] : memref<4x128x32xf32, #tpu.memory_space<vmem>>, vector<1x128x32xf32>
    %24 = vector.shape_cast %23 : vector<1x128x32xf32> to vector<128x32xf32>
    %25 = vector.extract_strided_slice %24 {offsets = [0, 0], sizes = [32, 32], strides = [1, 1]} : vector<128x32xf32> to vector<32x32xf32>
    %26 = vector.extract_strided_slice %24 {offsets = [32, 0], sizes = [32, 32], strides = [1, 1]} : vector<128x32xf32> to vector<32x32xf32>
    %27 = vector.extract_strided_slice %24 {offsets = [64, 0], sizes = [32, 32], strides = [1, 1]} : vector<128x32xf32> to vector<32x32xf32>
    %28 = vector.extract_strided_slice %24 {offsets = [96, 0], sizes = [32, 32], strides = [1, 1]} : vector<128x32xf32> to vector<32x32xf32>
    %c0_29 = arith.constant 0 : index
    %c0_30 = arith.constant 0 : index
    %c0_31 = arith.constant 0 : index
    %29 = vector.load %arg13[%c0_29, %c0_30, %c0_31] : memref<4x10x32xf32, #tpu.memory_space<vmem>>, vector<1x10x32xf32>
    %30 = vector.shape_cast %29 : vector<1x10x32xf32> to vector<10x32xf32>
    %31 = vector.extract_strided_slice %30 {offsets = [0, 0], sizes = [1, 32], strides = [1, 1]} : vector<10x32xf32> to vector<1x32xf32>
    %32 = vector.extract_strided_slice %30 {offsets = [1, 0], sizes = [1, 32], strides = [1, 1]} : vector<10x32xf32> to vector<1x32xf32>
    %33 = vector.extract_strided_slice %30 {offsets = [2, 0], sizes = [1, 32], strides = [1, 1]} : vector<10x32xf32> to vector<1x32xf32>
    %34 = vector.extract_strided_slice %30 {offsets = [3, 0], sizes = [1, 32], strides = [1, 1]} : vector<10x32xf32> to vector<1x32xf32>
    %35 = vector.extract_strided_slice %30 {offsets = [4, 0], sizes = [1, 32], strides = [1, 1]} : vector<10x32xf32> to vector<1x32xf32>
    %36 = vector.extract_strided_slice %30 {offsets = [5, 0], sizes = [1, 32], strides = [1, 1]} : vector<10x32xf32> to vector<1x32xf32>
    %37 = vector.extract_strided_slice %30 {offsets = [6, 0], sizes = [1, 32], strides = [1, 1]} : vector<10x32xf32> to vector<1x32xf32>
    %38 = vector.extract_strided_slice %30 {offsets = [7, 0], sizes = [1, 32], strides = [1, 1]} : vector<10x32xf32> to vector<1x32xf32>
    %39 = vector.extract_strided_slice %30 {offsets = [8, 0], sizes = [1, 32], strides = [1, 1]} : vector<10x32xf32> to vector<1x32xf32>
    %40 = vector.extract_strided_slice %30 {offsets = [9, 0], sizes = [1, 1], strides = [1, 1]} : vector<10x32xf32> to vector<1x1xf32>
    %41 = vector.extract_strided_slice %12 {offsets = [0, 0], sizes = [8, 32], strides = [1, 1]} : vector<16x32xf32> to vector<8x32xf32>
    %42 = vector.extract_strided_slice %14 {offsets = [0, 0], sizes = [8, 3], strides = [1, 1]} : vector<16x3xf32> to vector<8x3xf32>
    %cst = arith.constant dense<0.000000e+00> : vector<112x32xf32>
    %43 = tpu.matmul %0, %41, %cst {dimension_numbers = #tpu.dot_dimension_numbers<[1], [0], [0], [1], [0, 0, 1, 1], [], []>} : vector<112x8xf32>, vector<8x32xf32>, vector<112x32xf32> -> vector<112x32xf32>
    %44 = vector.extract_strided_slice %43 {offsets = [0, 0], sizes = [56, 32], strides = [1, 1]} : vector<112x32xf32> to vector<56x32xf32>
    %45 = vector.extract_strided_slice %43 {offsets = [56, 0], sizes = [56, 32], strides = [1, 1]} : vector<112x32xf32> to vector<56x32xf32>
    %cst_32 = arith.constant dense<0.000000e+00> : vector<56x3xf32>
    %46 = tpu.matmul %1, %42, %cst_32 {dimension_numbers = #tpu.dot_dimension_numbers<[1], [0], [0], [1], [0, 0, 1, 1], [], []>} : vector<56x8xf32>, vector<8x3xf32>, vector<56x3xf32> -> vector<56x3xf32>
    %47 = vector.extract_strided_slice %12 {offsets = [8, 0], sizes = [8, 32], strides = [1, 1]} : vector<16x32xf32> to vector<8x32xf32>
    %48 = vector.extract_strided_slice %14 {offsets = [8, 0], sizes = [8, 3], strides = [1, 1]} : vector<16x3xf32> to vector<8x3xf32>
    %cst_33 = arith.constant dense<0.000000e+00> : vector<112x32xf32>
    %49 = tpu.matmul %0, %47, %cst_33 {dimension_numbers = #tpu.dot_dimension_numbers<[1], [0], [0], [1], [0, 0, 1, 1], [], []>} : vector<112x8xf32>, vector<8x32xf32>, vector<112x32xf32> -> vector<112x32xf32>
    %50 = vector.extract_strided_slice %49 {offsets = [0, 0], sizes = [56, 32], strides = [1, 1]} : vector<112x32xf32> to vector<56x32xf32>
    %51 = vector.extract_strided_slice %49 {offsets = [56, 0], sizes = [56, 32], strides = [1, 1]} : vector<112x32xf32> to vector<56x32xf32>
    %cst_34 = arith.constant dense<0.000000e+00> : vector<56x3xf32>
    %52 = tpu.matmul %1, %48, %cst_34 {dimension_numbers = #tpu.dot_dimension_numbers<[1], [0], [0], [1], [0, 0, 1, 1], [], []>} : vector<56x8xf32>, vector<8x3xf32>, vector<56x3xf32> -> vector<56x3xf32>
    %53 = tpu.concatenate %44, %50 in 0 : vector<56x32xf32>, vector<56x32xf32> -> vector<112x32xf32>
    %54 = tpu.concatenate %45, %51 in 0 : vector<56x32xf32>, vector<56x32xf32> -> vector<112x32xf32>
    %55 = tpu.concatenate %46, %52 in 0 : vector<56x3xf32>, vector<56x3xf32> -> vector<112x3xf32>
    %56 = arith.mulf %55, %55 : vector<112x3xf32>
    %cst_35 = arith.constant dense<0.000000e+00> : vector<112xf32>
    %57 = vector.multi_reduction <add>, %56, %cst_35 [1] : vector<112x3xf32> to vector<112xf32>
    %58 = vector.shape_cast %57 : vector<112xf32> to vector<112x1xf32>
    %cst_36 = arith.constant dense<0.000000e+00> : vector<112x32xf32>
    %59 = tpu.matmul %53, %19, %cst_36 {dimension_numbers = #tpu.dot_dimension_numbers<[1], [0], [0], [1], [0, 0, 1, 1], [], []>} : vector<112x32xf32>, vector<32x32xf32>, vector<112x32xf32> -> vector<112x32xf32>
    %cst_37 = arith.constant dense<0.000000e+00> : vector<112x32xf32>
    %60 = tpu.matmul %54, %20, %cst_37 {dimension_numbers = #tpu.dot_dimension_numbers<[1], [0], [0], [1], [0, 0, 1, 1], [], []>} : vector<112x32xf32>, vector<32x32xf32>, vector<112x32xf32> -> vector<112x32xf32>
    %61 = arith.addf %59, %60 : vector<112x32xf32>
    %62 = vector.broadcast %58 : vector<112x1xf32> to vector<112x32xf32>
    %63 = vector.broadcast %37 : vector<1x32xf32> to vector<112x32xf32>
    %64 = arith.mulf %62, %63 : vector<112x32xf32>
    %65 = arith.addf %61, %64 : vector<112x32xf32>
    %66 = vector.broadcast %31 : vector<1x32xf32> to vector<112x32xf32>
    %67 = arith.addf %65, %66 : vector<112x32xf32>
    %68 = arith.negf %67 : vector<112x32xf32>
    %69 = math.exp %68 : vector<112x32xf32>
    %cst_38 = arith.constant 1.000000e+00 : f32
    %70 = vector.broadcast %cst_38 : f32 to vector<112x32xf32>
    %71 = arith.addf %70, %69 : vector<112x32xf32>
    %72 = arith.divf %70, %71 : vector<112x32xf32>
    %73 = arith.mulf %67, %72 : vector<112x32xf32>
    %cst_39 = arith.constant dense<0.000000e+00> : vector<112x32xf32>
    %74 = tpu.matmul %73, %25, %cst_39 {dimension_numbers = #tpu.dot_dimension_numbers<[1], [0], [0], [1], [0, 0, 1, 1], [], []>} : vector<112x32xf32>, vector<32x32xf32>, vector<112x32xf32> -> vector<112x32xf32>
    %75 = vector.broadcast %32 : vector<1x32xf32> to vector<112x32xf32>
    %76 = arith.addf %74, %75 : vector<112x32xf32>
    %77 = arith.negf %76 : vector<112x32xf32>
    %78 = math.exp %77 : vector<112x32xf32>
    %cst_40 = arith.constant 1.000000e+00 : f32
    %79 = vector.broadcast %cst_40 : f32 to vector<112x32xf32>
    %80 = arith.addf %79, %78 : vector<112x32xf32>
    %81 = arith.divf %79, %80 : vector<112x32xf32>
    %82 = arith.mulf %76, %81 : vector<112x32xf32>
    %cst_41 = arith.constant dense<0.000000e+00> : vector<112x32xf32>
    %83 = tpu.matmul %82, %26, %cst_41 {dimension_numbers = #tpu.dot_dimension_numbers<[1], [0], [0], [1], [0, 0, 1, 1], [], []>} : vector<112x32xf32>, vector<32x32xf32>, vector<112x32xf32> -> vector<112x32xf32>
    %84 = vector.broadcast %33 : vector<1x32xf32> to vector<112x32xf32>
    %85 = arith.addf %83, %84 : vector<112x32xf32>
    %86 = arith.negf %85 : vector<112x32xf32>
    %87 = math.exp %86 : vector<112x32xf32>
    %cst_42 = arith.constant 1.000000e+00 : f32
    %88 = vector.broadcast %cst_42 : f32 to vector<112x32xf32>
    %89 = arith.addf %88, %87 : vector<112x32xf32>
    %90 = arith.divf %88, %89 : vector<112x32xf32>
    %91 = arith.mulf %85, %90 : vector<112x32xf32>
    %92 = vector.broadcast %38 : vector<1x32xf32> to vector<112x32xf32>
    %93 = arith.mulf %91, %92 : vector<112x32xf32>
    %cst_43 = arith.constant dense<0.000000e+00> : vector<112xf32>
    %94 = vector.multi_reduction <add>, %93, %cst_43 [1] : vector<112x32xf32> to vector<112xf32>
    %95 = vector.shape_cast %94 : vector<112xf32> to vector<112x1xf32>
    %96 = vector.broadcast %95 : vector<112x1xf32> to vector<112x3xf32>
    %97 = arith.mulf %55, %96 : vector<112x3xf32>
    %cst_44 = arith.constant -1.000000e+02 : f32
    %cst_45 = arith.constant 1.000000e+02 : f32
    %98 = vector.broadcast %cst_44 : f32 to vector<112x3xf32>
    %99 = arith.maximumf %98, %97 : vector<112x3xf32>
    %100 = vector.broadcast %cst_45 : f32 to vector<112x3xf32>
    %101 = arith.minimumf %100, %99 : vector<112x3xf32>
    %cst_46 = arith.constant dense<0.000000e+00> : vector<16x64xf32>
    %102 = tpu.matmul %12, %22, %cst_46 {dimension_numbers = #tpu.dot_dimension_numbers<[1], [0], [0], [1], [0, 0, 1, 1], [], []>} : vector<16x32xf32>, vector<32x64xf32>, vector<16x64xf32> -> vector<16x64xf32>
    %103 = vector.extract_strided_slice %102 {offsets = [0, 0], sizes = [16, 32], strides = [1, 1]} : vector<16x64xf32> to vector<16x32xf32>
    %104 = vector.broadcast %34 : vector<1x32xf32> to vector<16x32xf32>
    %105 = arith.addf %103, %104 : vector<16x32xf32>
    %106 = arith.negf %105 : vector<16x32xf32>
    %107 = math.exp %106 : vector<16x32xf32>
    %cst_47 = arith.constant 1.000000e+00 : f32
    %108 = vector.broadcast %cst_47 : f32 to vector<16x32xf32>
    %109 = arith.addf %108, %107 : vector<16x32xf32>
    %110 = arith.divf %108, %109 : vector<16x32xf32>
    %111 = arith.mulf %105, %110 : vector<16x32xf32>
    %112 = vector.broadcast %39 : vector<1x32xf32> to vector<16x32xf32>
    %113 = arith.mulf %111, %112 : vector<16x32xf32>
    %cst_48 = arith.constant dense<0.000000e+00> : vector<16xf32>
    %114 = vector.multi_reduction <add>, %113, %cst_48 [1] : vector<16x32xf32> to vector<16xf32>
    %115 = vector.shape_cast %114 : vector<16xf32> to vector<16x1xf32>
    %116 = vector.broadcast %40 : vector<1x1xf32> to vector<16x1xf32>
    %117 = arith.addf %115, %116 : vector<16x1xf32>
    %118 = vector.extract_strided_slice %102 {offsets = [0, 32], sizes = [16, 32], strides = [1, 1]} : vector<16x64xf32> to vector<16x32xf32>
    %119 = vector.extract_strided_slice %82 {offsets = [0, 0], sizes = [56, 32], strides = [1, 1]} : vector<112x32xf32> to vector<56x32xf32>
    %120 = vector.extract_strided_slice %101 {offsets = [0, 0], sizes = [56, 3], strides = [1, 1]} : vector<112x3xf32> to vector<56x3xf32>
    %cst_49 = arith.constant dense<0.000000e+00> : vector<8x32xf32>
    %121 = tpu.matmul %2, %119, %cst_49 {dimension_numbers = #tpu.dot_dimension_numbers<[1], [0], [0], [1], [0, 0, 1, 1], [], []>} : vector<8x56xf32>, vector<56x32xf32>, vector<8x32xf32> -> vector<8x32xf32>
    %cst_50 = arith.constant dense<0.000000e+00> : vector<8x3xf32>
    %122 = tpu.matmul %3, %120, %cst_50 {dimension_numbers = #tpu.dot_dimension_numbers<[1], [0], [0], [1], [0, 0, 1, 1], [], []>} : vector<8x56xf32>, vector<56x3xf32>, vector<8x3xf32> -> vector<8x3xf32>
    %123 = vector.extract_strided_slice %82 {offsets = [56, 0], sizes = [56, 32], strides = [1, 1]} : vector<112x32xf32> to vector<56x32xf32>
    %124 = vector.extract_strided_slice %101 {offsets = [56, 0], sizes = [56, 3], strides = [1, 1]} : vector<112x3xf32> to vector<56x3xf32>
    %cst_51 = arith.constant dense<0.000000e+00> : vector<8x32xf32>
    %125 = tpu.matmul %2, %123, %cst_51 {dimension_numbers = #tpu.dot_dimension_numbers<[1], [0], [0], [1], [0, 0, 1, 1], [], []>} : vector<8x56xf32>, vector<56x32xf32>, vector<8x32xf32> -> vector<8x32xf32>
    %cst_52 = arith.constant dense<0.000000e+00> : vector<8x3xf32>
    %126 = tpu.matmul %3, %124, %cst_52 {dimension_numbers = #tpu.dot_dimension_numbers<[1], [0], [0], [1], [0, 0, 1, 1], [], []>} : vector<8x56xf32>, vector<56x3xf32>, vector<8x3xf32> -> vector<8x3xf32>
    %127 = tpu.concatenate %121, %125 in 0 : vector<8x32xf32>, vector<8x32xf32> -> vector<16x32xf32>
    %128 = tpu.concatenate %122, %126 in 0 : vector<8x3xf32>, vector<8x3xf32> -> vector<16x3xf32>
    %cst_53 = arith.constant 1.000000e+00 : f32
    %129 = vector.broadcast %cst_53 : f32 to vector<16x3xf32>
    %130 = arith.mulf %128, %129 : vector<16x3xf32>
    %131 = vector.broadcast %117 : vector<16x1xf32> to vector<16x3xf32>
    %132 = arith.mulf %131, %16 : vector<16x3xf32>
    %133 = arith.addf %130, %132 : vector<16x3xf32>
    %134 = arith.addf %14, %133 : vector<16x3xf32>
    %cst_54 = arith.constant dense<0.000000e+00> : vector<16x32xf32>
    %135 = tpu.matmul %127, %27, %cst_54 {dimension_numbers = #tpu.dot_dimension_numbers<[1], [0], [0], [1], [0, 0, 1, 1], [], []>} : vector<16x32xf32>, vector<32x32xf32>, vector<16x32xf32> -> vector<16x32xf32>
    %136 = arith.addf %118, %135 : vector<16x32xf32>
    %137 = vector.broadcast %35 : vector<1x32xf32> to vector<16x32xf32>
    %138 = arith.addf %136, %137 : vector<16x32xf32>
    %139 = arith.negf %138 : vector<16x32xf32>
    %140 = math.exp %139 : vector<16x32xf32>
    %cst_55 = arith.constant 1.000000e+00 : f32
    %141 = vector.broadcast %cst_55 : f32 to vector<16x32xf32>
    %142 = arith.addf %141, %140 : vector<16x32xf32>
    %143 = arith.divf %141, %142 : vector<16x32xf32>
    %144 = arith.mulf %138, %143 : vector<16x32xf32>
    %cst_56 = arith.constant dense<0.000000e+00> : vector<16x32xf32>
    %145 = tpu.matmul %144, %28, %cst_56 {dimension_numbers = #tpu.dot_dimension_numbers<[1], [0], [0], [1], [0, 0, 1, 1], [], []>} : vector<16x32xf32>, vector<32x32xf32>, vector<16x32xf32> -> vector<16x32xf32>
    %146 = vector.broadcast %36 : vector<1x32xf32> to vector<16x32xf32>
    %147 = arith.addf %145, %146 : vector<16x32xf32>
    %148 = arith.addf %147, %12 : vector<16x32xf32>
    %c1 = arith.constant 1 : index
    %c0_57 = arith.constant 0 : index
    %c0_58 = arith.constant 0 : index
    %149 = vector.load %arg10[%c1, %c0_57, %c0_58] : memref<4x64x32xf32, #tpu.memory_space<vmem>>, vector<1x64x32xf32>
    %150 = vector.shape_cast %149 : vector<1x64x32xf32> to vector<64x32xf32>
    %151 = vector.extract_strided_slice %150 {offsets = [0, 0], sizes = [32, 32], strides = [1, 1]} : vector<64x32xf32> to vector<32x32xf32>
    %152 = vector.extract_strided_slice %150 {offsets = [32, 0], sizes = [32, 32], strides = [1, 1]} : vector<64x32xf32> to vector<32x32xf32>
    %c1_59 = arith.constant 1 : index
    %c0_60 = arith.constant 0 : index
    %c0_61 = arith.constant 0 : index
    %153 = vector.load %arg11[%c1_59, %c0_60, %c0_61] : memref<4x32x64xf32, #tpu.memory_space<vmem>>, vector<1x32x64xf32>
    %154 = vector.shape_cast %153 : vector<1x32x64xf32> to vector<32x64xf32>
    %c1_62 = arith.constant 1 : index
    %c0_63 = arith.constant 0 : index
    %c0_64 = arith.constant 0 : index
    %155 = vector.load %arg12[%c1_62, %c0_63, %c0_64] : memref<4x128x32xf32, #tpu.memory_space<vmem>>, vector<1x128x32xf32>
    %156 = vector.shape_cast %155 : vector<1x128x32xf32> to vector<128x32xf32>
    %157 = vector.extract_strided_slice %156 {offsets = [0, 0], sizes = [32, 32], strides = [1, 1]} : vector<128x32xf32> to vector<32x32xf32>
    %158 = vector.extract_strided_slice %156 {offsets = [32, 0], sizes = [32, 32], strides = [1, 1]} : vector<128x32xf32> to vector<32x32xf32>
    %159 = vector.extract_strided_slice %156 {offsets = [64, 0], sizes = [32, 32], strides = [1, 1]} : vector<128x32xf32> to vector<32x32xf32>
    %160 = vector.extract_strided_slice %156 {offsets = [96, 0], sizes = [32, 32], strides = [1, 1]} : vector<128x32xf32> to vector<32x32xf32>
    %c1_65 = arith.constant 1 : index
    %c0_66 = arith.constant 0 : index
    %c0_67 = arith.constant 0 : index
    %161 = vector.load %arg13[%c1_65, %c0_66, %c0_67] : memref<4x10x32xf32, #tpu.memory_space<vmem>>, vector<1x10x32xf32>
    %162 = vector.shape_cast %161 : vector<1x10x32xf32> to vector<10x32xf32>
    %163 = vector.extract_strided_slice %162 {offsets = [0, 0], sizes = [1, 32], strides = [1, 1]} : vector<10x32xf32> to vector<1x32xf32>
    %164 = vector.extract_strided_slice %162 {offsets = [1, 0], sizes = [1, 32], strides = [1, 1]} : vector<10x32xf32> to vector<1x32xf32>
    %165 = vector.extract_strided_slice %162 {offsets = [2, 0], sizes = [1, 32], strides = [1, 1]} : vector<10x32xf32> to vector<1x32xf32>
    %166 = vector.extract_strided_slice %162 {offsets = [3, 0], sizes = [1, 32], strides = [1, 1]} : vector<10x32xf32> to vector<1x32xf32>
    %167 = vector.extract_strided_slice %162 {offsets = [4, 0], sizes = [1, 32], strides = [1, 1]} : vector<10x32xf32> to vector<1x32xf32>
    %168 = vector.extract_strided_slice %162 {offsets = [5, 0], sizes = [1, 32], strides = [1, 1]} : vector<10x32xf32> to vector<1x32xf32>
    %169 = vector.extract_strided_slice %162 {offsets = [6, 0], sizes = [1, 32], strides = [1, 1]} : vector<10x32xf32> to vector<1x32xf32>
    %170 = vector.extract_strided_slice %162 {offsets = [7, 0], sizes = [1, 32], strides = [1, 1]} : vector<10x32xf32> to vector<1x32xf32>
    %171 = vector.extract_strided_slice %162 {offsets = [8, 0], sizes = [1, 32], strides = [1, 1]} : vector<10x32xf32> to vector<1x32xf32>
    %172 = vector.extract_strided_slice %162 {offsets = [9, 0], sizes = [1, 1], strides = [1, 1]} : vector<10x32xf32> to vector<1x1xf32>
    %173 = vector.extract_strided_slice %148 {offsets = [0, 0], sizes = [8, 32], strides = [1, 1]} : vector<16x32xf32> to vector<8x32xf32>
    %174 = vector.extract_strided_slice %134 {offsets = [0, 0], sizes = [8, 3], strides = [1, 1]} : vector<16x3xf32> to vector<8x3xf32>
    %cst_68 = arith.constant dense<0.000000e+00> : vector<112x32xf32>
    %175 = tpu.matmul %0, %173, %cst_68 {dimension_numbers = #tpu.dot_dimension_numbers<[1], [0], [0], [1], [0, 0, 1, 1], [], []>} : vector<112x8xf32>, vector<8x32xf32>, vector<112x32xf32> -> vector<112x32xf32>
    %176 = vector.extract_strided_slice %175 {offsets = [0, 0], sizes = [56, 32], strides = [1, 1]} : vector<112x32xf32> to vector<56x32xf32>
    %177 = vector.extract_strided_slice %175 {offsets = [56, 0], sizes = [56, 32], strides = [1, 1]} : vector<112x32xf32> to vector<56x32xf32>
    %cst_69 = arith.constant dense<0.000000e+00> : vector<56x3xf32>
    %178 = tpu.matmul %1, %174, %cst_69 {dimension_numbers = #tpu.dot_dimension_numbers<[1], [0], [0], [1], [0, 0, 1, 1], [], []>} : vector<56x8xf32>, vector<8x3xf32>, vector<56x3xf32> -> vector<56x3xf32>
    %179 = vector.extract_strided_slice %148 {offsets = [8, 0], sizes = [8, 32], strides = [1, 1]} : vector<16x32xf32> to vector<8x32xf32>
    %180 = vector.extract_strided_slice %134 {offsets = [8, 0], sizes = [8, 3], strides = [1, 1]} : vector<16x3xf32> to vector<8x3xf32>
    %cst_70 = arith.constant dense<0.000000e+00> : vector<112x32xf32>
    %181 = tpu.matmul %0, %179, %cst_70 {dimension_numbers = #tpu.dot_dimension_numbers<[1], [0], [0], [1], [0, 0, 1, 1], [], []>} : vector<112x8xf32>, vector<8x32xf32>, vector<112x32xf32> -> vector<112x32xf32>
    %182 = vector.extract_strided_slice %181 {offsets = [0, 0], sizes = [56, 32], strides = [1, 1]} : vector<112x32xf32> to vector<56x32xf32>
    %183 = vector.extract_strided_slice %181 {offsets = [56, 0], sizes = [56, 32], strides = [1, 1]} : vector<112x32xf32> to vector<56x32xf32>
    %cst_71 = arith.constant dense<0.000000e+00> : vector<56x3xf32>
    %184 = tpu.matmul %1, %180, %cst_71 {dimension_numbers = #tpu.dot_dimension_numbers<[1], [0], [0], [1], [0, 0, 1, 1], [], []>} : vector<56x8xf32>, vector<8x3xf32>, vector<56x3xf32> -> vector<56x3xf32>
    %185 = tpu.concatenate %176, %182 in 0 : vector<56x32xf32>, vector<56x32xf32> -> vector<112x32xf32>
    %186 = tpu.concatenate %177, %183 in 0 : vector<56x32xf32>, vector<56x32xf32> -> vector<112x32xf32>
    %187 = tpu.concatenate %178, %184 in 0 : vector<56x3xf32>, vector<56x3xf32> -> vector<112x3xf32>
    %188 = arith.mulf %187, %187 : vector<112x3xf32>
    %cst_72 = arith.constant dense<0.000000e+00> : vector<112xf32>
    %189 = vector.multi_reduction <add>, %188, %cst_72 [1] : vector<112x3xf32> to vector<112xf32>
    %190 = vector.shape_cast %189 : vector<112xf32> to vector<112x1xf32>
    %cst_73 = arith.constant dense<0.000000e+00> : vector<112x32xf32>
    %191 = tpu.matmul %185, %151, %cst_73 {dimension_numbers = #tpu.dot_dimension_numbers<[1], [0], [0], [1], [0, 0, 1, 1], [], []>} : vector<112x32xf32>, vector<32x32xf32>, vector<112x32xf32> -> vector<112x32xf32>
    %cst_74 = arith.constant dense<0.000000e+00> : vector<112x32xf32>
    %192 = tpu.matmul %186, %152, %cst_74 {dimension_numbers = #tpu.dot_dimension_numbers<[1], [0], [0], [1], [0, 0, 1, 1], [], []>} : vector<112x32xf32>, vector<32x32xf32>, vector<112x32xf32> -> vector<112x32xf32>
    %193 = arith.addf %191, %192 : vector<112x32xf32>
    %194 = vector.broadcast %190 : vector<112x1xf32> to vector<112x32xf32>
    %195 = vector.broadcast %169 : vector<1x32xf32> to vector<112x32xf32>
    %196 = arith.mulf %194, %195 : vector<112x32xf32>
    %197 = arith.addf %193, %196 : vector<112x32xf32>
    %198 = vector.broadcast %163 : vector<1x32xf32> to vector<112x32xf32>
    %199 = arith.addf %197, %198 : vector<112x32xf32>
    %200 = arith.negf %199 : vector<112x32xf32>
    %201 = math.exp %200 : vector<112x32xf32>
    %cst_75 = arith.constant 1.000000e+00 : f32
    %202 = vector.broadcast %cst_75 : f32 to vector<112x32xf32>
    %203 = arith.addf %202, %201 : vector<112x32xf32>
    %204 = arith.divf %202, %203 : vector<112x32xf32>
    %205 = arith.mulf %199, %204 : vector<112x32xf32>
    %cst_76 = arith.constant dense<0.000000e+00> : vector<112x32xf32>
    %206 = tpu.matmul %205, %157, %cst_76 {dimension_numbers = #tpu.dot_dimension_numbers<[1], [0], [0], [1], [0, 0, 1, 1], [], []>} : vector<112x32xf32>, vector<32x32xf32>, vector<112x32xf32> -> vector<112x32xf32>
    %207 = vector.broadcast %164 : vector<1x32xf32> to vector<112x32xf32>
    %208 = arith.addf %206, %207 : vector<112x32xf32>
    %209 = arith.negf %208 : vector<112x32xf32>
    %210 = math.exp %209 : vector<112x32xf32>
    %cst_77 = arith.constant 1.000000e+00 : f32
    %211 = vector.broadcast %cst_77 : f32 to vector<112x32xf32>
    %212 = arith.addf %211, %210 : vector<112x32xf32>
    %213 = arith.divf %211, %212 : vector<112x32xf32>
    %214 = arith.mulf %208, %213 : vector<112x32xf32>
    %cst_78 = arith.constant dense<0.000000e+00> : vector<112x32xf32>
    %215 = tpu.matmul %214, %158, %cst_78 {dimension_numbers = #tpu.dot_dimension_numbers<[1], [0], [0], [1], [0, 0, 1, 1], [], []>} : vector<112x32xf32>, vector<32x32xf32>, vector<112x32xf32> -> vector<112x32xf32>
    %216 = vector.broadcast %165 : vector<1x32xf32> to vector<112x32xf32>
    %217 = arith.addf %215, %216 : vector<112x32xf32>
    %218 = arith.negf %217 : vector<112x32xf32>
    %219 = math.exp %218 : vector<112x32xf32>
    %cst_79 = arith.constant 1.000000e+00 : f32
    %220 = vector.broadcast %cst_79 : f32 to vector<112x32xf32>
    %221 = arith.addf %220, %219 : vector<112x32xf32>
    %222 = arith.divf %220, %221 : vector<112x32xf32>
    %223 = arith.mulf %217, %222 : vector<112x32xf32>
    %224 = vector.broadcast %170 : vector<1x32xf32> to vector<112x32xf32>
    %225 = arith.mulf %223, %224 : vector<112x32xf32>
    %cst_80 = arith.constant dense<0.000000e+00> : vector<112xf32>
    %226 = vector.multi_reduction <add>, %225, %cst_80 [1] : vector<112x32xf32> to vector<112xf32>
    %227 = vector.shape_cast %226 : vector<112xf32> to vector<112x1xf32>
    %228 = vector.broadcast %227 : vector<112x1xf32> to vector<112x3xf32>
    %229 = arith.mulf %187, %228 : vector<112x3xf32>
    %cst_81 = arith.constant -1.000000e+02 : f32
    %cst_82 = arith.constant 1.000000e+02 : f32
    %230 = vector.broadcast %cst_81 : f32 to vector<112x3xf32>
    %231 = arith.maximumf %230, %229 : vector<112x3xf32>
    %232 = vector.broadcast %cst_82 : f32 to vector<112x3xf32>
    %233 = arith.minimumf %232, %231 : vector<112x3xf32>
    %cst_83 = arith.constant dense<0.000000e+00> : vector<16x64xf32>
    %234 = tpu.matmul %148, %154, %cst_83 {dimension_numbers = #tpu.dot_dimension_numbers<[1], [0], [0], [1], [0, 0, 1, 1], [], []>} : vector<16x32xf32>, vector<32x64xf32>, vector<16x64xf32> -> vector<16x64xf32>
    %235 = vector.extract_strided_slice %234 {offsets = [0, 0], sizes = [16, 32], strides = [1, 1]} : vector<16x64xf32> to vector<16x32xf32>
    %236 = vector.broadcast %166 : vector<1x32xf32> to vector<16x32xf32>
    %237 = arith.addf %235, %236 : vector<16x32xf32>
    %238 = arith.negf %237 : vector<16x32xf32>
    %239 = math.exp %238 : vector<16x32xf32>
    %cst_84 = arith.constant 1.000000e+00 : f32
    %240 = vector.broadcast %cst_84 : f32 to vector<16x32xf32>
    %241 = arith.addf %240, %239 : vector<16x32xf32>
    %242 = arith.divf %240, %241 : vector<16x32xf32>
    %243 = arith.mulf %237, %242 : vector<16x32xf32>
    %244 = vector.broadcast %171 : vector<1x32xf32> to vector<16x32xf32>
    %245 = arith.mulf %243, %244 : vector<16x32xf32>
    %cst_85 = arith.constant dense<0.000000e+00> : vector<16xf32>
    %246 = vector.multi_reduction <add>, %245, %cst_85 [1] : vector<16x32xf32> to vector<16xf32>
    %247 = vector.shape_cast %246 : vector<16xf32> to vector<16x1xf32>
    %248 = vector.broadcast %172 : vector<1x1xf32> to vector<16x1xf32>
    %249 = arith.addf %247, %248 : vector<16x1xf32>
    %250 = vector.extract_strided_slice %234 {offsets = [0, 32], sizes = [16, 32], strides = [1, 1]} : vector<16x64xf32> to vector<16x32xf32>
    %251 = vector.extract_strided_slice %214 {offsets = [0, 0], sizes = [56, 32], strides = [1, 1]} : vector<112x32xf32> to vector<56x32xf32>
    %252 = vector.extract_strided_slice %233 {offsets = [0, 0], sizes = [56, 3], strides = [1, 1]} : vector<112x3xf32> to vector<56x3xf32>
    %cst_86 = arith.constant dense<0.000000e+00> : vector<8x32xf32>
    %253 = tpu.matmul %2, %251, %cst_86 {dimension_numbers = #tpu.dot_dimension_numbers<[1], [0], [0], [1], [0, 0, 1, 1], [], []>} : vector<8x56xf32>, vector<56x32xf32>, vector<8x32xf32> -> vector<8x32xf32>
    %cst_87 = arith.constant dense<0.000000e+00> : vector<8x3xf32>
    %254 = tpu.matmul %3, %252, %cst_87 {dimension_numbers = #tpu.dot_dimension_numbers<[1], [0], [0], [1], [0, 0, 1, 1], [], []>} : vector<8x56xf32>, vector<56x3xf32>, vector<8x3xf32> -> vector<8x3xf32>
    %255 = vector.extract_strided_slice %214 {offsets = [56, 0], sizes = [56, 32], strides = [1, 1]} : vector<112x32xf32> to vector<56x32xf32>
    %256 = vector.extract_strided_slice %233 {offsets = [56, 0], sizes = [56, 3], strides = [1, 1]} : vector<112x3xf32> to vector<56x3xf32>
    %cst_88 = arith.constant dense<0.000000e+00> : vector<8x32xf32>
    %257 = tpu.matmul %2, %255, %cst_88 {dimension_numbers = #tpu.dot_dimension_numbers<[1], [0], [0], [1], [0, 0, 1, 1], [], []>} : vector<8x56xf32>, vector<56x32xf32>, vector<8x32xf32> -> vector<8x32xf32>
    %cst_89 = arith.constant dense<0.000000e+00> : vector<8x3xf32>
    %258 = tpu.matmul %3, %256, %cst_89 {dimension_numbers = #tpu.dot_dimension_numbers<[1], [0], [0], [1], [0, 0, 1, 1], [], []>} : vector<8x56xf32>, vector<56x3xf32>, vector<8x3xf32> -> vector<8x3xf32>
    %259 = tpu.concatenate %253, %257 in 0 : vector<8x32xf32>, vector<8x32xf32> -> vector<16x32xf32>
    %260 = tpu.concatenate %254, %258 in 0 : vector<8x3xf32>, vector<8x3xf32> -> vector<16x3xf32>
    %cst_90 = arith.constant 1.000000e+00 : f32
    %261 = vector.broadcast %cst_90 : f32 to vector<16x3xf32>
    %262 = arith.mulf %260, %261 : vector<16x3xf32>
    %263 = vector.broadcast %249 : vector<16x1xf32> to vector<16x3xf32>
    %264 = arith.mulf %263, %16 : vector<16x3xf32>
    %265 = arith.addf %262, %264 : vector<16x3xf32>
    %266 = arith.addf %134, %265 : vector<16x3xf32>
    %cst_91 = arith.constant dense<0.000000e+00> : vector<16x32xf32>
    %267 = tpu.matmul %259, %159, %cst_91 {dimension_numbers = #tpu.dot_dimension_numbers<[1], [0], [0], [1], [0, 0, 1, 1], [], []>} : vector<16x32xf32>, vector<32x32xf32>, vector<16x32xf32> -> vector<16x32xf32>
    %268 = arith.addf %250, %267 : vector<16x32xf32>
    %269 = vector.broadcast %167 : vector<1x32xf32> to vector<16x32xf32>
    %270 = arith.addf %268, %269 : vector<16x32xf32>
    %271 = arith.negf %270 : vector<16x32xf32>
    %272 = math.exp %271 : vector<16x32xf32>
    %cst_92 = arith.constant 1.000000e+00 : f32
    %273 = vector.broadcast %cst_92 : f32 to vector<16x32xf32>
    %274 = arith.addf %273, %272 : vector<16x32xf32>
    %275 = arith.divf %273, %274 : vector<16x32xf32>
    %276 = arith.mulf %270, %275 : vector<16x32xf32>
    %cst_93 = arith.constant dense<0.000000e+00> : vector<16x32xf32>
    %277 = tpu.matmul %276, %160, %cst_93 {dimension_numbers = #tpu.dot_dimension_numbers<[1], [0], [0], [1], [0, 0, 1, 1], [], []>} : vector<16x32xf32>, vector<32x32xf32>, vector<16x32xf32> -> vector<16x32xf32>
    %278 = vector.broadcast %168 : vector<1x32xf32> to vector<16x32xf32>
    %279 = arith.addf %277, %278 : vector<16x32xf32>
    %280 = arith.addf %279, %148 : vector<16x32xf32>
    %c2 = arith.constant 2 : index
    %c0_94 = arith.constant 0 : index
    %c0_95 = arith.constant 0 : index
    %281 = vector.load %arg10[%c2, %c0_94, %c0_95] : memref<4x64x32xf32, #tpu.memory_space<vmem>>, vector<1x64x32xf32>
    %282 = vector.shape_cast %281 : vector<1x64x32xf32> to vector<64x32xf32>
    %283 = vector.extract_strided_slice %282 {offsets = [0, 0], sizes = [32, 32], strides = [1, 1]} : vector<64x32xf32> to vector<32x32xf32>
    %284 = vector.extract_strided_slice %282 {offsets = [32, 0], sizes = [32, 32], strides = [1, 1]} : vector<64x32xf32> to vector<32x32xf32>
    %c2_96 = arith.constant 2 : index
    %c0_97 = arith.constant 0 : index
    %c0_98 = arith.constant 0 : index
    %285 = vector.load %arg11[%c2_96, %c0_97, %c0_98] : memref<4x32x64xf32, #tpu.memory_space<vmem>>, vector<1x32x64xf32>
    %286 = vector.shape_cast %285 : vector<1x32x64xf32> to vector<32x64xf32>
    %c2_99 = arith.constant 2 : index
    %c0_100 = arith.constant 0 : index
    %c0_101 = arith.constant 0 : index
    %287 = vector.load %arg12[%c2_99, %c0_100, %c0_101] : memref<4x128x32xf32, #tpu.memory_space<vmem>>, vector<1x128x32xf32>
    %288 = vector.shape_cast %287 : vector<1x128x32xf32> to vector<128x32xf32>
    %289 = vector.extract_strided_slice %288 {offsets = [0, 0], sizes = [32, 32], strides = [1, 1]} : vector<128x32xf32> to vector<32x32xf32>
    %290 = vector.extract_strided_slice %288 {offsets = [32, 0], sizes = [32, 32], strides = [1, 1]} : vector<128x32xf32> to vector<32x32xf32>
    %291 = vector.extract_strided_slice %288 {offsets = [64, 0], sizes = [32, 32], strides = [1, 1]} : vector<128x32xf32> to vector<32x32xf32>
    %292 = vector.extract_strided_slice %288 {offsets = [96, 0], sizes = [32, 32], strides = [1, 1]} : vector<128x32xf32> to vector<32x32xf32>
    %c2_102 = arith.constant 2 : index
    %c0_103 = arith.constant 0 : index
    %c0_104 = arith.constant 0 : index
    %293 = vector.load %arg13[%c2_102, %c0_103, %c0_104] : memref<4x10x32xf32, #tpu.memory_space<vmem>>, vector<1x10x32xf32>
    %294 = vector.shape_cast %293 : vector<1x10x32xf32> to vector<10x32xf32>
    %295 = vector.extract_strided_slice %294 {offsets = [0, 0], sizes = [1, 32], strides = [1, 1]} : vector<10x32xf32> to vector<1x32xf32>
    %296 = vector.extract_strided_slice %294 {offsets = [1, 0], sizes = [1, 32], strides = [1, 1]} : vector<10x32xf32> to vector<1x32xf32>
    %297 = vector.extract_strided_slice %294 {offsets = [2, 0], sizes = [1, 32], strides = [1, 1]} : vector<10x32xf32> to vector<1x32xf32>
    %298 = vector.extract_strided_slice %294 {offsets = [3, 0], sizes = [1, 32], strides = [1, 1]} : vector<10x32xf32> to vector<1x32xf32>
    %299 = vector.extract_strided_slice %294 {offsets = [4, 0], sizes = [1, 32], strides = [1, 1]} : vector<10x32xf32> to vector<1x32xf32>
    %300 = vector.extract_strided_slice %294 {offsets = [5, 0], sizes = [1, 32], strides = [1, 1]} : vector<10x32xf32> to vector<1x32xf32>
    %301 = vector.extract_strided_slice %294 {offsets = [6, 0], sizes = [1, 32], strides = [1, 1]} : vector<10x32xf32> to vector<1x32xf32>
    %302 = vector.extract_strided_slice %294 {offsets = [7, 0], sizes = [1, 32], strides = [1, 1]} : vector<10x32xf32> to vector<1x32xf32>
    %303 = vector.extract_strided_slice %294 {offsets = [8, 0], sizes = [1, 32], strides = [1, 1]} : vector<10x32xf32> to vector<1x32xf32>
    %304 = vector.extract_strided_slice %294 {offsets = [9, 0], sizes = [1, 1], strides = [1, 1]} : vector<10x32xf32> to vector<1x1xf32>
    %305 = vector.extract_strided_slice %280 {offsets = [0, 0], sizes = [8, 32], strides = [1, 1]} : vector<16x32xf32> to vector<8x32xf32>
    %306 = vector.extract_strided_slice %266 {offsets = [0, 0], sizes = [8, 3], strides = [1, 1]} : vector<16x3xf32> to vector<8x3xf32>
    %cst_105 = arith.constant dense<0.000000e+00> : vector<112x32xf32>
    %307 = tpu.matmul %0, %305, %cst_105 {dimension_numbers = #tpu.dot_dimension_numbers<[1], [0], [0], [1], [0, 0, 1, 1], [], []>} : vector<112x8xf32>, vector<8x32xf32>, vector<112x32xf32> -> vector<112x32xf32>
    %308 = vector.extract_strided_slice %307 {offsets = [0, 0], sizes = [56, 32], strides = [1, 1]} : vector<112x32xf32> to vector<56x32xf32>
    %309 = vector.extract_strided_slice %307 {offsets = [56, 0], sizes = [56, 32], strides = [1, 1]} : vector<112x32xf32> to vector<56x32xf32>
    %cst_106 = arith.constant dense<0.000000e+00> : vector<56x3xf32>
    %310 = tpu.matmul %1, %306, %cst_106 {dimension_numbers = #tpu.dot_dimension_numbers<[1], [0], [0], [1], [0, 0, 1, 1], [], []>} : vector<56x8xf32>, vector<8x3xf32>, vector<56x3xf32> -> vector<56x3xf32>
    %311 = vector.extract_strided_slice %280 {offsets = [8, 0], sizes = [8, 32], strides = [1, 1]} : vector<16x32xf32> to vector<8x32xf32>
    %312 = vector.extract_strided_slice %266 {offsets = [8, 0], sizes = [8, 3], strides = [1, 1]} : vector<16x3xf32> to vector<8x3xf32>
    %cst_107 = arith.constant dense<0.000000e+00> : vector<112x32xf32>
    %313 = tpu.matmul %0, %311, %cst_107 {dimension_numbers = #tpu.dot_dimension_numbers<[1], [0], [0], [1], [0, 0, 1, 1], [], []>} : vector<112x8xf32>, vector<8x32xf32>, vector<112x32xf32> -> vector<112x32xf32>
    %314 = vector.extract_strided_slice %313 {offsets = [0, 0], sizes = [56, 32], strides = [1, 1]} : vector<112x32xf32> to vector<56x32xf32>
    %315 = vector.extract_strided_slice %313 {offsets = [56, 0], sizes = [56, 32], strides = [1, 1]} : vector<112x32xf32> to vector<56x32xf32>
    %cst_108 = arith.constant dense<0.000000e+00> : vector<56x3xf32>
    %316 = tpu.matmul %1, %312, %cst_108 {dimension_numbers = #tpu.dot_dimension_numbers<[1], [0], [0], [1], [0, 0, 1, 1], [], []>} : vector<56x8xf32>, vector<8x3xf32>, vector<56x3xf32> -> vector<56x3xf32>
    %317 = tpu.concatenate %308, %314 in 0 : vector<56x32xf32>, vector<56x32xf32> -> vector<112x32xf32>
    %318 = tpu.concatenate %309, %315 in 0 : vector<56x32xf32>, vector<56x32xf32> -> vector<112x32xf32>
    %319 = tpu.concatenate %310, %316 in 0 : vector<56x3xf32>, vector<56x3xf32> -> vector<112x3xf32>
    %320 = arith.mulf %319, %319 : vector<112x3xf32>
    %cst_109 = arith.constant dense<0.000000e+00> : vector<112xf32>
    %321 = vector.multi_reduction <add>, %320, %cst_109 [1] : vector<112x3xf32> to vector<112xf32>
    %322 = vector.shape_cast %321 : vector<112xf32> to vector<112x1xf32>
    %cst_110 = arith.constant dense<0.000000e+00> : vector<112x32xf32>
    %323 = tpu.matmul %317, %283, %cst_110 {dimension_numbers = #tpu.dot_dimension_numbers<[1], [0], [0], [1], [0, 0, 1, 1], [], []>} : vector<112x32xf32>, vector<32x32xf32>, vector<112x32xf32> -> vector<112x32xf32>
    %cst_111 = arith.constant dense<0.000000e+00> : vector<112x32xf32>
    %324 = tpu.matmul %318, %284, %cst_111 {dimension_numbers = #tpu.dot_dimension_numbers<[1], [0], [0], [1], [0, 0, 1, 1], [], []>} : vector<112x32xf32>, vector<32x32xf32>, vector<112x32xf32> -> vector<112x32xf32>
    %325 = arith.addf %323, %324 : vector<112x32xf32>
    %326 = vector.broadcast %322 : vector<112x1xf32> to vector<112x32xf32>
    %327 = vector.broadcast %301 : vector<1x32xf32> to vector<112x32xf32>
    %328 = arith.mulf %326, %327 : vector<112x32xf32>
    %329 = arith.addf %325, %328 : vector<112x32xf32>
    %330 = vector.broadcast %295 : vector<1x32xf32> to vector<112x32xf32>
    %331 = arith.addf %329, %330 : vector<112x32xf32>
    %332 = arith.negf %331 : vector<112x32xf32>
    %333 = math.exp %332 : vector<112x32xf32>
    %cst_112 = arith.constant 1.000000e+00 : f32
    %334 = vector.broadcast %cst_112 : f32 to vector<112x32xf32>
    %335 = arith.addf %334, %333 : vector<112x32xf32>
    %336 = arith.divf %334, %335 : vector<112x32xf32>
    %337 = arith.mulf %331, %336 : vector<112x32xf32>
    %cst_113 = arith.constant dense<0.000000e+00> : vector<112x32xf32>
    %338 = tpu.matmul %337, %289, %cst_113 {dimension_numbers = #tpu.dot_dimension_numbers<[1], [0], [0], [1], [0, 0, 1, 1], [], []>} : vector<112x32xf32>, vector<32x32xf32>, vector<112x32xf32> -> vector<112x32xf32>
    %339 = vector.broadcast %296 : vector<1x32xf32> to vector<112x32xf32>
    %340 = arith.addf %338, %339 : vector<112x32xf32>
    %341 = arith.negf %340 : vector<112x32xf32>
    %342 = math.exp %341 : vector<112x32xf32>
    %cst_114 = arith.constant 1.000000e+00 : f32
    %343 = vector.broadcast %cst_114 : f32 to vector<112x32xf32>
    %344 = arith.addf %343, %342 : vector<112x32xf32>
    %345 = arith.divf %343, %344 : vector<112x32xf32>
    %346 = arith.mulf %340, %345 : vector<112x32xf32>
    %cst_115 = arith.constant dense<0.000000e+00> : vector<112x32xf32>
    %347 = tpu.matmul %346, %290, %cst_115 {dimension_numbers = #tpu.dot_dimension_numbers<[1], [0], [0], [1], [0, 0, 1, 1], [], []>} : vector<112x32xf32>, vector<32x32xf32>, vector<112x32xf32> -> vector<112x32xf32>
    %348 = vector.broadcast %297 : vector<1x32xf32> to vector<112x32xf32>
    %349 = arith.addf %347, %348 : vector<112x32xf32>
    %350 = arith.negf %349 : vector<112x32xf32>
    %351 = math.exp %350 : vector<112x32xf32>
    %cst_116 = arith.constant 1.000000e+00 : f32
    %352 = vector.broadcast %cst_116 : f32 to vector<112x32xf32>
    %353 = arith.addf %352, %351 : vector<112x32xf32>
    %354 = arith.divf %352, %353 : vector<112x32xf32>
    %355 = arith.mulf %349, %354 : vector<112x32xf32>
    %356 = vector.broadcast %302 : vector<1x32xf32> to vector<112x32xf32>
    %357 = arith.mulf %355, %356 : vector<112x32xf32>
    %cst_117 = arith.constant dense<0.000000e+00> : vector<112xf32>
    %358 = vector.multi_reduction <add>, %357, %cst_117 [1] : vector<112x32xf32> to vector<112xf32>
    %359 = vector.shape_cast %358 : vector<112xf32> to vector<112x1xf32>
    %360 = vector.broadcast %359 : vector<112x1xf32> to vector<112x3xf32>
    %361 = arith.mulf %319, %360 : vector<112x3xf32>
    %cst_118 = arith.constant -1.000000e+02 : f32
    %cst_119 = arith.constant 1.000000e+02 : f32
    %362 = vector.broadcast %cst_118 : f32 to vector<112x3xf32>
    %363 = arith.maximumf %362, %361 : vector<112x3xf32>
    %364 = vector.broadcast %cst_119 : f32 to vector<112x3xf32>
    %365 = arith.minimumf %364, %363 : vector<112x3xf32>
    %cst_120 = arith.constant dense<0.000000e+00> : vector<16x64xf32>
    %366 = tpu.matmul %280, %286, %cst_120 {dimension_numbers = #tpu.dot_dimension_numbers<[1], [0], [0], [1], [0, 0, 1, 1], [], []>} : vector<16x32xf32>, vector<32x64xf32>, vector<16x64xf32> -> vector<16x64xf32>
    %367 = vector.extract_strided_slice %366 {offsets = [0, 0], sizes = [16, 32], strides = [1, 1]} : vector<16x64xf32> to vector<16x32xf32>
    %368 = vector.broadcast %298 : vector<1x32xf32> to vector<16x32xf32>
    %369 = arith.addf %367, %368 : vector<16x32xf32>
    %370 = arith.negf %369 : vector<16x32xf32>
    %371 = math.exp %370 : vector<16x32xf32>
    %cst_121 = arith.constant 1.000000e+00 : f32
    %372 = vector.broadcast %cst_121 : f32 to vector<16x32xf32>
    %373 = arith.addf %372, %371 : vector<16x32xf32>
    %374 = arith.divf %372, %373 : vector<16x32xf32>
    %375 = arith.mulf %369, %374 : vector<16x32xf32>
    %376 = vector.broadcast %303 : vector<1x32xf32> to vector<16x32xf32>
    %377 = arith.mulf %375, %376 : vector<16x32xf32>
    %cst_122 = arith.constant dense<0.000000e+00> : vector<16xf32>
    %378 = vector.multi_reduction <add>, %377, %cst_122 [1] : vector<16x32xf32> to vector<16xf32>
    %379 = vector.shape_cast %378 : vector<16xf32> to vector<16x1xf32>
    %380 = vector.broadcast %304 : vector<1x1xf32> to vector<16x1xf32>
    %381 = arith.addf %379, %380 : vector<16x1xf32>
    %382 = vector.extract_strided_slice %366 {offsets = [0, 32], sizes = [16, 32], strides = [1, 1]} : vector<16x64xf32> to vector<16x32xf32>
    %383 = vector.extract_strided_slice %346 {offsets = [0, 0], sizes = [56, 32], strides = [1, 1]} : vector<112x32xf32> to vector<56x32xf32>
    %384 = vector.extract_strided_slice %365 {offsets = [0, 0], sizes = [56, 3], strides = [1, 1]} : vector<112x3xf32> to vector<56x3xf32>
    %cst_123 = arith.constant dense<0.000000e+00> : vector<8x32xf32>
    %385 = tpu.matmul %2, %383, %cst_123 {dimension_numbers = #tpu.dot_dimension_numbers<[1], [0], [0], [1], [0, 0, 1, 1], [], []>} : vector<8x56xf32>, vector<56x32xf32>, vector<8x32xf32> -> vector<8x32xf32>
    %cst_124 = arith.constant dense<0.000000e+00> : vector<8x3xf32>
    %386 = tpu.matmul %3, %384, %cst_124 {dimension_numbers = #tpu.dot_dimension_numbers<[1], [0], [0], [1], [0, 0, 1, 1], [], []>} : vector<8x56xf32>, vector<56x3xf32>, vector<8x3xf32> -> vector<8x3xf32>
    %387 = vector.extract_strided_slice %346 {offsets = [56, 0], sizes = [56, 32], strides = [1, 1]} : vector<112x32xf32> to vector<56x32xf32>
    %388 = vector.extract_strided_slice %365 {offsets = [56, 0], sizes = [56, 3], strides = [1, 1]} : vector<112x3xf32> to vector<56x3xf32>
    %cst_125 = arith.constant dense<0.000000e+00> : vector<8x32xf32>
    %389 = tpu.matmul %2, %387, %cst_125 {dimension_numbers = #tpu.dot_dimension_numbers<[1], [0], [0], [1], [0, 0, 1, 1], [], []>} : vector<8x56xf32>, vector<56x32xf32>, vector<8x32xf32> -> vector<8x32xf32>
    %cst_126 = arith.constant dense<0.000000e+00> : vector<8x3xf32>
    %390 = tpu.matmul %3, %388, %cst_126 {dimension_numbers = #tpu.dot_dimension_numbers<[1], [0], [0], [1], [0, 0, 1, 1], [], []>} : vector<8x56xf32>, vector<56x3xf32>, vector<8x3xf32> -> vector<8x3xf32>
    %391 = tpu.concatenate %385, %389 in 0 : vector<8x32xf32>, vector<8x32xf32> -> vector<16x32xf32>
    %392 = tpu.concatenate %386, %390 in 0 : vector<8x3xf32>, vector<8x3xf32> -> vector<16x3xf32>
    %cst_127 = arith.constant 1.000000e+00 : f32
    %393 = vector.broadcast %cst_127 : f32 to vector<16x3xf32>
    %394 = arith.mulf %392, %393 : vector<16x3xf32>
    %395 = vector.broadcast %381 : vector<16x1xf32> to vector<16x3xf32>
    %396 = arith.mulf %395, %16 : vector<16x3xf32>
    %397 = arith.addf %394, %396 : vector<16x3xf32>
    %398 = arith.addf %266, %397 : vector<16x3xf32>
    %cst_128 = arith.constant dense<0.000000e+00> : vector<16x32xf32>
    %399 = tpu.matmul %391, %291, %cst_128 {dimension_numbers = #tpu.dot_dimension_numbers<[1], [0], [0], [1], [0, 0, 1, 1], [], []>} : vector<16x32xf32>, vector<32x32xf32>, vector<16x32xf32> -> vector<16x32xf32>
    %400 = arith.addf %382, %399 : vector<16x32xf32>
    %401 = vector.broadcast %299 : vector<1x32xf32> to vector<16x32xf32>
    %402 = arith.addf %400, %401 : vector<16x32xf32>
    %403 = arith.negf %402 : vector<16x32xf32>
    %404 = math.exp %403 : vector<16x32xf32>
    %cst_129 = arith.constant 1.000000e+00 : f32
    %405 = vector.broadcast %cst_129 : f32 to vector<16x32xf32>
    %406 = arith.addf %405, %404 : vector<16x32xf32>
    %407 = arith.divf %405, %406 : vector<16x32xf32>
    %408 = arith.mulf %402, %407 : vector<16x32xf32>
    %cst_130 = arith.constant dense<0.000000e+00> : vector<16x32xf32>
    %409 = tpu.matmul %408, %292, %cst_130 {dimension_numbers = #tpu.dot_dimension_numbers<[1], [0], [0], [1], [0, 0, 1, 1], [], []>} : vector<16x32xf32>, vector<32x32xf32>, vector<16x32xf32> -> vector<16x32xf32>
    %410 = vector.broadcast %300 : vector<1x32xf32> to vector<16x32xf32>
    %411 = arith.addf %409, %410 : vector<16x32xf32>
    %412 = arith.addf %411, %280 : vector<16x32xf32>
    %c3 = arith.constant 3 : index
    %c0_131 = arith.constant 0 : index
    %c0_132 = arith.constant 0 : index
    %413 = vector.load %arg10[%c3, %c0_131, %c0_132] : memref<4x64x32xf32, #tpu.memory_space<vmem>>, vector<1x64x32xf32>
    %414 = vector.shape_cast %413 : vector<1x64x32xf32> to vector<64x32xf32>
    %415 = vector.extract_strided_slice %414 {offsets = [0, 0], sizes = [32, 32], strides = [1, 1]} : vector<64x32xf32> to vector<32x32xf32>
    %416 = vector.extract_strided_slice %414 {offsets = [32, 0], sizes = [32, 32], strides = [1, 1]} : vector<64x32xf32> to vector<32x32xf32>
    %c3_133 = arith.constant 3 : index
    %c0_134 = arith.constant 0 : index
    %c0_135 = arith.constant 0 : index
    %417 = vector.load %arg11[%c3_133, %c0_134, %c0_135] : memref<4x32x64xf32, #tpu.memory_space<vmem>>, vector<1x32x64xf32>
    %418 = vector.shape_cast %417 : vector<1x32x64xf32> to vector<32x64xf32>
    %c3_136 = arith.constant 3 : index
    %c0_137 = arith.constant 0 : index
    %c0_138 = arith.constant 0 : index
    %419 = vector.load %arg12[%c3_136, %c0_137, %c0_138] : memref<4x128x32xf32, #tpu.memory_space<vmem>>, vector<1x128x32xf32>
    %420 = vector.shape_cast %419 : vector<1x128x32xf32> to vector<128x32xf32>
    %421 = vector.extract_strided_slice %420 {offsets = [0, 0], sizes = [32, 32], strides = [1, 1]} : vector<128x32xf32> to vector<32x32xf32>
    %422 = vector.extract_strided_slice %420 {offsets = [32, 0], sizes = [32, 32], strides = [1, 1]} : vector<128x32xf32> to vector<32x32xf32>
    %423 = vector.extract_strided_slice %420 {offsets = [64, 0], sizes = [32, 32], strides = [1, 1]} : vector<128x32xf32> to vector<32x32xf32>
    %424 = vector.extract_strided_slice %420 {offsets = [96, 0], sizes = [32, 32], strides = [1, 1]} : vector<128x32xf32> to vector<32x32xf32>
    %c3_139 = arith.constant 3 : index
    %c0_140 = arith.constant 0 : index
    %c0_141 = arith.constant 0 : index
    %425 = vector.load %arg13[%c3_139, %c0_140, %c0_141] : memref<4x10x32xf32, #tpu.memory_space<vmem>>, vector<1x10x32xf32>
    %426 = vector.shape_cast %425 : vector<1x10x32xf32> to vector<10x32xf32>
    %427 = vector.extract_strided_slice %426 {offsets = [0, 0], sizes = [1, 32], strides = [1, 1]} : vector<10x32xf32> to vector<1x32xf32>
    %428 = vector.extract_strided_slice %426 {offsets = [1, 0], sizes = [1, 32], strides = [1, 1]} : vector<10x32xf32> to vector<1x32xf32>
    %429 = vector.extract_strided_slice %426 {offsets = [2, 0], sizes = [1, 32], strides = [1, 1]} : vector<10x32xf32> to vector<1x32xf32>
    %430 = vector.extract_strided_slice %426 {offsets = [3, 0], sizes = [1, 32], strides = [1, 1]} : vector<10x32xf32> to vector<1x32xf32>
    %431 = vector.extract_strided_slice %426 {offsets = [4, 0], sizes = [1, 32], strides = [1, 1]} : vector<10x32xf32> to vector<1x32xf32>
    %432 = vector.extract_strided_slice %426 {offsets = [5, 0], sizes = [1, 32], strides = [1, 1]} : vector<10x32xf32> to vector<1x32xf32>
    %433 = vector.extract_strided_slice %426 {offsets = [6, 0], sizes = [1, 32], strides = [1, 1]} : vector<10x32xf32> to vector<1x32xf32>
    %434 = vector.extract_strided_slice %426 {offsets = [7, 0], sizes = [1, 32], strides = [1, 1]} : vector<10x32xf32> to vector<1x32xf32>
    %435 = vector.extract_strided_slice %426 {offsets = [8, 0], sizes = [1, 32], strides = [1, 1]} : vector<10x32xf32> to vector<1x32xf32>
    %436 = vector.extract_strided_slice %426 {offsets = [9, 0], sizes = [1, 1], strides = [1, 1]} : vector<10x32xf32> to vector<1x1xf32>
    %437 = vector.extract_strided_slice %412 {offsets = [0, 0], sizes = [8, 32], strides = [1, 1]} : vector<16x32xf32> to vector<8x32xf32>
    %438 = vector.extract_strided_slice %398 {offsets = [0, 0], sizes = [8, 3], strides = [1, 1]} : vector<16x3xf32> to vector<8x3xf32>
    %cst_142 = arith.constant dense<0.000000e+00> : vector<112x32xf32>
    %439 = tpu.matmul %0, %437, %cst_142 {dimension_numbers = #tpu.dot_dimension_numbers<[1], [0], [0], [1], [0, 0, 1, 1], [], []>} : vector<112x8xf32>, vector<8x32xf32>, vector<112x32xf32> -> vector<112x32xf32>
    %440 = vector.extract_strided_slice %439 {offsets = [0, 0], sizes = [56, 32], strides = [1, 1]} : vector<112x32xf32> to vector<56x32xf32>
    %441 = vector.extract_strided_slice %439 {offsets = [56, 0], sizes = [56, 32], strides = [1, 1]} : vector<112x32xf32> to vector<56x32xf32>
    %cst_143 = arith.constant dense<0.000000e+00> : vector<56x3xf32>
    %442 = tpu.matmul %1, %438, %cst_143 {dimension_numbers = #tpu.dot_dimension_numbers<[1], [0], [0], [1], [0, 0, 1, 1], [], []>} : vector<56x8xf32>, vector<8x3xf32>, vector<56x3xf32> -> vector<56x3xf32>
    %443 = vector.extract_strided_slice %412 {offsets = [8, 0], sizes = [8, 32], strides = [1, 1]} : vector<16x32xf32> to vector<8x32xf32>
    %444 = vector.extract_strided_slice %398 {offsets = [8, 0], sizes = [8, 3], strides = [1, 1]} : vector<16x3xf32> to vector<8x3xf32>
    %cst_144 = arith.constant dense<0.000000e+00> : vector<112x32xf32>
    %445 = tpu.matmul %0, %443, %cst_144 {dimension_numbers = #tpu.dot_dimension_numbers<[1], [0], [0], [1], [0, 0, 1, 1], [], []>} : vector<112x8xf32>, vector<8x32xf32>, vector<112x32xf32> -> vector<112x32xf32>
    %446 = vector.extract_strided_slice %445 {offsets = [0, 0], sizes = [56, 32], strides = [1, 1]} : vector<112x32xf32> to vector<56x32xf32>
    %447 = vector.extract_strided_slice %445 {offsets = [56, 0], sizes = [56, 32], strides = [1, 1]} : vector<112x32xf32> to vector<56x32xf32>
    %cst_145 = arith.constant dense<0.000000e+00> : vector<56x3xf32>
    %448 = tpu.matmul %1, %444, %cst_145 {dimension_numbers = #tpu.dot_dimension_numbers<[1], [0], [0], [1], [0, 0, 1, 1], [], []>} : vector<56x8xf32>, vector<8x3xf32>, vector<56x3xf32> -> vector<56x3xf32>
    %449 = tpu.concatenate %440, %446 in 0 : vector<56x32xf32>, vector<56x32xf32> -> vector<112x32xf32>
    %450 = tpu.concatenate %441, %447 in 0 : vector<56x32xf32>, vector<56x32xf32> -> vector<112x32xf32>
    %451 = tpu.concatenate %442, %448 in 0 : vector<56x3xf32>, vector<56x3xf32> -> vector<112x3xf32>
    %452 = arith.mulf %451, %451 : vector<112x3xf32>
    %cst_146 = arith.constant dense<0.000000e+00> : vector<112xf32>
    %453 = vector.multi_reduction <add>, %452, %cst_146 [1] : vector<112x3xf32> to vector<112xf32>
    %454 = vector.shape_cast %453 : vector<112xf32> to vector<112x1xf32>
    %cst_147 = arith.constant dense<0.000000e+00> : vector<112x32xf32>
    %455 = tpu.matmul %449, %415, %cst_147 {dimension_numbers = #tpu.dot_dimension_numbers<[1], [0], [0], [1], [0, 0, 1, 1], [], []>} : vector<112x32xf32>, vector<32x32xf32>, vector<112x32xf32> -> vector<112x32xf32>
    %cst_148 = arith.constant dense<0.000000e+00> : vector<112x32xf32>
    %456 = tpu.matmul %450, %416, %cst_148 {dimension_numbers = #tpu.dot_dimension_numbers<[1], [0], [0], [1], [0, 0, 1, 1], [], []>} : vector<112x32xf32>, vector<32x32xf32>, vector<112x32xf32> -> vector<112x32xf32>
    %457 = arith.addf %455, %456 : vector<112x32xf32>
    %458 = vector.broadcast %454 : vector<112x1xf32> to vector<112x32xf32>
    %459 = vector.broadcast %433 : vector<1x32xf32> to vector<112x32xf32>
    %460 = arith.mulf %458, %459 : vector<112x32xf32>
    %461 = arith.addf %457, %460 : vector<112x32xf32>
    %462 = vector.broadcast %427 : vector<1x32xf32> to vector<112x32xf32>
    %463 = arith.addf %461, %462 : vector<112x32xf32>
    %464 = arith.negf %463 : vector<112x32xf32>
    %465 = math.exp %464 : vector<112x32xf32>
    %cst_149 = arith.constant 1.000000e+00 : f32
    %466 = vector.broadcast %cst_149 : f32 to vector<112x32xf32>
    %467 = arith.addf %466, %465 : vector<112x32xf32>
    %468 = arith.divf %466, %467 : vector<112x32xf32>
    %469 = arith.mulf %463, %468 : vector<112x32xf32>
    %cst_150 = arith.constant dense<0.000000e+00> : vector<112x32xf32>
    %470 = tpu.matmul %469, %421, %cst_150 {dimension_numbers = #tpu.dot_dimension_numbers<[1], [0], [0], [1], [0, 0, 1, 1], [], []>} : vector<112x32xf32>, vector<32x32xf32>, vector<112x32xf32> -> vector<112x32xf32>
    %471 = vector.broadcast %428 : vector<1x32xf32> to vector<112x32xf32>
    %472 = arith.addf %470, %471 : vector<112x32xf32>
    %473 = arith.negf %472 : vector<112x32xf32>
    %474 = math.exp %473 : vector<112x32xf32>
    %cst_151 = arith.constant 1.000000e+00 : f32
    %475 = vector.broadcast %cst_151 : f32 to vector<112x32xf32>
    %476 = arith.addf %475, %474 : vector<112x32xf32>
    %477 = arith.divf %475, %476 : vector<112x32xf32>
    %478 = arith.mulf %472, %477 : vector<112x32xf32>
    %cst_152 = arith.constant dense<0.000000e+00> : vector<112x32xf32>
    %479 = tpu.matmul %478, %422, %cst_152 {dimension_numbers = #tpu.dot_dimension_numbers<[1], [0], [0], [1], [0, 0, 1, 1], [], []>} : vector<112x32xf32>, vector<32x32xf32>, vector<112x32xf32> -> vector<112x32xf32>
    %480 = vector.broadcast %429 : vector<1x32xf32> to vector<112x32xf32>
    %481 = arith.addf %479, %480 : vector<112x32xf32>
    %482 = arith.negf %481 : vector<112x32xf32>
    %483 = math.exp %482 : vector<112x32xf32>
    %cst_153 = arith.constant 1.000000e+00 : f32
    %484 = vector.broadcast %cst_153 : f32 to vector<112x32xf32>
    %485 = arith.addf %484, %483 : vector<112x32xf32>
    %486 = arith.divf %484, %485 : vector<112x32xf32>
    %487 = arith.mulf %481, %486 : vector<112x32xf32>
    %488 = vector.broadcast %434 : vector<1x32xf32> to vector<112x32xf32>
    %489 = arith.mulf %487, %488 : vector<112x32xf32>
    %cst_154 = arith.constant dense<0.000000e+00> : vector<112xf32>
    %490 = vector.multi_reduction <add>, %489, %cst_154 [1] : vector<112x32xf32> to vector<112xf32>
    %491 = vector.shape_cast %490 : vector<112xf32> to vector<112x1xf32>
    %492 = vector.broadcast %491 : vector<112x1xf32> to vector<112x3xf32>
    %493 = arith.mulf %451, %492 : vector<112x3xf32>
    %cst_155 = arith.constant -1.000000e+02 : f32
    %cst_156 = arith.constant 1.000000e+02 : f32
    %494 = vector.broadcast %cst_155 : f32 to vector<112x3xf32>
    %495 = arith.maximumf %494, %493 : vector<112x3xf32>
    %496 = vector.broadcast %cst_156 : f32 to vector<112x3xf32>
    %497 = arith.minimumf %496, %495 : vector<112x3xf32>
    %cst_157 = arith.constant dense<0.000000e+00> : vector<16x64xf32>
    %498 = tpu.matmul %412, %418, %cst_157 {dimension_numbers = #tpu.dot_dimension_numbers<[1], [0], [0], [1], [0, 0, 1, 1], [], []>} : vector<16x32xf32>, vector<32x64xf32>, vector<16x64xf32> -> vector<16x64xf32>
    %499 = vector.extract_strided_slice %498 {offsets = [0, 0], sizes = [16, 32], strides = [1, 1]} : vector<16x64xf32> to vector<16x32xf32>
    %500 = vector.broadcast %430 : vector<1x32xf32> to vector<16x32xf32>
    %501 = arith.addf %499, %500 : vector<16x32xf32>
    %502 = arith.negf %501 : vector<16x32xf32>
    %503 = math.exp %502 : vector<16x32xf32>
    %cst_158 = arith.constant 1.000000e+00 : f32
    %504 = vector.broadcast %cst_158 : f32 to vector<16x32xf32>
    %505 = arith.addf %504, %503 : vector<16x32xf32>
    %506 = arith.divf %504, %505 : vector<16x32xf32>
    %507 = arith.mulf %501, %506 : vector<16x32xf32>
    %508 = vector.broadcast %435 : vector<1x32xf32> to vector<16x32xf32>
    %509 = arith.mulf %507, %508 : vector<16x32xf32>
    %cst_159 = arith.constant dense<0.000000e+00> : vector<16xf32>
    %510 = vector.multi_reduction <add>, %509, %cst_159 [1] : vector<16x32xf32> to vector<16xf32>
    %511 = vector.shape_cast %510 : vector<16xf32> to vector<16x1xf32>
    %512 = vector.broadcast %436 : vector<1x1xf32> to vector<16x1xf32>
    %513 = arith.addf %511, %512 : vector<16x1xf32>
    %514 = vector.extract_strided_slice %498 {offsets = [0, 32], sizes = [16, 32], strides = [1, 1]} : vector<16x64xf32> to vector<16x32xf32>
    %515 = vector.extract_strided_slice %478 {offsets = [0, 0], sizes = [56, 32], strides = [1, 1]} : vector<112x32xf32> to vector<56x32xf32>
    %516 = vector.extract_strided_slice %497 {offsets = [0, 0], sizes = [56, 3], strides = [1, 1]} : vector<112x3xf32> to vector<56x3xf32>
    %cst_160 = arith.constant dense<0.000000e+00> : vector<8x32xf32>
    %517 = tpu.matmul %2, %515, %cst_160 {dimension_numbers = #tpu.dot_dimension_numbers<[1], [0], [0], [1], [0, 0, 1, 1], [], []>} : vector<8x56xf32>, vector<56x32xf32>, vector<8x32xf32> -> vector<8x32xf32>
    %cst_161 = arith.constant dense<0.000000e+00> : vector<8x3xf32>
    %518 = tpu.matmul %3, %516, %cst_161 {dimension_numbers = #tpu.dot_dimension_numbers<[1], [0], [0], [1], [0, 0, 1, 1], [], []>} : vector<8x56xf32>, vector<56x3xf32>, vector<8x3xf32> -> vector<8x3xf32>
    %519 = vector.extract_strided_slice %478 {offsets = [56, 0], sizes = [56, 32], strides = [1, 1]} : vector<112x32xf32> to vector<56x32xf32>
    %520 = vector.extract_strided_slice %497 {offsets = [56, 0], sizes = [56, 3], strides = [1, 1]} : vector<112x3xf32> to vector<56x3xf32>
    %cst_162 = arith.constant dense<0.000000e+00> : vector<8x32xf32>
    %521 = tpu.matmul %2, %519, %cst_162 {dimension_numbers = #tpu.dot_dimension_numbers<[1], [0], [0], [1], [0, 0, 1, 1], [], []>} : vector<8x56xf32>, vector<56x32xf32>, vector<8x32xf32> -> vector<8x32xf32>
    %cst_163 = arith.constant dense<0.000000e+00> : vector<8x3xf32>
    %522 = tpu.matmul %3, %520, %cst_163 {dimension_numbers = #tpu.dot_dimension_numbers<[1], [0], [0], [1], [0, 0, 1, 1], [], []>} : vector<8x56xf32>, vector<56x3xf32>, vector<8x3xf32> -> vector<8x3xf32>
    %523 = tpu.concatenate %517, %521 in 0 : vector<8x32xf32>, vector<8x32xf32> -> vector<16x32xf32>
    %524 = tpu.concatenate %518, %522 in 0 : vector<8x3xf32>, vector<8x3xf32> -> vector<16x3xf32>
    %cst_164 = arith.constant 1.000000e+00 : f32
    %525 = vector.broadcast %cst_164 : f32 to vector<16x3xf32>
    %526 = arith.mulf %524, %525 : vector<16x3xf32>
    %527 = vector.broadcast %513 : vector<16x1xf32> to vector<16x3xf32>
    %528 = arith.mulf %527, %16 : vector<16x3xf32>
    %529 = arith.addf %526, %528 : vector<16x3xf32>
    %530 = arith.addf %398, %529 : vector<16x3xf32>
    %cst_165 = arith.constant dense<0.000000e+00> : vector<16x32xf32>
    %531 = tpu.matmul %523, %423, %cst_165 {dimension_numbers = #tpu.dot_dimension_numbers<[1], [0], [0], [1], [0, 0, 1, 1], [], []>} : vector<16x32xf32>, vector<32x32xf32>, vector<16x32xf32> -> vector<16x32xf32>
    %532 = arith.addf %514, %531 : vector<16x32xf32>
    %533 = vector.broadcast %431 : vector<1x32xf32> to vector<16x32xf32>
    %534 = arith.addf %532, %533 : vector<16x32xf32>
    %535 = arith.negf %534 : vector<16x32xf32>
    %536 = math.exp %535 : vector<16x32xf32>
    %cst_166 = arith.constant 1.000000e+00 : f32
    %537 = vector.broadcast %cst_166 : f32 to vector<16x32xf32>
    %538 = arith.addf %537, %536 : vector<16x32xf32>
    %539 = arith.divf %537, %538 : vector<16x32xf32>
    %540 = arith.mulf %534, %539 : vector<16x32xf32>
    %cst_167 = arith.constant dense<0.000000e+00> : vector<16x32xf32>
    %541 = tpu.matmul %540, %424, %cst_167 {dimension_numbers = #tpu.dot_dimension_numbers<[1], [0], [0], [1], [0, 0, 1, 1], [], []>} : vector<16x32xf32>, vector<32x32xf32>, vector<16x32xf32> -> vector<16x32xf32>
    %542 = vector.broadcast %432 : vector<1x32xf32> to vector<16x32xf32>
    %543 = arith.addf %541, %542 : vector<16x32xf32>
    %544 = arith.addf %543, %412 : vector<16x32xf32>
    %cst_168 = arith.constant 0.000000e+00 : f32
    %545 = vector.broadcast %cst_168 : f32 to vector<16x90xf32>
    %546 = tpu.concatenate %544, %530, %529, %545 in 1 : vector<16x32xf32>, vector<16x3xf32>, vector<16x3xf32>, vector<16x90xf32> -> vector<16x128xf32>
    %547 = vector.shape_cast %546 : vector<16x128xf32> to vector<2x8x128xf32>
    %c0_169 = arith.constant 0 : index
    %c0_170 = arith.constant 0 : index
    %c0_171 = arith.constant 0 : index
    %548 = vector.load %arg14[%c0_169, %c0_170, %c0_171] : memref<2x8x128xf32, #tpu.memory_space<vmem>>, vector<2x8x128xf32>
    tpu.vector_store %arg14[%c0_169, %c0_170, %c0_171], %547 {strides = array<i32>} : memref<2x8x128xf32, #tpu.memory_space<vmem>>, vector<2x8x128xf32>,
    return
  }
  func.func @transform_0(%arg0: i32) -> (i32, i32, i32) {
    %c0_i32 = arith.constant 0 : i32
    %c0_i32_0 = arith.constant 0 : i32
    %c0_i32_1 = arith.constant 0 : i32
    return %arg0, %c0_i32, %c0_i32_0 : i32, i32, i32
  }
  func.func @transform_1(%arg0: i32) -> (i32, i32, i32) {
    %c0_i32 = arith.constant 0 : i32
    %c0_i32_0 = arith.constant 0 : i32
    %c0_i32_1 = arith.constant 0 : i32
    return %arg0, %c0_i32, %c0_i32_0 : i32, i32, i32
  }
  func.func @transform_2(%arg0: i32) -> (i32, i32, i32) {
    %c0_i32 = arith.constant 0 : i32
    %c0_i32_0 = arith.constant 0 : i32
    %c0_i32_1 = arith.constant 0 : i32
    return %arg0, %c0_i32, %c0_i32_0 : i32, i32, i32
  }
  func.func @transform_3(%arg0: i32) -> (i32, i32) {
    %c0_i32 = arith.constant 0 : i32
    %c0_i32_0 = arith.constant 0 : i32
    %c0_i32_1 = arith.constant 0 : i32
    return %c0_i32, %c0_i32_0 : i32, i32
  }
  func.func @transform_4(%arg0: i32) -> (i32, i32) {
    %c0_i32 = arith.constant 0 : i32
    %c0_i32_0 = arith.constant 0 : i32
    %c0_i32_1 = arith.constant 0 : i32
    return %c0_i32, %c0_i32_0 : i32, i32
  }
  func.func @transform_5(%arg0: i32) -> (i32, i32) {
    %c0_i32 = arith.constant 0 : i32
    %c0_i32_0 = arith.constant 0 : i32
    %c0_i32_1 = arith.constant 0 : i32
    return %c0_i32, %c0_i32_0 : i32, i32
  }
  func.func @transform_6(%arg0: i32) -> (i32, i32) {
    %c0_i32 = arith.constant 0 : i32
    %c0_i32_0 = arith.constant 0 : i32
    %c0_i32_1 = arith.constant 0 : i32
    return %c0_i32, %c0_i32_0 : i32, i32
  }
  func.func @transform_7(%arg0: i32) -> (i32, i32) {
    %c0_i32 = arith.constant 0 : i32
    %c0_i32_0 = arith.constant 0 : i32
    %c0_i32_1 = arith.constant 0 : i32
    return %c0_i32, %c0_i32_0 : i32, i32
  }
  func.func @transform_8(%arg0: i32) -> (i32, i32) {
    %c0_i32 = arith.constant 0 : i32
    %c0_i32_0 = arith.constant 0 : i32
    %c0_i32_1 = arith.constant 0 : i32
    return %c0_i32, %c0_i32_0 : i32, i32
  }
  func.func @transform_9(%arg0: i32) -> (i32, i32, i32) {
    %c0_i32 = arith.constant 0 : i32
    %c0_i32_0 = arith.constant 0 : i32
    %c0_i32_1 = arith.constant 0 : i32
    %c0_i32_2 = arith.constant 0 : i32
    return %c0_i32, %c0_i32_0, %c0_i32_1 : i32, i32, i32
  }
  func.func @transform_10(%arg0: i32) -> (i32, i32, i32) {
    %c0_i32 = arith.constant 0 : i32
    %c0_i32_0 = arith.constant 0 : i32
    %c0_i32_1 = arith.constant 0 : i32
    %c0_i32_2 = arith.constant 0 : i32
    return %c0_i32, %c0_i32_0, %c0_i32_1 : i32, i32, i32
  }
  func.func @transform_11(%arg0: i32) -> (i32, i32, i32) {
    %c0_i32 = arith.constant 0 : i32
    %c0_i32_0 = arith.constant 0 : i32
    %c0_i32_1 = arith.constant 0 : i32
    %c0_i32_2 = arith.constant 0 : i32
    return %c0_i32, %c0_i32_0, %c0_i32_1 : i32, i32, i32
  }
  func.func @transform_12(%arg0: i32) -> (i32, i32, i32) {
    %c0_i32 = arith.constant 0 : i32
    %c0_i32_0 = arith.constant 0 : i32
    %c0_i32_1 = arith.constant 0 : i32
    %c0_i32_2 = arith.constant 0 : i32
    return %c0_i32, %c0_i32_0, %c0_i32_1 : i32, i32, i32
  }
  func.func @transform_13(%arg0: i32) -> (i32, i32, i32) {
    %c0_i32 = arith.constant 0 : i32
    %c0_i32_0 = arith.constant 0 : i32
    %c0_i32_1 = arith.constant 0 : i32
    return %arg0, %c0_i32, %c0_i32_0 : i32, i32, i32
  }
}

</mosaic_0001>

<bundles_post_ra>
// kernel: tpu_custom_call.1
= control target key start
LH: loop header
LB: loop body
LE: loop exit
PB: predicated region body
PF: predicated region fallthrough
CT: control target
= control target key end

     0   :  { %s16991_s0 = inlined_call_operand.vmem [shape: f32[4,8,1], index: 0, kind: input, shape index: {}]   ;;  %s16992_s1 = inlined_call_operand.vmem [shape: f32[4,8,3], index: 1, kind: input, shape index: {}]   ;;  %s16993_s2 = inlined_call_operand.vmem [shape: f32[4,8,3], index: 2, kind: input, shape index: {}]   ;;  %s16994_s3 = inlined_call_operand.vmem [shape: f32[112,8], index: 3, kind: input, shape index: {}]   ;;  %s16995_s4 = inlined_call_operand.vmem [shape: f32[56,8], index: 4, kind: input, shape index: {}]   ;;  %s16996_s5 = inlined_call_operand.vmem [shape: f32[8,56], index: 5, kind: input, shape index: {}]   ;;  %s16997_s6 = inlined_call_operand.vmem [shape: f32[8,56], index: 6, kind: input, shape index: {}]   ;;  %s16998_s7 = inlined_call_operand.vmem [shape: f32[1,32], index: 7, kind: input, shape index: {}]   ;;  %s16999_s8 = inlined_call_operand.vmem [shape: f32[1,32], index: 8, kind: input, shape index: {}]   ;;  %s17000_s9 = inlined_call_operand.vmem [shape: f32[4,64,32], index: 9, kind: input, shape index: {}]   ;;  %s17001_s10 = inlined_call_operand.vmem [shape: f32[4,32,64], index: 10, kind: input, shape index: {}]   ;;  %s17002_s11 = inlined_call_operand.vmem [shape: f32[4,128,32], index: 11, kind: input, shape index: {}]   ;;  %s17003_s12 = inlined_call_operand.vmem [shape: f32[4,10,32], index: 12, kind: input, shape index: {}]   ;;  %s17004_s13 = inlined_call_operand.hbm [shape: f32[4,8,128], index: 13, kind: output, shape index: {}]  }
   0x1   :  { %17009 = sst [smem:[#allocation6_spill]] %s16991_s0 }
   0x2   :  { %17010 = sst [smem:[#allocation7_spill]] %s16992_s1 }
   0x3   :  { %18 = vsyncpa [#allocation3], 0 }
   0x4   :  { %20 = vsyncpa [#allocation3 + $0x1], 0  ;;  %s13808_s25 = smov 0   ;;  %s13810_s26 = smov 0  }
   0x5   :  { %s13812_s27 = smov 0   ;;  %s13814_s28 = smov 0  }
   0x6 LB: > { %s13829_s29 = sadd.s32 4294967295, %s13727_s28   ;;  %s10110_s30 = sadd.s32 4294967294, %s13727_s28   ;;  %s13727_s28 = sphi %s13814_s28, %s17022_s28   ;;  %s13723_s27 = sphi %s13812_s27, %s17021_s27   ;;  %s13719_s26 = sphi %s13810_s26, %s17020_s26   ;;  %s13715_s25 = sphi %s13808_s25, %s17019_s25  }
   0x7   : > { %s13833_s14 = sadd.s32 1, %s13727_s28   ;;  %s321_s15 = sadd.s32 1, %s13723_s27 }
   0x8   : > { %s318_s16 = ssub.s32 %s13727_s28, %s13833_s14  ;;  %p331_p0 = scmp.ne.s32.totalorder %s13723_s27, %s13719_s26 }
   0x9   : > { %p319_p1 = scmp.eq.s32.totalorder %s318_s16, 0  ;;  %p332_p2 = scmp.eq.s32.totalorder %s13829_s29, 1 }
   0xa   : > { %p337_p3 = scmp.ne.s32.totalorder %s13719_s26, %s13715_s25  ;;  %p338_p4 = scmp.eq.s32.totalorder %s10110_s30, 1 }
   0xb   : > { %s13844_s17 = scalar_select %p319_p1, %s13723_s27, %s321_s15  }
   0xc   : > { %p13846_p5 = por %p332_p2, %p331_p0  ;;  %p13850_p6 = por %p338_p4, %p337_p3 }
   0xd   : > { %17011 = sst [smem:[#allocation5_spill]] %s13844_s17  ;;  %p10113_p7 = scmp.ge.s32.totalorder %s13727_s28, 1 }
   0xe   : > { %p413_p8 = scmp.lt.s32.totalorder %s13727_s28, 3 }
  0x10   : > { %p414_p9 = pnand %p10113_p7, %p413_p8 }
  0x11   : > { %s10115_s20 = sshll.u32 (!%p414_p9), %s13829_s29, 1  ;;  %s17014_s0 = sld [smem:[#allocation6_spill]] (!%p414_p9) }
  0x12   : > { %417 = sbr.rel (%p414_p9) target bundleno = 6698 (0x1a2a), region = 72  ;;  %p468_p10 = scmp.lt.s32.totalorder (!%p414_p9), %s10115_s20, 3 }
  0x13   : > { %s17015_s1 = sld [smem:[#allocation7_spill]] (!%p414_p9)  ;;  %s13732_s22 = smov (!%p414_p9), 32  }
  0x14   : > { %s17016_s30 = smov (!%p414_p9), 96   ;;  %s13734_s23 = smov (!%p414_p9), 35  }
  0x17   : > { %v13729_v0 = vmov 0   ;;  %s17024_s20 = smov (!%p468_p10, %s10115_s20), 3  ;;  %v13866_v2 = vld [vmem:[%s16994_s3] sm:$0xff]  ;;  %vm573_vm0 = vcmask 64512   ;;  %v487_v11 = vld [vmem:[%s16994_s3 + $0x8] sm:$0xff]  ;;  %v488_v14 = vld [vmem:[%s16994_s3 + $0x10] sm:$0xff] }
  0x18   : > { %12848 = vset.pattern.permute.xlu0 %v13729_v0  ;;  %12849 = vset.pattern.permute.xlu1 %v13729_v0  ;;  %s13857_s21 = sshll.u32 %s17024_s20, 3  ;;  %v13873_v4 = vld [vmem:[%s16994_s3 + $0x60] sm:$0xff]  ;;  %v13897_v12 = vld [vmem:[%s16994_s3 + $0x68] sm:$0xff]  ;;  %v489_v17 = vld [vmem:[%s16994_s3 + $0x18] sm:$0xff]  ;;  %v17007_v18 = vmov 0.0   ;;  %vm13731_vm1 = vmmov 0  }
  0x19   : > { %s471_s24 = scalar_lea.vmem %s17014_s0, %s13857_s21  ;;  %11565 = vmatprep.mubr.msk.f32.mxu0 %vm573_vm0, %v13866_v2  ;;  %11583 = vmatprep.mubr.msk.f32.mxu1 %vm573_vm0, %v13873_v4  ;;  %v10121_v5 = vld [vmem:[%s16998_s7] ss:$0 sm:$0xff]  ;;  %s13889_s16 = scalar_lea.vmem %s17015_s1, %s13857_s21  ;;  %v491_v22 = vld [vmem:[%s16994_s3 + $0x28] sm:$0xff]  ;;  %v492_v24 = vld [vmem:[%s16994_s3 + $0x30] sm:$0xff]  ;;  %vm1164_vm2 = vcmask 261120   ;;  %vm1121_vm3 = vcmask 23552  }
  0x1a   : > { %v509_v1 = vld [vmem:[%s471_s24] sm:$0xff]  ;;  %v510_v3 = vld [vmem:[%s471_s24 + $0x8] sm:$0xff]  ;;  %v546_v25 = vld [vmem:[%s17000_s9 + $0x18] sm:$0xff]  ;;  %vm2446_vm4 = vcmask 457728   ;;  %s17005_s1 = smov 96   ;;  %s14774_s24 = scalar_lea.vmem %s16993_s2, %s13857_s21  ;;  %vm10002_vm5 = vcmask 285696  }
  0x1b   : > { %514 = vperm.xlu0 %12848, %v509_v1   ;;  %v10122_v6 = vld [vmem:[%s16999_s8] ss:$0 sm:$0xff]  ;;  %v540_v21 = vld [vmem:[%s13889_s16 + $0x8] sm:$0xff]  ;;  %v493_v26 = vld [vmem:[%s16994_s3 + $0x38] sm:$0xff]  ;;  %vm10005_vm6 = vcmask 310272   ;;  %s13735_s20 = smov [#allocation2]  }
  0x1c   : > { %v539_v15 = vld [vmem:[%s13889_s16] sm:$0xff]  ;;  %v501_v23 = vld [vmem:[%s16995_s4 + $0x8] sm:$0xff]  ;;  %v502_v27 = vld [vmem:[%s16995_s4 + $0x10] sm:$0xff] }
  0x1d   : > { %v500_v19 = vld [vmem:[%s16995_s4] sm:$0xff]  ;;  %v495_v29 = vld [vmem:[%s16994_s3 + $0x48] sm:$0xff]  ;;  %v503_v30 = vld [vmem:[%s16995_s4 + $0x18] sm:$0xff] }
  0x1e   : > { %v490_v20 = vld [vmem:[%s16994_s3 + $0x20] sm:$0xff]  ;;  %v496_v31 = vld [vmem:[%s16994_s3 + $0x50] sm:$0xff]  ;;  %v497_v32 = vld [vmem:[%s16994_s3 + $0x58] sm:$0xff] }
  0x1f   : > { %519 = vperm.xlu0 %12848, %v510_v3   ;;  %v494_v28 = vld [vmem:[%s16994_s3 + $0x40] sm:$0xff]  ;;  %v505_v34 = vld [vmem:[%s16995_s4 + $0x28] sm:$0xff]  ;;  %v506_v35 = vld [vmem:[%s16995_s4 + $0x30] sm:$0xff] }
  0x20   : > { %v504_v33 = vld [vmem:[%s16995_s4 + $0x20] sm:$0xff]  ;;  %v545_v36 = vld [vmem:[%s17000_s9 + $0x10] sm:$0xff]  ;;  %v544_v37 = vld [vmem:[%s17000_s9 + $0x8] sm:$0xff] }
  0x21   : > { %v543_v38 = vld [vmem:[%s17000_s9] sm:$0xff]  ;;  %v550_v39 = vld [vmem:[%s17000_s9 + $0x38] sm:$0xff]  ;;  %v549_v40 = vld [vmem:[%s17000_s9 + $0x30] sm:$0xff] }
  0x22   : > { %v548_v41 = vld [vmem:[%s17000_s9 + $0x28] sm:$0xff]  ;;  %v547_v42 = vld [vmem:[%s17000_s9 + $0x20] sm:$0xff] }
  0x96   : > { %v515_v7 = vpop.permute.xlu0 %514 }
  0x97   : > { %v528_v8 = vmul.f32 %v10121_v5, %v515_v7 }
  0x99   : > { %v13883_v9 = vadd.f32 %v10122_v6, %v528_v8 }
  0x9a   : > { %v520_v10 = vpop.permute.xlu0 %519 }
  0x9b   : > { %v529_v13 = vmul.f32 %v10121_v5, %v520_v10  ;;  %11563 = vmatprep.subr.mxu0 %v13883_v9  ;;  %12799 = vmatprep.subr.mxu1 %v13883_v9 }
  0x9c   : > { %11564 = vmatpush3.msra.mxu0 %v13883_v9  ;;  %12800 = vmatpush3.msra.mxu1 %v13883_v9 }
  0x9d   : > { %v13907_v16 = vadd.f32 %v10122_v6, %v529_v13  ;;  %11566 = vmatmul.mubr.msk.f32.vlgmr.msra.gmra.mxu0 %vm573_vm0, %v487_v11  ;;  %11584 = vmatmul.mubr.msk.f32.vlgmr.msra.gmra.mxu1 %vm573_vm0, %v13897_v12 }
  0x9e   : > { %11568 = vmatprep.mubr.msk.f32.mxu0 %vm573_vm0, %v488_v14  ;;  %11586 = vmatprep.subr.mxu1 %v17007_v18 }
  0x9f   : > { %11609 = vmatprep.subr.mxu0 %v13907_v16  ;;  %11587 = vmatpush3.msra.mxu1 %v539_v15 }
  0xa0   : > { %11610 = vmatpush3.msra.mxu0 %v13907_v16  ;;  %11588 = vmatprep.mubr.msk.f32.mxu1 %vm13731_vm1, %v17007_v18 }
  0xa1   : > { %11569 = vmatmul.mubr.msk.f32.gmra.mxu0 %vm573_vm0, %v489_v17  ;;  %11589 = vmatmul.mubr.msk.f32.vlgmr.msra.gmra.mxu1 %vm573_vm0, %v500_v19 }
  0xa2   : > { %11571 = vmatprep.mubr.msk.f32.mxu0 %vm573_vm0, %v490_v20  ;;  %11591 = vmatprep.mubr.msk.f32.mxu1 %vm13731_vm1, %v17007_v18 }
  0xa3   : > { %11632 = vmatprep.subr.mxu1 %v17007_v18  ;;  %11655 = vmatprep.subr.mxu0 %v550_v39 }
  0xa4   : > { %11633 = vmatpush3.msra.mxu1 %v540_v21 }
  0xa5   : > { %11572 = vmatmul.mubr.msk.f32.gmra.mxu0 %vm573_vm0, %v491_v22  ;;  %11592 = vmatmul.mubr.msk.f32.gmra.mxu1 %vm573_vm0, %v501_v23 }
  0xa6   : > { %11574 = vmatprep.mubr.msk.f32.mxu0 %vm573_vm0, %v492_v24  ;;  %11594 = vmatprep.mubr.msk.f32.mxu1 %vm13731_vm1, %v17007_v18 }
  0xa7   : > { %11684 = vmatprep.subr.mxu1 %v546_v25 }
  0xa9   : > { %11575 = vmatmul.mubr.msk.f32.gmra.mxu0 %vm573_vm0, %v493_v26  ;;  %11595 = vmatmul.mubr.msk.f32.gmra.mxu1 %vm573_vm0, %v502_v27 }
  0xaa   : > { %11577 = vmatprep.mubr.msk.f32.mxu0 %vm573_vm0, %v494_v28  ;;  %11597 = vmatprep.mubr.msk.f32.mxu1 %vm13731_vm1, %v17007_v18 }
  0xad   : > { %11578 = vmatmul.mubr.msk.f32.gmra.mxu0 %vm573_vm0, %v495_v29  ;;  %11598 = vmatmul.mubr.msk.f32.gmra.mxu1 %vm573_vm0, %v503_v30 }
  0xae   : > { %11580 = vmatprep.mubr.msk.f32.mxu0 %vm573_vm0, %v496_v31  ;;  %11600 = vmatprep.mubr.msk.f32.mxu1 %vm13731_vm1, %v17007_v18 }
  0xb1   : > { %11581 = vmatmul.mubr.msk.f32.gmra.mxu0 %vm573_vm0, %v497_v32  ;;  %11601 = vmatmul.mubr.msk.f32.gmra.mxu1 %vm573_vm0, %v504_v33 }
  0xb2   : > { %11611 = vmatprep.mubr.msk.f32.mxu0 %vm573_vm0, %v13866_v2  ;;  %11603 = vmatprep.mubr.msk.f32.mxu1 %vm13731_vm1, %v17007_v18 }
  0xb5   : > { %11612 = vmatmul.mubr.msk.f32.vlgmr.msra.gmra.mxu0 %vm573_vm0, %v487_v11  ;;  %11604 = vmatmul.mubr.msk.f32.gmra.mxu1 %vm573_vm0, %v505_v34 }
  0xb6   : > { %11614 = vmatprep.mubr.msk.f32.mxu0 %vm573_vm0, %v488_v14  ;;  %11606 = vmatprep.mubr.msk.f32.mxu1 %vm13731_vm1, %v17007_v18 }
  0xb7   : > { %11656 = vmatpush3.msra.mxu0 %v550_v39 }
  0xb8   : > { %11657 = vmatprep.subr.mxu0 %v549_v40 }
  0xb9   : > { %11615 = vmatmul.mubr.msk.f32.gmra.mxu0 %vm573_vm0, %v489_v17  ;;  %11607 = vmatmul.mubr.msk.f32.gmra.mxu1 %vm573_vm0, %v506_v35 }
  0xba   : > { %11617 = vmatprep.mubr.msk.f32.mxu0 %vm573_vm0, %v490_v20  ;;  %11634 = vmatprep.mubr.msk.f32.mxu1 %vm13731_vm1, %v17007_v18 }
  0xbb   : > { %11658 = vmatpush3.msra.mxu0 %v549_v40 }
  0xbc   : > { %11659 = vmatprep.subr.mxu0 %v548_v41 }
  0xbd   : > { %11618 = vmatmul.mubr.msk.f32.gmra.mxu0 %vm573_vm0, %v491_v22  ;;  %11635 = vmatmul.mubr.msk.f32.vlgmr.msra.gmra.mxu1 %vm573_vm0, %v500_v19 }
  0xbe   : > { %11620 = vmatprep.mubr.msk.f32.mxu0 %vm573_vm0, %v492_v24  ;;  %11637 = vmatprep.mubr.msk.f32.mxu1 %vm13731_vm1, %v17007_v18 }
  0xbf   : > { %11685 = vmatpush3.msra.mxu1 %v546_v25  ;;  %11660 = vmatpush3.msra.mxu0 %v548_v41 }
  0xc0   : > { %11686 = vmatprep.subr.mxu1 %v545_v36  ;;  %11661 = vmatprep.subr.mxu0 %v547_v42 }
  0xc1   : > { %11621 = vmatmul.mubr.msk.f32.gmra.mxu0 %vm573_vm0, %v493_v26  ;;  %11638 = vmatmul.mubr.msk.f32.gmra.mxu1 %vm573_vm0, %v501_v23 }
  0xc2   : > { %11623 = vmatprep.mubr.msk.f32.mxu0 %vm573_vm0, %v494_v28  ;;  %11640 = vmatprep.mubr.msk.f32.mxu1 %vm13731_vm1, %v17007_v18 }
  0xc3   : > { %11687 = vmatpush3.msra.mxu1 %v545_v36  ;;  %11662 = vmatpush3.msra.mxu0 %v547_v42 }
  0xc4   : > { %11688 = vmatprep.subr.mxu1 %v544_v37 }
  0xc5   : > { %11624 = vmatmul.mubr.msk.f32.gmra.mxu0 %vm573_vm0, %v495_v29  ;;  %11641 = vmatmul.mubr.msk.f32.gmra.mxu1 %vm573_vm0, %v502_v27 }
  0xc6   : > { %11626 = vmatprep.mubr.msk.f32.mxu0 %vm573_vm0, %v496_v31  ;;  %11643 = vmatprep.mubr.msk.f32.mxu1 %vm13731_vm1, %v17007_v18 }
  0xc7   : > { %11689 = vmatpush3.msra.mxu1 %v544_v37 }
  0xc8   : > { %11690 = vmatprep.subr.mxu1 %v543_v38 }
  0xc9   : > { %11627 = vmatmul.mubr.msk.f32.gmra.mxu0 %vm573_vm0, %v497_v32  ;;  %11644 = vmatmul.mubr.msk.f32.gmra.mxu1 %vm573_vm0, %v503_v30 }
  0xca   : > { %11629 = vmatprep.mubr.msk.f32.mxu0 %vm573_vm0, %v13873_v4  ;;  %11646 = vmatprep.mubr.msk.f32.mxu1 %vm13731_vm1, %v17007_v18 }
  0xcb   : > { %11691 = vmatpush3.msra.mxu1 %v543_v38 }
  0xcd   : > { %11630 = vmatmul.mubr.msk.f32.gmra.mxu0 %vm573_vm0, %v13897_v12  ;;  %11647 = vmatmul.mubr.msk.f32.gmra.mxu1 %vm573_vm0, %v504_v33 }
  0xce   : > { %11649 = vmatprep.mubr.msk.f32.mxu1 %vm13731_vm1, %v17007_v18 }
  0xd1   : > { %11650 = vmatmul.mubr.msk.f32.gmra.mxu1 %vm573_vm0, %v505_v34 }
  0xd2   : > { %11652 = vmatprep.mubr.msk.f32.mxu1 %vm13731_vm1, %v17007_v18 }
  0xd5   : > { %11653 = vmatmul.mubr.msk.f32.gmra.mxu1 %vm573_vm0, %v506_v35 }
 0x15d   : > { %v11567_v43 = vpop.f32.mrf.mxu0  ;;  %v11585_v44 = vpop.f32.mrf.mxu1 }
 0x15f   : > { %v682_v45 = vpop.f32.mrf.mxu0  ;;  %v742_v46 = vpop.f32.mrf.mxu1 }
 0x160   : > { %11692 = vmatprep.mubr.msk.f32.mxu1 %vm1164_vm2, %v682_v45 }
 0x161   : > { %v11570_v47 = vpop.f32.mrf.mxu0  ;;  %11693 = vmatmul.mubr.msk.f32.vlgmr.msra.gmra.mxu1 %vm1164_vm2, %v11567_v43  ;;  %v14060_v48 = vpop.f32.mrf.mxu1 }
 0x162   : > { %v1107_v49 = vmul.f32 %v14060_v48, %v14060_v48 }
 0x163   : > { %v692_v50 = vpop.f32.mrf.mxu0  ;;  %v11590_v51 = vpop.f32.mrf.mxu1 }
 0x164   : > { %11695 = vmatprep.mubr.msk.f32.mxu1 %vm1164_vm2, %v692_v50  ;;  %v1122_v52 = vsel %vm1121_vm3, %v1107_v49, 0.0 }
 0x165   : > { %v11573_v53 = vpop.f32.mrf.mxu0  ;;  %11696 = vmatmul.mubr.msk.f32.gmra.mxu1 %vm1164_vm2, %v11570_v47  ;;  %v14067_v54 = vpop.f32.mrf.mxu1  ;;  %1123 = vadd.xlane.f32.xlu1 %v1122_v52 }
 0x166   : > { %v1108_v55 = vmul.f32 %v14067_v54, %v14067_v54 }
 0x167   : > { %v702_v56 = vpop.f32.mrf.mxu0  ;;  %v11593_v57 = vpop.f32.mrf.mxu1 }
 0x168   : > { %11698 = vmatprep.mubr.msk.f32.mxu1 %vm1164_vm2, %v702_v56  ;;  %v1125_v58 = vsel %vm1121_vm3, %v1108_v55, 0.0 }
 0x169   : > { %v11576_v59 = vpop.f32.mrf.mxu0  ;;  %11699 = vmatmul.mubr.msk.f32.gmra.mxu1 %vm1164_vm2, %v11573_v53  ;;  %v14074_v60 = vpop.f32.mrf.mxu1  ;;  %1126 = vadd.xlane.f32.xlu1 %v1125_v58 }
 0x16a   : > { %11663 = vmatprep.mubr.msk.f32.mxu0 %vm1164_vm2, %v11576_v59  ;;  %v1109_v61 = vmul.f32 %v14074_v60, %v14074_v60 }
 0x16b   : > { %v712_v62 = vpop.f32.mrf.mxu0  ;;  %v11596_v63 = vpop.f32.mrf.mxu1 }
 0x16c   : > { %11701 = vmatprep.mubr.msk.f32.mxu1 %vm1164_vm2, %v712_v62  ;;  %v1128_v0 = vsel %vm1121_vm3, %v1109_v61, 0.0 }
 0x16d   : > { %v11579_v1 = vpop.f32.mrf.mxu0  ;;  %v14081_v2 = vpop.f32.mrf.mxu1  ;;  %1129 = vadd.xlane.f32.xlu0 %v1128_v0 }
 0x16e   : > { %v1110_v3 = vmul.f32 %v14081_v2, %v14081_v2 }
 0x16f   : > { %v722_v4 = vpop.f32.mrf.mxu0  ;;  %v11599_v5 = vpop.f32.mrf.mxu1 }
 0x170   : > { %11664 = vmatmul.mubr.msk.f32.vlgmr.msra.gmra.mxu0 %vm1164_vm2, %v722_v4  ;;  %v1131_v6 = vsel %vm1121_vm3, %v1110_v3, 0.0 }
 0x171   : > { %v11582_v7 = vpop.f32.mrf.mxu0  ;;  %11666 = vmatprep.mubr.msk.f32.mxu0 %vm1164_vm2, %v11579_v1  ;;  %v14088_v8 = vpop.f32.mrf.mxu1  ;;  %1132 = vadd.xlane.f32.xlu1 %v1131_v6  ;;  %v558_v6 = vld [vmem:[%s17002_s11 + $0x18] sm:$0xff] }
 0x172   : > { %v1111_v10 = vmul.f32 %v14088_v8, %v14088_v8  ;;  %11713 = vmatprep.subr.mxu0 %v558_v6 }
 0x173   : > { %v732_v11 = vpop.f32.mrf.mxu0  ;;  %v11602_v12 = vpop.f32.mrf.mxu1  ;;  %11714 = vmatpush3.msra.mxu0 %v558_v6 }
 0x174   : > { %11667 = vmatmul.mubr.msk.f32.gmra.mxu0 %vm1164_vm2, %v732_v11  ;;  %v1134_v13 = vsel %vm1121_vm3, %v1111_v10, 0.0  ;;  %v556_v10 = vld [vmem:[%s17002_s11 + $0x8] sm:$0xff]  ;;  %v555_v11 = vld [vmem:[%s17002_s11] sm:$0xff]  ;;  %v14171_v12 = vld [vmem:[%s17001_s10 + $0x18] sm:$0xff] }
 0x175   : > { %v11613_v14 = vpop.f32.mrf.mxu0  ;;  %11669 = vmatprep.mubr.msk.f32.mxu0 %vm1164_vm2, %v11582_v7  ;;  %v14095_v15 = vpop.f32.mrf.mxu1  ;;  %1135 = vadd.xlane.f32.xlu1 %v1134_v13  ;;  %v557_v7 = vld [vmem:[%s17002_s11 + $0x10] sm:$0xff] }
 0x176   : > { %v1112_v17 = vmul.f32 %v14095_v15, %v14095_v15  ;;  %11715 = vmatprep.subr.mxu0 %v557_v7 }
 0x177   : > { %v938_v19 = vpop.f32.mrf.mxu0  ;;  %v11605_v20 = vpop.f32.mrf.mxu1  ;;  %11716 = vmatpush3.msra.mxu0 %v557_v7 }
 0x178   : > { %11670 = vmatmul.mubr.msk.f32.gmra.mxu0 %vm1164_vm2, %v742_v46  ;;  %11702 = vmatmul.mubr.msk.f32.gmra.mxu1 %vm1164_vm2, %v938_v19  ;;  %v1137_v21 = vsel %vm1121_vm3, %v1112_v17, 0.0  ;;  %v1519_v20 = vlaneseq }
 0x179   : > { %v11616_v22 = vpop.f32.mrf.mxu0  ;;  %11704 = vmatprep.mubr.msk.f32.mxu1 %vm1164_vm2, %v11613_v14  ;;  %11672 = vmatprep.mubr.msk.f32.mxu0 %vm1164_vm2, %v11585_v44  ;;  %v14104_v23 = vpop.f32.mrf.mxu1 }
 0x17a   : > { %v1113_v24 = vmul.f32 %v14104_v23, %v14104_v23  ;;  %1138 = vadd.xlane.f32.xlu1 %v1137_v21  ;;  %11717 = vmatprep.subr.mxu0 %v556_v10 }
 0x17b   : > { %v948_v25 = vpop.f32.mrf.mxu0  ;;  %v11608_v26 = vpop.f32.mrf.mxu1  ;;  %11718 = vmatpush3.msra.mxu0 %v556_v10 }
 0x17c   : > { %11705 = vmatmul.mubr.msk.f32.gmra.mxu1 %vm1164_vm2, %v948_v25  ;;  %v1140_v27 = vsel %vm1121_vm3, %v1113_v24, 0.0  ;;  %11719 = vmatprep.subr.mxu0 %v555_v11 }
 0x17d   : > { %v11619_v28 = vpop.f32.mrf.mxu0  ;;  %11707 = vmatprep.mubr.msk.f32.mxu1 %vm1164_vm2, %v11616_v22  ;;  %v14111_v29 = vpop.f32.mrf.mxu1  ;;  %11720 = vmatpush3.msra.mxu0 %v555_v11  ;;  %v14174_v22 = vshrl.u32 %v1519_v20, 7 }
 0x17e   : > { %v1114_v30 = vmul.f32 %v14111_v29, %v14111_v29  ;;  %1141 = vadd.xlane.f32.xlu1 %v1140_v27  ;;  %11771 = vmatprep.subr.mxu0 %v14171_v12  ;;  %v14182_v27 = vld [vmem:[%s17003_s12] sm:$0xff] }
 0x17f   : > { %v958_v31 = vpop.f32.mrf.mxu0  ;;  %v11636_v32 = vpop.f32.mrf.mxu1  ;;  %v14177_v26 = vsub.s32 6, %v14174_v22 }
 0x180   : > { %11708 = vmatmul.mubr.msk.f32.gmra.mxu1 %vm1164_vm2, %v958_v31  ;;  %v1143_v33 = vsel %vm1121_vm3, %v1114_v30, 0.0 }
 0x181   : > { %v11622_v34 = vpop.f32.mrf.mxu0  ;;  %11710 = vmatprep.mubr.msk.f32.mxu1 %vm1164_vm2, %v11619_v28  ;;  %v14118_v35 = vpop.f32.mrf.mxu1  ;;  %v14185_v28 = vsub.s32 0, %v14174_v22  ;;  %v14189_v32 = vrot.slane %v14182_v27, %v14177_v26 }
 0x182   : > { %11673 = vmatmul.mubr.msk.f32.gmra.mxu0 %vm1164_vm2, %v11622_v34  ;;  %v1115_v36 = vmul.f32 %v14118_v35, %v14118_v35  ;;  %1144 = vadd.xlane.f32.xlu1 %v1143_v33 }
 0x183   : > { %v968_v37 = vpop.f32.mrf.mxu0  ;;  %v11639_v38 = vpop.f32.mrf.mxu1 }
 0x184   : > { %11711 = vmatmul.mubr.msk.f32.gmra.mxu1 %vm1164_vm2, %v968_v37  ;;  %v1146_v39 = vsel %vm1121_vm3, %v1115_v36, 0.0  ;;  %v14194_v37 = vrot.slane %v14182_v27, %v14185_v28 }
 0x185   : > { %v11625_v40 = vpop.f32.mrf.mxu0  ;;  %v14125_v41 = vpop.f32.mrf.mxu1 }
 0x186   : > { %v1116_v42 = vmul.f32 %v14125_v41, %v14125_v41  ;;  %1147 = vadd.xlane.f32.xlu1 %v1146_v39 }
 0x187   : > { %v978_v43 = vpop.f32.mrf.mxu0  ;;  %v11642_v44 = vpop.f32.mrf.mxu1 }
 0x188   : > { %11675 = vmatprep.mubr.msk.f32.mxu0 %vm1164_vm2, %v978_v43  ;;  %v1149_v45 = vsel %vm1121_vm3, %v1116_v42, 0.0 }
 0x189   : > { %v11628_v46 = vpop.f32.mrf.mxu0  ;;  %11676 = vmatmul.mubr.msk.f32.gmra.mxu0 %vm1164_vm2, %v11625_v40  ;;  %v14132_v47 = vpop.f32.mrf.mxu1 }
 0x18a   : > { %v1117_v49 = vmul.f32 %v14132_v47, %v14132_v47  ;;  %1150 = vadd.xlane.f32.xlu1 %v1149_v45 }
 0x18b   : > { %v988_v50 = vpop.f32.mrf.mxu0  ;;  %v11645_v51 = vpop.f32.mrf.mxu1 }
 0x18c   : > { %11678 = vmatprep.mubr.msk.f32.mxu0 %vm1164_vm2, %v988_v50  ;;  %v1152_v52 = vsel %vm1121_vm3, %v1117_v49, 0.0 }
 0x18d   : > { %v11631_v53 = vpop.f32.mrf.mxu0  ;;  %11679 = vmatmul.mubr.msk.f32.gmra.mxu0 %vm1164_vm2, %v11628_v46  ;;  %v14139_v55 = vpop.f32.mrf.mxu1 }
 0x18e   : > { %v1118_v56 = vmul.f32 %v14139_v55, %v14139_v55  ;;  %1153 = vadd.xlane.f32.xlu1 %v1152_v52 }
 0x18f   : > { %v998_v57 = vpop.f32.mrf.mxu0  ;;  %v11648_v58 = vpop.f32.mrf.mxu1 }
 0x190   : > { %11681 = vmatprep.mubr.msk.f32.mxu0 %vm1164_vm2, %v998_v57  ;;  %v1155_v59 = vsel %vm1121_vm3, %v1118_v56, 0.0 }
 0x191   : > { %11682 = vmatmul.mubr.msk.f32.gmra.mxu0 %vm1164_vm2, %v11631_v53  ;;  %v14146_v61 = vpop.f32.mrf.mxu1  ;;  %1156 = vadd.xlane.f32.xlu0 %v1155_v59 }
 0x192   : > { %v1119_v62 = vmul.f32 %v14146_v61, %v14146_v61 }
 0x193   : > { %v11651_v63 = vpop.f32.mrf.mxu1 }
 0x194   : > { %v1158_v0 = vsel %vm1121_vm3, %v1119_v62, 0.0 }
 0x195   : > { %v14151_v1 = vpop.f32.mrf.mxu1  ;;  %1159 = vadd.xlane.f32.xlu1 %v1158_v0 }
 0x196   : > { %v1120_v3 = vmul.f32 %v14151_v1, %v14151_v1 }
 0x197   : > { %v11654_v4 = vpop.f32.mrf.mxu1 }
 0x198   : > { %v1161_v5 = vsel %vm1121_vm3, %v1120_v3, 0.0 }
 0x199   : > { %1162 = vadd.xlane.f32.xlu0 %v1161_v5 }
 0x1ee   : > { %v1124_v13 = vpop.xlane.xlu1 %1123 }
 0x1ef   : > { %v1523_v40 = vmul.f32 %v14189_v32, %v1124_v13 }
 0x1f2   : > { %v1127_v14 = vpop.xlane.xlu1 %1126 }
 0x1f3   : > { %v1524_v34 = vmul.f32 %v14189_v32, %v1127_v14 }
 0x1f6   : > { %v1130_v42 = vpop.xlane.xlu0 %1129 }
 0x1f7   : > { %v1525_v53 = vmul.f32 %v14189_v32, %v1130_v42 }
 0x1fa   : > { %v1133_v19 = vpop.xlane.xlu1 %1132 }
 0x1fb   : > { %v1526_v49 = vmul.f32 %v14189_v32, %v1133_v19 }
 0x1fe   : > { %v1136_v24 = vpop.xlane.xlu1 %1135 }
 0x1ff   : > { %v1527_v7 = vmul.f32 %v14189_v32, %v1136_v24 }
 0x203   : > { %v1139_v31 = vpop.xlane.xlu1 %1138 }
 0x204   : > { %v1528_v10 = vmul.f32 %v14189_v32, %v1139_v31 }
 0x207   : > { %v1142_v46 = vpop.xlane.xlu1 %1141 }
 0x20b   : > { %v1145_v14 = vpop.xlane.xlu1 %1144 }
 0x20c   : > { %v1530_v42 = vmul.f32 %v14189_v32, %v1145_v14 }
 0x221   : > { %v11694_v17 = vpop.f32.mrf.mxu1 }
 0x223   : > { %v1450_v21 = vpop.f32.mrf.mxu1 }
 0x225   : > { %v11697_v25 = vpop.f32.mrf.mxu1 }
 0x227   : > { %v1460_v30 = vpop.f32.mrf.mxu1 }
 0x229   : > { %v11700_v38 = vpop.f32.mrf.mxu1 }
 0x22b   : > { %v1470_v56 = vpop.f32.mrf.mxu1 }
 0x230   : > { %v11665_v33 = vpop.f32.mrf.mxu0 }
 0x231   : > { %v1456_v36 = vadd.f32 %v11694_v17, %v11665_v33 }
 0x232   : > { %v1273_v39 = vpop.f32.mrf.mxu0 }
 0x233   : > { %v1538_v43 = vadd.f32 %v1524_v34, %v1456_v36  ;;  %v1451_v44 = vadd.f32 %v1450_v21, %v1273_v39 }
 0x234   : > { %v11668_v45 = vpop.f32.mrf.mxu0 }
 0x235   : > { %v14199_v50 = vadd.f32 %v14194_v37, %v1538_v43  ;;  %v1537_v51 = vadd.f32 %v1523_v40, %v1451_v44  ;;  %v1466_v52 = vadd.f32 %v11697_v25, %v11668_v45 }
 0x236   : > { %v1283_v57 = vpop.f32.mrf.mxu0 }
 0x237   : > { %v10194_v58 = vmul.f32 -1.442695, %v14199_v50  ;;  %v14204_v59 = vadd.f32 %v14194_v37, %v1537_v51  ;;  %v1540_v62 = vadd.f32 %v1526_v49, %v1466_v52  ;;  %v1461_v63 = vadd.f32 %v1460_v30, %v1283_v57  ;;  %v1157_v57 = vpop.xlane.xlu0 %1156 }
 0x238   : > { %v11671_v0 = vpop.f32.mrf.mxu0  ;;  %v11703_v3 = vpop.f32.mrf.mxu1  ;;  %v1529_v49 = vmul.f32 %v14189_v32, %v1142_v46 }
 0x239   : > { %12850 = vpow2.f32 %v10194_v58  ;;  %v10193_v4 = vmul.f32 -1.442695, %v14204_v59  ;;  %v14208_v5 = vadd.f32 %v14194_v37, %v1540_v62  ;;  %v1539_v6 = vadd.f32 %v1525_v53, %v1461_v63 }
 0x23a   : > { %v1476_v11 = vadd.f32 %v11700_v38, %v11671_v0  ;;  %v1293_v13 = vpop.f32.mrf.mxu0  ;;  %v1480_v21 = vpop.f32.mrf.mxu1 }
 0x23b   : > { %12852 = vpow2.f32 %v10193_v4  ;;  %v10196_v17 = vmul.f32 -1.442695, %v14208_v5  ;;  %v14214_v19 = vadd.f32 %v14194_v37, %v1539_v6  ;;  %v1471_v20 = vadd.f32 %v1470_v56, %v1293_v13  ;;  %v1148_v38 = vpop.xlane.xlu1 %1147 }
 0x23c   : > { %v1542_v25 = vadd.f32 %v1528_v10, %v1476_v11  ;;  %v11706_v34 = vpop.f32.mrf.mxu1 }
 0x23d   : > { %12854 = vpow2.f32 %v10196_v17  ;;  %v10195_v30 = vmul.f32 -1.442695, %v14214_v19  ;;  %v1541_v33 = vadd.f32 %v1527_v7, %v1471_v20  ;;  %v1531_v17 = vmul.f32 %v14189_v32, %v1148_v38 }
 0x23e   : > { %v14218_v24 = vadd.f32 %v14194_v37, %v1542_v25  ;;  %v1490_v43 = vpop.f32.mrf.mxu1 }
 0x23f   : > { %12856 = vpow2.f32 %v10195_v30  ;;  %v14221_v31 = vadd.f32 %v14194_v37, %v1541_v33  ;;  %v1151_v56 = vpop.xlane.xlu1 %1150 }
 0x240   : > { %v10198_v36 = vmul.f32 -1.442695, %v14218_v24  ;;  %v11709_v62 = vpop.f32.mrf.mxu1  ;;  %v1532_v11 = vmul.f32 %v14189_v32, %v1151_v56 }
 0x241   : > { %v10197_v39 = vmul.f32 -1.442695, %v14221_v31 }
 0x242   : > { %12858 = vpow2.f32 %v10198_v36  ;;  %v11674_v40 = vpop.f32.mrf.mxu0  ;;  %v1500_v20 = vpop.f32.mrf.mxu1 }
 0x243   : > { %12860 = vpow2.f32 %v10197_v39  ;;  %v1486_v44 = vadd.f32 %v11703_v3, %v11674_v40  ;;  %v1154_v33 = vpop.xlane.xlu1 %1153  ;;  %v1534_v40 = vmul.f32 %v14189_v32, %v1157_v57 }
 0x244   : > { %v1303_v45 = vpop.f32.mrf.mxu0 }
 0x245   : > { %v1544_v51 = vadd.f32 %v1530_v42, %v1486_v44  ;;  %v1481_v52 = vadd.f32 %v1480_v21, %v1303_v45  ;;  %v1163_v42 = vpop.xlane.xlu0 %1162 }
 0x246   : > { %v12851_v53 = vpop.eup %12850  ;;  %v1536_v56 = vmul.f32 %v14189_v32, %v1163_v42 }
 0x247   : > { %v1612_v58 = vadd.f32 1.0, %v12851_v53  ;;  %v14228_v63 = vadd.f32 %v14194_v37, %v1544_v51  ;;  %v1543_v0 = vadd.f32 %v1529_v49, %v1481_v52  ;;  %v11712_v52 = vpop.f32.mrf.mxu1 }
 0x248   : > { %v12853_v4 = vpop.eup %12852 }
 0x249   : > { %v1611_v6 = vadd.f32 1.0, %v12853_v4  ;;  %v10200_v7 = vmul.f32 -1.442695, %v14228_v63  ;;  %v14232_v3 = vadd.f32 %v14194_v37, %v1543_v0  ;;  %v11677_v10 = vpop.f32.mrf.mxu0  ;;  %12862 = vrcp.f32 %v1612_v58 }
 0x24a   : > { %v12855_v46 = vpop.eup %12854  ;;  %v1496_v13 = vadd.f32 %v11706_v34, %v11677_v10  ;;  %v1533_v10 = vmul.f32 %v14189_v32, %v1154_v33 }
 0x24b   : > { %12864 = vrcp.f32 %v1611_v6  ;;  %v1614_v14 = vadd.f32 1.0, %v12855_v46  ;;  %v10199_v21 = vmul.f32 -1.442695, %v14232_v3  ;;  %v1313_v25 = vpop.f32.mrf.mxu0  ;;  %v1160_v6 = vpop.xlane.xlu1 %1159 }
 0x24c   : > { %v12857_v30 = vpop.eup %12856  ;;  %12866 = vpow2.f32 %v10200_v7  ;;  %v1546_v36 = vadd.f32 %v1532_v11, %v1496_v13  ;;  %v1491_v39 = vadd.f32 %v1490_v43, %v1313_v25  ;;  %v1535_v25 = vmul.f32 %v14189_v32, %v1160_v6 }
 0x24d   : > { %12868 = vrcp.f32 %v1614_v14  ;;  %v1613_v44 = vadd.f32 1.0, %v12857_v30  ;;  %v11680_v45 = vpop.f32.mrf.mxu0 }
 0x24e   : > { %12870 = vpow2.f32 %v10199_v21  ;;  %v14239_v34 = vadd.f32 %v14194_v37, %v1546_v36  ;;  %v1545_v38 = vadd.f32 %v1531_v17, %v1491_v39  ;;  %v1506_v49 = vadd.f32 %v11709_v62, %v11680_v45  ;;  %v1510_v17 = vpop.f32.mrf.mxu1 }
 0x24f   : > { %v12859_v51 = vpop.eup %12858  ;;  %12872 = vrcp.f32 %v1613_v44  ;;  %v1323_v53 = vpop.f32.mrf.mxu0 }
 0x250   : > { %v12861_v58 = vpop.eup %12860  ;;  %v1616_v43 = vadd.f32 1.0, %v12859_v51  ;;  %v10202_v57 = vmul.f32 -1.442695, %v14239_v34  ;;  %v14244_v0 = vadd.f32 %v14194_v37, %v1545_v38  ;;  %v1548_v4 = vadd.f32 %v1534_v40, %v1506_v49 }
 0x251   : > { %v1615_v7 = vadd.f32 1.0, %v12861_v58  ;;  %v1501_v46 = vadd.f32 %v1500_v20, %v1323_v53  ;;  %v11683_v62 = vpop.f32.mrf.mxu0 }
 0x252   : > { %12874 = vrcp.f32 %v1616_v43  ;;  %v10201_v11 = vmul.f32 -1.442695, %v14244_v0  ;;  %v14249_v13 = vadd.f32 %v14194_v37, %v1548_v4  ;;  %v1516_v14 = vadd.f32 %v11712_v52, %v11683_v62  ;;  %v553_v4 = vld [vmem:[%s17001_s10 + $0x10] sm:$0xff] }
 0x253   : > { %12876 = vrcp.f32 %v1615_v7  ;;  %v1547_v21 = vadd.f32 %v1533_v10, %v1501_v46  ;;  %v1333_v30 = vpop.f32.mrf.mxu0  ;;  %v551_v46 = vld [vmem:[%s17001_s10] sm:$0xff] }
 0x254   : > { %12878 = vpow2.f32 %v10202_v57  ;;  %v10204_v36 = vmul.f32 -1.442695, %v14249_v13  ;;  %v1550_v39 = vadd.f32 %v1536_v56, %v1516_v14  ;;  %v1511_v33 = vadd.f32 %v1510_v17, %v1333_v30 }
 0x255   : > { %12880 = vpow2.f32 %v10201_v11  ;;  %v14254_v20 = vadd.f32 %v14194_v37, %v1547_v21 }
 0x256   : > { %12882 = vpow2.f32 %v10204_v36  ;;  %v14257_v40 = vadd.f32 %v14194_v37, %v1550_v39  ;;  %v1549_v42 = vadd.f32 %v1535_v25, %v1511_v33  ;;  %v12863_v44 = vpop.eup %12862 }
 0x257   : > { %v10203_v45 = vmul.f32 -1.442695, %v14254_v20  ;;  %v1654_v56 = vmul.f32 %v12863_v44, %v14199_v50  ;;  %v552_v50 = vld [vmem:[%s17001_s10 + $0x8] sm:$0xff] }
 0x258   : > { %v12865_v38 = vpop.eup %12864  ;;  %v10206_v32 = vmul.f32 -1.442695, %v14257_v40  ;;  %v14262_v49 = vadd.f32 %v14194_v37, %v1549_v42 }
 0x259   : > { %v12867_v51 = vpop.eup %12866  ;;  %12884 = vpow2.f32 %v10203_v45  ;;  %v1653_v52 = vmul.f32 %v12865_v38, %v14204_v59 }
 0x25a   : > { %v12869_v53 = vpop.eup %12868  ;;  %v1618_v58 = vadd.f32 1.0, %v12867_v51  ;;  %12886 = vpow2.f32 %v10206_v32  ;;  %v10205_v43 = vmul.f32 -1.442695, %v14262_v49 }
 0x25b   : > { %v12871_v57 = vpop.eup %12870  ;;  %11721 = vmatprep.mubr.msk.f32.mxu0 %vm1164_vm2, %v1653_v52  ;;  %v1656_v7 = vmul.f32 %v12869_v53, %v14208_v5 }
 0x25c   : > { %v12873_v37 = vpop.eup %12872  ;;  %12888 = vrcp.f32 %v1618_v58  ;;  %v1617_v6 = vadd.f32 1.0, %v12871_v57  ;;  %11722 = vmatmul.mubr.msk.f32.vlgmr.msra.gmra.mxu0 %vm1164_vm2, %v1654_v56 }
 0x25d   : > { %12890 = vpow2.f32 %v10205_v43  ;;  %v1655_v59 = vmul.f32 %v12873_v37, %v14214_v19  ;;  %11772 = vmatpush3.msra.mxu0 %v14171_v12 }
 0x25e   : > { %12892 = vrcp.f32 %v1617_v6  ;;  %11773 = vmatprep.subr.mxu0 %v553_v4 }
 0x25f   : > { %v12875_v10 = vpop.eup %12874  ;;  %11724 = vmatprep.mubr.msk.f32.mxu0 %vm1164_vm2, %v1655_v59  ;;  %11774 = vmatpush3.msra.mxu0 %v553_v4  ;;  %v14324_v4 = vsub.s32 1, %v14174_v22 }
 0x260   : > { %v12877_v62 = vpop.eup %12876  ;;  %11725 = vmatmul.mubr.msk.f32.gmra.mxu0 %vm1164_vm2, %v1656_v7  ;;  %11775 = vmatprep.subr.mxu0 %v552_v50  ;;  %v1658_v5 = vmul.f32 %v12875_v10, %v14218_v24 }
 0x261   : > { %v12879_v12 = vpop.eup %12878  ;;  %v1657_v19 = vmul.f32 %v12877_v62, %v14221_v31  ;;  %11776 = vmatpush3.msra.mxu0 %v552_v50  ;;  %v14328_v37 = vrot.slane %v14182_v27, %v14324_v4 }
 0x262   : > { %v12881_v11 = vpop.eup %12880  ;;  %v1620_v14 = vadd.f32 1.0, %v12879_v12  ;;  %11777 = vmatprep.subr.mxu0 %v551_v46 }
 0x263   : > { %v12883_v17 = vpop.eup %12882  ;;  %v1619_v21 = vadd.f32 1.0, %v12881_v11  ;;  %11727 = vmatprep.mubr.msk.f32.mxu0 %vm1164_vm2, %v1657_v19  ;;  %11778 = vmatpush3.msra.mxu0 %v551_v46 }
 0x264   : > { %12894 = vrcp.f32 %v1620_v14  ;;  %v1622_v25 = vadd.f32 1.0, %v12883_v17  ;;  %11728 = vmatmul.mubr.msk.f32.gmra.mxu0 %vm1164_vm2, %v1658_v5  ;;  %11799 = vmatprep.subr.mxu0 %v17007_v18 }
 0x265   : > { %12896 = vrcp.f32 %v1619_v21 }
 0x266   : > { %v12885_v30 = vpop.eup %12884  ;;  %12898 = vrcp.f32 %v1622_v25 }
 0x267   : > { %v12887_v31 = vpop.eup %12886  ;;  %v1621_v36 = vadd.f32 1.0, %v12885_v30 }
 0x268   : > { %v1624_v39 = vadd.f32 1.0, %v12887_v31 }
 0x269   : > { %v12889_v24 = vpop.eup %12888  ;;  %12900 = vrcp.f32 %v1621_v36 }
 0x26a   : > { %v12891_v33 = vpop.eup %12890  ;;  %12902 = vrcp.f32 %v1624_v39  ;;  %v1660_v38 = vmul.f32 %v12889_v24, %v14228_v63 }
 0x26b   : > { %v12893_v42 = vpop.eup %12892  ;;  %v1623_v44 = vadd.f32 1.0, %v12891_v33 }
 0x26c   : > { %v1659_v45 = vmul.f32 %v12893_v42, %v14232_v3 }
 0x26d   : > { %12904 = vrcp.f32 %v1623_v44 }
 0x26e   : > { %11730 = vmatprep.mubr.msk.f32.mxu0 %vm1164_vm2, %v1659_v45 }
 0x26f   : > { %11731 = vmatmul.mubr.msk.f32.gmra.mxu0 %vm1164_vm2, %v1660_v38 }
 0x271   : > { %v12895_v32 = vpop.eup %12894 }
 0x272   : > { %v12897_v51 = vpop.eup %12896  ;;  %v1662_v53 = vmul.f32 %v12895_v32, %v14239_v34 }
 0x273   : > { %v1661_v52 = vmul.f32 %v12897_v51, %v14244_v0  ;;  %v12899_v56 = vpop.eup %12898 }
 0x274   : > { %v1664_v63 = vmul.f32 %v12899_v56, %v14249_v13  ;;  %v562_v13 = vld [vmem:[%s17002_s11 + $0x38] sm:$0xff] }
 0x275   : > { %11733 = vmatprep.mubr.msk.f32.mxu0 %vm1164_vm2, %v1661_v52  ;;  %11742 = vmatprep.subr.mxu1 %v562_v13 }
 0x276   : > { %v12901_v58 = vpop.eup %12900  ;;  %11734 = vmatmul.mubr.msk.f32.gmra.mxu0 %vm1164_vm2, %v1662_v53  ;;  %11743 = vmatpush3.msra.mxu1 %v562_v13 }
 0x277   : > { %v1663_v3 = vmul.f32 %v12901_v58, %v14254_v20  ;;  %v12903_v43 = vpop.eup %12902  ;;  %v561_v20 = vld [vmem:[%s17002_s11 + $0x30] sm:$0xff] }
 0x278   : > { %v1666_v34 = vmul.f32 %v12903_v43, %v14257_v40  ;;  %11744 = vmatprep.subr.mxu1 %v561_v20  ;;  %v560_v40 = vld [vmem:[%s17002_s11 + $0x28] sm:$0xff] }
 0x279   : > { %11736 = vmatprep.mubr.msk.f32.mxu0 %vm1164_vm2, %v1663_v3  ;;  %11745 = vmatpush3.msra.mxu1 %v561_v20 }
 0x27a   : > { %v12905_v57 = vpop.eup %12904  ;;  %11737 = vmatmul.mubr.msk.f32.gmra.mxu0 %vm1164_vm2, %v1664_v63  ;;  %11746 = vmatprep.subr.mxu1 %v560_v40 }
 0x27b   : > { %v1665_v0 = vmul.f32 %v12905_v57, %v14262_v49  ;;  %11747 = vmatpush3.msra.mxu1 %v560_v40  ;;  %v559_v49 = vld [vmem:[%s17002_s11 + $0x20] sm:$0xff] }
 0x27c   : > { %11748 = vmatprep.subr.mxu1 %v559_v49 }
 0x27d   : > { %11739 = vmatprep.mubr.msk.f32.mxu0 %vm1164_vm2, %v1665_v0  ;;  %11749 = vmatpush3.msra.mxu1 %v559_v49 }
 0x27e   : > { %11740 = vmatmul.mubr.msk.f32.gmra.mxu0 %vm1164_vm2, %v1666_v34  ;;  %11782 = vmatprep.subr.mxu1 %v17007_v18 }
 0x27f   : > { %11779 = vmatprep.mubr.msk.f32.mxu0 %vm1164_vm2, %v13883_v9 }
 0x282   : > { %11780 = vmatmul.mubr.msk.f32.vlgmr.msra.gmra.mxu0 %vm1164_vm2, %v13907_v16 }
 0x283   : > { %11813 = vmatprep.mubr.msk.f32.mxu0 %vm13731_vm1, %v17007_v18 }
 0x31c   : > { %v11723_v6 = vpop.f32.mrf.mxu0 }
 0x31d   : > { %v14331_v59 = vadd.f32 %v11723_v6, %v14328_v37 }
 0x31e   : > { %v1779_v50 = vpop.f32.mrf.mxu0 }
 0x31f   : > { %v10222_v7 = vmul.f32 -1.442695, %v14331_v59  ;;  %v14335_v10 = vadd.f32 %v1779_v50, %v14328_v37 }
 0x320   : > { %v11726_v46 = vpop.f32.mrf.mxu0 }
 0x321   : > { %12906 = vpow2.f32 %v10222_v7  ;;  %v10221_v62 = vmul.f32 -1.442695, %v14335_v10  ;;  %v14339_v12 = vadd.f32 %v11726_v46, %v14328_v37 }
 0x322   : > { %v1789_v19 = vpop.f32.mrf.mxu0 }
 0x323   : > { %12908 = vpow2.f32 %v10221_v62  ;;  %v10224_v11 = vmul.f32 -1.442695, %v14339_v12  ;;  %v14343_v5 = vadd.f32 %v1789_v19, %v14328_v37 }
 0x324   : > { %v11729_v14 = vpop.f32.mrf.mxu0 }
 0x325   : > { %12910 = vpow2.f32 %v10224_v11  ;;  %v10223_v17 = vmul.f32 -1.442695, %v14343_v5  ;;  %v14347_v21 = vadd.f32 %v11729_v14, %v14328_v37 }
 0x326   : > { %v1799_v25 = vpop.f32.mrf.mxu0 }
 0x327   : > { %12912 = vpow2.f32 %v10223_v17  ;;  %v10226_v30 = vmul.f32 -1.442695, %v14347_v21  ;;  %v14351_v31 = vadd.f32 %v1799_v25, %v14328_v37 }
 0x329   : > { %12914 = vpow2.f32 %v10226_v30  ;;  %v10225_v36 = vmul.f32 -1.442695, %v14351_v31 }
 0x32b   : > { %12916 = vpow2.f32 %v10225_v36 }
 0x32e   : > { %v12907_v39 = vpop.eup %12906 }
 0x32f   : > { %v1891_v24 = vadd.f32 1.0, %v12907_v39  ;;  %v11732_v33 = vpop.f32.mrf.mxu0 }
 0x330   : > { %v12909_v42 = vpop.eup %12908  ;;  %v14355_v44 = vadd.f32 %v11732_v33, %v14328_v37 }
 0x331   : > { %v1890_v45 = vadd.f32 1.0, %v12909_v42  ;;  %v1809_v38 = vpop.f32.mrf.mxu0  ;;  %12918 = vrcp.f32 %v1891_v24 }
 0x332   : > { %v12911_v32 = vpop.eup %12910  ;;  %v10228_v51 = vmul.f32 -1.442695, %v14355_v44  ;;  %v14359_v52 = vadd.f32 %v1809_v38, %v14328_v37 }
 0x333   : > { %12920 = vrcp.f32 %v1890_v45  ;;  %v1893_v53 = vadd.f32 1.0, %v12911_v32 }
 0x334   : > { %v12913_v56 = vpop.eup %12912  ;;  %12922 = vpow2.f32 %v10228_v51  ;;  %v10227_v58 = vmul.f32 -1.442695, %v14359_v52 }
 0x335   : > { %12924 = vrcp.f32 %v1893_v53  ;;  %v1892_v3 = vadd.f32 1.0, %v12913_v56 }
 0x336   : > { %v12915_v63 = vpop.eup %12914  ;;  %12926 = vpow2.f32 %v10227_v58  ;;  %v11735_v43 = vpop.f32.mrf.mxu0 }
 0x337   : > { %12928 = vrcp.f32 %v1892_v3  ;;  %v1895_v57 = vadd.f32 1.0, %v12915_v63  ;;  %v14363_v0 = vadd.f32 %v11735_v43, %v14328_v37 }
 0x338   : > { %v12917_v34 = vpop.eup %12916  ;;  %v1819_v13 = vpop.f32.mrf.mxu0 }
 0x339   : > { %v1894_v20 = vadd.f32 1.0, %v12917_v34  ;;  %v10230_v40 = vmul.f32 -1.442695, %v14363_v0  ;;  %v14367_v49 = vadd.f32 %v1819_v13, %v14328_v37  ;;  %12930 = vrcp.f32 %v1895_v57 }
 0x33a   : > { %v11738_v6 = vpop.f32.mrf.mxu0 }
 0x33b   : > { %12932 = vrcp.f32 %v1894_v20  ;;  %v10229_v50 = vmul.f32 -1.442695, %v14367_v49  ;;  %v14371_v7 = vadd.f32 %v11738_v6, %v14328_v37 }
 0x33c   : > { %12934 = vpow2.f32 %v10230_v40  ;;  %v1829_v46 = vpop.f32.mrf.mxu0 }
 0x33d   : > { %12936 = vpow2.f32 %v10229_v50  ;;  %v10232_v62 = vmul.f32 -1.442695, %v14371_v7  ;;  %v14375_v19 = vadd.f32 %v1829_v46, %v14328_v37 }
 0x33e   : > { %v11741_v11 = vpop.f32.mrf.mxu0  ;;  %v12919_v14 = vpop.eup %12918 }
 0x33f   : > { %12938 = vpow2.f32 %v10232_v62  ;;  %v10231_v17 = vmul.f32 -1.442695, %v14375_v19  ;;  %v14379_v25 = vadd.f32 %v11741_v11, %v14328_v37  ;;  %v14389_v38 = vmul.f32 %v12919_v14, %v14331_v59 }
 0x340   : > { %v12921_v30 = vpop.eup %12920  ;;  %v1839_v36 = vpop.f32.mrf.mxu0 }
 0x341   : > { %v12923_v39 = vpop.eup %12922  ;;  %v14382_v24 = vmul.f32 %v12921_v30, %v14335_v10  ;;  %12940 = vpow2.f32 %v10231_v17  ;;  %v10234_v33 = vmul.f32 -1.442695, %v14379_v25  ;;  %v14386_v42 = vadd.f32 %v1839_v36, %v14328_v37 }
 0x342   : > { %v12925_v45 = vpop.eup %12924  ;;  %v1897_v32 = vadd.f32 1.0, %v12923_v39 }
 0x343   : > { %v12927_v51 = vpop.eup %12926  ;;  %12942 = vpow2.f32 %v10234_v33  ;;  %v10233_v53 = vmul.f32 -1.442695, %v14386_v42  ;;  %11750 = vmatprep.mubr.msk.f32.mxu1 %vm1164_vm2, %v14382_v24  ;;  %v1935_v59 = vmul.f32 %v12925_v45, %v14339_v12 }
 0x344   : > { %v12929_v10 = vpop.eup %12928  ;;  %12944 = vrcp.f32 %v1897_v32  ;;  %v1896_v56 = vadd.f32 1.0, %v12927_v51  ;;  %11751 = vmatmul.mubr.msk.f32.vlgmr.msra.gmra.mxu1 %vm1164_vm2, %v14389_v38 }
 0x345   : > { %v1934_v37 = vmul.f32 %v12929_v10, %v14343_v5  ;;  %12946 = vpow2.f32 %v10233_v53 }
 0x346   : > { %12948 = vrcp.f32 %v1896_v56  ;;  %v12931_v58 = vpop.eup %12930 }
 0x347   : > { %11753 = vmatprep.mubr.msk.f32.mxu1 %vm1164_vm2, %v1934_v37  ;;  %v1937_v34 = vmul.f32 %v12931_v58, %v14347_v21 }
 0x348   : > { %v12933_v3 = vpop.eup %12932  ;;  %11754 = vmatmul.mubr.msk.f32.gmra.mxu1 %vm1164_vm2, %v1935_v59 }
 0x349   : > { %v12935_v63 = vpop.eup %12934  ;;  %v1936_v43 = vmul.f32 %v12933_v3, %v14351_v31 }
 0x34a   : > { %v12937_v57 = vpop.eup %12936  ;;  %v1899_v13 = vadd.f32 1.0, %v12935_v63 }
 0x34b   : > { %v1898_v20 = vadd.f32 1.0, %v12937_v57  ;;  %11756 = vmatprep.mubr.msk.f32.mxu1 %vm1164_vm2, %v1936_v43 }
 0x34c   : > { %v12939_v5 = vpop.eup %12938  ;;  %12950 = vrcp.f32 %v1899_v13  ;;  %11757 = vmatmul.mubr.msk.f32.gmra.mxu1 %vm1164_vm2, %v1937_v34 }
 0x34d   : > { %12952 = vrcp.f32 %v1898_v20  ;;  %v1901_v12 = vadd.f32 1.0, %v12939_v5 }
 0x34e   : > { %v12941_v40 = vpop.eup %12940 }
 0x34f   : > { %v1900_v6 = vadd.f32 1.0, %v12941_v40  ;;  %12954 = vrcp.f32 %v1901_v12 }
 0x350   : > { %v12943_v50 = vpop.eup %12942 }
 0x351   : > { %v12945_v46 = vpop.eup %12944  ;;  %12956 = vrcp.f32 %v1900_v6  ;;  %v1903_v31 = vadd.f32 1.0, %v12943_v50 }
 0x352   : > { %v12947_v62 = vpop.eup %12946  ;;  %v1939_v17 = vmul.f32 %v12945_v46, %v14355_v44  ;;  %v14481_v46 = vsub.s32 4, %v14174_v22 }
 0x353   : > { %v12949_v11 = vpop.eup %12948  ;;  %v1902_v21 = vadd.f32 1.0, %v12947_v62  ;;  %12958 = vrcp.f32 %v1903_v31 }
 0x354   : > { %v1938_v14 = vmul.f32 %v12949_v11, %v14359_v52  ;;  %v2843_v11 = vrot.slane %v14182_v27, %v14481_v46 }
 0x355   : > { %12960 = vrcp.f32 %v1902_v21  ;;  %v570_v21 = vld [vmem:[%s17002_s11 + $0x78] sm:$0xff] }
 0x356   : > { %11759 = vmatprep.mubr.msk.f32.mxu1 %vm1164_vm2, %v1938_v14  ;;  %11783 = vmatpush3.msra.mxu1 %v1938_v14  ;;  %v569_v14 = vld [vmem:[%s17002_s11 + $0x70] sm:$0xff] }
 0x357   : > { %11760 = vmatmul.mubr.msk.f32.gmra.mxu1 %vm1164_vm2, %v1939_v17  ;;  %11784 = vmatprep.subr.mxu1 %v17007_v18 }
 0x358   : > { %11785 = vmatpush3.msra.mxu1 %v1937_v34 }
 0x359   : > { %v12951_v30 = vpop.eup %12950  ;;  %11786 = vmatprep.subr.mxu1 %v17007_v18 }
 0x35a   : > { %v12953_v36 = vpop.eup %12952  ;;  %11787 = vmatpush3.msra.mxu1 %v1936_v43  ;;  %v1941_v44 = vmul.f32 %v12951_v30, %v14363_v0  ;;  %v567_v30 = vld [vmem:[%s17002_s11 + $0x60] sm:$0xff] }
 0x35b   : > { %v1940_v39 = vmul.f32 %v12953_v36, %v14367_v49  ;;  %11788 = vmatprep.subr.mxu1 %v17007_v18  ;;  %v14501_v36 = vpop.f32.mrf.mxu0 }
 0x35c   : > { %11789 = vmatpush3.msra.mxu1 %v1935_v59  ;;  %v12955_v52 = vpop.eup %12954 }
 0x35d   : > { %11762 = vmatprep.mubr.msk.f32.mxu1 %vm1164_vm2, %v1940_v39  ;;  %11790 = vmatprep.subr.mxu1 %v17007_v18  ;;  %v1943_v32 = vmul.f32 %v12955_v52, %v14371_v7  ;;  %v507_v7 = vld [vmem:[%s16996_s5] sm:$0xff]  ;;  %v14503_v52 = vpop.f32.mrf.mxu0 }
 0x35e   : > { %v12957_v33 = vpop.eup %12956  ;;  %11763 = vmatmul.mubr.msk.f32.gmra.mxu1 %vm1164_vm2, %v1941_v44 }
 0x35f   : > { %v1942_v45 = vmul.f32 %v12957_v33, %v14375_v19  ;;  %11791 = vmatpush3.msra.mxu1 %v1934_v37 }
 0x360   : > { %11792 = vmatprep.subr.mxu1 %v17007_v18  ;;  %v12959_v49 = vpop.eup %12958 }
 0x361   : > { %11793 = vmatpush3.msra.mxu1 %v14389_v38  ;;  %11765 = vmatprep.mubr.msk.f32.mxu1 %vm1164_vm2, %v1942_v45  ;;  %v1945_v19 = vmul.f32 %v12959_v49, %v14379_v25  ;;  %v566_v25 = vld [vmem:[%s17002_s11 + $0x58] sm:$0xff]  ;;  %v563_v38 = vld [vmem:[%s17002_s11 + $0x40] sm:$0xff] }
 0x362   : > { %v12961_v0 = vpop.eup %12960  ;;  %11794 = vmatprep.subr.mxu1 %v17007_v18  ;;  %11766 = vmatmul.mubr.msk.f32.gmra.mxu1 %vm1164_vm2, %v1943_v32 }
 0x363   : > { %v1944_v51 = vmul.f32 %v12961_v0, %v14386_v42  ;;  %11795 = vmatpush3.msra.mxu1 %v14382_v24  ;;  %v565_v24 = vld [vmem:[%s17002_s11 + $0x50] sm:$0xff]  ;;  %v564_v42 = vld [vmem:[%s17002_s11 + $0x48] sm:$0xff] }
 0x364   : > { %11816 = vmatprep.subr.mxu1 %v17007_v18 }
 0x365   : > { %11768 = vmatprep.mubr.msk.f32.mxu1 %vm1164_vm2, %v1944_v51 }
 0x366   : > { %11769 = vmatmul.mubr.msk.f32.gmra.mxu1 %vm1164_vm2, %v1945_v19 }
 0x367   : > { %11796 = vmatprep.mubr.msk.f32.mxu1 %vm13731_vm1, %v17007_v18 }
 0x36a   : > { %11797 = vmatmul.mubr.msk.f32.vlgmr.msra.gmra.mxu1 %vm2446_vm4, %v507_v7 }
 0x36b   : > { %11817 = vmatpush3.msra.mxu1 %v1945_v19  ;;  %11830 = vmatprep.mubr.msk.f32.mxu1 %vm13731_vm1, %v17007_v18 }
 0x36c   : > { %11818 = vmatprep.subr.mxu1 %v17007_v18 }
 0x36d   : > { %11819 = vmatpush3.msra.mxu1 %v1944_v51 }
 0x36e   : > { %11820 = vmatprep.subr.mxu1 %v17007_v18 }
 0x36f   : > { %11821 = vmatpush3.msra.mxu1 %v1943_v32 }
 0x370   : > { %11822 = vmatprep.subr.mxu1 %v17007_v18 }
 0x371   : > { %11823 = vmatpush3.msra.mxu1 %v1942_v45 }
 0x372   : > { %11824 = vmatprep.subr.mxu1 %v17007_v18 }
 0x373   : > { %11825 = vmatpush3.msra.mxu1 %v1941_v44 }
 0x374   : > { %11826 = vmatprep.subr.mxu1 %v17007_v18 }
 0x375   : > { %11827 = vmatpush3.msra.mxu1 %v1940_v39 }
 0x376   : > { %11828 = vmatprep.subr.mxu1 %v17007_v18 }
 0x377   : > { %11829 = vmatpush3.msra.mxu1 %v1939_v17  ;;  %v568_v17 = vld [vmem:[%s17002_s11 + $0x68] sm:$0xff] }
 0x378   : > { %11831 = vmatmul.mubr.msk.f32.vlgmr.msra.gmra.mxu1 %vm2446_vm4, %v507_v7  ;;  %11850 = vmatprep.subr.mxu1 %v566_v25  ;;  %v14508_v7 = vsub.s32 2, %v14174_v22 }
 0x379   : > { %11851 = vmatpush3.msra.mxu1 %v566_v25 }
 0x37a   : > { %11852 = vmatprep.subr.mxu1 %v565_v24  ;;  %v1949_v25 = vrot.slane %v14182_v27, %v14508_v7 }
 0x37b   : > { %11853 = vmatpush3.msra.mxu1 %v565_v24 }
 0x37c   : > { %11854 = vmatprep.subr.mxu1 %v564_v42 }
 0x37d   : > { %11855 = vmatpush3.msra.mxu1 %v564_v42 }
 0x37e   : > { %11856 = vmatprep.subr.mxu1 %v563_v38 }
 0x37f   : > { %11857 = vmatpush3.msra.mxu1 %v563_v38 }
 0x380   : > { %11861 = vmatprep.subr.mxu1 %v570_v21 }
 0x404   : > { %v14456_v53 = vpop.f32.mrf.mxu1 }
 0x406   : > { %v14458_v10 = vpop.f32.mrf.mxu1 }
 0x408   : > { %v14460_v56 = vpop.f32.mrf.mxu1 }
 0x40a   : > { %v14462_v37 = vpop.f32.mrf.mxu1 }
 0x40b   : > { %v14524_v27 = vadd.f32 %v14462_v37, %v1949_v25 }
 0x40c   : > { %v11758_v59 = vpop.f32.mrf.mxu1 }
 0x40d   : > { %v14512_v24 = vadd.f32 %v11758_v59, %v1949_v25 }
 0x40e   : > { %v2078_v58 = vpop.f32.mrf.mxu1 }
 0x40f   : > { %v10254_v42 = vmul.f32 -1.442695, %v14512_v24  ;;  %v14515_v38 = vadd.f32 %v2078_v58, %v1949_v25  ;;  %v14528_v58 = vadd.f32 %v14456_v53, %v1949_v25 }
 0x417   : > { %v14464_v3 = vpop.f32.mrf.mxu1 }
 0x419   : > { %v2088_v63 = vpop.f32.mrf.mxu1 }
 0x41e   : > { %v14466_v43 = vpop.f32.mrf.mxu1 }
 0x420   : > { %v14468_v57 = vpop.f32.mrf.mxu1 }
 0x422   : > { %v14470_v34 = vpop.f32.mrf.mxu1 }
 0x424   : > { %v14472_v13 = vpop.f32.mrf.mxu1 }
 0x426   : > { %v14474_v20 = vpop.f32.mrf.mxu1 }
 0x427   : > { %v14538_v37 = vadd.f32 %v14474_v20, %v1949_v25  ;;  %v14551_v20 = vadd.f32 %v14472_v13, %v1949_v25 }
 0x428   : > { %v14476_v5 = vpop.f32.mrf.mxu1 }
 0x429   : > { %v14541_v53 = vadd.f32 %v14476_v5, %v1949_v25 }
 0x42a   : > { %v2516_v12 = vpop.f32.mrf.mxu1 }
 0x42b   : > { %11858 = vmatprep.mubr.msk.f32.mxu1 %vm1164_vm2, %v2516_v12  ;;  %v10261_v5 = vmul.f32 -1.442695, %v14541_v53 }
 0x42c   : > { %v11798_v40 = vpop.f32.mrf.mxu1 }
 0x438   : > { %v2659_v6 = vpop.f32.mrf.mxu1 }
 0x439   : > { %11859 = vmatmul.mubr.msk.f32.vlgmr.msra.gmra.mxu1 %vm1164_vm2, %v2659_v6 }
 0x43a   : > { %v11832_v50 = vpop.f32.mrf.mxu1  ;;  %11862 = vmatpush3.msra.mxu1 %v570_v21 }
 0x43b   : > { %11863 = vmatprep.subr.mxu1 %v569_v14  ;;  %v14517_v50 = vadd.f32 %v2088_v63, %v1949_v25  ;;  %v14531_v63 = vadd.f32 %v14458_v10, %v1949_v25 }
 0x43c   : > { %11864 = vmatpush3.msra.mxu1 %v569_v14  ;;  %v10251_v14 = vmul.f32 -1.442695, %v14524_v27 }
 0x43d   : > { %11865 = vmatprep.subr.mxu1 %v568_v17  ;;  %v10255_v59 = vmul.f32 -1.442695, %v14517_v50 }
 0x43e   : > { %11866 = vmatpush3.msra.mxu1 %v568_v17  ;;  %v10249_v17 = vmul.f32 -1.442695, %v14531_v63 }
 0x43f   : > { %11867 = vmatprep.subr.mxu1 %v567_v30 }
 0x440   : > { %11868 = vmatpush3.msra.mxu1 %v567_v30 }
 0x441   : > { %11895 = vmatprep.subr.mxu1 %v17007_v18 }
 0x4f9   : > { %v11860_v31 = vpop.f32.mrf.mxu1 }
 0x4fa   : > { %2834 = vrot.lane.b32.xlu0 %v11860_v31, %s13732_s22 }
 0x4fb   : > { %v2821_v62 = vpop.f32.mrf.mxu1 }
 0x4fc   : > { %2832 = vrot.lane.b32.xlu1 %v2821_v62, %s13732_s22  ;;  %v10253_v62 = vmul.f32 -1.442695, %v14515_v38 }
 0x500   : > { %2845 = vrot.lane.b32.xlu1 %v2843_v11, %s13732_s22  ;;  %v14521_v11 = vadd.f32 %v14460_v56, %v1949_v25  ;;  %v10250_v56 = vmul.f32 -1.442695, %v14528_v58 }
 0x502   : > { %v10252_v21 = vmul.f32 -1.442695, %v14521_v11 }
 0x56c   : > { %v2835_v39 = vpop.permute.xlu0 %2834 }
 0x56d   : > { %v2839_v33 = vadd.f32 %v14501_v36, %v2835_v39  ;;  %v14544_v39 = vsub.s32 3, %v14174_v22 }
 0x56e   : > { %v2833_v44 = vpop.permute.xlu1 %2832 }
 0x56f   : > { %v2838_v45 = vadd.f32 %v2833_v44, %v14503_v52 }
 0x572   : > { %v2846_v32 = vpop.permute.xlu1 %2845 }
 0x573   : > { %v2848_v49 = vadd.f32 %v2846_v32, %v2838_v45  ;;  %v2849_v0 = vadd.f32 %v2846_v32, %v2839_v33  ;;  %v14547_v33 = vadd.f32 %v14470_v34, %v1949_v25  ;;  %v10262_v45 = vmul.f32 -1.442695, %v14538_v37  ;;  %v14562_v34 = vld [vmem:[%s17003_s12] sm:$0xff] }
 0x574   : > { %v2411_v13 = vrot.slane %v14562_v34, %v14544_v39 }
 0x575   : > { %v10287_v51 = vmul.f32 -1.442695, %v2848_v49  ;;  %v10288_v19 = vmul.f32 -1.442695, %v2849_v0 }
 0x577   : > { %12962 = vpow2.f32 %v10287_v51 }
 0x578   : > { %12964 = vpow2.f32 %v10288_v19 }
 0x579   : > { %12966 = vpow2.f32 %v10254_v42 }
 0x584   : > { %v12963_v12 = vpop.eup %12962 }
 0x585   : > { %v12965_v40 = vpop.eup %12964  ;;  %v2856_v6 = vadd.f32 1.0, %v12963_v12  ;;  %v14556_v12 = vadd.f32 %v14466_v43, %v1949_v25 }
 0x586   : > { %v2857_v31 = vadd.f32 1.0, %v12965_v40  ;;  %v12967_v30 = vpop.eup %12966  ;;  %v10259_v40 = vmul.f32 -1.442695, %v14551_v20 }
 0x587   : > { %12968 = vrcp.f32 %v2856_v6  ;;  %v2174_v42 = vadd.f32 1.0, %v12967_v30  ;;  %v14572_v6 = vadd.f32 %v2411_v13, %v14503_v52 }
 0x588   : > { %12970 = vrcp.f32 %v2857_v31 }
 0x589   : > { %12972 = vpow2.f32 %v10253_v62  ;;  %v14575_v62 = vadd.f32 %v14464_v3, %v1949_v25  ;;  %v10279_v52 = vmul.f32 -1.442695, %v14572_v6 }
 0x58a   : > { %12974 = vpow2.f32 %v10255_v59  ;;  %v10258_v59 = vmul.f32 -1.442695, %v14556_v12 }
 0x58b   : > { %12976 = vpow2.f32 %v10252_v21  ;;  %v10256_v30 = vmul.f32 -1.442695, %v14575_v62 }
 0x58c   : > { %12978 = vpow2.f32 %v10251_v14 }
 0x58d   : > { %12980 = vpow2.f32 %v10250_v56 }
 0x58e   : > { %12982 = vpow2.f32 %v10249_v17  ;;  %v14580_v17 = vadd.f32 %v14501_v36, %v2411_v13 }
 0x58f   : > { %12984 = vpow2.f32 %v10262_v45 }
 0x590   : > { %12986 = vpow2.f32 %v10261_v5  ;;  %v10280_v45 = vmul.f32 -1.442695, %v14580_v17 }
 0x591   : > { %12988 = vrcp.f32 %v2174_v42 }
 0x594   : > { %v12969_v10 = vpop.eup %12968 }
 0x595   : > { %v12971_v44 = vpop.eup %12970  ;;  %v2862_v32 = vmul.f32 %v12969_v10, %v2848_v49  ;;  %v14567_v49 = vadd.f32 %v14468_v57, %v1949_v25 }
 0x596   : > { %v2863_v51 = vmul.f32 %v12971_v44, %v2849_v0  ;;  %v12973_v19 = vpop.eup %12972  ;;  %v10260_v0 = vmul.f32 -1.442695, %v14547_v33 }
 0x597   : > { %2870 = vrot.lane.b32.xlu1 %v2862_v32, %s17005_s1  ;;  %v12975_v43 = vpop.eup %12974  ;;  %v2173_v31 = vadd.f32 1.0, %v12973_v19  ;;  %v10257_v57 = vmul.f32 -1.442695, %v14567_v49 }
 0x598   : > { %2872 = vrot.lane.b32.xlu0 %v2863_v51, %s17005_s1  ;;  %12990 = vpow2.f32 %v10260_v0  ;;  %v12977_v21 = vpop.eup %12976  ;;  %v2175_v14 = vadd.f32 1.0, %v12975_v43 }
 0x599   : > { %12992 = vpow2.f32 %v10259_v40  ;;  %v12979_v56 = vpop.eup %12978  ;;  %v2172_v25 = vadd.f32 1.0, %v12977_v21 }
 0x59a   : > { %12994 = vrcp.f32 %v2173_v31  ;;  %v12981_v3 = vpop.eup %12980  ;;  %v2171_v44 = vadd.f32 1.0, %v12979_v56  ;;  %v14586_v31 = vsub.s32 7, %v14174_v22 }
 0x59b   : > { %12996 = vpow2.f32 %v10258_v59  ;;  %v12983_v10 = vpop.eup %12982  ;;  %v2170_v32 = vadd.f32 1.0, %v12981_v3 }
 0x59c   : > { %12998 = vpow2.f32 %v10257_v57  ;;  %v2169_v5 = vadd.f32 1.0, %v12983_v10  ;;  %v12985_v36 = vpop.eup %12984 }
 0x59d   : > { %13000 = vrcp.f32 %v2175_v14  ;;  %v12987_v51 = vpop.eup %12986  ;;  %v2182_v42 = vadd.f32 1.0, %v12985_v36 }
 0x59e   : > { %13002 = vpow2.f32 %v10279_v52  ;;  %v12989_v19 = vpop.eup %12988  ;;  %v2181_v0 = vadd.f32 1.0, %v12987_v51 }
 0x59f   : > { %13004 = vpow2.f32 %v10256_v30  ;;  %v2216_v14 = vmul.f32 %v12989_v19, %v14512_v24 }
 0x5a0   : > { %13006 = vrcp.f32 %v2172_v25  ;;  %v14591_v25 = vrot.slane %v14562_v34, %v14586_v31 }
 0x5a1   : > { %13008 = vrcp.f32 %v2171_v44 }
 0x5a2   : > { %13010 = vpow2.f32 %v10280_v45  ;;  %v2234_v24 = vmul.f32 %v14591_v25, %v2216_v14 }
 0x5a3   : > { %13012 = vrcp.f32 %v2170_v32 }
 0x5a4   : > { %13014 = vrcp.f32 %v2169_v5 }
 0x5a5   : > { %v12991_v13 = vpop.eup %12990  ;;  %13016 = vrcp.f32 %v2182_v42 }
 0x5a6   : > { %v12993_v40 = vpop.eup %12992  ;;  %v2180_v57 = vadd.f32 1.0, %v12991_v13  ;;  %13018 = vrcp.f32 %v2181_v0 }
 0x5a7   : > { %v12995_v43 = vpop.eup %12994  ;;  %v2179_v56 = vadd.f32 1.0, %v12993_v40 }
 0x5a8   : > { %v12997_v59 = vpop.eup %12996  ;;  %13020 = vrcp.f32 %v2180_v57  ;;  %v2215_v32 = vmul.f32 %v12995_v43, %v14515_v38  ;;  %v2258_v57 = vsel %vm1164_vm2, %v2234_v24, 0.0 }
 0x5a9   : > { %v12999_v21 = vpop.eup %12998  ;;  %v2178_v3 = vadd.f32 1.0, %v12997_v59  ;;  %13022 = vrcp.f32 %v2179_v56 }
 0x5aa   : > { %v13001_v52 = vpop.eup %13000  ;;  %v2177_v44 = vadd.f32 1.0, %v12999_v21  ;;  %v2233_v38 = vmul.f32 %v14591_v25, %v2215_v32 }
 0x5ab   : > { %v13003_v30 = vpop.eup %13002  ;;  %v2217_v5 = vmul.f32 %v13001_v52, %v14517_v50  ;;  %13024 = vrcp.f32 %v2178_v3 }
 0x5ac   : > { %v13005_v10 = vpop.eup %13004  ;;  %v2420_v19 = vadd.f32 1.0, %v13003_v30  ;;  %13026 = vrcp.f32 %v2177_v44  ;;  %v2255_v56 = vsel %vm1164_vm2, %v2233_v38, 0.0 }
 0x5ad   : > { %v13007_v45 = vpop.eup %13006  ;;  %v2176_v0 = vadd.f32 1.0, %v13005_v10  ;;  %v2235_v50 = vmul.f32 %v14591_v25, %v2217_v5 }
 0x5ae   : > { %v13009_v36 = vpop.eup %13008  ;;  %v2214_v13 = vmul.f32 %v13007_v45, %v14521_v11  ;;  %13028 = vrcp.f32 %v2420_v19 }
 0x5af   : > { %v13011_v51 = vpop.eup %13010  ;;  %v2213_v59 = vmul.f32 %v13009_v36, %v14524_v27  ;;  %13030 = vrcp.f32 %v2176_v0  ;;  %v2261_v52 = vsel %vm1164_vm2, %v2235_v50, 0.0 }
 0x5b0   : > { %v13013_v42 = vpop.eup %13012  ;;  %v2421_v43 = vadd.f32 1.0, %v13011_v51  ;;  %v2232_v30 = vmul.f32 %v14591_v25, %v2214_v13 }
 0x5b1   : > { %v13015_v40 = vpop.eup %13014  ;;  %v2212_v21 = vmul.f32 %v13013_v42, %v14528_v58  ;;  %v2231_v27 = vmul.f32 %v14591_v25, %v2213_v59 }
 0x5b2   : > { %v2211_v14 = vmul.f32 %v13015_v40, %v14531_v63  ;;  %v13017_v11 = vpop.eup %13016  ;;  %13032 = vrcp.f32 %v2421_v43  ;;  %v2252_v5 = vsel %vm1164_vm2, %v2232_v30, 0.0 }
 0x5b3   : > { %v13019_v3 = vpop.eup %13018  ;;  %v2230_v58 = vmul.f32 %v14591_v25, %v2212_v21  ;;  %v2224_v63 = vmul.f32 %v13017_v11, %v14538_v37  ;;  %v2249_v32 = vsel %vm1164_vm2, %v2231_v27, 0.0 }
 0x5b4   : > { %v2229_v10 = vmul.f32 %v14591_v25, %v2211_v14  ;;  %v2223_v45 = vmul.f32 %v13019_v3, %v14541_v53  ;;  %v14629_v14 = vld [vmem:[%s17003_s12 + $0x8] sm:$0x3] }
 0x5b5   : > { %v13021_v44 = vpop.eup %13020  ;;  %v2246_v19 = vsel %vm1164_vm2, %v2230_v58, 0.0  ;;  %v2242_v53 = vmul.f32 %v14591_v25, %v2224_v63 }
 0x5b6   : > { %v13023_v24 = vpop.eup %13022  ;;  %v2243_v51 = vsel %vm1164_vm2, %v2229_v10, 0.0  ;;  %v2222_v13 = vmul.f32 %v13021_v44, %v14547_v33  ;;  %v2241_v37 = vmul.f32 %v14591_v25, %v2223_v45 }
 0x5b7   : > { %2259 = vadd.xlane.f32.xlu0 %v2258_v57  ;;  %v2221_v0 = vmul.f32 %v13023_v24, %v14551_v20  ;;  %v2282_v43 = vsel %vm1164_vm2, %v2242_v53, 0.0 }
 0x5b8   : > { %v13025_v36 = vpop.eup %13024  ;;  %v2279_v50 = vsel %vm1164_vm2, %v2241_v37, 0.0  ;;  %v2240_v20 = vmul.f32 %v14591_v25, %v2222_v13 }
 0x5b9   : > { %v13027_v42 = vpop.eup %13026  ;;  %v2220_v59 = vmul.f32 %v13025_v36, %v14556_v12  ;;  %v2239_v33 = vmul.f32 %v14591_v25, %v2221_v0 }
 0x5ba   : > { %v2219_v57 = vmul.f32 %v13027_v42, %v14567_v49 }
 0x5bb   : > { %2256 = vadd.xlane.f32.xlu0 %v2255_v56  ;;  %2262 = vadd.xlane.f32.xlu1 %v2261_v52  ;;  %v13029_v40 = vpop.eup %13028  ;;  %v2273_v11 = vsel %vm1164_vm2, %v2239_v33, 0.0  ;;  %v2276_v56 = vsel %vm1164_vm2, %v2240_v20, 0.0  ;;  %v2238_v27 = vmul.f32 %v14591_v25, %v2220_v59 }
 0x5bc   : > { %v13031_v38 = vpop.eup %13030  ;;  %v2426_v12 = vmul.f32 %v13029_v40, %v14572_v6  ;;  %v2237_v52 = vmul.f32 %v14591_v25, %v2219_v57 }
 0x5bd   : > { %v2218_v21 = vmul.f32 %v13031_v38, %v14575_v62  ;;  %v2431_v62 = vrot.slane %v14629_v14, %v14185_v28  ;;  %v2270_v6 = vsel %vm1164_vm2, %v2238_v27, 0.0 }
 0x5be   : > { %v2267_v3 = vsel %vm1164_vm2, %v2237_v52, 0.0 }
 0x5bf   : > { %2250 = vadd.xlane.f32.xlu0 %v2249_v32  ;;  %2253 = vadd.xlane.f32.xlu1 %v2252_v5  ;;  %v13033_v49 = vpop.eup %13032  ;;  %v2432_v10 = vmul.f32 %v2431_v62, %v2426_v12  ;;  %v2236_v58 = vmul.f32 %v14591_v25, %v2218_v21  ;;  %v508_v12 = vld [vmem:[%s16997_s6] sm:$0xff] }
 0x5c0   : > { %v2427_v30 = vmul.f32 %v13033_v49, %v14580_v17 }
 0x5c1   : > { %v2434_v44 = vsel %vm1164_vm2, %v2432_v10, 0.0  ;;  %v2264_v63 = vsel %vm1164_vm2, %v2236_v58, 0.0 }
 0x5c2   : > { %v2433_v45 = vmul.f32 %v2431_v62, %v2427_v30 }
 0x5c3   : > { %2244 = vadd.xlane.f32.xlu0 %v2243_v51  ;;  %2247 = vadd.xlane.f32.xlu1 %v2246_v19 }
 0x5c4   : > { %v2437_v32 = vsel %vm1164_vm2, %v2433_v45, 0.0 }
 0x5c7   : > { %2280 = vadd.xlane.f32.xlu0 %v2279_v50  ;;  %2283 = vadd.xlane.f32.xlu1 %v2282_v43 }
 0x5cb   : > { %2274 = vadd.xlane.f32.xlu0 %v2273_v11  ;;  %2277 = vadd.xlane.f32.xlu1 %v2276_v56 }
 0x5cf   : > { %2268 = vadd.xlane.f32.xlu0 %v2267_v3  ;;  %2271 = vadd.xlane.f32.xlu1 %v2270_v6 }
 0x5d3   : > { %2435 = vadd.xlane.f32.xlu0 %v2434_v44  ;;  %2265 = vadd.xlane.f32.xlu1 %v2264_v63 }
 0x5d7   : > { %2438 = vadd.xlane.f32.xlu1 %v2437_v32  ;;  %v14690_v32 = vsub.s32 5, %v14174_v22  ;;  %v13588_v22 = vld [vmem:[%s16994_s3 + $0x8] sm:$0xff] }
 0x609   : > { %v2871_v17 = vpop.permute.xlu1 %2870 }
 0x60a   : > { %v2873_v5 = vpop.permute.xlu0 %2872  ;;  %11869 = vmatprep.mubr.msk.f32.mxu1 %vm1164_vm2, %v2871_v17  ;;  %v2867_v17 = vrot.slane %v14562_v34, %v14690_v32  ;;  %v13591_v34 = vld [vmem:[%s16994_s3 + $0x20] sm:$0xff] }
 0x60b   : > { %11870 = vmatmul.mubr.msk.f32.vlgmr.msra.gmra.mxu1 %vm1164_vm2, %v2873_v5 }
 0x60c   : > { %11897 = vmatprep.mubr.msk.f32.mxu1 %vm13731_vm1, %v17007_v18 }
 0x640   : > { %v2260_v25 = vpop.xlane.xlu0 %2259 }
 0x641   : > { %v2290_v51 = vmul.f32 %v2260_v25, %v14095_v15 }
 0x643   : > { %v10268_v53 = vclamps-f32 %v2290_v51, 100.0 }
 0x644   : > { %v2257_v24 = vpop.xlane.xlu0 %2256  ;;  %v2263_v36 = vpop.xlane.xlu1 %2262 }
 0x645   : > { %v2291_v19 = vmul.f32 %v2263_v36, %v14104_v23  ;;  %v2289_v42 = vmul.f32 %v2257_v24, %v14088_v8 }
 0x647   : > { %v10269_v13 = vclamps-f32 %v2291_v19, 100.0  ;;  %v10267_v59 = vclamps-f32 %v2289_v42, 100.0  ;;  %v13592_v42 = vld [vmem:[%s16994_s3 + $0x28] sm:$0xff] }
 0x648   : > { %v2251_v0 = vpop.xlane.xlu0 %2250  ;;  %v2254_v37 = vpop.xlane.xlu1 %2253 }
 0x649   : > { %v2288_v40 = vmul.f32 %v2254_v37, %v14081_v2  ;;  %11800 = vmatpush3.msra.mxu0 %v10269_v13  ;;  %v2287_v57 = vmul.f32 %v2251_v0, %v14074_v60  ;;  %v13593_v13 = vld [vmem:[%s16994_s3 + $0x30] sm:$0xff]  ;;  %v13594_v0 = vld [vmem:[%s16994_s3 + $0x38] sm:$0xff]  ;;  %v13595_v37 = vld [vmem:[%s16994_s3 + $0x40] sm:$0xff] }
 0x64a   : > { %11801 = vmatprep.subr.mxu0 %v17007_v18 }
 0x64b   : > { %11802 = vmatpush3.msra.mxu0 %v10268_v53  ;;  %v10266_v23 = vclamps-f32 %v2288_v40, 100.0  ;;  %v10265_v50 = vclamps-f32 %v2287_v57, 100.0  ;;  %v13596_v53 = vld [vmem:[%s16994_s3 + $0x48] sm:$0xff]  ;;  %v13597_v40 = vld [vmem:[%s16994_s3 + $0x50] sm:$0xff]  ;;  %v13599_v57 = vld [vmem:[%s16994_s3 + $0x60] sm:$0xff] }
 0x64c   : > { %v2245_v38 = vpop.xlane.xlu0 %2244  ;;  %11803 = vmatprep.subr.mxu0 %v17007_v18  ;;  %v2248_v15 = vpop.xlane.xlu1 %2247 }
 0x64d   : > { %v2286_v8 = vmul.f32 %v2248_v15, %v14067_v54  ;;  %11804 = vmatpush3.msra.mxu0 %v10267_v59  ;;  %v2285_v2 = vmul.f32 %v2245_v38, %v14060_v48  ;;  %v13598_v59 = vld [vmem:[%s16994_s3 + $0x58] sm:$0xff]  ;;  %v13600_v38 = vld [vmem:[%s16994_s3 + $0x68] sm:$0xff]  ;;  %v541_v15 = vld [vmem:[%s14774_s24] sm:$0xff] }
 0x64e   : > { %11805 = vmatprep.subr.mxu0 %v17007_v18 }
 0x64f   : > { %11806 = vmatpush3.msra.mxu0 %v10266_v23  ;;  %v10264_v60 = vclamps-f32 %v2286_v8, 100.0  ;;  %v10263_v21 = vclamps-f32 %v2285_v2, 100.0 }
 0x650   : > { %v2281_v43 = vpop.xlane.xlu0 %2280  ;;  %11807 = vmatprep.subr.mxu0 %v17007_v18  ;;  %v2284_v33 = vpop.xlane.xlu1 %2283 }
 0x651   : > { %v2298_v20 = vmul.f32 %v2284_v33, %v14151_v1  ;;  %11808 = vmatpush3.msra.mxu0 %v10265_v50  ;;  %v2297_v54 = vmul.f32 %v2281_v43, %v14146_v61  ;;  %v13601_v33 = vld [vmem:[%s13889_s16] sm:$0xff] }
 0x652   : > { %11809 = vmatprep.subr.mxu0 %v17007_v18 }
 0x653   : > { %11810 = vmatpush3.msra.mxu0 %v10264_v60  ;;  %v10276_v11 = vclamps-f32 %v2298_v20, 100.0  ;;  %v10275_v1 = vclamps-f32 %v2297_v54, 100.0  ;;  %v13602_v20 = vld [vmem:[%s16995_s4] sm:$0xff]  ;;  %v542_v54 = vld [vmem:[%s14774_s24 + $0x8] sm:$0xff] }
 0x654   : > { %v2275_v48 = vpop.xlane.xlu0 %2274  ;;  %11811 = vmatprep.subr.mxu0 %v17007_v18  ;;  %v2278_v49 = vpop.xlane.xlu1 %2277 }
 0x655   : > { %v2296_v56 = vmul.f32 %v2278_v49, %v14139_v55  ;;  %11812 = vmatpush3.msra.mxu0 %v10263_v21  ;;  %v2295_v61 = vmul.f32 %v2275_v48, %v14132_v47  ;;  %v2443_v55 = vrot.slane %v14629_v14, %v14324_v4  ;;  %v10298_v21 = vld [vmem:[%s17000_s9 + $0x78] sm:$0xff]  ;;  %v13603_v48 = vld [vmem:[%s16995_s4 + $0x8] sm:$0xff]  ;;  %v10297_v49 = vld [vmem:[%s17000_s9 + $0x70] sm:$0xff] }
 0x656   : > { %11814 = vmatmul.mubr.msk.f32.vlgmr.msra.gmra.mxu0 %vm2446_vm4, %v508_v12  ;;  %11833 = vmatprep.subr.mxu0 %v17007_v18 }
 0x657   : > { %11834 = vmatpush3.msra.mxu0 %v10276_v11  ;;  %11847 = vmatprep.mubr.msk.f32.mxu0 %vm13731_vm1, %v17007_v18  ;;  %v10274_v62 = vclamps-f32 %v2296_v56, 100.0  ;;  %v10273_v3 = vclamps-f32 %v2295_v61, 100.0  ;;  %v10296_v11 = vld [vmem:[%s17000_s9 + $0x68] sm:$0xff]  ;;  %v13604_v61 = vld [vmem:[%s16995_s4 + $0x10] sm:$0xff] }
 0x658   : > { %v2269_v52 = vpop.xlane.xlu0 %2268  ;;  %11835 = vmatprep.subr.mxu0 %v17007_v18  ;;  %v2272_v27 = vpop.xlane.xlu1 %2271 }
 0x659   : > { %v2294_v30 = vmul.f32 %v2272_v27, %v14125_v41  ;;  %11836 = vmatpush3.msra.mxu0 %v10275_v1  ;;  %v2293_v47 = vmul.f32 %v2269_v52, %v14118_v35  ;;  %v10295_v52 = vld [vmem:[%s17000_s9 + $0x60] sm:$0xff] }
 0x65a   : > { %11837 = vmatprep.subr.mxu0 %v17007_v18 }
 0x65b   : > { %11838 = vmatpush3.msra.mxu0 %v10274_v62  ;;  %v10272_v58 = vclamps-f32 %v2294_v30, 100.0  ;;  %v10271_v41 = vclamps-f32 %v2293_v47, 100.0  ;;  %v13605_v30 = vld [vmem:[%s13889_s16 + $0x8] sm:$0xff]  ;;  %v13606_v47 = vld [vmem:[%s16995_s4 + $0x18] sm:$0xff]  ;;  %s10890_s16 = sshll.u32 %s13829_s29, 8 }
 0x65c   : > { %v2436_v6 = vpop.xlane.xlu0 %2435  ;;  %v2266_v10 = vpop.xlane.xlu1 %2265  ;;  %11839 = vmatprep.subr.mxu0 %v17007_v18  ;;  %s16947_s17 = scalar_lea.hbm %s17004_s13, %s10890_s16 }
 0x65d   : > { %v2444_v44 = vadd.f32 %v2443_v55, %v2436_v6  ;;  %v2292_v63 = vmul.f32 %v2266_v10, %v14111_v29  ;;  %11840 = vmatpush3.msra.mxu0 %v10273_v3  ;;  %v13587_v29 = vld [vmem:[%s16994_s3] sm:$0xff]  ;;  %v10294_v3 = vld [vmem:[%s17000_s9 + $0x58] sm:$0xff]  ;;  %v13608_v10 = vld [vmem:[%s16995_s4 + $0x28] sm:$0xff] }
 0x65e   : > { %11841 = vmatprep.subr.mxu0 %v17007_v18  ;;  %v13607_v6 = vld [vmem:[%s16995_s4 + $0x20] sm:$0xff] }
 0x65f   : > { %2735 = vperm.xlu0 %12848, %v2444_v44   ;;  %11842 = vmatpush3.msra.mxu0 %v10272_v58  ;;  %v10270_v45 = vclamps-f32 %v2292_v63, 100.0  ;;  %v13609_v58 = vld [vmem:[%s16995_s4 + $0x30] sm:$0xff]  ;;  %v10292_v63 = vld [vmem:[%s17000_s9 + $0x48] sm:$0xff] }
 0x660   : > { %v2439_v14 = vpop.xlane.xlu1 %2438  ;;  %11843 = vmatprep.subr.mxu0 %v17007_v18  ;;  %v10293_v44 = vld [vmem:[%s17000_s9 + $0x50] sm:$0xff] }
 0x661   : > { %v2445_v35 = vadd.f32 %v2443_v55, %v2439_v14  ;;  %11844 = vmatpush3.msra.mxu0 %v10271_v41  ;;  %v10291_v41 = vld [vmem:[%s17000_s9 + $0x40] sm:$0xff] }
 0x662   : > { %11845 = vmatprep.subr.mxu0 %v17007_v18 }
 0x663   : > { %2740 = vperm.xlu1 %12849, %v2445_v35   ;;  %11846 = vmatpush3.msra.mxu0 %v10270_v45 }
 0x664   : > { %11848 = vmatmul.mubr.msk.f32.vlgmr.msra.gmra.mxu0 %vm2446_vm4, %v508_v12 }
 0x665   : > { %11874 = vmatprep.mubr.msk.f32.mxu0 %vm573_vm0, %v13587_v29 }
 0x6cb   : > { %v11871_v5 = vpop.f32.mrf.mxu1 }
 0x6cc   : > { %v2950_v24 = vadd.f32 %v11871_v5, %v2867_v17 }
 0x6cd   : > { %v2944_v25 = vpop.f32.mrf.mxu1 }
 0x6ce   : > { %v2945_v36 = vadd.f32 %v2944_v25, %v2867_v17  ;;  %v14698_v19 = vadd.f32 %v2950_v24, %v13907_v16  ;;  %v13590_v16 = vld [vmem:[%s16994_s3 + $0x18] sm:$0xff] }
 0x6d0   : > { %v14695_v51 = vadd.f32 %v2945_v36, %v13883_v9  ;;  %v13589_v9 = vld [vmem:[%s16994_s3 + $0x10] sm:$0xff] }
 0x6d2   : > { %11872 = vmatprep.subr.mxu0 %v14695_v51 }
 0x6d3   : > { %11873 = vmatpush3.msra.mxu0 %v14695_v51 }
 0x6d4   : > { %11875 = vmatmul.mubr.msk.f32.vlgmr.msra.gmra.mxu0 %vm573_vm0, %v13588_v22  ;;  %11918 = vmatprep.subr.mxu0 %v14698_v19 }
 0x6d5   : > { %11919 = vmatpush3.msra.mxu0 %v14698_v19  ;;  %11877 = vmatprep.mubr.msk.f32.mxu0 %vm573_vm0, %v13589_v9 }
 0x6d6   : > { %11964 = vmatprep.subr.mxu0 %v10298_v21 }
 0x6d8   : > { %11878 = vmatmul.mubr.msk.f32.gmra.mxu0 %vm573_vm0, %v13590_v16 }
 0x6d9   : > { %11880 = vmatprep.mubr.msk.f32.mxu0 %vm573_vm0, %v13591_v34 }
 0x6da   : > { %v2736_v23 = vpop.permute.xlu0 %2735 }
 0x6db   : > { %v2743_v8 = vmul.f32 %v2736_v23, %v541_v15 }
 0x6dc   : > { %11881 = vmatmul.mubr.msk.f32.gmra.mxu0 %vm573_vm0, %v13592_v42 }
 0x6dd   : > { %11883 = vmatprep.mubr.msk.f32.mxu0 %vm573_vm0, %v13593_v13 }
 0x6de   : > { %v2741_v12 = vpop.permute.xlu1 %2740 }
 0x6df   : > { %v2744_v56 = vmul.f32 %v2741_v12, %v542_v54 }
 0x6e0   : > { %11884 = vmatmul.mubr.msk.f32.gmra.mxu0 %vm573_vm0, %v13594_v0 }
 0x6e1   : > { %11886 = vmatprep.mubr.msk.f32.mxu0 %vm573_vm0, %v13595_v37 }
 0x6e4   : > { %11887 = vmatmul.mubr.msk.f32.gmra.mxu0 %vm573_vm0, %v13596_v53 }
 0x6e5   : > { %11889 = vmatprep.mubr.msk.f32.mxu0 %vm573_vm0, %v13597_v40 }
 0x6e8   : > { %11890 = vmatmul.mubr.msk.f32.gmra.mxu0 %vm573_vm0, %v13598_v59 }
 0x6e9   : > { %11892 = vmatprep.mubr.msk.f32.mxu0 %vm573_vm0, %v13599_v57 }
 0x6ec   : > { %11893 = vmatmul.mubr.msk.f32.gmra.mxu0 %vm573_vm0, %v13600_v38 }
 0x6ed   : > { %11920 = vmatprep.mubr.msk.f32.mxu0 %vm573_vm0, %v13587_v29 }
 0x6f0   : > { %11921 = vmatmul.mubr.msk.f32.vlgmr.msra.gmra.mxu0 %vm573_vm0, %v13588_v22 }
 0x6f1   : > { %11923 = vmatprep.mubr.msk.f32.mxu0 %vm573_vm0, %v13589_v9  ;;  %11965 = vmatpush3.msra.mxu0 %v10298_v21 }
 0x6f2   : > { %11966 = vmatprep.subr.mxu0 %v10297_v49 }
 0x6f3   : > { %11967 = vmatpush3.msra.mxu0 %v10297_v49 }
 0x6f4   : > { %11924 = vmatmul.mubr.msk.f32.gmra.mxu0 %vm573_vm0, %v13590_v16  ;;  %11968 = vmatprep.subr.mxu0 %v10296_v11 }
 0x6f5   : > { %11926 = vmatprep.mubr.msk.f32.mxu0 %vm573_vm0, %v13591_v34  ;;  %11969 = vmatpush3.msra.mxu0 %v10296_v11 }
 0x6f6   : > { %11970 = vmatprep.subr.mxu0 %v10295_v52 }
 0x6f7   : > { %11971 = vmatpush3.msra.mxu0 %v10295_v52 }
 0x6f8   : > { %11927 = vmatmul.mubr.msk.f32.gmra.mxu0 %vm573_vm0, %v13592_v42 }
 0x6f9   : > { %11929 = vmatprep.mubr.msk.f32.mxu0 %vm573_vm0, %v13593_v13 }
 0x6fc   : > { %11930 = vmatmul.mubr.msk.f32.gmra.mxu0 %vm573_vm0, %v13594_v0 }
 0x6fd   : > { %11932 = vmatprep.mubr.msk.f32.mxu0 %vm573_vm0, %v13595_v37 }
 0x700   : > { %11933 = vmatmul.mubr.msk.f32.gmra.mxu0 %vm573_vm0, %v13596_v53 }
 0x701   : > { %11935 = vmatprep.mubr.msk.f32.mxu0 %vm573_vm0, %v13597_v40 }
 0x704   : > { %11936 = vmatmul.mubr.msk.f32.gmra.mxu0 %vm573_vm0, %v13598_v59 }
 0x705   : > { %11938 = vmatprep.mubr.msk.f32.mxu0 %vm573_vm0, %v13599_v57 }
 0x708   : > { %11939 = vmatmul.mubr.msk.f32.gmra.mxu0 %vm573_vm0, %v13600_v38 }
 0x716   : > { %v2589_v50 = vpop.f32.mrf.mxu0 }
 0x717   : > { %v2745_v2 = vadd.f32 %v2743_v8, %v2589_v50 }
 0x718   : > { %v11815_v43 = vpop.f32.mrf.mxu0 }
 0x719   : > { %v14778_v60 = vadd.f32 %v13601_v33, %v2745_v2 }
 0x71b   : > { %11896 = vmatpush3.msra.mxu1 %v14778_v60 }
 0x71c   : > { %11898 = vmatmul.mubr.msk.f32.vlgmr.msra.gmra.mxu1 %vm573_vm0, %v13602_v20  ;;  %11941 = vmatprep.subr.mxu1 %v17007_v18 }
 0x71d   : > { %11900 = vmatprep.mubr.msk.f32.mxu1 %vm13731_vm1, %v17007_v18 }
 0x720   : > { %11901 = vmatmul.mubr.msk.f32.gmra.mxu1 %vm573_vm0, %v13603_v48 }
 0x721   : > { %11903 = vmatprep.mubr.msk.f32.mxu1 %vm13731_vm1, %v17007_v18 }
 0x724   : > { %v2729_v1 = vpop.f32.mrf.mxu0  ;;  %11904 = vmatmul.mubr.msk.f32.gmra.mxu1 %vm573_vm0, %v13604_v61 }
 0x725   : > { %v2746_v27 = vadd.f32 %v2744_v56, %v2729_v1  ;;  %11906 = vmatprep.mubr.msk.f32.mxu1 %vm13731_vm1, %v17007_v18 }
 0x726   : > { %v11849_v62 = vpop.f32.mrf.mxu0 }
 0x727   : > { %v14814_v55 = vadd.f32 %v13605_v30, %v2746_v27 }
 0x728   : > { %11907 = vmatmul.mubr.msk.f32.gmra.mxu1 %vm573_vm0, %v13606_v47 }
 0x729   : > { %11942 = vmatpush3.msra.mxu1 %v14814_v55  ;;  %11909 = vmatprep.mubr.msk.f32.mxu1 %vm13731_vm1, %v17007_v18 }
 0x72a   : > { %11993 = vmatprep.subr.mxu1 %v10294_v3 }
 0x72c   : > { %11910 = vmatmul.mubr.msk.f32.gmra.mxu1 %vm573_vm0, %v13607_v6 }
 0x72d   : > { %11912 = vmatprep.mubr.msk.f32.mxu1 %vm13731_vm1, %v17007_v18 }
 0x730   : > { %11913 = vmatmul.mubr.msk.f32.gmra.mxu1 %vm573_vm0, %v13608_v10 }
 0x731   : > { %11915 = vmatprep.mubr.msk.f32.mxu1 %vm13731_vm1, %v17007_v18 }
 0x734   : > { %11916 = vmatmul.mubr.msk.f32.gmra.mxu1 %vm573_vm0, %v13609_v58 }
 0x735   : > { %11943 = vmatprep.mubr.msk.f32.mxu1 %vm13731_vm1, %v17007_v18 }
 0x738   : > { %11944 = vmatmul.mubr.msk.f32.vlgmr.msra.gmra.mxu1 %vm573_vm0, %v13602_v20 }
 0x739   : > { %11946 = vmatprep.mubr.msk.f32.mxu1 %vm13731_vm1, %v17007_v18  ;;  %11994 = vmatpush3.msra.mxu1 %v10294_v3 }
 0x73a   : > { %11995 = vmatprep.subr.mxu1 %v10293_v44 }
 0x73b   : > { %11996 = vmatpush3.msra.mxu1 %v10293_v44 }
 0x73c   : > { %11947 = vmatmul.mubr.msk.f32.gmra.mxu1 %vm573_vm0, %v13603_v48  ;;  %11997 = vmatprep.subr.mxu1 %v10292_v63 }
 0x73d   : > { %11949 = vmatprep.mubr.msk.f32.mxu1 %vm13731_vm1, %v17007_v18  ;;  %11998 = vmatpush3.msra.mxu1 %v10292_v63 }
 0x73e   : > { %11999 = vmatprep.subr.mxu1 %v10291_v41 }
 0x73f   : > { %12000 = vmatpush3.msra.mxu1 %v10291_v41 }
 0x740   : > { %11950 = vmatmul.mubr.msk.f32.gmra.mxu1 %vm573_vm0, %v13604_v61 }
 0x741   : > { %11952 = vmatprep.mubr.msk.f32.mxu1 %vm13731_vm1, %v17007_v18 }
 0x744   : > { %11953 = vmatmul.mubr.msk.f32.gmra.mxu1 %vm573_vm0, %v13606_v47 }
 0x745   : > { %11955 = vmatprep.mubr.msk.f32.mxu1 %vm13731_vm1, %v17007_v18 }
 0x748   : > { %11956 = vmatmul.mubr.msk.f32.gmra.mxu1 %vm573_vm0, %v13607_v6 }
 0x749   : > { %11958 = vmatprep.mubr.msk.f32.mxu1 %vm13731_vm1, %v17007_v18 }
 0x74c   : > { %11959 = vmatmul.mubr.msk.f32.gmra.mxu1 %vm573_vm0, %v13608_v10 }
 0x74d   : > { %11961 = vmatprep.mubr.msk.f32.mxu1 %vm13731_vm1, %v17007_v18 }
 0x750   : > { %11962 = vmatmul.mubr.msk.f32.gmra.mxu1 %vm573_vm0, %v13609_v58 }
 0x794   : > { %v11876_v14 = vpop.f32.mrf.mxu0 }
 0x796   : > { %v3055_v45 = vpop.f32.mrf.mxu0 }
 0x797   : > { %12001 = vmatprep.mubr.msk.f32.mxu1 %vm1164_vm2, %v3055_v45 }
 0x798   : > { %v11879_v35 = vpop.f32.mrf.mxu0  ;;  %12002 = vmatmul.mubr.msk.f32.vlgmr.msra.gmra.mxu1 %vm1164_vm2, %v11876_v14 }
 0x79a   : > { %v3065_v29 = vpop.f32.mrf.mxu0 }
 0x79b   : > { %12004 = vmatprep.mubr.msk.f32.mxu1 %vm1164_vm2, %v3065_v29 }
 0x79c   : > { %v11882_v17 = vpop.f32.mrf.mxu0  ;;  %12005 = vmatmul.mubr.msk.f32.gmra.mxu1 %vm1164_vm2, %v11879_v35 }
 0x79e   : > { %v3075_v5 = vpop.f32.mrf.mxu0 }
 0x79f   : > { %12007 = vmatprep.mubr.msk.f32.mxu1 %vm1164_vm2, %v3075_v5 }
 0x7a0   : > { %v11885_v25 = vpop.f32.mrf.mxu0  ;;  %12008 = vmatmul.mubr.msk.f32.gmra.mxu1 %vm1164_vm2, %v11882_v17 }
 0x7a1   : > { %11972 = vmatprep.mubr.msk.f32.mxu0 %vm1164_vm2, %v11885_v25 }
 0x7a2   : > { %v3085_v24 = vpop.f32.mrf.mxu0 }
 0x7a3   : > { %12010 = vmatprep.mubr.msk.f32.mxu1 %vm1164_vm2, %v3085_v24 }
 0x7a4   : > { %v11888_v36 = vpop.f32.mrf.mxu0 }
 0x7a6   : > { %v3095_v22 = vpop.f32.mrf.mxu0 }
 0x7a7   : > { %11973 = vmatmul.mubr.msk.f32.vlgmr.msra.gmra.mxu0 %vm1164_vm2, %v3095_v22 }
 0x7a8   : > { %v11891_v9 = vpop.f32.mrf.mxu0  ;;  %11975 = vmatprep.mubr.msk.f32.mxu0 %vm1164_vm2, %v11888_v36 }
 0x7aa   : > { %v3105_v16 = vpop.f32.mrf.mxu0 }
 0x7ab   : > { %11976 = vmatmul.mubr.msk.f32.gmra.mxu0 %vm1164_vm2, %v3105_v16 }
 0x7ac   : > { %v11894_v34 = vpop.f32.mrf.mxu0  ;;  %11978 = vmatprep.mubr.msk.f32.mxu0 %vm1164_vm2, %v11891_v9 }
 0x7ae   : > { %v3115_v42 = vpop.f32.mrf.mxu0 }
 0x7af   : > { %11979 = vmatmul.mubr.msk.f32.gmra.mxu0 %vm1164_vm2, %v3115_v42 }
 0x7b0   : > { %v11922_v13 = vpop.f32.mrf.mxu0  ;;  %11981 = vmatprep.mubr.msk.f32.mxu0 %vm1164_vm2, %v11894_v34 }
 0x7b2   : > { %v3290_v0 = vpop.f32.mrf.mxu0 }
 0x7b3   : > { %12011 = vmatmul.mubr.msk.f32.gmra.mxu1 %vm1164_vm2, %v3290_v0 }
 0x7b4   : > { %v11925_v37 = vpop.f32.mrf.mxu0  ;;  %12013 = vmatprep.mubr.msk.f32.mxu1 %vm1164_vm2, %v11922_v13 }
 0x7b6   : > { %v3300_v53 = vpop.f32.mrf.mxu0 }
 0x7b7   : > { %12014 = vmatmul.mubr.msk.f32.gmra.mxu1 %vm1164_vm2, %v3300_v53 }
 0x7b8   : > { %v11928_v40 = vpop.f32.mrf.mxu0  ;;  %12016 = vmatprep.mubr.msk.f32.mxu1 %vm1164_vm2, %v11925_v37 }
 0x7ba   : > { %v3310_v59 = vpop.f32.mrf.mxu0 }
 0x7bb   : > { %12017 = vmatmul.mubr.msk.f32.gmra.mxu1 %vm1164_vm2, %v3310_v59 }
 0x7bc   : > { %v11931_v57 = vpop.f32.mrf.mxu0  ;;  %12019 = vmatprep.mubr.msk.f32.mxu1 %vm1164_vm2, %v11928_v40 }
 0x7bd   : > { %11982 = vmatmul.mubr.msk.f32.gmra.mxu0 %vm1164_vm2, %v11931_v57 }
 0x7be   : > { %v3320_v38 = vpop.f32.mrf.mxu0 }
 0x7bf   : > { %12020 = vmatmul.mubr.msk.f32.gmra.mxu1 %vm1164_vm2, %v3320_v38 }
 0x7c0   : > { %v11934_v15 = vpop.f32.mrf.mxu0 }
 0x7c2   : > { %v3330_v23 = vpop.f32.mrf.mxu0 }
 0x7c3   : > { %11984 = vmatprep.mubr.msk.f32.mxu0 %vm1164_vm2, %v3330_v23 }
 0x7c4   : > { %v11937_v8 = vpop.f32.mrf.mxu0  ;;  %11985 = vmatmul.mubr.msk.f32.gmra.mxu0 %vm1164_vm2, %v11934_v15 }
 0x7c6   : > { %v3340_v50 = vpop.f32.mrf.mxu0 }
 0x7c7   : > { %11987 = vmatprep.mubr.msk.f32.mxu0 %vm1164_vm2, %v3340_v50 }
 0x7c8   : > { %v11940_v2 = vpop.f32.mrf.mxu0  ;;  %11988 = vmatmul.mubr.msk.f32.gmra.mxu0 %vm1164_vm2, %v11937_v8 }
 0x7ca   : > { %v3350_v43 = vpop.f32.mrf.mxu0 }
 0x7cb   : > { %11990 = vmatprep.mubr.msk.f32.mxu0 %vm1164_vm2, %v3350_v43 }
 0x7cc   : > { %11991 = vmatmul.mubr.msk.f32.gmra.mxu0 %vm1164_vm2, %v11940_v2 }
 0x7dc   : > { %v14900_v33 = vpop.f32.mrf.mxu1 }
 0x7dd   : > { %v3459_v20 = vmul.f32 %v14900_v33, %v14900_v33 }
 0x7de   : > { %v11899_v21 = vpop.f32.mrf.mxu1 }
 0x7df   : > { %v3473_v54 = vsel %vm1121_vm3, %v3459_v20, 0.0  ;;  %v10306_v20 = vld [vmem:[%s17002_s11 + $0x98] sm:$0xff] }
 0x7e0   : > { %3474 = vadd.xlane.f32.xlu1 %v3473_v54  ;;  %v14905_v12 = vpop.f32.mrf.mxu1  ;;  %12022 = vmatprep.subr.mxu0 %v10306_v20 }
 0x7e1   : > { %v3460_v48 = vmul.f32 %v14905_v12, %v14905_v12  ;;  %12023 = vmatpush3.msra.mxu0 %v10306_v20 }
 0x7e2   : > { %v11902_v49 = vpop.f32.mrf.mxu1 }
 0x7e3   : > { %v3476_v11 = vsel %vm1121_vm3, %v3460_v48, 0.0  ;;  %v10305_v48 = vld [vmem:[%s17002_s11 + $0x90] sm:$0xff] }
 0x7e4   : > { %3477 = vadd.xlane.f32.xlu0 %v3476_v11  ;;  %v14910_v56 = vpop.f32.mrf.mxu1  ;;  %12024 = vmatprep.subr.mxu0 %v10305_v48 }
 0x7e5   : > { %v3461_v1 = vmul.f32 %v14910_v56, %v14910_v56  ;;  %12025 = vmatpush3.msra.mxu0 %v10305_v48 }
 0x7e6   : > { %v11905_v61 = vpop.f32.mrf.mxu1 }
 0x7e7   : > { %v3479_v52 = vsel %vm1121_vm3, %v3461_v1, 0.0  ;;  %v10304_v1 = vld [vmem:[%s17002_s11 + $0x88] sm:$0xff] }
 0x7e8   : > { %3480 = vadd.xlane.f32.xlu0 %v3479_v52  ;;  %v14915_v27 = vpop.f32.mrf.mxu1  ;;  %12026 = vmatprep.subr.mxu0 %v10304_v1  ;;  %v10303_v52 = vld [vmem:[%s17002_s11 + $0x80] sm:$0xff] }
 0x7e9   : > { %v3462_v62 = vmul.f32 %v14915_v27, %v14915_v27  ;;  %12027 = vmatpush3.msra.mxu0 %v10304_v1 }
 0x7ea   : > { %v11908_v30 = vpop.f32.mrf.mxu1  ;;  %12028 = vmatprep.subr.mxu0 %v10303_v52 }
 0x7eb   : > { %v3482_v3 = vsel %vm1121_vm3, %v3462_v62, 0.0  ;;  %12029 = vmatpush3.msra.mxu0 %v10303_v52  ;;  %v14985_v62 = vld [vmem:[%s17001_s10 + $0x38] sm:$0xff]  ;;  %v14991_v30 = vld [vmem:[%s17003_s12 + $0x10] sm:$0xff] }
 0x7ec   : > { %3483 = vadd.xlane.f32.xlu1 %v3482_v3  ;;  %v14920_v47 = vpop.f32.mrf.mxu1  ;;  %12080 = vmatprep.subr.mxu0 %v14985_v62 }
 0x7ed   : > { %v3463_v6 = vmul.f32 %v14920_v47, %v14920_v47 }
 0x7ee   : > { %v11911_v10 = vpop.f32.mrf.mxu1 }
 0x7ef   : > { %v3485_v58 = vsel %vm1121_vm3, %v3463_v6, 0.0  ;;  %v14995_v6 = vrot.slane %v14991_v30, %v14177_v26 }
 0x7f0   : > { %3486 = vadd.xlane.f32.xlu0 %v3485_v58  ;;  %v14925_v44 = vpop.f32.mrf.mxu1 }
 0x7f1   : > { %v3464_v63 = vmul.f32 %v14925_v44, %v14925_v44 }
 0x7f2   : > { %v11914_v41 = vpop.f32.mrf.mxu1 }
 0x7f3   : > { %v3488_v14 = vsel %vm1121_vm3, %v3464_v63, 0.0 }
 0x7f4   : > { %3489 = vadd.xlane.f32.xlu1 %v3488_v14  ;;  %v14930_v45 = vpop.f32.mrf.mxu1 }
 0x7f5   : > { %v3465_v35 = vmul.f32 %v14930_v45, %v14930_v45 }
 0x7f6   : > { %v11917_v29 = vpop.f32.mrf.mxu1 }
 0x7f7   : > { %v3491_v17 = vsel %vm1121_vm3, %v3465_v35, 0.0  ;;  %v14999_v35 = vrot.slane %v14991_v30, %v14185_v28 }
 0x7f8   : > { %3492 = vadd.xlane.f32.xlu0 %v3491_v17  ;;  %v14935_v5 = vpop.f32.mrf.mxu1 }
 0x7f9   : > { %v3466_v25 = vmul.f32 %v14935_v5, %v14935_v5 }
 0x7fa   : > { %v11945_v24 = vpop.f32.mrf.mxu1 }
 0x7fb   : > { %v3494_v36 = vsel %vm1121_vm3, %v3466_v25, 0.0 }
 0x7fc   : > { %3495 = vadd.xlane.f32.xlu1 %v3494_v36  ;;  %v14940_v22 = vpop.f32.mrf.mxu1 }
 0x7fd   : > { %v3467_v9 = vmul.f32 %v14940_v22, %v14940_v22 }
 0x7fe   : > { %v11948_v16 = vpop.f32.mrf.mxu1 }
 0x7ff   : > { %v3497_v34 = vsel %vm1121_vm3, %v3467_v9, 0.0 }
 0x800   : > { %3498 = vadd.xlane.f32.xlu0 %v3497_v34  ;;  %v14945_v42 = vpop.f32.mrf.mxu1 }
 0x801   : > { %v3468_v13 = vmul.f32 %v14945_v42, %v14945_v42 }
 0x802   : > { %v11951_v0 = vpop.f32.mrf.mxu1 }
 0x803   : > { %v3500_v37 = vsel %vm1121_vm3, %v3468_v13, 0.0 }
 0x804   : > { %3501 = vadd.xlane.f32.xlu1 %v3500_v37  ;;  %v14950_v53 = vpop.f32.mrf.mxu1 }
 0x805   : > { %v3469_v40 = vmul.f32 %v14950_v53, %v14950_v53 }
 0x806   : > { %v11954_v59 = vpop.f32.mrf.mxu1 }
 0x807   : > { %v3503_v57 = vsel %vm1121_vm3, %v3469_v40, 0.0 }
 0x808   : > { %3504 = vadd.xlane.f32.xlu0 %v3503_v57  ;;  %v14955_v38 = vpop.f32.mrf.mxu1 }
 0x809   : > { %v3470_v15 = vmul.f32 %v14955_v38, %v14955_v38 }
 0x80a   : > { %v11957_v23 = vpop.f32.mrf.mxu1 }
 0x80b   : > { %v3506_v8 = vsel %vm1121_vm3, %v3470_v15, 0.0 }
 0x80c   : > { %3507 = vadd.xlane.f32.xlu1 %v3506_v8  ;;  %v14960_v50 = vpop.f32.mrf.mxu1 }
 0x80d   : > { %v3471_v2 = vmul.f32 %v14960_v50, %v14960_v50 }
 0x80e   : > { %v11960_v43 = vpop.f32.mrf.mxu1 }
 0x80f   : > { %v3509_v21 = vsel %vm1121_vm3, %v3471_v2, 0.0 }
 0x810   : > { %3510 = vadd.xlane.f32.xlu0 %v3509_v21  ;;  %v14968_v54 = vpop.f32.mrf.mxu1 }
 0x811   : > { %v3472_v49 = vmul.f32 %v14968_v54, %v14968_v54 }
 0x812   : > { %v11963_v11 = vpop.f32.mrf.mxu1 }
 0x813   : > { %v3512_v61 = vsel %vm1121_vm3, %v3472_v49, 0.0 }
 0x814   : > { %3513 = vadd.xlane.f32.xlu1 %v3512_v61 }
 0x858   : > { %v12003_v3 = vpop.f32.mrf.mxu1 }
 0x85a   : > { %v3800_v58 = vpop.f32.mrf.mxu1 }
 0x85c   : > { %v12006_v24 = vpop.f32.mrf.mxu1 }
 0x85e   : > { %v3810_v40 = vpop.f32.mrf.mxu1 }
 0x860   : > { %v12009_v20 = vpop.f32.mrf.mxu1 }
 0x867   : > { %v11974_v10 = vpop.f32.mrf.mxu0 }
 0x868   : > { %v3806_v9 = vadd.f32 %v12003_v3, %v11974_v10  ;;  %v3820_v3 = vpop.f32.mrf.mxu1 }
 0x869   : > { %v3623_v63 = vpop.f32.mrf.mxu0  ;;  %v3475_v41 = vpop.xlane.xlu1 %3474 }
 0x86a   : > { %v3801_v14 = vadd.f32 %v3800_v58, %v3623_v63  ;;  %v3873_v29 = vmul.f32 %v14995_v6, %v3475_v41 }
 0x86b   : > { %v11977_v17 = vpop.f32.mrf.mxu0 }
 0x86c   : > { %v3887_v25 = vadd.f32 %v3873_v29, %v3801_v14  ;;  %v3816_v48 = vadd.f32 %v12006_v24, %v11977_v17 }
 0x86d   : > { %v3478_v36 = vpop.xlane.xlu0 %3477  ;;  %v3633_v13 = vpop.f32.mrf.mxu0 }
 0x86e   : > { %v15003_v16 = vadd.f32 %v14999_v35, %v3887_v25  ;;  %v3874_v34 = vmul.f32 %v14995_v6, %v3478_v36  ;;  %v3811_v57 = vadd.f32 %v3810_v40, %v3633_v13 }
 0x86f   : > { %v11980_v8 = vpop.f32.mrf.mxu0 }
 0x870   : > { %v10391_v0 = vmul.f32 -1.442695, %v15003_v16  ;;  %v3888_v37 = vadd.f32 %v3874_v34, %v3806_v9  ;;  %v3826_v36 = vadd.f32 %v12009_v20, %v11980_v8 }
 0x871   : > { %v3481_v59 = vpop.xlane.xlu0 %3480  ;;  %v3643_v1 = vpop.f32.mrf.mxu0 }
 0x872   : > { %13034 = vpow2.f32 %v10391_v0  ;;  %v15008_v15 = vadd.f32 %v14999_v35, %v3888_v37  ;;  %v3875_v23 = vmul.f32 %v14995_v6, %v3481_v59  ;;  %v3821_v58 = vadd.f32 %v3820_v3, %v3643_v1 }
 0x873   : > { %v12012_v14 = vpop.f32.mrf.mxu1 }
 0x874   : > { %v10392_v2 = vmul.f32 -1.442695, %v15008_v15  ;;  %v3889_v43 = vadd.f32 %v3875_v23, %v3811_v57 }
 0x875   : > { %v3484_v21 = vpop.xlane.xlu1 %3483  ;;  %v3830_v37 = vpop.f32.mrf.mxu1 }
 0x876   : > { %13036 = vpow2.f32 %v10392_v2  ;;  %v15013_v49 = vadd.f32 %v14999_v35, %v3889_v43  ;;  %v3876_v11 = vmul.f32 %v14995_v6, %v3484_v21 }
 0x878   : > { %v10393_v61 = vmul.f32 -1.442695, %v15013_v49  ;;  %v3890_v52 = vadd.f32 %v3876_v11, %v3816_v48 }
 0x879   : > { %v3487_v10 = vpop.xlane.xlu0 %3486 }
 0x87a   : > { %13038 = vpow2.f32 %v10393_v61  ;;  %v15018_v63 = vadd.f32 %v14999_v35, %v3890_v52  ;;  %v3877_v41 = vmul.f32 %v14995_v6, %v3487_v10  ;;  %v12015_v61 = vpop.f32.mrf.mxu1 }
 0x87c   : > { %v10394_v29 = vmul.f32 -1.442695, %v15018_v63  ;;  %v3891_v17 = vadd.f32 %v3877_v41, %v3821_v58 }
 0x87d   : > { %v11983_v25 = vpop.f32.mrf.mxu0  ;;  %v3490_v24 = vpop.xlane.xlu1 %3489 }
 0x87e   : > { %13040 = vpow2.f32 %v10394_v29  ;;  %v15023_v9 = vadd.f32 %v14999_v35, %v3891_v17  ;;  %v3878_v34 = vmul.f32 %v14995_v6, %v3490_v24  ;;  %v3836_v3 = vadd.f32 %v12012_v14, %v11983_v25 }
 0x87f   : > { %v13035_v13 = vpop.eup %13034  ;;  %v3653_v0 = vpop.f32.mrf.mxu0 }
 0x880   : > { %v3961_v40 = vadd.f32 1.0, %v13035_v13  ;;  %v10395_v59 = vmul.f32 -1.442695, %v15023_v9  ;;  %v3892_v57 = vadd.f32 %v3878_v34, %v3826_v36  ;;  %v3831_v43 = vadd.f32 %v3830_v37, %v3653_v0  ;;  %v3840_v34 = vpop.f32.mrf.mxu1 }
 0x881   : > { %v3493_v23 = vpop.xlane.xlu0 %3492 }
 0x882   : > { %13042 = vrcp.f32 %v3961_v40  ;;  %v15028_v2 = vadd.f32 %v14999_v35, %v3892_v57  ;;  %v3879_v8 = vmul.f32 %v14995_v6, %v3493_v23 }
 0x883   : > { %v13037_v20 = vpop.eup %13036  ;;  %13044 = vpow2.f32 %v10395_v59 }
 0x884   : > { %v3962_v21 = vadd.f32 1.0, %v13037_v20  ;;  %v10396_v48 = vmul.f32 -1.442695, %v15028_v2  ;;  %v3893_v11 = vadd.f32 %v3879_v8, %v3831_v43  ;;  %v11986_v1 = vpop.f32.mrf.mxu0  ;;  %v12018_v43 = vpop.f32.mrf.mxu1 }
 0x885   : > { %v3496_v52 = vpop.xlane.xlu1 %3495  ;;  %v3846_v20 = vadd.f32 %v12015_v61, %v11986_v1 }
 0x886   : > { %13046 = vrcp.f32 %v3962_v21  ;;  %v15033_v10 = vadd.f32 %v14999_v35, %v3893_v11  ;;  %v3880_v58 = vmul.f32 %v14995_v6, %v3496_v52  ;;  %v3663_v29 = vpop.f32.mrf.mxu0 }
 0x887   : > { %v13039_v41 = vpop.eup %13038  ;;  %13048 = vpow2.f32 %v10396_v48  ;;  %v3841_v37 = vadd.f32 %v3840_v34, %v3663_v29 }
 0x888   : > { %v3963_v17 = vadd.f32 1.0, %v13039_v41  ;;  %v10397_v24 = vmul.f32 -1.442695, %v15033_v10  ;;  %v3894_v36 = vadd.f32 %v3880_v58, %v3836_v3  ;;  %v11989_v40 = vpop.f32.mrf.mxu0 }
 0x889   : > { %v3499_v13 = vpop.xlane.xlu0 %3498 }
 0x88a   : > { %13050 = vrcp.f32 %v3963_v17  ;;  %v15038_v0 = vadd.f32 %v14999_v35, %v3894_v36  ;;  %v3881_v14 = vmul.f32 %v14995_v6, %v3499_v13  ;;  %v3673_v52 = vpop.f32.mrf.mxu0 }
 0x88b   : > { %v13041_v25 = vpop.eup %13040  ;;  %13052 = vpow2.f32 %v10397_v24  ;;  %v3850_v24 = vpop.f32.mrf.mxu1 }
 0x88c   : > { %v3964_v59 = vadd.f32 1.0, %v13041_v25  ;;  %v10398_v57 = vmul.f32 -1.442695, %v15038_v0  ;;  %v3895_v23 = vadd.f32 %v3881_v14, %v3841_v37  ;;  %v3851_v34 = vadd.f32 %v3850_v24, %v3673_v52  ;;  %v11992_v37 = vpop.f32.mrf.mxu0 }
 0x88d   : > { %v3502_v8 = vpop.xlane.xlu1 %3501 }
 0x88e   : > { %13054 = vrcp.f32 %v3964_v59  ;;  %v15043_v21 = vadd.f32 %v14999_v35, %v3895_v23  ;;  %v3882_v48 = vmul.f32 %v14995_v6, %v3502_v8  ;;  %v12021_v23 = vpop.f32.mrf.mxu1 }
 0x88f   : > { %v13043_v11 = vpop.eup %13042  ;;  %13056 = vpow2.f32 %v10398_v57 }
 0x890   : > { %v13045_v3 = vpop.eup %13044  ;;  %v10399_v58 = vmul.f32 -1.442695, %v15043_v21  ;;  %v3896_v41 = vadd.f32 %v3882_v48, %v3846_v20  ;;  %v4003_v29 = vmul.f32 %v13043_v11, %v15003_v16  ;;  %v10301_v20 = vld [vmem:[%s17001_s10 + $0x30] sm:$0xff]  ;;  %v3856_v48 = vadd.f32 %v12018_v43, %v11989_v40  ;;  %v3860_v24 = vpop.f32.mrf.mxu1 }
 0x891   : > { %v3965_v17 = vadd.f32 1.0, %v13045_v3  ;;  %v3505_v36 = vpop.xlane.xlu0 %3504  ;;  %v3683_v3 = vpop.f32.mrf.mxu0 }
 0x892   : > { %13058 = vpow2.f32 %v10399_v58  ;;  %v15049_v1 = vadd.f32 %v14999_v35, %v3896_v41  ;;  %v3883_v61 = vmul.f32 %v14995_v6, %v3505_v36  ;;  %12030 = vmatprep.mubr.msk.f32.mxu0 %vm1164_vm2, %v4003_v29  ;;  %v10300_v58 = vld [vmem:[%s17001_s10 + $0x28] sm:$0xff] }
 0x893   : > { %v13047_v13 = vpop.eup %13046  ;;  %13060 = vrcp.f32 %v3965_v17 }
 0x894   : > { %v13049_v14 = vpop.eup %13048  ;;  %v4004_v25 = vmul.f32 %v13047_v13, %v15008_v15  ;;  %v10400_v16 = vmul.f32 -1.442695, %v15049_v1  ;;  %v3897_v59 = vadd.f32 %v3883_v61, %v3851_v34  ;;  %v10299_v34 = vld [vmem:[%s17001_s10 + $0x20] sm:$0xff] }
 0x895   : > { %v3966_v57 = vadd.f32 1.0, %v13049_v14  ;;  %v3508_v8 = vpop.xlane.xlu1 %3507 }
 0x896   : > { %13062 = vpow2.f32 %v10400_v16  ;;  %v15059_v11 = vadd.f32 %v14999_v35, %v3897_v59  ;;  %v3884_v52 = vmul.f32 %v14995_v6, %v3508_v8  ;;  %12031 = vmatmul.mubr.msk.f32.vlgmr.msra.gmra.mxu0 %vm1164_vm2, %v4004_v25 }
 0x897   : > { %v13051_v15 = vpop.eup %13050  ;;  %13064 = vrcp.f32 %v3966_v57  ;;  %12081 = vmatpush3.msra.mxu0 %v14985_v62  ;;  %v3861_v62 = vadd.f32 %v3860_v24, %v3683_v3 }
 0x898   : > { %v13053_v41 = vpop.eup %13052  ;;  %v10401_v40 = vmul.f32 -1.442695, %v15059_v11  ;;  %v3898_v43 = vadd.f32 %v3884_v52, %v3856_v48  ;;  %v4005_v29 = vmul.f32 %v13051_v15, %v15013_v49  ;;  %12082 = vmatprep.subr.mxu0 %v10301_v20 }
 0x899   : > { %v3967_v17 = vadd.f32 1.0, %v13053_v41  ;;  %v3511_v36 = vpop.xlane.xlu0 %3510  ;;  %12083 = vmatpush3.msra.mxu0 %v10301_v20  ;;  %v3866_v20 = vadd.f32 %v12021_v23, %v11992_v37 }
 0x89a   : > { %13066 = vpow2.f32 %v10401_v40  ;;  %v15073_v61 = vadd.f32 %v14999_v35, %v3898_v43  ;;  %v3885_v13 = vmul.f32 %v14995_v6, %v3511_v36  ;;  %12033 = vmatprep.mubr.msk.f32.mxu0 %vm1164_vm2, %v4005_v29  ;;  %12084 = vmatprep.subr.mxu0 %v10300_v58 }
 0x89b   : > { %v13055_v49 = vpop.eup %13054  ;;  %13068 = vrcp.f32 %v3967_v17  ;;  %12085 = vmatpush3.msra.mxu0 %v10300_v58 }
 0x89c   : > { %v13057_v14 = vpop.eup %13056  ;;  %v10402_v25 = vmul.f32 -1.442695, %v15073_v61  ;;  %v3899_v16 = vadd.f32 %v3885_v13, %v3861_v62  ;;  %v4006_v59 = vmul.f32 %v13055_v49, %v15018_v63  ;;  %12086 = vmatprep.subr.mxu0 %v10299_v34 }
 0x89d   : > { %v3968_v57 = vadd.f32 1.0, %v13057_v14  ;;  %v3514_v8 = vpop.xlane.xlu1 %3513  ;;  %12087 = vmatpush3.msra.mxu0 %v10299_v34 }
 0x89e   : > { %13070 = vpow2.f32 %v10402_v25  ;;  %v3917_v48 = vadd.f32 %v14999_v35, %v3899_v16  ;;  %v3886_v52 = vmul.f32 %v14995_v6, %v3514_v8  ;;  %12034 = vmatmul.mubr.msk.f32.gmra.mxu0 %vm1164_vm2, %v4006_v59  ;;  %12108 = vmatprep.subr.mxu0 %v17007_v18 }
 0x89f   : > { %v13059_v15 = vpop.eup %13058  ;;  %13072 = vrcp.f32 %v3968_v57 }
 0x8a0   : > { %v13061_v3 = vpop.eup %13060  ;;  %v3969_v58 = vadd.f32 1.0, %v13059_v15  ;;  %v10403_v41 = vmul.f32 -1.442695, %v3917_v48  ;;  %v3900_v63 = vadd.f32 %v3886_v52, %v3866_v20 }
 0x8a1   : > { %v4007_v40 = vmul.f32 %v13061_v3, %v15023_v9 }
 0x8a2   : > { %13074 = vrcp.f32 %v3969_v58  ;;  %v3918_v37 = vadd.f32 %v14999_v35, %v3900_v63  ;;  %v15123_v63 = vrot.slane %v14991_v30, %v14324_v4 }
 0x8a3   : > { %v13063_v23 = vpop.eup %13062  ;;  %13076 = vpow2.f32 %v10403_v41  ;;  %12036 = vmatprep.mubr.msk.f32.mxu0 %vm1164_vm2, %v4007_v40  ;;  %v10307_v41 = vld [vmem:[%s17002_s11 + $0xa0] sm:$0xff] }
 0x8a4   : > { %v13065_v6 = vpop.eup %13064  ;;  %v3970_v43 = vadd.f32 1.0, %v13063_v23  ;;  %v10404_v29 = vmul.f32 -1.442695, %v3918_v37 }
 0x8a5   : > { %v4008_v17 = vmul.f32 %v13065_v6, %v15028_v2 }
 0x8a6   : > { %13078 = vrcp.f32 %v3970_v43 }
 0x8a7   : > { %v13067_v24 = vpop.eup %13066  ;;  %13080 = vpow2.f32 %v10404_v29  ;;  %12037 = vmatmul.mubr.msk.f32.gmra.mxu0 %vm1164_vm2, %v4008_v17 }
 0x8a8   : > { %v13069_v36 = vpop.eup %13068  ;;  %v3971_v34 = vadd.f32 1.0, %v13067_v24 }
 0x8a9   : > { %v4009_v9 = vmul.f32 %v13069_v36, %v15033_v10 }
 0x8aa   : > { %13082 = vrcp.f32 %v3971_v34 }
 0x8ab   : > { %v13071_v35 = vpop.eup %13070  ;;  %12039 = vmatprep.mubr.msk.f32.mxu0 %vm1164_vm2, %v4009_v9 }
 0x8ac   : > { %v13073_v62 = vpop.eup %13072  ;;  %v3972_v13 = vadd.f32 1.0, %v13071_v35 }
 0x8ad   : > { %v4010_v49 = vmul.f32 %v13073_v62, %v15038_v0 }
 0x8ae   : > { %13084 = vrcp.f32 %v3972_v13 }
 0x8af   : > { %v13075_v14 = vpop.eup %13074  ;;  %12040 = vmatmul.mubr.msk.f32.gmra.mxu0 %vm1164_vm2, %v4010_v49 }
 0x8b0   : > { %v13077_v2 = vpop.eup %13076  ;;  %v4011_v25 = vmul.f32 %v13075_v14, %v15043_v21 }
 0x8b1   : > { %v3973_v16 = vadd.f32 1.0, %v13077_v2 }
 0x8b2   : > { %12042 = vmatprep.mubr.msk.f32.mxu0 %vm1164_vm2, %v4011_v25 }
 0x8b3   : > { %v13079_v59 = vpop.eup %13078  ;;  %13086 = vrcp.f32 %v3973_v16 }
 0x8b4   : > { %v13081_v10 = vpop.eup %13080  ;;  %v4012_v57 = vmul.f32 %v13079_v59, %v15049_v1 }
 0x8b5   : > { %v3974_v8 = vadd.f32 1.0, %v13081_v10 }
 0x8b6   : > { %12043 = vmatmul.mubr.msk.f32.gmra.mxu0 %vm1164_vm2, %v4012_v57 }
 0x8b7   : > { %v13083_v20 = vpop.eup %13082  ;;  %13088 = vrcp.f32 %v3974_v8 }
 0x8b8   : > { %v4013_v0 = vmul.f32 %v13083_v20, %v15059_v11  ;;  %v10310_v11 = vld [vmem:[%s17002_s11 + $0xb8] sm:$0xff] }
 0x8b9   : > { %12051 = vmatprep.subr.mxu1 %v10310_v11 }
 0x8ba   : > { %12045 = vmatprep.mubr.msk.f32.mxu0 %vm1164_vm2, %v4013_v0  ;;  %12052 = vmatpush3.msra.mxu1 %v10310_v11 }
 0x8bb   : > { %v13085_v52 = vpop.eup %13084 }
 0x8bc   : > { %v4014_v21 = vmul.f32 %v13085_v52, %v15073_v61  ;;  %v10309_v61 = vld [vmem:[%s17002_s11 + $0xb0] sm:$0xff] }
 0x8bd   : > { %12053 = vmatprep.subr.mxu1 %v10309_v61 }
 0x8be   : > { %12046 = vmatmul.mubr.msk.f32.gmra.mxu0 %vm1164_vm2, %v4014_v21  ;;  %12054 = vmatpush3.msra.mxu1 %v10309_v61 }
 0x8c0   : > { %v13087_v15 = vpop.eup %13086 }
 0x8c1   : > { %v4015_v3 = vmul.f32 %v13087_v15, %v3917_v48  ;;  %v10308_v48 = vld [vmem:[%s17002_s11 + $0xa8] sm:$0xff] }
 0x8c2   : > { %12055 = vmatprep.subr.mxu1 %v10308_v48 }
 0x8c3   : > { %12048 = vmatprep.mubr.msk.f32.mxu0 %vm1164_vm2, %v4015_v3  ;;  %12056 = vmatpush3.msra.mxu1 %v10308_v48 }
 0x8c4   : > { %v13089_v58 = vpop.eup %13088  ;;  %12057 = vmatprep.subr.mxu1 %v10307_v41 }
 0x8c5   : > { %v4016_v1 = vmul.f32 %v13089_v58, %v3918_v37  ;;  %12058 = vmatpush3.msra.mxu1 %v10307_v41 }
 0x8c6   : > { %12091 = vmatprep.subr.mxu1 %v17007_v18 }
 0x8c7   : > { %12049 = vmatmul.mubr.msk.f32.gmra.mxu0 %vm1164_vm2, %v4016_v1 }
 0x8c8   : > { %12088 = vmatprep.mubr.msk.f32.mxu0 %vm1164_vm2, %v14695_v51 }
 0x8cb   : > { %12089 = vmatmul.mubr.msk.f32.vlgmr.msra.gmra.mxu0 %vm1164_vm2, %v14698_v19 }
 0x8cc   : > { %12122 = vmatprep.mubr.msk.f32.mxu0 %vm13731_vm1, %v17007_v18 }
 0x956   : > { %v12032_v40 = vpop.f32.mrf.mxu0 }
 0x957   : > { %v4135_v37 = vadd.f32 %v12032_v40, %v15123_v63 }
 0x958   : > { %v4129_v23 = vpop.f32.mrf.mxu0 }
 0x959   : > { %v10420_v6 = vmul.f32 -1.442695, %v4135_v37  ;;  %v4130_v43 = vadd.f32 %v4129_v23, %v15123_v63 }
 0x95b   : > { %13090 = vpow2.f32 %v10420_v6  ;;  %v10419_v29 = vmul.f32 -1.442695, %v4130_v43 }
 0x95d   : > { %13092 = vpow2.f32 %v10419_v29 }
 0x95e   : > { %v12035_v17 = vpop.f32.mrf.mxu0 }
 0x95f   : > { %v15128_v24 = vadd.f32 %v12035_v17, %v15123_v63 }
 0x960   : > { %v4139_v36 = vpop.f32.mrf.mxu0 }
 0x961   : > { %v10422_v34 = vmul.f32 -1.442695, %v15128_v24  ;;  %v4140_v9 = vadd.f32 %v4139_v36, %v15123_v63 }
 0x963   : > { %13094 = vpow2.f32 %v10422_v34  ;;  %v10421_v35 = vmul.f32 -1.442695, %v4140_v9 }
 0x965   : > { %13096 = vpow2.f32 %v10421_v35 }
 0x967   : > { %v12038_v62 = vpop.f32.mrf.mxu0 }
 0x968   : > { %v13091_v13 = vpop.eup %13090  ;;  %v15133_v49 = vadd.f32 %v12038_v62, %v15123_v63 }
 0x969   : > { %v4241_v14 = vadd.f32 1.0, %v13091_v13  ;;  %v4149_v2 = vpop.f32.mrf.mxu0 }
 0x96a   : > { %v13093_v25 = vpop.eup %13092  ;;  %v10424_v16 = vmul.f32 -1.442695, %v15133_v49  ;;  %v15137_v59 = vadd.f32 %v4149_v2, %v15123_v63 }
 0x96b   : > { %13098 = vrcp.f32 %v4241_v14  ;;  %v4240_v10 = vadd.f32 1.0, %v13093_v25 }
 0x96c   : > { %13100 = vpow2.f32 %v10424_v16  ;;  %v10423_v57 = vmul.f32 -1.442695, %v15137_v59 }
 0x96d   : > { %13102 = vrcp.f32 %v4240_v10 }
 0x96e   : > { %13104 = vpow2.f32 %v10423_v57 }
 0x96f   : > { %v12041_v8 = vpop.f32.mrf.mxu0 }
 0x970   : > { %v13095_v20 = vpop.eup %13094  ;;  %v15141_v0 = vadd.f32 %v12041_v8, %v15123_v63 }
 0x971   : > { %v4243_v52 = vadd.f32 1.0, %v13095_v20  ;;  %v4159_v21 = vpop.f32.mrf.mxu0 }
 0x972   : > { %v13097_v15 = vpop.eup %13096  ;;  %v10426_v3 = vmul.f32 -1.442695, %v15141_v0  ;;  %v15145_v58 = vadd.f32 %v4159_v21, %v15123_v63 }
 0x973   : > { %13106 = vrcp.f32 %v4243_v52  ;;  %v4242_v1 = vadd.f32 1.0, %v13097_v15 }
 0x974   : > { %13108 = vpow2.f32 %v10426_v3  ;;  %v10425_v11 = vmul.f32 -1.442695, %v15145_v58 }
 0x975   : > { %13110 = vrcp.f32 %v4242_v1 }
 0x976   : > { %13112 = vpow2.f32 %v10425_v11  ;;  %v12044_v61 = vpop.f32.mrf.mxu0 }
 0x977   : > { %v15149_v48 = vadd.f32 %v12044_v61, %v15123_v63 }
 0x978   : > { %v13099_v41 = vpop.eup %13098  ;;  %v4169_v40 = vpop.f32.mrf.mxu0 }
 0x979   : > { %v13101_v23 = vpop.eup %13100  ;;  %v10428_v6 = vmul.f32 -1.442695, %v15149_v48  ;;  %v15153_v29 = vadd.f32 %v4169_v40, %v15123_v63  ;;  %v15158_v13 = vmul.f32 %v13099_v41, %v4135_v37 }
 0x97a   : > { %v13103_v17 = vpop.eup %13102  ;;  %v4245_v36 = vadd.f32 1.0, %v13101_v23 }
 0x97b   : > { %v13105_v34 = vpop.eup %13104  ;;  %v15155_v35 = vmul.f32 %v13103_v17, %v4130_v43  ;;  %13114 = vpow2.f32 %v10428_v6  ;;  %v10427_v62 = vmul.f32 -1.442695, %v15153_v29 }
 0x97c   : > { %13116 = vrcp.f32 %v4245_v36  ;;  %v4244_v14 = vadd.f32 1.0, %v13105_v34 }
 0x97d   : > { %13118 = vpow2.f32 %v10427_v62  ;;  %12059 = vmatprep.mubr.msk.f32.mxu1 %vm1164_vm2, %v15155_v35 }
 0x97e   : > { %13120 = vrcp.f32 %v4244_v14  ;;  %v12047_v2 = vpop.f32.mrf.mxu0  ;;  %12060 = vmatmul.mubr.msk.f32.vlgmr.msra.gmra.mxu1 %vm1164_vm2, %v15158_v13 }
 0x97f   : > { %v15165_v25 = vadd.f32 %v12047_v2, %v15123_v63 }
 0x980   : > { %v13107_v43 = vpop.eup %13106  ;;  %v4179_v16 = vpop.f32.mrf.mxu0 }
 0x981   : > { %v13109_v10 = vpop.eup %13108  ;;  %v10430_v37 = vmul.f32 -1.442695, %v15165_v25  ;;  %v15169_v57 = vadd.f32 %v4179_v16, %v15123_v63  ;;  %v4285_v3 = vmul.f32 %v13107_v43, %v15128_v24 }
 0x982   : > { %v13111_v8 = vpop.eup %13110  ;;  %v4247_v20 = vadd.f32 1.0, %v13109_v10 }
 0x983   : > { %v13113_v52 = vpop.eup %13112  ;;  %v4284_v21 = vmul.f32 %v13111_v8, %v4140_v9  ;;  %13122 = vpow2.f32 %v10430_v37  ;;  %v10429_v15 = vmul.f32 -1.442695, %v15169_v57 }
 0x984   : > { %13124 = vrcp.f32 %v4247_v20  ;;  %v4246_v1 = vadd.f32 1.0, %v13113_v52 }
 0x985   : > { %13126 = vpow2.f32 %v10429_v15  ;;  %12062 = vmatprep.mubr.msk.f32.mxu1 %vm1164_vm2, %v4284_v21 }
 0x986   : > { %13128 = vrcp.f32 %v4246_v1  ;;  %12063 = vmatmul.mubr.msk.f32.gmra.mxu1 %vm1164_vm2, %v4285_v3 }
 0x987   : > { %v12050_v11 = vpop.f32.mrf.mxu0 }
 0x988   : > { %v13115_v61 = vpop.eup %13114  ;;  %v15176_v41 = vadd.f32 %v12050_v11, %v15123_v63 }
 0x989   : > { %v13117_v40 = vpop.eup %13116  ;;  %v4249_v9 = vadd.f32 1.0, %v13115_v61  ;;  %v4189_v23 = vpop.f32.mrf.mxu0 }
 0x98a   : > { %v13119_v6 = vpop.eup %13118  ;;  %v10432_v17 = vmul.f32 -1.442695, %v15176_v41  ;;  %v4190_v24 = vadd.f32 %v4189_v23, %v15123_v63  ;;  %v4287_v2 = vmul.f32 %v13117_v40, %v15133_v49 }
 0x98b   : > { %v13121_v36 = vpop.eup %13120  ;;  %13130 = vrcp.f32 %v4249_v9  ;;  %v4248_v34 = vadd.f32 1.0, %v13119_v6  ;;  %v10311_v6 = vld [vmem:[%s17002_s11 + $0xc0] sm:$0xff] }
 0x98c   : > { %v4286_v62 = vmul.f32 %v13121_v36, %v15137_v59  ;;  %13132 = vpow2.f32 %v10432_v17  ;;  %v10431_v14 = vmul.f32 -1.442695, %v4190_v24 }
 0x98d   : > { %13134 = vrcp.f32 %v4248_v34 }
 0x98e   : > { %13136 = vpow2.f32 %v10431_v14  ;;  %12065 = vmatprep.mubr.msk.f32.mxu1 %vm1164_vm2, %v4286_v62 }
 0x98f   : > { %12066 = vmatmul.mubr.msk.f32.gmra.mxu1 %vm1164_vm2, %v4287_v2 }
 0x990   : > { %v13123_v43 = vpop.eup %13122 }
 0x991   : > { %v13125_v16 = vpop.eup %13124  ;;  %v4251_v10 = vadd.f32 1.0, %v13123_v43 }
 0x992   : > { %v13127_v37 = vpop.eup %13126  ;;  %v4289_v59 = vmul.f32 %v13125_v16, %v15141_v0 }
 0x993   : > { %v13129_v63 = vpop.eup %13128  ;;  %v4250_v8 = vadd.f32 1.0, %v13127_v37  ;;  %13138 = vrcp.f32 %v4251_v10 }
 0x994   : > { %v4288_v20 = vmul.f32 %v13129_v63, %v15145_v58 }
 0x995   : > { %13140 = vrcp.f32 %v4250_v8 }
 0x996   : > { %12068 = vmatprep.mubr.msk.f32.mxu1 %vm1164_vm2, %v4288_v20  ;;  %12092 = vmatpush3.msra.mxu1 %v4288_v20 }
 0x997   : > { %12069 = vmatmul.mubr.msk.f32.gmra.mxu1 %vm1164_vm2, %v4289_v59  ;;  %12093 = vmatprep.subr.mxu1 %v17007_v18 }
 0x998   : > { %v13131_v49 = vpop.eup %13130  ;;  %12094 = vmatpush3.msra.mxu1 %v4287_v2 }
 0x999   : > { %v13133_v52 = vpop.eup %13132  ;;  %12095 = vmatprep.subr.mxu1 %v17007_v18  ;;  %v4291_v61 = vmul.f32 %v13131_v49, %v15149_v48 }
 0x99a   : > { %v13135_v15 = vpop.eup %13134  ;;  %v4253_v1 = vadd.f32 1.0, %v13133_v52  ;;  %12096 = vmatpush3.msra.mxu1 %v4286_v62 }
 0x99b   : > { %v13137_v58 = vpop.eup %13136  ;;  %v4290_v11 = vmul.f32 %v13135_v15, %v15153_v29  ;;  %12097 = vmatprep.subr.mxu1 %v17007_v18 }
 0x99c   : > { %v4252_v0 = vadd.f32 1.0, %v13137_v58  ;;  %12098 = vmatpush3.msra.mxu1 %v4285_v3  ;;  %13142 = vrcp.f32 %v4253_v1  ;;  %v5186_v58 = vrot.slane %v14991_v30, %v14481_v46 }
 0x99d   : > { %12099 = vmatprep.subr.mxu1 %v17007_v18  ;;  %12071 = vmatprep.mubr.msk.f32.mxu1 %vm1164_vm2, %v4290_v11 }
 0x99e   : > { %13144 = vrcp.f32 %v4252_v0  ;;  %12100 = vmatpush3.msra.mxu1 %v4284_v21  ;;  %v10318_v0 = vld [vmem:[%s17002_s11 + $0xf8] sm:$0xff] }
 0x99f   : > { %12072 = vmatmul.mubr.msk.f32.gmra.mxu1 %vm1164_vm2, %v4291_v61  ;;  %12101 = vmatprep.subr.mxu1 %v17007_v18 }
 0x9a0   : > { %12102 = vmatpush3.msra.mxu1 %v15158_v13  ;;  %v13139_v29 = vpop.eup %13138 }
 0x9a1   : > { %12103 = vmatprep.subr.mxu1 %v17007_v18  ;;  %v4293_v3 = vmul.f32 %v13139_v29, %v15165_v25  ;;  %v10314_v25 = vld [vmem:[%s17002_s11 + $0xd8] sm:$0xff]  ;;  %v10316_v29 = vld [vmem:[%s17002_s11 + $0xe8] sm:$0xff] }
 0x9a2   : > { %v13141_v40 = vpop.eup %13140  ;;  %12104 = vmatpush3.msra.mxu1 %v15155_v35  ;;  %v13610_v35 = vld [vmem:[%s16996_s5] sm:$0xff] }
 0x9a3   : > { %v4292_v48 = vmul.f32 %v13141_v40, %v15169_v57  ;;  %12125 = vmatprep.subr.mxu1 %v17007_v18  ;;  %v10313_v57 = vld [vmem:[%s17002_s11 + $0xd0] sm:$0xff]  ;;  %v10315_v40 = vld [vmem:[%s17002_s11 + $0xe0] sm:$0xff] }
 0x9a5   : > { %12074 = vmatprep.mubr.msk.f32.mxu1 %vm1164_vm2, %v4292_v48 }
 0x9a6   : > { %12075 = vmatmul.mubr.msk.f32.gmra.mxu1 %vm1164_vm2, %v4293_v3 }
 0x9a9   : > { %v13143_v21 = vpop.eup %13142 }
 0x9aa   : > { %v4295_v13 = vmul.f32 %v13143_v21, %v15176_v41  ;;  %v10312_v41 = vld [vmem:[%s17002_s11 + $0xc8] sm:$0xff] }
 0x9ab   : > { %v13145_v9 = vpop.eup %13144 }
 0x9ac   : > { %v4294_v23 = vmul.f32 %v13145_v9, %v4190_v24 }
 0x9ae   : > { %12077 = vmatprep.mubr.msk.f32.mxu1 %vm1164_vm2, %v4294_v23 }
 0x9af   : > { %12078 = vmatmul.mubr.msk.f32.gmra.mxu1 %vm1164_vm2, %v4295_v13 }
 0x9b0   : > { %12105 = vmatprep.mubr.msk.f32.mxu1 %vm13731_vm1, %v17007_v18 }
 0x9b3   : > { %12106 = vmatmul.mubr.msk.f32.vlgmr.msra.gmra.mxu1 %vm2446_vm4, %v13610_v35 }
 0x9b4   : > { %12126 = vmatpush3.msra.mxu1 %v4295_v13  ;;  %12139 = vmatprep.mubr.msk.f32.mxu1 %vm13731_vm1, %v17007_v18 }
 0x9b5   : > { %12127 = vmatprep.subr.mxu1 %v17007_v18 }
 0x9b6   : > { %12128 = vmatpush3.msra.mxu1 %v4294_v23 }
 0x9b7   : > { %12129 = vmatprep.subr.mxu1 %v17007_v18 }
 0x9b8   : > { %12130 = vmatpush3.msra.mxu1 %v4293_v3 }
 0x9b9   : > { %12131 = vmatprep.subr.mxu1 %v17007_v18 }
 0x9ba   : > { %12132 = vmatpush3.msra.mxu1 %v4292_v48  ;;  %v15275_v48 = vpop.f32.mrf.mxu0 }
 0x9bb   : > { %12133 = vmatprep.subr.mxu1 %v17007_v18 }
 0x9bc   : > { %12134 = vmatpush3.msra.mxu1 %v4291_v61  ;;  %v10317_v61 = vld [vmem:[%s17002_s11 + $0xf0] sm:$0xff]  ;;  %v15277_v21 = vpop.f32.mrf.mxu0 }
 0x9bd   : > { %12135 = vmatprep.subr.mxu1 %v17007_v18 }
 0x9be   : > { %12136 = vmatpush3.msra.mxu1 %v4290_v11 }
 0x9bf   : > { %12137 = vmatprep.subr.mxu1 %v17007_v18 }
 0x9c0   : > { %12138 = vmatpush3.msra.mxu1 %v4289_v59 }
 0x9c1   : > { %12140 = vmatmul.mubr.msk.f32.vlgmr.msra.gmra.mxu1 %vm2446_vm4, %v13610_v35  ;;  %12159 = vmatprep.subr.mxu1 %v10314_v25 }
 0x9c2   : > { %12160 = vmatpush3.msra.mxu1 %v10314_v25 }
 0x9c3   : > { %12161 = vmatprep.subr.mxu1 %v10313_v57 }
 0x9c4   : > { %12162 = vmatpush3.msra.mxu1 %v10313_v57 }
 0x9c5   : > { %12163 = vmatprep.subr.mxu1 %v10312_v41 }
 0x9c6   : > { %12164 = vmatpush3.msra.mxu1 %v10312_v41 }
 0x9c7   : > { %12165 = vmatprep.subr.mxu1 %v10311_v6 }
 0x9c8   : > { %12166 = vmatpush3.msra.mxu1 %v10311_v6 }
 0x9c9   : > { %12170 = vmatprep.subr.mxu1 %v10318_v0 }
 0xa3e   : > { %v15235_v17 = vpop.f32.mrf.mxu1 }
 0xa40   : > { %v15237_v24 = vpop.f32.mrf.mxu1 }
 0xa46   : > { %v12064_v36 = vpop.f32.mrf.mxu1 }
 0xa48   : > { %v15239_v34 = vpop.f32.mrf.mxu1 }
 0xa4f   : > { %v12067_v62 = vpop.f32.mrf.mxu1 }
 0xa51   : > { %v4428_v14 = vpop.f32.mrf.mxu1 }
 0xa57   : > { %v15241_v2 = vpop.f32.mrf.mxu1 }
 0xa59   : > { %v4438_v43 = vpop.f32.mrf.mxu1 }
 0xa5f   : > { %v15243_v16 = vpop.f32.mrf.mxu1 }
 0xa61   : > { %v15245_v10 = vpop.f32.mrf.mxu1 }
 0xa66   : > { %v15247_v37 = vpop.f32.mrf.mxu1 }
 0xa68   : > { %v15249_v63 = vpop.f32.mrf.mxu1 }
 0xa6f   : > { %v15251_v8 = vpop.f32.mrf.mxu1 }
 0xa71   : > { %v15253_v20 = vpop.f32.mrf.mxu1 }
 0xa73   : > { %v4862_v59 = vpop.f32.mrf.mxu1 }
 0xa74   : > { %12167 = vmatprep.mubr.msk.f32.mxu1 %vm1164_vm2, %v4862_v59  ;;  %v4299_v59 = vrot.slane %v14991_v30, %v14508_v7 }
 0xa75   : > { %v12107_v49 = vpop.f32.mrf.mxu1 }
 0xa76   : > { %v15283_v49 = vadd.f32 %v4438_v43, %v4299_v59  ;;  %v15295_v43 = vadd.f32 %v15239_v34, %v4299_v59 }
 0xa81   : > { %v5002_v52 = vpop.f32.mrf.mxu1 }
 0xa82   : > { %12168 = vmatmul.mubr.msk.f32.vlgmr.msra.gmra.mxu1 %vm1164_vm2, %v5002_v52 }
 0xa83   : > { %v12141_v15 = vpop.f32.mrf.mxu1  ;;  %12171 = vmatpush3.msra.mxu1 %v10318_v0  ;;  %v15288_v0 = vadd.f32 %v12067_v62, %v4299_v59  ;;  %v15302_v62 = vadd.f32 %v15237_v24, %v4299_v59 }
 0xa84   : > { %12172 = vmatprep.subr.mxu1 %v10317_v61 }
 0xa85   : > { %12173 = vmatpush3.msra.mxu1 %v10317_v61  ;;  %v10452_v30 = vmul.f32 -1.442695, %v15288_v0  ;;  %v10447_v34 = vmul.f32 -1.442695, %v15302_v62 }
 0xa86   : > { %12174 = vmatprep.subr.mxu1 %v10316_v29 }
 0xa87   : > { %12175 = vmatpush3.msra.mxu1 %v10316_v29  ;;  %v15290_v29 = vadd.f32 %v12064_v36, %v4299_v59  ;;  %v10449_v36 = vmul.f32 -1.442695, %v15295_v43 }
 0xa88   : > { %12176 = vmatprep.subr.mxu1 %v10315_v40 }
 0xa89   : > { %12177 = vmatpush3.msra.mxu1 %v10315_v40 }
 0xa8a   : > { %12204 = vmatprep.subr.mxu1 %v17007_v18 }
 0xb42   : > { %v12169_v1 = vpop.f32.mrf.mxu1 }
 0xb43   : > { %5177 = vrot.lane.b32.xlu1 %v12169_v1, %s13732_s22  ;;  %v15285_v1 = vadd.f32 %v4428_v14, %v4299_v59  ;;  %v10450_v14 = vmul.f32 -1.442695, %v15290_v29 }
 0xb44   : > { %v5164_v11 = vpop.f32.mrf.mxu1 }
 0xb45   : > { %5175 = vrot.lane.b32.xlu0 %v5164_v11, %s13732_s22  ;;  %v10451_v40 = vmul.f32 -1.442695, %v15285_v1 }
 0xb47   : > { %5188 = vrot.lane.b32.xlu1 %v5186_v58, %s13732_s22  ;;  %v10453_v58 = vmul.f32 -1.442695, %v15283_v49 }
 0xbb5   : > { %v5178_v3 = vpop.permute.xlu1 %5177 }
 0xbb6   : > { %v5182_v23 = vadd.f32 %v15275_v48, %v5178_v3  ;;  %v15299_v3 = vadd.f32 %v15235_v17, %v4299_v59 }
 0xbb7   : > { %v5176_v9 = vpop.permute.xlu0 %5175 }
 0xbb8   : > { %v5181_v13 = vadd.f32 %v5176_v9, %v15277_v21  ;;  %v10448_v9 = vmul.f32 -1.442695, %v15299_v3 }
 0xbb9   : > { %v5189_v35 = vpop.permute.xlu1 %5188 }
 0xbba   : > { %v5191_v25 = vadd.f32 %v5189_v35, %v5181_v13  ;;  %v5192_v57 = vadd.f32 %v5189_v35, %v5182_v23  ;;  %v15307_v23 = vadd.f32 %v15251_v8, %v4299_v59  ;;  %v15311_v13 = vadd.f32 %v15253_v20, %v4299_v59 }
 0xbbb   : > { %v15314_v35 = vadd.f32 %v15247_v37, %v4299_v59  ;;  %v15318_v8 = vadd.f32 %v15249_v63, %v4299_v59  ;;  %v15323_v20 = vadd.f32 %v15243_v16, %v4299_v59 }
 0xbbc   : > { %v10485_v41 = vmul.f32 -1.442695, %v5191_v25  ;;  %v10486_v6 = vmul.f32 -1.442695, %v5192_v57 }
 0xbbd   : > { %v10458_v37 = vmul.f32 -1.442695, %v15314_v35  ;;  %v10457_v63 = vmul.f32 -1.442695, %v15318_v8 }
 0xbbe   : > { %13146 = vpow2.f32 %v10485_v41  ;;  %v10460_v41 = vmul.f32 -1.442695, %v15307_v23 }
 0xbbf   : > { %13148 = vpow2.f32 %v10486_v6 }
 0xbcb   : > { %v13147_v52 = vpop.eup %13146 }
 0xbcc   : > { %v13149_v15 = vpop.eup %13148  ;;  %v5199_v11 = vadd.f32 1.0, %v13147_v52 }
 0xbcd   : > { %v5200_v61 = vadd.f32 1.0, %v13149_v15 }
 0xbce   : > { %13150 = vrcp.f32 %v5199_v11 }
 0xbcf   : > { %13152 = vrcp.f32 %v5200_v61 }
 0xbd0   : > { %13154 = vpow2.f32 %v10453_v58  ;;  %v10459_v58 = vmul.f32 -1.442695, %v15311_v13 }
 0xbd1   : > { %13156 = vpow2.f32 %v10451_v40  ;;  %v15334_v40 = vld [vmem:[%s17003_s12 + $0x10] sm:$0xff] }
 0xbd2   : > { %13158 = vpow2.f32 %v10452_v30  ;;  %v4761_v16 = vrot.slane %v15334_v40, %v14544_v39  ;;  %v10456_v30 = vmul.f32 -1.442695, %v15323_v20 }
 0xbd3   : > { %13160 = vpow2.f32 %v10450_v14 }
 0xbd4   : > { %13162 = vpow2.f32 %v10449_v36 }
 0xbd5   : > { %13164 = vpow2.f32 %v10448_v9  ;;  %v15340_v9 = vadd.f32 %v15241_v2, %v4299_v59 }
 0xbd6   : > { %13166 = vpow2.f32 %v10447_v34 }
 0xbd7   : > { %13168 = vpow2.f32 %v10460_v41  ;;  %v15347_v41 = vadd.f32 %v15275_v48, %v4761_v16 }
 0xbd8   : > { %13170 = vpow2.f32 %v10459_v58 }
 0xbd9   : > { %13172 = vpow2.f32 %v10458_v37  ;;  %v10478_v58 = vmul.f32 -1.442695, %v15347_v41 }
 0xbdb   : > { %v13151_v17 = vpop.eup %13150 }
 0xbdc   : > { %v13153_v24 = vpop.eup %13152  ;;  %v5205_v6 = vmul.f32 %v13151_v17, %v5191_v25 }
 0xbdd   : > { %v13155_v52 = vpop.eup %13154  ;;  %v5206_v15 = vmul.f32 %v13153_v24, %v5192_v57  ;;  %v15328_v57 = vadd.f32 %v15245_v10, %v4299_v59  ;;  %v15343_v10 = vadd.f32 %v4761_v16, %v15277_v21 }
 0xbde   : > { %5213 = vrot.lane.b32.xlu0 %v5205_v6, %s17016_s30  ;;  %v4525_v11 = vadd.f32 1.0, %v13155_v52  ;;  %v13157_v25 = vpop.eup %13156  ;;  %v10454_v52 = vmul.f32 -1.442695, %v15340_v9 }
 0xbdf   : > { %5215 = vrot.lane.b32.xlu1 %v5206_v15, %s17016_s30  ;;  %v13159_v61 = vpop.eup %13158  ;;  %v4523_v36 = vadd.f32 1.0, %v13157_v25  ;;  %v10455_v17 = vmul.f32 -1.442695, %v15328_v57  ;;  %v10477_v2 = vmul.f32 -1.442695, %v15343_v10 }
 0xbe0   : > { %v13161_v14 = vpop.eup %13160  ;;  %13174 = vrcp.f32 %v4525_v11  ;;  %v4524_v34 = vadd.f32 1.0, %v13159_v61 }
 0xbe1   : > { %13176 = vpow2.f32 %v10457_v63  ;;  %v13163_v24 = vpop.eup %13162  ;;  %v4522_v6 = vadd.f32 1.0, %v13161_v14 }
 0xbe2   : > { %13178 = vpow2.f32 %v10456_v30  ;;  %v13165_v15 = vpop.eup %13164  ;;  %v4521_v59 = vadd.f32 1.0, %v13163_v24 }
 0xbe3   : > { %13180 = vrcp.f32 %v4523_v36  ;;  %v13167_v21 = vpop.eup %13166  ;;  %v4520_v37 = vadd.f32 1.0, %v13165_v15  ;;  %v15355_v15 = vrot.slane %v15334_v40, %v14586_v31 }
 0xbe4   : > { %13182 = vrcp.f32 %v4524_v34  ;;  %v13169_v11 = vpop.eup %13168  ;;  %v4519_v48 = vadd.f32 1.0, %v13167_v21 }
 0xbe5   : > { %13184 = vpow2.f32 %v10455_v17  ;;  %v13171_v25 = vpop.eup %13170  ;;  %v4532_v63 = vadd.f32 1.0, %v13169_v11 }
 0xbe6   : > { %13186 = vrcp.f32 %v4522_v6  ;;  %v13173_v61 = vpop.eup %13172  ;;  %v4531_v30 = vadd.f32 1.0, %v13171_v25 }
 0xbe7   : > { %13188 = vpow2.f32 %v10454_v52  ;;  %v4530_v17 = vadd.f32 1.0, %v13173_v61 }
 0xbe8   : > { %13190 = vpow2.f32 %v10477_v2 }
 0xbe9   : > { %13192 = vrcp.f32 %v4521_v59 }
 0xbea   : > { %13194 = vpow2.f32 %v10478_v58 }
 0xbeb   : > { %13196 = vrcp.f32 %v4520_v37 }
 0xbec   : > { %13198 = vrcp.f32 %v4519_v48 }
 0xbed   : > { %v13175_v16 = vpop.eup %13174  ;;  %13200 = vrcp.f32 %v4532_v63 }
 0xbee   : > { %v13177_v14 = vpop.eup %13176  ;;  %v4567_v34 = vmul.f32 %v13175_v16, %v15283_v49  ;;  %13202 = vrcp.f32 %v4531_v30 }
 0xbef   : > { %v13179_v36 = vpop.eup %13178  ;;  %v4529_v52 = vadd.f32 1.0, %v13177_v14  ;;  %13204 = vrcp.f32 %v4530_v17 }
 0xbf0   : > { %v13181_v24 = vpop.eup %13180  ;;  %v4528_v58 = vadd.f32 1.0, %v13179_v36  ;;  %v4585_v37 = vmul.f32 %v15355_v15, %v4567_v34 }
 0xbf1   : > { %v13183_v6 = vpop.eup %13182  ;;  %v4565_v21 = vmul.f32 %v13181_v24, %v15285_v1  ;;  %13206 = vrcp.f32 %v4529_v52 }
 0xbf2   : > { %v13185_v2 = vpop.eup %13184  ;;  %v4566_v48 = vmul.f32 %v13183_v6, %v15288_v0  ;;  %13208 = vrcp.f32 %v4528_v58  ;;  %v4611_v14 = vsel %vm1164_vm2, %v4585_v37, 0.0 }
 0xbf3   : > { %v13187_v59 = vpop.eup %13186  ;;  %v4527_v25 = vadd.f32 1.0, %v13185_v2  ;;  %v4583_v1 = vmul.f32 %v15355_v15, %v4565_v21 }
 0xbf4   : > { %v13189_v11 = vpop.eup %13188  ;;  %v4564_v63 = vmul.f32 %v13187_v59, %v15290_v29  ;;  %v4584_v0 = vmul.f32 %v15355_v15, %v4566_v48 }
 0xbf5   : > { %v13191_v49 = vpop.eup %13190  ;;  %v4526_v30 = vadd.f32 1.0, %v13189_v11  ;;  %13210 = vrcp.f32 %v4527_v25  ;;  %v4605_v29 = vsel %vm1164_vm2, %v4583_v1, 0.0 }
 0xbf6   : > { %v13193_v61 = vpop.eup %13192  ;;  %v4770_v17 = vadd.f32 1.0, %v13191_v49  ;;  %v4582_v2 = vmul.f32 %v15355_v15, %v4564_v63  ;;  %v4608_v58 = vsel %vm1164_vm2, %v4584_v0, 0.0 }
 0xbf7   : > { %v13195_v16 = vpop.eup %13194  ;;  %v4563_v34 = vmul.f32 %v13193_v61, %v15295_v43  ;;  %13212 = vrcp.f32 %v4526_v30 }
 0xbf8   : > { %v13197_v36 = vpop.eup %13196  ;;  %v4771_v6 = vadd.f32 1.0, %v13195_v16  ;;  %13214 = vrcp.f32 %v4770_v17 }
 0xbf9   : > { %v13199_v24 = vpop.eup %13198  ;;  %v4562_v52 = vmul.f32 %v13197_v36, %v15299_v3  ;;  %v4581_v43 = vmul.f32 %v15355_v15, %v4563_v34  ;;  %v4602_v3 = vsel %vm1164_vm2, %v4582_v2, 0.0 }
 0xbfa   : > { %v13201_v59 = vpop.eup %13200  ;;  %v4561_v21 = vmul.f32 %v13199_v24, %v15302_v62  ;;  %13216 = vrcp.f32 %v4771_v6 }
 0xbfb   : > { %v13203_v37 = vpop.eup %13202  ;;  %v4574_v11 = vmul.f32 %v13201_v59, %v15307_v23  ;;  %v4580_v49 = vmul.f32 %v15355_v15, %v4562_v52  ;;  %v4599_v61 = vsel %vm1164_vm2, %v4581_v43, 0.0 }
 0xbfc   : > { %v13205_v48 = vpop.eup %13204  ;;  %v4573_v25 = vmul.f32 %v13203_v37, %v15311_v13  ;;  %v4579_v62 = vmul.f32 %v15355_v15, %v4561_v21 }
 0xbfd   : > { %4612 = vadd.xlane.f32.xlu0 %v4611_v14  ;;  %v4572_v16 = vmul.f32 %v13205_v48, %v15314_v35  ;;  %v4596_v30 = vsel %vm1164_vm2, %v4580_v49, 0.0  ;;  %v4592_v23 = vmul.f32 %v15355_v15, %v4574_v11 }
 0xbfe   : > { %v13207_v63 = vpop.eup %13206  ;;  %v4593_v36 = vsel %vm1164_vm2, %v4579_v62, 0.0  ;;  %v4591_v13 = vmul.f32 %v15355_v15, %v4573_v25 }
 0xbff   : > { %v13209_v14 = vpop.eup %13208  ;;  %v4571_v1 = vmul.f32 %v13207_v63, %v15318_v8  ;;  %v4632_v0 = vsel %vm1164_vm2, %v4592_v23, 0.0  ;;  %v4590_v35 = vmul.f32 %v15355_v15, %v4572_v16 }
 0xc00   : > { %v4570_v34 = vmul.f32 %v13209_v14, %v15323_v20  ;;  %v4629_v52 = vsel %vm1164_vm2, %v4591_v13, 0.0 }
 0xc01   : > { %4606 = vadd.xlane.f32.xlu0 %v4605_v29  ;;  %v4589_v8 = vmul.f32 %v15355_v15, %v4571_v1  ;;  %v4626_v59 = vsel %vm1164_vm2, %v4590_v35, 0.0 }
 0xc02   : > { %v13211_v17 = vpop.eup %13210  ;;  %v4588_v20 = vmul.f32 %v15355_v15, %v4570_v34 }
 0xc03   : > { %4609 = vadd.xlane.f32.xlu1 %v4608_v58  ;;  %v4569_v6 = vmul.f32 %v13211_v17, %v15328_v57  ;;  %v15395_v58 = vld [vmem:[%s17003_s12 + $0x18] sm:$0x3]  ;;  %v4623_v57 = vsel %vm1164_vm2, %v4589_v8, 0.0 }
 0xc04   : > { %v13213_v24 = vpop.eup %13212  ;;  %v4620_v11 = vsel %vm1164_vm2, %v4588_v20, 0.0  ;;  %v4781_v49 = vrot.slane %v15395_v58, %v14185_v28 }
 0xc05   : > { %4603 = vadd.xlane.f32.xlu0 %v4602_v3  ;;  %v13215_v29 = vpop.eup %13214  ;;  %v4568_v2 = vmul.f32 %v13213_v24, %v15340_v9  ;;  %v4587_v43 = vmul.f32 %v15355_v15, %v4569_v6 }
 0xc06   : > { %v4776_v37 = vmul.f32 %v13215_v29, %v15343_v10 }
 0xc07   : > { %4600 = vadd.xlane.f32.xlu1 %v4599_v61  ;;  %v13217_v21 = vpop.eup %13216  ;;  %v4586_v3 = vmul.f32 %v15355_v15, %v4568_v2  ;;  %v4617_v48 = vsel %vm1164_vm2, %v4587_v43, 0.0  ;;  %v13612_v43 = vld [vmem:[%s16997_s6] sm:$0xff] }
 0xc08   : > { %v4777_v9 = vmul.f32 %v13217_v21, %v15347_v41  ;;  %v4782_v25 = vmul.f32 %v4781_v49, %v4776_v37 }
 0xc09   : > { %4597 = vadd.xlane.f32.xlu0 %v4596_v30  ;;  %v4614_v61 = vsel %vm1164_vm2, %v4586_v3, 0.0 }
 0xc0a   : > { %v4783_v62 = vmul.f32 %v4781_v49, %v4777_v9  ;;  %v4784_v10 = vsel %vm1164_vm2, %v4782_v25, 0.0 }
 0xc0b   : > { %4594 = vadd.xlane.f32.xlu1 %v4593_v36 }
 0xc0c   : > { %v4787_v41 = vsel %vm1164_vm2, %v4783_v62, 0.0 }
 0xc0d   : > { %4633 = vadd.xlane.f32.xlu0 %v4632_v0 }
 0xc0f   : > { %4630 = vadd.xlane.f32.xlu1 %v4629_v52 }
 0xc11   : > { %4627 = vadd.xlane.f32.xlu0 %v4626_v59 }
 0xc13   : > { %4624 = vadd.xlane.f32.xlu1 %v4623_v57 }
 0xc15   : > { %4621 = vadd.xlane.f32.xlu0 %v4620_v11 }
 0xc17   : > { %4618 = vadd.xlane.f32.xlu1 %v4617_v48 }
 0xc19   : > { %4615 = vadd.xlane.f32.xlu0 %v4614_v61 }
 0xc1b   : > { %4785 = vadd.xlane.f32.xlu1 %v4784_v10 }
 0xc1d   : > { %4788 = vadd.xlane.f32.xlu0 %v4787_v41 }
 0xc50   : > { %v5214_v63 = vpop.permute.xlu0 %5213 }
 0xc51   : > { %v5216_v15 = vpop.permute.xlu1 %5215  ;;  %12178 = vmatprep.mubr.msk.f32.mxu1 %vm1164_vm2, %v5214_v63 }
 0xc52   : > { %12179 = vmatmul.mubr.msk.f32.vlgmr.msra.gmra.mxu1 %vm1164_vm2, %v5216_v15 }
 0xc53   : > { %12206 = vmatprep.mubr.msk.f32.mxu1 %vm13731_vm1, %v17007_v18 }
 0xc86   : > { %v4613_v16 = vpop.xlane.xlu0 %4612 }
 0xc87   : > { %v4641_v30 = vmul.f32 %v4613_v16, %v14930_v45 }
 0xc89   : > { %v10467_v23 = vclamps-f32 %v4641_v30, 100.0 }
 0xc8a   : > { %v4607_v14 = vpop.xlane.xlu0 %4606 }
 0xc8b   : > { %12109 = vmatpush3.msra.mxu0 %v10467_v23  ;;  %v4639_v36 = vmul.f32 %v4607_v14, %v14920_v47 }
 0xc8c   : > { %v4610_v1 = vpop.xlane.xlu1 %4609  ;;  %12110 = vmatprep.subr.mxu0 %v17007_v18 }
 0xc8d   : > { %v4640_v13 = vmul.f32 %v4610_v1, %v14925_v44  ;;  %v10465_v24 = vclamps-f32 %v4639_v36, 100.0 }
 0xc8e   : > { %v4604_v17 = vpop.xlane.xlu0 %4603 }
 0xc8f   : > { %v10466_v34 = vclamps-f32 %v4640_v13, 100.0  ;;  %v4638_v0 = vmul.f32 %v4604_v17, %v14915_v27  ;;  %v13614_v13 = vld [vmem:[%s16994_s3 + $0x8] sm:$0xff] }
 0xc90   : > { %v4601_v35 = vpop.xlane.xlu1 %4600  ;;  %v13618_v17 = vld [vmem:[%s16994_s3 + $0x28] sm:$0xff] }
 0xc91   : > { %v10464_v6 = vclamps-f32 %v4638_v0, 100.0  ;;  %v4637_v52 = vmul.f32 %v4601_v35, %v14910_v56  ;;  %12111 = vmatpush3.msra.mxu0 %v10466_v34  ;;  %v13619_v34 = vld [vmem:[%s16994_s3 + $0x30] sm:$0xff]  ;;  %v13620_v0 = vld [vmem:[%s16994_s3 + $0x38] sm:$0xff]  ;;  %v13621_v35 = vld [vmem:[%s16994_s3 + $0x40] sm:$0xff] }
 0xc92   : > { %12112 = vmatprep.subr.mxu0 %v17007_v18  ;;  %v4598_v45 = vpop.xlane.xlu0 %4597 }
 0xc93   : > { %12113 = vmatpush3.msra.mxu0 %v10465_v24  ;;  %v4636_v8 = vmul.f32 %v4598_v45, %v14905_v12  ;;  %v10463_v44 = vclamps-f32 %v4637_v52, 100.0  ;;  %v13622_v24 = vld [vmem:[%s16994_s3 + $0x48] sm:$0xff]  ;;  %v13624_v52 = vld [vmem:[%s16994_s3 + $0x58] sm:$0xff]  ;;  %v13625_v45 = vld [vmem:[%s16994_s3 + $0x60] sm:$0xff] }
 0xc94   : > { %12114 = vmatprep.subr.mxu0 %v17007_v18  ;;  %v4595_v47 = vpop.xlane.xlu1 %4594 }
 0xc95   : > { %v10462_v29 = vclamps-f32 %v4636_v8, 100.0  ;;  %v4635_v2 = vmul.f32 %v4595_v47, %v14900_v33  ;;  %12115 = vmatpush3.msra.mxu0 %v10464_v6  ;;  %v13623_v6 = vld [vmem:[%s16994_s3 + $0x50] sm:$0xff]  ;;  %v13626_v8 = vld [vmem:[%s16994_s3 + $0x68] sm:$0xff] }
 0xc96   : > { %12116 = vmatprep.subr.mxu0 %v17007_v18  ;;  %v4634_v27 = vpop.xlane.xlu0 %4633 }
 0xc97   : > { %v4648_v56 = vmul.f32 %v4634_v27, %v14968_v54  ;;  %12117 = vmatpush3.msra.mxu0 %v10463_v44  ;;  %v10461_v20 = vclamps-f32 %v4635_v2, 100.0  ;;  %v13627_v44 = vld [vmem:[%s14774_s24] sm:$0xff] }
 0xc98   : > { %12118 = vmatprep.subr.mxu0 %v17007_v18  ;;  %v4631_v59 = vpop.xlane.xlu1 %4630 }
 0xc99   : > { %v10474_v21 = vclamps-f32 %v4648_v56, 100.0  ;;  %v4647_v12 = vmul.f32 %v4631_v59, %v14960_v50  ;;  %12119 = vmatpush3.msra.mxu0 %v10462_v29 }
 0xc9a   : > { %12120 = vmatprep.subr.mxu0 %v17007_v18  ;;  %v4628_v57 = vpop.xlane.xlu0 %4627 }
 0xc9b   : > { %v4646_v33 = vmul.f32 %v4628_v57, %v14955_v38  ;;  %12121 = vmatpush3.msra.mxu0 %v10461_v20  ;;  %v10473_v37 = vclamps-f32 %v4647_v12, 100.0  ;;  %v13628_v20 = vld [vmem:[%s16995_s4] sm:$0xff]  ;;  %v10495_v57 = vld [vmem:[%s17000_s9 + $0xb0] sm:$0xff] }
 0xc9c   : > { %12123 = vmatmul.mubr.msk.f32.vlgmr.msra.gmra.mxu0 %vm2446_vm4, %v13612_v43  ;;  %12142 = vmatprep.subr.mxu0 %v17007_v18  ;;  %v4625_v54 = vpop.xlane.xlu1 %4624 }
 0xc9d   : > { %v10472_v9 = vclamps-f32 %v4646_v33, 100.0  ;;  %v4645_v50 = vmul.f32 %v4625_v54, %v14950_v53  ;;  %12143 = vmatpush3.msra.mxu0 %v10474_v21  ;;  %12156 = vmatprep.mubr.msk.f32.mxu0 %vm13731_vm1, %v17007_v18  ;;  %v4793_v53 = vrot.slane %v15395_v58, %v14324_v4  ;;  %v5210_v58 = vrot.slane %v15334_v40, %v14690_v32  ;;  %v13617_v40 = vld [vmem:[%s16994_s3 + $0x20] sm:$0xff]  ;;  %v10496_v21 = vld [vmem:[%s17000_s9 + $0xb8] sm:$0xff]  ;;  %v13630_v33 = vld [vmem:[%s14774_s24 + $0x8] sm:$0xff] }
 0xc9e   : > { %12144 = vmatprep.subr.mxu0 %v17007_v18  ;;  %v4622_v38 = vpop.xlane.xlu0 %4621  ;;  %v10494_v54 = vld [vmem:[%s17000_s9 + $0xa8] sm:$0xff] }
 0xc9f   : > { %v4644_v11 = vmul.f32 %v4622_v38, %v14945_v42  ;;  %12145 = vmatpush3.msra.mxu0 %v10473_v37  ;;  %v10471_v49 = vclamps-f32 %v4645_v50, 100.0  ;;  %v10493_v38 = vld [vmem:[%s17000_s9 + $0xa0] sm:$0xff] }
 0xca0   : > { %12146 = vmatprep.subr.mxu0 %v17007_v18  ;;  %v4619_v3 = vpop.xlane.xlu1 %4618 }
 0xca1   : > { %v10470_v48 = vclamps-f32 %v4644_v11, 100.0  ;;  %v4643_v25 = vmul.f32 %v4619_v3, %v14940_v22  ;;  %12147 = vmatpush3.msra.mxu0 %v10472_v9  ;;  %v13631_v9 = vld [vmem:[%s16995_s4 + $0x10] sm:$0xff] }
 0xca2   : > { %12148 = vmatprep.subr.mxu0 %v17007_v18  ;;  %v4616_v61 = vpop.xlane.xlu0 %4615 }
 0xca3   : > { %v4642_v62 = vmul.f32 %v4616_v61, %v14935_v5  ;;  %12149 = vmatpush3.msra.mxu0 %v10471_v49  ;;  %v10469_v10 = vclamps-f32 %v4643_v25, 100.0  ;;  %v13613_v5 = vld [vmem:[%s16994_s3] sm:$0xff]  ;;  %v10492_v49 = vld [vmem:[%s17000_s9 + $0x98] sm:$0xff]  ;;  %v13634_v25 = vld [vmem:[%s16995_s4 + $0x28] sm:$0xff] }
 0xca4   : > { %12150 = vmatprep.subr.mxu0 %v17007_v18  ;;  %v4786_v42 = vpop.xlane.xlu1 %4785  ;;  %v10491_v61 = vld [vmem:[%s17000_s9 + $0x90] sm:$0xff] }
 0xca5   : > { %v10468_v41 = vclamps-f32 %v4642_v62, 100.0  ;;  %v4794_v63 = vadd.f32 %v4793_v53, %v4786_v42  ;;  %12151 = vmatpush3.msra.mxu0 %v10470_v48  ;;  %v13632_v48 = vld [vmem:[%s16995_s4 + $0x18] sm:$0xff]  ;;  %v10490_v62 = vld [vmem:[%s17000_s9 + $0x88] sm:$0xff]  ;;  %v10489_v42 = vld [vmem:[%s17000_s9 + $0x80] sm:$0xff] }
 0xca6   : > { %12152 = vmatprep.subr.mxu0 %v17007_v18  ;;  %v4789_v22 = vpop.xlane.xlu0 %4788 }
 0xca7   : > { %v4795_v15 = vadd.f32 %v4793_v53, %v4789_v22  ;;  %12153 = vmatpush3.msra.mxu0 %v10469_v10  ;;  %5078 = vperm.xlu1 %12849, %v4794_v63   ;;  %v13635_v53 = vld [vmem:[%s16995_s4 + $0x30] sm:$0xff] }
 0xca8   : > { %12154 = vmatprep.subr.mxu0 %v17007_v18 }
 0xca9   : > { %12155 = vmatpush3.msra.mxu0 %v10468_v41  ;;  %5083 = vperm.xlu0 %12848, %v4795_v15  }
 0xcaa   : > { %12157 = vmatmul.mubr.msk.f32.vlgmr.msra.gmra.mxu0 %vm2446_vm4, %v13612_v43 }
 0xcab   : > { %12183 = vmatprep.mubr.msk.f32.mxu0 %vm573_vm0, %v13613_v5 }
 0xd12   : > { %v12180_v16 = vpop.f32.mrf.mxu1 }
 0xd13   : > { %v5293_v23 = vadd.f32 %v12180_v16, %v5210_v58 }
 0xd14   : > { %v5287_v30 = vpop.f32.mrf.mxu1 }
 0xd15   : > { %v5288_v14 = vadd.f32 %v5287_v30, %v5210_v58  ;;  %v15459_v36 = vadd.f32 %v5293_v23, %v14698_v19  ;;  %v13616_v19 = vld [vmem:[%s16994_s3 + $0x18] sm:$0xff] }
 0xd17   : > { %v15456_v1 = vadd.f32 %v5288_v14, %v14695_v51  ;;  %v13615_v51 = vld [vmem:[%s16994_s3 + $0x10] sm:$0xff] }
 0xd19   : > { %12181 = vmatprep.subr.mxu0 %v15456_v1 }
 0xd1a   : > { %12182 = vmatpush3.msra.mxu0 %v15456_v1 }
 0xd1b   : > { %12184 = vmatmul.mubr.msk.f32.vlgmr.msra.gmra.mxu0 %vm573_vm0, %v13614_v13  ;;  %12227 = vmatprep.subr.mxu0 %v15459_v36 }
 0xd1c   : > { %12228 = vmatpush3.msra.mxu0 %v15459_v36  ;;  %12186 = vmatprep.mubr.msk.f32.mxu0 %vm573_vm0, %v13615_v51 }
 0xd1d   : > { %12273 = vmatprep.subr.mxu0 %v10496_v21 }
 0xd1f   : > { %12187 = vmatmul.mubr.msk.f32.gmra.mxu0 %vm573_vm0, %v13616_v19 }
 0xd20   : > { %12189 = vmatprep.mubr.msk.f32.mxu0 %vm573_vm0, %v13617_v40 }
 0xd22   : > { %v5079_v47 = vpop.permute.xlu1 %5078 }
 0xd23   : > { %12190 = vmatmul.mubr.msk.f32.gmra.mxu0 %vm573_vm0, %v13618_v17  ;;  %v5086_v29 = vmul.f32 %v13627_v44, %v5079_v47 }
 0xd24   : > { %12192 = vmatprep.mubr.msk.f32.mxu0 %vm573_vm0, %v13619_v34  ;;  %v5084_v12 = vpop.permute.xlu0 %5083 }
 0xd25   : > { %v5087_v43 = vmul.f32 %v13630_v33, %v5084_v12 }
 0xd27   : > { %12193 = vmatmul.mubr.msk.f32.gmra.mxu0 %vm573_vm0, %v13620_v0 }
 0xd28   : > { %12195 = vmatprep.mubr.msk.f32.mxu0 %vm573_vm0, %v13621_v35 }
 0xd2b   : > { %12196 = vmatmul.mubr.msk.f32.gmra.mxu0 %vm573_vm0, %v13622_v24 }
 0xd2c   : > { %12198 = vmatprep.mubr.msk.f32.mxu0 %vm573_vm0, %v13623_v6 }
 0xd2f   : > { %12199 = vmatmul.mubr.msk.f32.gmra.mxu0 %vm573_vm0, %v13624_v52 }
 0xd30   : > { %12201 = vmatprep.mubr.msk.f32.mxu0 %vm573_vm0, %v13625_v45 }
 0xd33   : > { %12202 = vmatmul.mubr.msk.f32.gmra.mxu0 %vm573_vm0, %v13626_v8 }
 0xd34   : > { %12229 = vmatprep.mubr.msk.f32.mxu0 %vm573_vm0, %v13613_v5 }
 0xd37   : > { %12230 = vmatmul.mubr.msk.f32.vlgmr.msra.gmra.mxu0 %vm573_vm0, %v13614_v13 }
 0xd38   : > { %12232 = vmatprep.mubr.msk.f32.mxu0 %vm573_vm0, %v13615_v51  ;;  %12274 = vmatpush3.msra.mxu0 %v10496_v21 }
 0xd39   : > { %12275 = vmatprep.subr.mxu0 %v10495_v57 }
 0xd3a   : > { %12276 = vmatpush3.msra.mxu0 %v10495_v57 }
 0xd3b   : > { %12233 = vmatmul.mubr.msk.f32.gmra.mxu0 %vm573_vm0, %v13616_v19  ;;  %12277 = vmatprep.subr.mxu0 %v10494_v54 }
 0xd3c   : > { %12235 = vmatprep.mubr.msk.f32.mxu0 %vm573_vm0, %v13617_v40  ;;  %12278 = vmatpush3.msra.mxu0 %v10494_v54 }
 0xd3d   : > { %12279 = vmatprep.subr.mxu0 %v10493_v38 }
 0xd3e   : > { %12280 = vmatpush3.msra.mxu0 %v10493_v38 }
 0xd3f   : > { %12236 = vmatmul.mubr.msk.f32.gmra.mxu0 %vm573_vm0, %v13618_v17 }
 0xd40   : > { %12238 = vmatprep.mubr.msk.f32.mxu0 %vm573_vm0, %v13619_v34 }
 0xd43   : > { %12239 = vmatmul.mubr.msk.f32.gmra.mxu0 %vm573_vm0, %v13620_v0 }
 0xd44   : > { %12241 = vmatprep.mubr.msk.f32.mxu0 %vm573_vm0, %v13621_v35 }
 0xd47   : > { %12242 = vmatmul.mubr.msk.f32.gmra.mxu0 %vm573_vm0, %v13622_v24 }
 0xd48   : > { %12244 = vmatprep.mubr.msk.f32.mxu0 %vm573_vm0, %v13623_v6 }
 0xd4b   : > { %12245 = vmatmul.mubr.msk.f32.gmra.mxu0 %vm573_vm0, %v13624_v52 }
 0xd4c   : > { %12247 = vmatprep.mubr.msk.f32.mxu0 %vm573_vm0, %v13625_v45 }
 0xd4f   : > { %12248 = vmatmul.mubr.msk.f32.gmra.mxu0 %vm573_vm0, %v13626_v8 }
 0xd5c   : > { %v4932_v2 = vpop.f32.mrf.mxu0 }
 0xd5d   : > { %v5088_v27 = vadd.f32 %v5086_v29, %v4932_v2 }
 0xd5e   : > { %v12124_v56 = vpop.f32.mrf.mxu0 }
 0xd5f   : > { %v15533_v59 = vadd.f32 %v5088_v27, %v14778_v60  ;;  %v13629_v60 = vld [vmem:[%s16995_s4 + $0x8] sm:$0xff] }
 0xd61   : > { %12205 = vmatpush3.msra.mxu1 %v15533_v59 }
 0xd62   : > { %12207 = vmatmul.mubr.msk.f32.vlgmr.msra.gmra.mxu1 %vm573_vm0, %v13628_v20  ;;  %12250 = vmatprep.subr.mxu1 %v17007_v18 }
 0xd63   : > { %12209 = vmatprep.mubr.msk.f32.mxu1 %vm13731_vm1, %v17007_v18 }
 0xd66   : > { %12210 = vmatmul.mubr.msk.f32.gmra.mxu1 %vm573_vm0, %v13629_v60 }
 0xd67   : > { %12212 = vmatprep.mubr.msk.f32.mxu1 %vm13731_vm1, %v17007_v18 }
 0xd6a   : > { %v5072_v37 = vpop.f32.mrf.mxu0  ;;  %12213 = vmatmul.mubr.msk.f32.gmra.mxu1 %vm573_vm0, %v13631_v9 }
 0xd6b   : > { %v5089_v50 = vadd.f32 %v5087_v43, %v5072_v37  ;;  %12215 = vmatprep.mubr.msk.f32.mxu1 %vm13731_vm1, %v17007_v18 }
 0xd6c   : > { %v12158_v11 = vpop.f32.mrf.mxu0 }
 0xd6d   : > { %v15569_v3 = vadd.f32 %v5089_v50, %v14814_v55  ;;  %v13633_v55 = vld [vmem:[%s16995_s4 + $0x20] sm:$0xff] }
 0xd6e   : > { %12216 = vmatmul.mubr.msk.f32.gmra.mxu1 %vm573_vm0, %v13632_v48 }
 0xd6f   : > { %12251 = vmatpush3.msra.mxu1 %v15569_v3  ;;  %12218 = vmatprep.mubr.msk.f32.mxu1 %vm13731_vm1, %v17007_v18 }
 0xd70   : > { %12302 = vmatprep.subr.mxu1 %v10492_v49 }
 0xd72   : > { %12219 = vmatmul.mubr.msk.f32.gmra.mxu1 %vm573_vm0, %v13633_v55 }
 0xd73   : > { %12221 = vmatprep.mubr.msk.f32.mxu1 %vm13731_vm1, %v17007_v18 }
 0xd76   : > { %12222 = vmatmul.mubr.msk.f32.gmra.mxu1 %vm573_vm0, %v13634_v25 }
 0xd77   : > { %12224 = vmatprep.mubr.msk.f32.mxu1 %vm13731_vm1, %v17007_v18 }
 0xd7a   : > { %12225 = vmatmul.mubr.msk.f32.gmra.mxu1 %vm573_vm0, %v13635_v53 }
 0xd7b   : > { %12252 = vmatprep.mubr.msk.f32.mxu1 %vm13731_vm1, %v17007_v18 }
 0xd7e   : > { %12253 = vmatmul.mubr.msk.f32.vlgmr.msra.gmra.mxu1 %vm573_vm0, %v13628_v20 }
 0xd7f   : > { %12255 = vmatprep.mubr.msk.f32.mxu1 %vm13731_vm1, %v17007_v18  ;;  %12303 = vmatpush3.msra.mxu1 %v10492_v49 }
 0xd80   : > { %12304 = vmatprep.subr.mxu1 %v10491_v61 }
 0xd81   : > { %12305 = vmatpush3.msra.mxu1 %v10491_v61 }
 0xd82   : > { %12256 = vmatmul.mubr.msk.f32.gmra.mxu1 %vm573_vm0, %v13629_v60  ;;  %12306 = vmatprep.subr.mxu1 %v10490_v62 }
 0xd83   : > { %12258 = vmatprep.mubr.msk.f32.mxu1 %vm13731_vm1, %v17007_v18  ;;  %12307 = vmatpush3.msra.mxu1 %v10490_v62 }
 0xd84   : > { %12308 = vmatprep.subr.mxu1 %v10489_v42 }
 0xd85   : > { %12309 = vmatpush3.msra.mxu1 %v10489_v42 }
 0xd86   : > { %12259 = vmatmul.mubr.msk.f32.gmra.mxu1 %vm573_vm0, %v13631_v9 }
 0xd87   : > { %12261 = vmatprep.mubr.msk.f32.mxu1 %vm13731_vm1, %v17007_v18 }
 0xd8a   : > { %12262 = vmatmul.mubr.msk.f32.gmra.mxu1 %vm573_vm0, %v13632_v48 }
 0xd8b   : > { %12264 = vmatprep.mubr.msk.f32.mxu1 %vm13731_vm1, %v17007_v18 }
 0xd8e   : > { %12265 = vmatmul.mubr.msk.f32.gmra.mxu1 %vm573_vm0, %v13633_v55 }
 0xd8f   : > { %12267 = vmatprep.mubr.msk.f32.mxu1 %vm13731_vm1, %v17007_v18 }
 0xd92   : > { %12268 = vmatmul.mubr.msk.f32.gmra.mxu1 %vm573_vm0, %v13634_v25 }
 0xd93   : > { %12270 = vmatprep.mubr.msk.f32.mxu1 %vm13731_vm1, %v17007_v18 }
 0xd96   : > { %12271 = vmatmul.mubr.msk.f32.gmra.mxu1 %vm573_vm0, %v13635_v53 }
 0xddb   : > { %v12185_v10 = vpop.f32.mrf.mxu0 }
 0xddd   : > { %v5398_v41 = vpop.f32.mrf.mxu0 }
 0xdde   : > { %12310 = vmatprep.mubr.msk.f32.mxu1 %vm1164_vm2, %v5398_v41 }
 0xddf   : > { %v12188_v63 = vpop.f32.mrf.mxu0  ;;  %12311 = vmatmul.mubr.msk.f32.vlgmr.msra.gmra.mxu1 %vm1164_vm2, %v12185_v10 }
 0xde1   : > { %v5408_v22 = vpop.f32.mrf.mxu0 }
 0xde2   : > { %12313 = vmatprep.mubr.msk.f32.mxu1 %vm1164_vm2, %v5408_v22 }
 0xde3   : > { %v12191_v15 = vpop.f32.mrf.mxu0  ;;  %12314 = vmatmul.mubr.msk.f32.gmra.mxu1 %vm1164_vm2, %v12188_v63 }
 0xde5   : > { %v5418_v5 = vpop.f32.mrf.mxu0 }
 0xde6   : > { %12316 = vmatprep.mubr.msk.f32.mxu1 %vm1164_vm2, %v5418_v5 }
 0xde7   : > { %v12194_v58 = vpop.f32.mrf.mxu0  ;;  %12317 = vmatmul.mubr.msk.f32.gmra.mxu1 %vm1164_vm2, %v12191_v15 }
 0xde8   : > { %12281 = vmatprep.mubr.msk.f32.mxu0 %vm1164_vm2, %v12194_v58 }
 0xde9   : > { %v5428_v16 = vpop.f32.mrf.mxu0 }
 0xdea   : > { %12319 = vmatprep.mubr.msk.f32.mxu1 %vm1164_vm2, %v5428_v16 }
 0xdeb   : > { %v12197_v30 = vpop.f32.mrf.mxu0 }
 0xded   : > { %v5438_v23 = vpop.f32.mrf.mxu0 }
 0xdee   : > { %12282 = vmatmul.mubr.msk.f32.vlgmr.msra.gmra.mxu0 %vm1164_vm2, %v5438_v23 }
 0xdef   : > { %v12200_v14 = vpop.f32.mrf.mxu0  ;;  %12284 = vmatprep.mubr.msk.f32.mxu0 %vm1164_vm2, %v12197_v30 }
 0xdf1   : > { %v5448_v13 = vpop.f32.mrf.mxu0 }
 0xdf2   : > { %12285 = vmatmul.mubr.msk.f32.gmra.mxu0 %vm1164_vm2, %v5448_v13 }
 0xdf3   : > { %v12203_v51 = vpop.f32.mrf.mxu0  ;;  %12287 = vmatprep.mubr.msk.f32.mxu0 %vm1164_vm2, %v12200_v14 }
 0xdf5   : > { %v5458_v19 = vpop.f32.mrf.mxu0 }
 0xdf6   : > { %12288 = vmatmul.mubr.msk.f32.gmra.mxu0 %vm1164_vm2, %v5458_v19 }
 0xdf7   : > { %v12231_v40 = vpop.f32.mrf.mxu0  ;;  %12290 = vmatprep.mubr.msk.f32.mxu0 %vm1164_vm2, %v12203_v51 }
 0xdf9   : > { %v5633_v17 = vpop.f32.mrf.mxu0 }
 0xdfa   : > { %12320 = vmatmul.mubr.msk.f32.gmra.mxu1 %vm1164_vm2, %v5633_v17 }
 0xdfb   : > { %v12234_v34 = vpop.f32.mrf.mxu0  ;;  %12322 = vmatprep.mubr.msk.f32.mxu1 %vm1164_vm2, %v12231_v40 }
 0xdfd   : > { %v5643_v0 = vpop.f32.mrf.mxu0 }
 0xdfe   : > { %12323 = vmatmul.mubr.msk.f32.gmra.mxu1 %vm1164_vm2, %v5643_v0 }
 0xdff   : > { %v12237_v35 = vpop.f32.mrf.mxu0  ;;  %12325 = vmatprep.mubr.msk.f32.mxu1 %vm1164_vm2, %v12234_v34 }
 0xe01   : > { %v5653_v24 = vpop.f32.mrf.mxu0 }
 0xe02   : > { %12326 = vmatmul.mubr.msk.f32.gmra.mxu1 %vm1164_vm2, %v5653_v24 }
 0xe03   : > { %v12240_v6 = vpop.f32.mrf.mxu0  ;;  %12328 = vmatprep.mubr.msk.f32.mxu1 %vm1164_vm2, %v12237_v35 }
 0xe04   : > { %12291 = vmatmul.mubr.msk.f32.gmra.mxu0 %vm1164_vm2, %v12240_v6 }
 0xe05   : > { %v5663_v52 = vpop.f32.mrf.mxu0 }
 0xe06   : > { %12329 = vmatmul.mubr.msk.f32.gmra.mxu1 %vm1164_vm2, %v5663_v52 }
 0xe07   : > { %v12243_v45 = vpop.f32.mrf.mxu0 }
 0xe09   : > { %v5673_v8 = vpop.f32.mrf.mxu0 }
 0xe0a   : > { %12293 = vmatprep.mubr.msk.f32.mxu0 %vm1164_vm2, %v5673_v8 }
 0xe0b   : > { %v12246_v47 = vpop.f32.mrf.mxu0  ;;  %12294 = vmatmul.mubr.msk.f32.gmra.mxu0 %vm1164_vm2, %v12243_v45 }
 0xe0d   : > { %v5683_v44 = vpop.f32.mrf.mxu0 }
 0xe0e   : > { %12296 = vmatprep.mubr.msk.f32.mxu0 %vm1164_vm2, %v5683_v44 }
 0xe0f   : > { %v12249_v29 = vpop.f32.mrf.mxu0  ;;  %12297 = vmatmul.mubr.msk.f32.gmra.mxu0 %vm1164_vm2, %v12246_v47 }
 0xe11   : > { %v5693_v2 = vpop.f32.mrf.mxu0 }
 0xe12   : > { %12299 = vmatprep.mubr.msk.f32.mxu0 %vm1164_vm2, %v5693_v2 }
 0xe13   : > { %12300 = vmatmul.mubr.msk.f32.gmra.mxu0 %vm1164_vm2, %v12249_v29 }
 0xe22   : > { %v15655_v27 = vpop.f32.mrf.mxu1 }
 0xe23   : > { %v5802_v56 = vmul.f32 %v15655_v27, %v15655_v27 }
 0xe24   : > { %v12208_v20 = vpop.f32.mrf.mxu1 }
 0xe25   : > { %v5816_v21 = vsel %vm1121_vm3, %v5802_v56, 0.0  ;;  %v10504_v56 = vld [vmem:[%s17002_s11 + $0x118] sm:$0xff] }
 0xe26   : > { %5817 = vadd.xlane.f32.xlu1 %v5816_v21  ;;  %v15660_v12 = vpop.f32.mrf.mxu1  ;;  %12331 = vmatprep.subr.mxu0 %v10504_v56 }
 0xe27   : > { %v5803_v60 = vmul.f32 %v15660_v12, %v15660_v12  ;;  %12332 = vmatpush3.msra.mxu0 %v10504_v56 }
 0xe28   : > { %v12211_v57 = vpop.f32.mrf.mxu1 }
 0xe29   : > { %v5819_v33 = vsel %vm1121_vm3, %v5803_v60, 0.0  ;;  %v10503_v60 = vld [vmem:[%s17002_s11 + $0x110] sm:$0xff] }
 0xe2a   : > { %5820 = vadd.xlane.f32.xlu0 %v5819_v33  ;;  %v15665_v43 = vpop.f32.mrf.mxu1  ;;  %12333 = vmatprep.subr.mxu0 %v10503_v60 }
 0xe2b   : > { %v5804_v54 = vmul.f32 %v15665_v43, %v15665_v43  ;;  %12334 = vmatpush3.msra.mxu0 %v10503_v60 }
 0xe2c   : > { %v12214_v37 = vpop.f32.mrf.mxu1 }
 0xe2d   : > { %v5822_v9 = vsel %vm1121_vm3, %v5804_v54, 0.0  ;;  %v10502_v54 = vld [vmem:[%s17002_s11 + $0x108] sm:$0xff] }
 0xe2e   : > { %5823 = vadd.xlane.f32.xlu1 %v5822_v9  ;;  %v15670_v50 = vpop.f32.mrf.mxu1  ;;  %12335 = vmatprep.subr.mxu0 %v10502_v54  ;;  %v10501_v9 = vld [vmem:[%s17002_s11 + $0x100] sm:$0xff] }
 0xe2f   : > { %v5805_v38 = vmul.f32 %v15670_v50, %v15670_v50  ;;  %12336 = vmatpush3.msra.mxu0 %v10502_v54 }
 0xe30   : > { %v12217_v11 = vpop.f32.mrf.mxu1  ;;  %12337 = vmatprep.subr.mxu0 %v10501_v9 }
 0xe31   : > { %v5825_v49 = vsel %vm1121_vm3, %v5805_v38, 0.0  ;;  %12338 = vmatpush3.msra.mxu0 %v10501_v9  ;;  %v15740_v38 = vld [vmem:[%s17001_s10 + $0x58] sm:$0xff]  ;;  %v15746_v11 = vld [vmem:[%s17003_s12 + $0x20] sm:$0xff] }
 0xe32   : > { %5826 = vadd.xlane.f32.xlu0 %v5825_v49  ;;  %v15675_v48 = vpop.f32.mrf.mxu1  ;;  %12389 = vmatprep.subr.mxu0 %v15740_v38 }
 0xe33   : > { %v5806_v55 = vmul.f32 %v15675_v48, %v15675_v48 }
 0xe34   : > { %v12220_v25 = vpop.f32.mrf.mxu1 }
 0xe35   : > { %v5828_v53 = vsel %vm1121_vm3, %v5806_v55, 0.0  ;;  %v15750_v55 = vrot.slane %v15746_v11, %v14177_v26 }
 0xe36   : > { %5829 = vadd.xlane.f32.xlu1 %v5828_v53  ;;  %v15680_v61 = vpop.f32.mrf.mxu1 }
 0xe37   : > { %v5807_v62 = vmul.f32 %v15680_v61, %v15680_v61 }
 0xe38   : > { %v12223_v42 = vpop.f32.mrf.mxu1 }
 0xe39   : > { %v5831_v10 = vsel %vm1121_vm3, %v5807_v62, 0.0 }
 0xe3a   : > { %5832 = vadd.xlane.f32.xlu0 %v5831_v10  ;;  %v15685_v41 = vpop.f32.mrf.mxu1 }
 0xe3b   : > { %v5808_v63 = vmul.f32 %v15685_v41, %v15685_v41 }
 0xe3c   : > { %v12226_v22 = vpop.f32.mrf.mxu1 }
 0xe3d   : > { %v5834_v15 = vsel %vm1121_vm3, %v5808_v63, 0.0  ;;  %v15755_v22 = vrot.slane %v15746_v11, %v14185_v28 }
 0xe3e   : > { %5835 = vadd.xlane.f32.xlu1 %v5834_v15  ;;  %v15690_v5 = vpop.f32.mrf.mxu1 }
 0xe3f   : > { %v5809_v58 = vmul.f32 %v15690_v5, %v15690_v5 }
 0xe40   : > { %v12254_v16 = vpop.f32.mrf.mxu1 }
 0xe41   : > { %v5837_v30 = vsel %vm1121_vm3, %v5809_v58, 0.0 }
 0xe42   : > { %5838 = vadd.xlane.f32.xlu0 %v5837_v30  ;;  %v15695_v23 = vpop.f32.mrf.mxu1 }
 0xe43   : > { %v5810_v14 = vmul.f32 %v15695_v23, %v15695_v23 }
 0xe44   : > { %v12257_v13 = vpop.f32.mrf.mxu1 }
 0xe45   : > { %v5840_v51 = vsel %vm1121_vm3, %v5810_v14, 0.0 }
 0xe46   : > { %5841 = vadd.xlane.f32.xlu1 %v5840_v51  ;;  %v15700_v19 = vpop.f32.mrf.mxu1 }
 0xe47   : > { %v5811_v40 = vmul.f32 %v15700_v19, %v15700_v19 }
 0xe48   : > { %v12260_v17 = vpop.f32.mrf.mxu1 }
 0xe49   : > { %v5843_v34 = vsel %vm1121_vm3, %v5811_v40, 0.0 }
 0xe4a   : > { %5844 = vadd.xlane.f32.xlu0 %v5843_v34  ;;  %v15705_v0 = vpop.f32.mrf.mxu1 }
 0xe4b   : > { %v5812_v35 = vmul.f32 %v15705_v0, %v15705_v0 }
 0xe4c   : > { %v12263_v24 = vpop.f32.mrf.mxu1 }
 0xe4d   : > { %v5846_v6 = vsel %vm1121_vm3, %v5812_v35, 0.0 }
 0xe4e   : > { %5847 = vadd.xlane.f32.xlu1 %v5846_v6  ;;  %v15710_v52 = vpop.f32.mrf.mxu1 }
 0xe4f   : > { %v5813_v45 = vmul.f32 %v15710_v52, %v15710_v52 }
 0xe50   : > { %v12266_v8 = vpop.f32.mrf.mxu1 }
 0xe51   : > { %v5849_v47 = vsel %vm1121_vm3, %v5813_v45, 0.0 }
 0xe52   : > { %5850 = vadd.xlane.f32.xlu0 %v5849_v47  ;;  %v15715_v44 = vpop.f32.mrf.mxu1 }
 0xe53   : > { %v5814_v29 = vmul.f32 %v15715_v44, %v15715_v44 }
 0xe54   : > { %v12269_v2 = vpop.f32.mrf.mxu1 }
 0xe55   : > { %v5852_v20 = vsel %vm1121_vm3, %v5814_v29, 0.0 }
 0xe56   : > { %5853 = vadd.xlane.f32.xlu1 %v5852_v20  ;;  %v15723_v21 = vpop.f32.mrf.mxu1 }
 0xe57   : > { %v5815_v57 = vmul.f32 %v15723_v21, %v15723_v21 }
 0xe58   : > { %v12272_v33 = vpop.f32.mrf.mxu1 }
 0xe59   : > { %v5855_v37 = vsel %vm1121_vm3, %v5815_v57, 0.0 }
 0xe5a   : > { %5856 = vadd.xlane.f32.xlu0 %v5855_v37 }
 0xe9f   : > { %v12312_v49 = vpop.f32.mrf.mxu1 }
 0xea1   : > { %v6143_v53 = vpop.f32.mrf.mxu1 }
 0xea3   : > { %v12315_v58 = vpop.f32.mrf.mxu1 }
 0xea5   : > { %v6153_v34 = vpop.f32.mrf.mxu1 }
 0xea7   : > { %v12318_v56 = vpop.f32.mrf.mxu1 }
 0xeae   : > { %v12283_v25 = vpop.f32.mrf.mxu0 }
 0xeaf   : > { %v5818_v62 = vpop.xlane.xlu1 %5817  ;;  %v6149_v14 = vadd.f32 %v12312_v49, %v12283_v25  ;;  %v6163_v49 = vpop.f32.mrf.mxu1 }
 0xeb0   : > { %v5966_v42 = vpop.f32.mrf.mxu0  ;;  %v6216_v10 = vmul.f32 %v15750_v55, %v5818_v62 }
 0xeb1   : > { %v6144_v63 = vadd.f32 %v6143_v53, %v5966_v42 }
 0xeb2   : > { %v12286_v15 = vpop.f32.mrf.mxu0 }
 0xeb3   : > { %v6230_v16 = vadd.f32 %v6216_v10, %v6144_v63  ;;  %v5821_v30 = vpop.xlane.xlu0 %5820  ;;  %v6159_v60 = vadd.f32 %v12315_v58, %v12286_v15 }
 0xeb4   : > { %v6217_v13 = vmul.f32 %v15750_v55, %v5821_v30  ;;  %v5976_v40 = vpop.f32.mrf.mxu0 }
 0xeb5   : > { %v15759_v51 = vadd.f32 %v15755_v22, %v6230_v16  ;;  %v6154_v45 = vadd.f32 %v6153_v34, %v5976_v40 }
 0xeb6   : > { %v6231_v17 = vadd.f32 %v6217_v13, %v6149_v14  ;;  %v12289_v47 = vpop.f32.mrf.mxu0 }
 0xeb7   : > { %v10589_v35 = vmul.f32 -1.442695, %v15759_v51  ;;  %v5824_v24 = vpop.xlane.xlu1 %5823  ;;  %v6169_v16 = vadd.f32 %v12318_v56, %v12289_v47 }
 0xeb8   : > { %v15763_v6 = vadd.f32 %v15755_v22, %v6231_v17  ;;  %v6218_v8 = vmul.f32 %v15750_v55, %v5824_v24  ;;  %v5986_v54 = vpop.f32.mrf.mxu0 }
 0xeb9   : > { %13218 = vpow2.f32 %v10589_v35  ;;  %v6164_v53 = vadd.f32 %v6163_v49, %v5986_v54 }
 0xeba   : > { %v10590_v29 = vmul.f32 -1.442695, %v15763_v6  ;;  %v6232_v2 = vadd.f32 %v6218_v8, %v6154_v45  ;;  %v12321_v10 = vpop.f32.mrf.mxu1 }
 0xebb   : > { %v5827_v20 = vpop.xlane.xlu0 %5826 }
 0xebc   : > { %13220 = vpow2.f32 %v10590_v29  ;;  %v15768_v57 = vadd.f32 %v15755_v22, %v6232_v2  ;;  %v6219_v33 = vmul.f32 %v15750_v55, %v5827_v20  ;;  %v6173_v40 = vpop.f32.mrf.mxu1 }
 0xebe   : > { %v10591_v37 = vmul.f32 -1.442695, %v15768_v57  ;;  %v6233_v9 = vadd.f32 %v6219_v33, %v6159_v60  ;;  %v12324_v20 = vpop.f32.mrf.mxu1 }
 0xebf   : > { %v5830_v25 = vpop.xlane.xlu1 %5829 }
 0xec0   : > { %13222 = vpow2.f32 %v10591_v37  ;;  %v15773_v62 = vadd.f32 %v15755_v22, %v6233_v9  ;;  %v6220_v42 = vmul.f32 %v15750_v55, %v5830_v25 }
 0xec2   : > { %v10592_v63 = vmul.f32 -1.442695, %v15773_v62  ;;  %v6234_v15 = vadd.f32 %v6220_v42, %v6164_v53 }
 0xec3   : > { %v5833_v58 = vpop.xlane.xlu0 %5832 }
 0xec4   : > { %13224 = vpow2.f32 %v10592_v63  ;;  %v15778_v30 = vadd.f32 %v15755_v22, %v6234_v15  ;;  %v6221_v14 = vmul.f32 %v15750_v55, %v5833_v58  ;;  %v12292_v13 = vpop.f32.mrf.mxu0  ;;  %v6183_v63 = vpop.f32.mrf.mxu1 }
 0xec5   : > { %v6179_v49 = vadd.f32 %v12321_v10, %v12292_v13 }
 0xec6   : > { %v13219_v17 = vpop.eup %13218  ;;  %v10593_v34 = vmul.f32 -1.442695, %v15778_v30  ;;  %v6235_v35 = vadd.f32 %v6221_v14, %v6169_v16  ;;  %v5996_v24 = vpop.f32.mrf.mxu0 }
 0xec7   : > { %v6304_v45 = vadd.f32 1.0, %v13219_v17  ;;  %v6174_v8 = vadd.f32 %v6173_v40, %v5996_v24  ;;  %v5836_v29 = vpop.xlane.xlu1 %5835 }
 0xec8   : > { %13226 = vpow2.f32 %v10593_v34  ;;  %v15783_v2 = vadd.f32 %v15755_v22, %v6235_v35  ;;  %v6222_v47 = vmul.f32 %v15750_v55, %v5836_v29  ;;  %v12327_v29 = vpop.f32.mrf.mxu1 }
 0xec9   : > { %v13221_v56 = vpop.eup %13220  ;;  %13228 = vrcp.f32 %v6304_v45 }
 0xeca   : > { %v6305_v60 = vadd.f32 1.0, %v13221_v56  ;;  %v10594_v33 = vmul.f32 -1.442695, %v15783_v2  ;;  %v6236_v54 = vadd.f32 %v6222_v47, %v6174_v8 }
 0xecb   : > { %v5839_v37 = vpop.xlane.xlu0 %5838  ;;  %v12295_v9 = vpop.f32.mrf.mxu0 }
 0xecc   : > { %13230 = vrcp.f32 %v6305_v60  ;;  %v15788_v25 = vadd.f32 %v15755_v22, %v6236_v54  ;;  %v6223_v53 = vmul.f32 %v15750_v55, %v5839_v37  ;;  %v6189_v56 = vadd.f32 %v12324_v20, %v12295_v9 }
 0xecd   : > { %v13223_v42 = vpop.eup %13222  ;;  %13232 = vpow2.f32 %v10594_v33  ;;  %v6006_v15 = vpop.f32.mrf.mxu0 }
 0xece   : > { %v6306_v58 = vadd.f32 1.0, %v13223_v42  ;;  %v10595_v16 = vmul.f32 -1.442695, %v15788_v25  ;;  %v6237_v14 = vadd.f32 %v6223_v53, %v6179_v49  ;;  %v6184_v40 = vadd.f32 %v6183_v63, %v6006_v15 }
 0xecf   : > { %v5842_v17 = vpop.xlane.xlu1 %5841  ;;  %v12298_v35 = vpop.f32.mrf.mxu0 }
 0xed0   : > { %13234 = vrcp.f32 %v6306_v58  ;;  %v15793_v34 = vadd.f32 %v15755_v22, %v6237_v14  ;;  %v6224_v10 = vmul.f32 %v15750_v55, %v5842_v17  ;;  %v6193_v58 = vpop.f32.mrf.mxu1 }
 0xed1   : > { %v13225_v13 = vpop.eup %13224  ;;  %13236 = vpow2.f32 %v10595_v16  ;;  %v6016_v37 = vpop.f32.mrf.mxu0 }
 0xed2   : > { %v6307_v24 = vadd.f32 1.0, %v13225_v13  ;;  %v10596_v45 = vmul.f32 -1.442695, %v15793_v34  ;;  %v6238_v8 = vadd.f32 %v6224_v10, %v6184_v40  ;;  %v6194_v14 = vadd.f32 %v6193_v58, %v6016_v37 }
 0xed3   : > { %v5845_v47 = vpop.xlane.xlu0 %5844  ;;  %v12301_v17 = vpop.f32.mrf.mxu0 }
 0xed4   : > { %13238 = vrcp.f32 %v6307_v24  ;;  %v15798_v60 = vadd.f32 %v15755_v22, %v6238_v8  ;;  %v6225_v33 = vmul.f32 %v15750_v55, %v5845_v47  ;;  %v12330_v8 = vpop.f32.mrf.mxu1 }
 0xed5   : > { %v13227_v54 = vpop.eup %13226  ;;  %13240 = vpow2.f32 %v10596_v45 }
 0xed6   : > { %v13229_v49 = vpop.eup %13228  ;;  %v6308_v53 = vadd.f32 1.0, %v13227_v54  ;;  %v10597_v42 = vmul.f32 -1.442695, %v15798_v60  ;;  %v6239_v63 = vadd.f32 %v6225_v33, %v6189_v56  ;;  %v10499_v56 = vld [vmem:[%s17001_s10 + $0x50] sm:$0xff]  ;;  %v6199_v33 = vadd.f32 %v12327_v29, %v12298_v35  ;;  %v6203_v58 = vpop.f32.mrf.mxu1 }
 0xed7   : > { %v6346_v15 = vmul.f32 %v13229_v49, %v15759_v51  ;;  %v5848_v16 = vpop.xlane.xlu1 %5847  ;;  %v6026_v49 = vpop.f32.mrf.mxu0 }
 0xed8   : > { %13242 = vrcp.f32 %v6308_v53  ;;  %v15804_v20 = vadd.f32 %v15755_v22, %v6239_v63  ;;  %v6226_v9 = vmul.f32 %v15750_v55, %v5848_v16  ;;  %v10498_v53 = vld [vmem:[%s17001_s10 + $0x48] sm:$0xff] }
 0xed9   : > { %v13231_v40 = vpop.eup %13230  ;;  %13244 = vpow2.f32 %v10597_v42  ;;  %12339 = vmatprep.mubr.msk.f32.mxu0 %vm1164_vm2, %v6346_v15 }
 0xeda   : > { %v13233_v10 = vpop.eup %13232  ;;  %v6347_v13 = vmul.f32 %v13231_v40, %v15763_v6  ;;  %v10598_v24 = vmul.f32 -1.442695, %v15804_v20  ;;  %v6240_v51 = vadd.f32 %v6226_v9, %v6194_v14  ;;  %v10497_v14 = vld [vmem:[%s17001_s10 + $0x40] sm:$0xff] }
 0xedb   : > { %v6309_v45 = vadd.f32 1.0, %v13233_v10  ;;  %v5851_v47 = vpop.xlane.xlu0 %5850 }
 0xedc   : > { %13246 = vpow2.f32 %v10598_v24  ;;  %v15814_v54 = vadd.f32 %v15755_v22, %v6240_v51  ;;  %v6227_v37 = vmul.f32 %v15750_v55, %v5851_v47  ;;  %12340 = vmatmul.mubr.msk.f32.vlgmr.msra.gmra.mxu0 %vm1164_vm2, %v6347_v13 }
 0xedd   : > { %v13235_v6 = vpop.eup %13234  ;;  %13248 = vrcp.f32 %v6309_v45  ;;  %12390 = vmatpush3.msra.mxu0 %v15740_v38  ;;  %v6204_v38 = vadd.f32 %v6203_v58, %v6026_v49 }
 0xede   : > { %v13237_v42 = vpop.eup %13236  ;;  %v6348_v35 = vmul.f32 %v13235_v6, %v15768_v57  ;;  %v10599_v29 = vmul.f32 -1.442695, %v15814_v54  ;;  %v6241_v63 = vadd.f32 %v6227_v37, %v6199_v33  ;;  %12391 = vmatprep.subr.mxu0 %v10499_v56 }
 0xedf   : > { %v6310_v15 = vadd.f32 1.0, %v13237_v42  ;;  %v5854_v16 = vpop.xlane.xlu1 %5853  ;;  %12392 = vmatpush3.msra.mxu0 %v10499_v56  ;;  %v6209_v56 = vadd.f32 %v12330_v8, %v12301_v17 }
 0xee0   : > { %13250 = vpow2.f32 %v10599_v29  ;;  %v15828_v9 = vadd.f32 %v15755_v22, %v6241_v63  ;;  %v6228_v40 = vmul.f32 %v15750_v55, %v5854_v16  ;;  %12342 = vmatprep.mubr.msk.f32.mxu0 %vm1164_vm2, %v6348_v35  ;;  %12393 = vmatprep.subr.mxu0 %v10498_v53 }
 0xee1   : > { %v13239_v57 = vpop.eup %13238  ;;  %13252 = vrcp.f32 %v6310_v15  ;;  %12394 = vmatpush3.msra.mxu0 %v10498_v53 }
 0xee2   : > { %v13241_v10 = vpop.eup %13240  ;;  %v6349_v13 = vmul.f32 %v13239_v57, %v15773_v62  ;;  %v10600_v24 = vmul.f32 -1.442695, %v15828_v9  ;;  %v6242_v51 = vadd.f32 %v6228_v40, %v6204_v38  ;;  %12395 = vmatprep.subr.mxu0 %v10497_v14 }
 0xee3   : > { %v6311_v45 = vadd.f32 1.0, %v13241_v10  ;;  %v5857_v47 = vpop.xlane.xlu0 %5856  ;;  %12396 = vmatpush3.msra.mxu0 %v10497_v14 }
 0xee4   : > { %13254 = vpow2.f32 %v10600_v24  ;;  %v6260_v33 = vadd.f32 %v15755_v22, %v6242_v51  ;;  %v6229_v37 = vmul.f32 %v15750_v55, %v5857_v47  ;;  %12343 = vmatmul.mubr.msk.f32.gmra.mxu0 %vm1164_vm2, %v6349_v13  ;;  %12417 = vmatprep.subr.mxu0 %v17007_v18 }
 0xee5   : > { %v13243_v6 = vpop.eup %13242  ;;  %13256 = vrcp.f32 %v6311_v45 }
 0xee6   : > { %v13245_v62 = vpop.eup %13244  ;;  %v6350_v49 = vmul.f32 %v13243_v6, %v15778_v30  ;;  %v10601_v53 = vmul.f32 -1.442695, %v6260_v33  ;;  %v6243_v42 = vadd.f32 %v6229_v37, %v6209_v56 }
 0xee7   : > { %v6312_v35 = vadd.f32 1.0, %v13245_v62 }
 0xee8   : > { %13258 = vpow2.f32 %v10601_v53  ;;  %v6261_v17 = vadd.f32 %v15755_v22, %v6243_v42  ;;  %12345 = vmatprep.mubr.msk.f32.mxu0 %vm1164_vm2, %v6350_v49  ;;  %v10505_v53 = vld [vmem:[%s17002_s11 + $0x120] sm:$0xff]  ;;  %v15878_v42 = vrot.slane %v15746_v11, %v14324_v4 }
 0xee9   : > { %v13247_v8 = vpop.eup %13246  ;;  %13260 = vrcp.f32 %v6312_v35 }
 0xeea   : > { %v13249_v55 = vpop.eup %13248  ;;  %v6313_v29 = vadd.f32 1.0, %v13247_v8  ;;  %v10602_v63 = vmul.f32 -1.442695, %v6261_v17 }
 0xeeb   : > { %v6351_v15 = vmul.f32 %v13249_v55, %v15783_v2 }
 0xeec   : > { %13262 = vrcp.f32 %v6313_v29 }
 0xeed   : > { %v13251_v58 = vpop.eup %13250  ;;  %13264 = vpow2.f32 %v10602_v63  ;;  %12346 = vmatmul.mubr.msk.f32.gmra.mxu0 %vm1164_vm2, %v6351_v15 }
 0xeee   : > { %v13253_v30 = vpop.eup %13252  ;;  %v6314_v16 = vadd.f32 1.0, %v13251_v58 }
 0xeef   : > { %v6352_v14 = vmul.f32 %v13253_v30, %v15788_v25 }
 0xef0   : > { %13266 = vrcp.f32 %v6314_v16 }
 0xef1   : > { %v13255_v22 = vpop.eup %13254  ;;  %12348 = vmatprep.mubr.msk.f32.mxu0 %vm1164_vm2, %v6352_v14 }
 0xef2   : > { %v13257_v38 = vpop.eup %13256  ;;  %v6315_v40 = vadd.f32 1.0, %v13255_v22 }
 0xef3   : > { %v6353_v57 = vmul.f32 %v13257_v38, %v15793_v34 }
 0xef4   : > { %13268 = vrcp.f32 %v6315_v40 }
 0xef5   : > { %v13259_v10 = vpop.eup %13258  ;;  %12349 = vmatmul.mubr.msk.f32.gmra.mxu0 %vm1164_vm2, %v6353_v57 }
 0xef6   : > { %v13261_v2 = vpop.eup %13260  ;;  %v6316_v13 = vadd.f32 1.0, %v13259_v10 }
 0xef7   : > { %v6354_v24 = vmul.f32 %v13261_v2, %v15798_v60 }
 0xef8   : > { %13270 = vrcp.f32 %v6316_v13 }
 0xef9   : > { %v13263_v51 = vpop.eup %13262  ;;  %12351 = vmatprep.mubr.msk.f32.mxu0 %vm1164_vm2, %v6354_v24 }
 0xefa   : > { %v13265_v25 = vpop.eup %13264  ;;  %v6355_v45 = vmul.f32 %v13263_v51, %v15804_v20 }
 0xefb   : > { %v6317_v47 = vadd.f32 1.0, %v13265_v25 }
 0xefc   : > { %12352 = vmatmul.mubr.msk.f32.gmra.mxu0 %vm1164_vm2, %v6355_v45 }
 0xefd   : > { %v13267_v56 = vpop.eup %13266  ;;  %13272 = vrcp.f32 %v6317_v47 }
 0xefe   : > { %v6356_v34 = vmul.f32 %v13267_v56, %v15814_v54  ;;  %v10508_v54 = vld [vmem:[%s17002_s11 + $0x138] sm:$0xff] }
 0xeff   : > { %12360 = vmatprep.subr.mxu1 %v10508_v54 }
 0xf00   : > { %12354 = vmatprep.mubr.msk.f32.mxu0 %vm1164_vm2, %v6356_v34  ;;  %12361 = vmatpush3.msra.mxu1 %v10508_v54 }
 0xf01   : > { %v13269_v37 = vpop.eup %13268 }
 0xf02   : > { %v6357_v6 = vmul.f32 %v13269_v37, %v15828_v9  ;;  %v10507_v9 = vld [vmem:[%s17002_s11 + $0x130] sm:$0xff] }
 0xf03   : > { %12362 = vmatprep.subr.mxu1 %v10507_v9 }
 0xf04   : > { %12355 = vmatmul.mubr.msk.f32.gmra.mxu0 %vm1164_vm2, %v6357_v6  ;;  %12363 = vmatpush3.msra.mxu1 %v10507_v9 }
 0xf05   : > { %v13271_v60 = vpop.eup %13270 }
 0xf06   : > { %v6358_v62 = vmul.f32 %v13271_v60, %v6260_v33  ;;  %v10506_v33 = vld [vmem:[%s17002_s11 + $0x128] sm:$0xff] }
 0xf07   : > { %12364 = vmatprep.subr.mxu1 %v10506_v33 }
 0xf08   : > { %12357 = vmatprep.mubr.msk.f32.mxu0 %vm1164_vm2, %v6358_v62  ;;  %12365 = vmatpush3.msra.mxu1 %v10506_v33 }
 0xf09   : > { %12366 = vmatprep.subr.mxu1 %v10505_v53 }
 0xf0a   : > { %v13273_v49 = vpop.eup %13272  ;;  %12367 = vmatpush3.msra.mxu1 %v10505_v53 }
 0xf0b   : > { %v6359_v20 = vmul.f32 %v13273_v49, %v6261_v17  ;;  %12400 = vmatprep.subr.mxu1 %v17007_v18 }
 0xf0d   : > { %12358 = vmatmul.mubr.msk.f32.gmra.mxu0 %vm1164_vm2, %v6359_v20 }
 0xf0e   : > { %12397 = vmatprep.mubr.msk.f32.mxu0 %vm1164_vm2, %v15456_v1 }
 0xf11   : > { %12398 = vmatmul.mubr.msk.f32.vlgmr.msra.gmra.mxu0 %vm1164_vm2, %v15459_v36 }
 0xf12   : > { %12431 = vmatprep.mubr.msk.f32.mxu0 %vm13731_vm1, %v17007_v18 }
 0xf9c   : > { %v12341_v35 = vpop.f32.mrf.mxu0 }
 0xf9d   : > { %v6478_v17 = vadd.f32 %v12341_v35, %v15878_v42 }
 0xf9e   : > { %v6472_v8 = vpop.f32.mrf.mxu0 }
 0xf9f   : > { %v10618_v55 = vmul.f32 -1.442695, %v6478_v17  ;;  %v6473_v29 = vadd.f32 %v6472_v8, %v15878_v42 }
 0xfa1   : > { %13274 = vpow2.f32 %v10618_v55  ;;  %v10617_v63 = vmul.f32 -1.442695, %v6473_v29 }
 0xfa3   : > { %13276 = vpow2.f32 %v10617_v63 }
 0xfa4   : > { %v12344_v15 = vpop.f32.mrf.mxu0 }
 0xfa5   : > { %v15883_v58 = vadd.f32 %v12344_v15, %v15878_v42 }
 0xfa6   : > { %v6482_v30 = vpop.f32.mrf.mxu0 }
 0xfa7   : > { %v10620_v16 = vmul.f32 -1.442695, %v15883_v58  ;;  %v6483_v14 = vadd.f32 %v6482_v30, %v15878_v42 }
 0xfa9   : > { %13278 = vpow2.f32 %v10620_v16  ;;  %v10619_v22 = vmul.f32 -1.442695, %v6483_v14 }
 0xfab   : > { %13280 = vpow2.f32 %v10619_v22 }
 0xfad   : > { %v12347_v38 = vpop.f32.mrf.mxu0 }
 0xfae   : > { %v13275_v40 = vpop.eup %13274  ;;  %v15888_v57 = vadd.f32 %v12347_v38, %v15878_v42 }
 0xfaf   : > { %v6584_v10 = vadd.f32 1.0, %v13275_v40  ;;  %v6492_v2 = vpop.f32.mrf.mxu0 }
 0xfb0   : > { %v13277_v13 = vpop.eup %13276  ;;  %v10622_v24 = vmul.f32 -1.442695, %v15888_v57  ;;  %v15892_v51 = vadd.f32 %v6492_v2, %v15878_v42 }
 0xfb1   : > { %13282 = vrcp.f32 %v6584_v10  ;;  %v6583_v25 = vadd.f32 1.0, %v13277_v13 }
 0xfb2   : > { %13284 = vpow2.f32 %v10622_v24  ;;  %v10621_v45 = vmul.f32 -1.442695, %v15892_v51 }
 0xfb3   : > { %13286 = vrcp.f32 %v6583_v25 }
 0xfb4   : > { %13288 = vpow2.f32 %v10621_v45 }
 0xfb5   : > { %v12350_v47 = vpop.f32.mrf.mxu0 }
 0xfb6   : > { %v13279_v56 = vpop.eup %13278  ;;  %v15896_v34 = vadd.f32 %v12350_v47, %v15878_v42 }
 0xfb7   : > { %v6586_v37 = vadd.f32 1.0, %v13279_v56  ;;  %v6502_v6 = vpop.f32.mrf.mxu0 }
 0xfb8   : > { %v13281_v60 = vpop.eup %13280  ;;  %v10624_v62 = vmul.f32 -1.442695, %v15896_v34  ;;  %v15900_v49 = vadd.f32 %v6502_v6, %v15878_v42 }
 0xfb9   : > { %13290 = vrcp.f32 %v6586_v37  ;;  %v6585_v20 = vadd.f32 1.0, %v13281_v60 }
 0xfba   : > { %13292 = vpow2.f32 %v10624_v62  ;;  %v10623_v54 = vmul.f32 -1.442695, %v15900_v49 }
 0xfbb   : > { %13294 = vrcp.f32 %v6585_v20 }
 0xfbc   : > { %13296 = vpow2.f32 %v10623_v54  ;;  %v12353_v9 = vpop.f32.mrf.mxu0 }
 0xfbd   : > { %v15904_v33 = vadd.f32 %v12353_v9, %v15878_v42 }
 0xfbe   : > { %v13283_v53 = vpop.eup %13282  ;;  %v6512_v35 = vpop.f32.mrf.mxu0 }
 0xfbf   : > { %v13285_v8 = vpop.eup %13284  ;;  %v10626_v55 = vmul.f32 -1.442695, %v15904_v33  ;;  %v15908_v63 = vadd.f32 %v6512_v35, %v15878_v42  ;;  %v15913_v40 = vmul.f32 %v13283_v53, %v6478_v17 }
 0xfc0   : > { %v13287_v15 = vpop.eup %13286  ;;  %v6588_v30 = vadd.f32 1.0, %v13285_v8 }
 0xfc1   : > { %v13289_v16 = vpop.eup %13288  ;;  %v15910_v22 = vmul.f32 %v13287_v15, %v6473_v29  ;;  %13298 = vpow2.f32 %v10626_v55  ;;  %v10625_v38 = vmul.f32 -1.442695, %v15908_v63 }
 0xfc2   : > { %13300 = vrcp.f32 %v6588_v30  ;;  %v6587_v10 = vadd.f32 1.0, %v13289_v16 }
 0xfc3   : > { %13302 = vpow2.f32 %v10625_v38  ;;  %12368 = vmatprep.mubr.msk.f32.mxu1 %vm1164_vm2, %v15910_v22 }
 0xfc4   : > { %13304 = vrcp.f32 %v6587_v10  ;;  %v12356_v2 = vpop.f32.mrf.mxu0  ;;  %12369 = vmatmul.mubr.msk.f32.vlgmr.msra.gmra.mxu1 %vm1164_vm2, %v15913_v40 }
 0xfc5   : > { %v15920_v13 = vadd.f32 %v12356_v2, %v15878_v42 }
 0xfc6   : > { %v13291_v29 = vpop.eup %13290  ;;  %v6522_v24 = vpop.f32.mrf.mxu0 }
 0xfc7   : > { %v13293_v25 = vpop.eup %13292  ;;  %v10628_v17 = vmul.f32 -1.442695, %v15920_v13  ;;  %v15924_v45 = vadd.f32 %v6522_v24, %v15878_v42  ;;  %v6628_v62 = vmul.f32 %v13291_v29, %v15883_v58 }
 0xfc8   : > { %v13295_v47 = vpop.eup %13294  ;;  %v6590_v56 = vadd.f32 1.0, %v13293_v25 }
 0xfc9   : > { %v13297_v37 = vpop.eup %13296  ;;  %v6627_v6 = vmul.f32 %v13295_v47, %v6483_v14  ;;  %13306 = vpow2.f32 %v10628_v17  ;;  %v10627_v60 = vmul.f32 -1.442695, %v15924_v45 }
 0xfca   : > { %13308 = vrcp.f32 %v6590_v56  ;;  %v6589_v20 = vadd.f32 1.0, %v13297_v37 }
 0xfcb   : > { %13310 = vpow2.f32 %v10627_v60  ;;  %12371 = vmatprep.mubr.msk.f32.mxu1 %vm1164_vm2, %v6627_v6 }
 0xfcc   : > { %13312 = vrcp.f32 %v6589_v20  ;;  %12372 = vmatmul.mubr.msk.f32.gmra.mxu1 %vm1164_vm2, %v6628_v62 }
 0xfcd   : > { %v12359_v54 = vpop.f32.mrf.mxu0 }
 0xfce   : > { %v13299_v9 = vpop.eup %13298  ;;  %v15931_v53 = vadd.f32 %v12359_v54, %v15878_v42 }
 0xfcf   : > { %v13301_v35 = vpop.eup %13300  ;;  %v6592_v14 = vadd.f32 1.0, %v13299_v9  ;;  %v6532_v8 = vpop.f32.mrf.mxu0 }
 0xfd0   : > { %v13303_v55 = vpop.eup %13302  ;;  %v10630_v15 = vmul.f32 -1.442695, %v15931_v53  ;;  %v6533_v58 = vadd.f32 %v6532_v8, %v15878_v42  ;;  %v6630_v2 = vmul.f32 %v13301_v35, %v15888_v57 }
 0xfd1   : > { %v13305_v30 = vpop.eup %13304  ;;  %13314 = vrcp.f32 %v6592_v14  ;;  %v6591_v16 = vadd.f32 1.0, %v13303_v55  ;;  %v10509_v55 = vld [vmem:[%s17002_s11 + $0x140] sm:$0xff] }
 0xfd2   : > { %v6629_v38 = vmul.f32 %v13305_v30, %v15892_v51  ;;  %13316 = vpow2.f32 %v10630_v15  ;;  %v10629_v10 = vmul.f32 -1.442695, %v6533_v58 }
 0xfd3   : > { %13318 = vrcp.f32 %v6591_v16 }
 0xfd4   : > { %13320 = vpow2.f32 %v10629_v10  ;;  %12374 = vmatprep.mubr.msk.f32.mxu1 %vm1164_vm2, %v6629_v38 }
 0xfd5   : > { %12375 = vmatmul.mubr.msk.f32.gmra.mxu1 %vm1164_vm2, %v6630_v2 }
 0xfd6   : > { %v13307_v29 = vpop.eup %13306 }
 0xfd7   : > { %v13309_v24 = vpop.eup %13308  ;;  %v6594_v25 = vadd.f32 1.0, %v13307_v29 }
 0xfd8   : > { %v13311_v17 = vpop.eup %13310  ;;  %v6632_v51 = vmul.f32 %v13309_v24, %v15896_v34 }
 0xfd9   : > { %v13313_v42 = vpop.eup %13312  ;;  %v6593_v47 = vadd.f32 1.0, %v13311_v17  ;;  %13322 = vrcp.f32 %v6594_v25 }
 0xfda   : > { %v6631_v56 = vmul.f32 %v13313_v42, %v15900_v49 }
 0xfdb   : > { %13324 = vrcp.f32 %v6593_v47 }
 0xfdc   : > { %12377 = vmatprep.mubr.msk.f32.mxu1 %vm1164_vm2, %v6631_v56  ;;  %12401 = vmatpush3.msra.mxu1 %v6631_v56 }
 0xfdd   : > { %12378 = vmatmul.mubr.msk.f32.gmra.mxu1 %vm1164_vm2, %v6632_v51  ;;  %12402 = vmatprep.subr.mxu1 %v17007_v18 }
 0xfde   : > { %v13315_v57 = vpop.eup %13314  ;;  %12403 = vmatpush3.msra.mxu1 %v6630_v2 }
 0xfdf   : > { %v13317_v37 = vpop.eup %13316  ;;  %12404 = vmatprep.subr.mxu1 %v17007_v18  ;;  %v6634_v9 = vmul.f32 %v13315_v57, %v15904_v33 }
 0xfe0   : > { %v13319_v60 = vpop.eup %13318  ;;  %v6596_v20 = vadd.f32 1.0, %v13317_v37  ;;  %12405 = vmatpush3.msra.mxu1 %v6629_v38 }
 0xfe1   : > { %v13321_v49 = vpop.eup %13320  ;;  %v6633_v54 = vmul.f32 %v13319_v60, %v15908_v63  ;;  %12406 = vmatprep.subr.mxu1 %v17007_v18 }
 0xfe2   : > { %v6595_v34 = vadd.f32 1.0, %v13321_v49  ;;  %12407 = vmatpush3.msra.mxu1 %v6628_v62  ;;  %13326 = vrcp.f32 %v6596_v20 }
 0xfe3   : > { %12408 = vmatprep.subr.mxu1 %v17007_v18  ;;  %12380 = vmatprep.mubr.msk.f32.mxu1 %vm1164_vm2, %v6633_v54 }
 0xfe4   : > { %13328 = vrcp.f32 %v6595_v34  ;;  %12409 = vmatpush3.msra.mxu1 %v6627_v6  ;;  %v10516_v34 = vld [vmem:[%s17002_s11 + $0x178] sm:$0xff] }
 0xfe5   : > { %12381 = vmatmul.mubr.msk.f32.gmra.mxu1 %vm1164_vm2, %v6634_v9  ;;  %12410 = vmatprep.subr.mxu1 %v17007_v18 }
 0xfe6   : > { %12411 = vmatpush3.msra.mxu1 %v15913_v40  ;;  %v13323_v63 = vpop.eup %13322 }
 0xfe7   : > { %12412 = vmatprep.subr.mxu1 %v17007_v18  ;;  %v6636_v62 = vmul.f32 %v13323_v63, %v15920_v13  ;;  %v10512_v13 = vld [vmem:[%s17002_s11 + $0x158] sm:$0xff]  ;;  %v10514_v63 = vld [vmem:[%s17002_s11 + $0x168] sm:$0xff] }
 0xfe8   : > { %v13325_v35 = vpop.eup %13324  ;;  %12413 = vmatpush3.msra.mxu1 %v15910_v22  ;;  %v13636_v22 = vld [vmem:[%s16996_s5] sm:$0xff] }
 0xfe9   : > { %v6635_v33 = vmul.f32 %v13325_v35, %v15924_v45  ;;  %12434 = vmatprep.subr.mxu1 %v17007_v18  ;;  %v10511_v45 = vld [vmem:[%s17002_s11 + $0x150] sm:$0xff]  ;;  %v10513_v35 = vld [vmem:[%s17002_s11 + $0x160] sm:$0xff] }
 0xfeb   : > { %12383 = vmatprep.mubr.msk.f32.mxu1 %vm1164_vm2, %v6635_v33 }
 0xfec   : > { %12384 = vmatmul.mubr.msk.f32.gmra.mxu1 %vm1164_vm2, %v6636_v62 }
 0xfef   : > { %v13327_v6 = vpop.eup %13326 }
 0xff0   : > { %v6638_v40 = vmul.f32 %v13327_v6, %v15931_v53  ;;  %v10510_v53 = vld [vmem:[%s17002_s11 + $0x148] sm:$0xff] }
 0xff1   : > { %v13329_v14 = vpop.eup %13328 }
 0xff2   : > { %v6637_v8 = vmul.f32 %v13329_v14, %v6533_v58 }
 0xff4   : > { %12386 = vmatprep.mubr.msk.f32.mxu1 %vm1164_vm2, %v6637_v8 }
 0xff5   : > { %12387 = vmatmul.mubr.msk.f32.gmra.mxu1 %vm1164_vm2, %v6638_v40 }
 0xff6   : > { %12414 = vmatprep.mubr.msk.f32.mxu1 %vm13731_vm1, %v17007_v18 }
 0xff9   : > { %12415 = vmatmul.mubr.msk.f32.vlgmr.msra.gmra.mxu1 %vm2446_vm4, %v13636_v22 }
 0xffa   : > { %12435 = vmatpush3.msra.mxu1 %v6638_v40  ;;  %12448 = vmatprep.mubr.msk.f32.mxu1 %vm13731_vm1, %v17007_v18 }
 0xffb   : > { %12436 = vmatprep.subr.mxu1 %v17007_v18 }
 0xffc   : > { %12437 = vmatpush3.msra.mxu1 %v6637_v8 }
 0xffd   : > { %12438 = vmatprep.subr.mxu1 %v17007_v18 }
 0xffe   : > { %12439 = vmatpush3.msra.mxu1 %v6636_v62 }
 0xfff   : > { %12440 = vmatprep.subr.mxu1 %v17007_v18 }
0x1000   : > { %12441 = vmatpush3.msra.mxu1 %v6635_v33  ;;  %v16030_v33 = vpop.f32.mrf.mxu0 }
0x1001   : > { %12442 = vmatprep.subr.mxu1 %v17007_v18 }
0x1002   : > { %12443 = vmatpush3.msra.mxu1 %v6634_v9  ;;  %v10515_v9 = vld [vmem:[%s17002_s11 + $0x170] sm:$0xff]  ;;  %v7092_v14 = vpop.f32.mrf.mxu0 }
0x1003   : > { %12444 = vmatprep.subr.mxu1 %v17007_v18 }
0x1004   : > { %12445 = vmatpush3.msra.mxu1 %v6633_v54  ;;  %v7529_v54 = vrot.slane %v15746_v11, %v14481_v46 }
0x1005   : > { %12446 = vmatprep.subr.mxu1 %v17007_v18 }
0x1006   : > { %12447 = vmatpush3.msra.mxu1 %v6632_v51 }
0x1007   : > { %12449 = vmatmul.mubr.msk.f32.vlgmr.msra.gmra.mxu1 %vm2446_vm4, %v13636_v22  ;;  %12468 = vmatprep.subr.mxu1 %v10512_v13 }
0x1008   : > { %12469 = vmatpush3.msra.mxu1 %v10512_v13 }
0x1009   : > { %12470 = vmatprep.subr.mxu1 %v10511_v45 }
0x100a   : > { %12471 = vmatpush3.msra.mxu1 %v10511_v45 }
0x100b   : > { %12472 = vmatprep.subr.mxu1 %v10510_v53 }
0x100c   : > { %12473 = vmatpush3.msra.mxu1 %v10510_v53 }
0x100d   : > { %12474 = vmatprep.subr.mxu1 %v10509_v55 }
0x100e   : > { %12475 = vmatpush3.msra.mxu1 %v10509_v55 }
0x100f   : > { %12479 = vmatprep.subr.mxu1 %v10516_v34 }
0x1084   : > { %v15990_v15 = vpop.f32.mrf.mxu1 }
0x1086   : > { %v15992_v58 = vpop.f32.mrf.mxu1 }
0x108c   : > { %v12373_v30 = vpop.f32.mrf.mxu1 }
0x108e   : > { %v15994_v16 = vpop.f32.mrf.mxu1 }
0x1095   : > { %v12376_v38 = vpop.f32.mrf.mxu1 }
0x1097   : > { %v6771_v10 = vpop.f32.mrf.mxu1 }
0x109d   : > { %v15996_v2 = vpop.f32.mrf.mxu1 }
0x109f   : > { %v6781_v29 = vpop.f32.mrf.mxu1 }
0x10a5   : > { %v15998_v24 = vpop.f32.mrf.mxu1 }
0x10a7   : > { %v16000_v25 = vpop.f32.mrf.mxu1 }
0x10ac   : > { %v16002_v17 = vpop.f32.mrf.mxu1 }
0x10ae   : > { %v16004_v42 = vpop.f32.mrf.mxu1 }
0x10b5   : > { %v16006_v47 = vpop.f32.mrf.mxu1 }
0x10b7   : > { %v16008_v56 = vpop.f32.mrf.mxu1 }
0x10b9   : > { %v7205_v51 = vpop.f32.mrf.mxu1 }
0x10ba   : > { %12476 = vmatprep.mubr.msk.f32.mxu1 %vm1164_vm2, %v7205_v51  ;;  %v6642_v51 = vrot.slane %v15746_v11, %v14508_v7 }
0x10bb   : > { %v12416_v57 = vpop.f32.mrf.mxu1 }
0x10bc   : > { %v16035_v57 = vadd.f32 %v12376_v38, %v6642_v51  ;;  %v16046_v11 = vadd.f32 %v15994_v16, %v6642_v51 }
0x10c7   : > { %v7345_v37 = vpop.f32.mrf.mxu1 }
0x10c8   : > { %12477 = vmatmul.mubr.msk.f32.vlgmr.msra.gmra.mxu1 %vm1164_vm2, %v7345_v37  ;;  %v10650_v37 = vmul.f32 -1.442695, %v16035_v57 }
0x10c9   : > { %v12450_v60 = vpop.f32.mrf.mxu1  ;;  %12480 = vmatpush3.msra.mxu1 %v10516_v34  ;;  %v16040_v34 = vadd.f32 %v6781_v29, %v6642_v51  ;;  %v16054_v29 = vadd.f32 %v15992_v58, %v6642_v51 }
0x10ca   : > { %12481 = vmatprep.subr.mxu1 %v10515_v9 }
0x10cb   : > { %12482 = vmatpush3.msra.mxu1 %v10515_v9  ;;  %v10651_v38 = vmul.f32 -1.442695, %v16040_v34  ;;  %v10645_v16 = vmul.f32 -1.442695, %v16054_v29 }
0x10cc   : > { %12483 = vmatprep.subr.mxu1 %v10514_v63 }
0x10cd   : > { %12484 = vmatpush3.msra.mxu1 %v10514_v63  ;;  %v16042_v63 = vadd.f32 %v12373_v30, %v6642_v51  ;;  %v10647_v30 = vmul.f32 -1.442695, %v16046_v11 }
0x10ce   : > { %12485 = vmatprep.subr.mxu1 %v10513_v35 }
0x10cf   : > { %12486 = vmatpush3.msra.mxu1 %v10513_v35 }
0x10d0   : > { %12513 = vmatprep.subr.mxu1 %v17007_v18 }
0x1188   : > { %v12478_v20 = vpop.f32.mrf.mxu1 }
0x1189   : > { %7520 = vrot.lane.b32.xlu0 %v12478_v20, %s13732_s22  ;;  %v16038_v20 = vadd.f32 %v6771_v10, %v6642_v51  ;;  %v16050_v10 = vadd.f32 %v15990_v15, %v6642_v51  ;;  %v16063_v15 = vadd.f32 %v16008_v56, %v6642_v51  ;;  %v16074_v56 = vadd.f32 %v15998_v24, %v6642_v51 }
0x118a   : > { %v7507_v49 = vpop.f32.mrf.mxu1 }
0x118b   : > { %7518 = vrot.lane.b32.xlu1 %v7507_v49, %s13732_s22  ;;  %v10649_v35 = vmul.f32 -1.442695, %v16038_v20 }
0x118f   : > { %7531 = vrot.lane.b32.xlu1 %v7529_v54, %s13732_s22 }
0x11fb   : > { %v7521_v62 = vpop.permute.xlu0 %7520 }
0x11fc   : > { %v7525_v8 = vadd.f32 %v16030_v33, %v7521_v62  ;;  %v10648_v62 = vmul.f32 -1.442695, %v16042_v63 }
0x11fd   : > { %v7519_v6 = vpop.permute.xlu1 %7518 }
0x11fe   : > { %v7524_v40 = vadd.f32 %v7519_v6, %v7092_v14  ;;  %v10646_v6 = vmul.f32 -1.442695, %v16050_v10 }
0x1201   : > { %v7532_v22 = vpop.permute.xlu1 %7531 }
0x1202   : > { %v7534_v13 = vadd.f32 %v7532_v22, %v7524_v40  ;;  %v7535_v45 = vadd.f32 %v7532_v22, %v7525_v8  ;;  %v16060_v8 = vadd.f32 %v16006_v47, %v6642_v51  ;;  %v10657_v47 = vmul.f32 -1.442695, %v16063_v15 }
0x1204   : > { %v10683_v53 = vmul.f32 -1.442695, %v7534_v13  ;;  %v10684_v55 = vmul.f32 -1.442695, %v7535_v45 }
0x1206   : > { %13330 = vpow2.f32 %v10683_v53  ;;  %v16066_v53 = vadd.f32 %v16002_v17, %v6642_v51  ;;  %v16081_v17 = vld [vmem:[%s17003_s12 + $0x20] sm:$0xff] }
0x1207   : > { %13332 = vpow2.f32 %v10684_v55  ;;  %v10658_v55 = vmul.f32 -1.442695, %v16060_v8 }
0x1208   : > { %13334 = vpow2.f32 %v10650_v37  ;;  %v10656_v24 = vmul.f32 -1.442695, %v16066_v53 }
0x1213   : > { %v13331_v60 = vpop.eup %13330 }
0x1214   : > { %v13333_v49 = vpop.eup %13332  ;;  %v7542_v54 = vadd.f32 1.0, %v13331_v60  ;;  %v16070_v60 = vadd.f32 %v16004_v42, %v6642_v51  ;;  %v7104_v42 = vrot.slane %v16081_v17, %v14544_v39 }
0x1215   : > { %v7543_v9 = vadd.f32 1.0, %v13333_v49  ;;  %v13335_v40 = vpop.eup %13334 }
0x1216   : > { %13336 = vrcp.f32 %v7542_v54  ;;  %v6867_v54 = vadd.f32 1.0, %v13335_v40 }
0x1217   : > { %13338 = vrcp.f32 %v7543_v9 }
0x1218   : > { %13340 = vpow2.f32 %v10649_v35 }
0x1219   : > { %13342 = vpow2.f32 %v10651_v38  ;;  %v16090_v38 = vadd.f32 %v7104_v42, %v7092_v14 }
0x121a   : > { %13344 = vpow2.f32 %v10648_v62  ;;  %v10654_v62 = vmul.f32 -1.442695, %v16074_v56 }
0x121b   : > { %13346 = vpow2.f32 %v10647_v30  ;;  %v10675_v14 = vmul.f32 -1.442695, %v16090_v38 }
0x121c   : > { %13348 = vpow2.f32 %v10646_v6 }
0x121d   : > { %13350 = vpow2.f32 %v10645_v16  ;;  %v16094_v16 = vadd.f32 %v15996_v2, %v6642_v51 }
0x121e   : > { %13352 = vpow2.f32 %v10658_v55 }
0x121f   : > { %13354 = vpow2.f32 %v10657_v47  ;;  %v10652_v47 = vmul.f32 -1.442695, %v16094_v16 }
0x1220   : > { %13356 = vrcp.f32 %v6867_v54 }
0x1221   : > { %13358 = vpow2.f32 %v10656_v24 }
0x1223   : > { %v13337_v22 = vpop.eup %13336 }
0x1224   : > { %v13339_v58 = vpop.eup %13338  ;;  %v7548_v37 = vmul.f32 %v13337_v22, %v7534_v13  ;;  %v16086_v13 = vadd.f32 %v16000_v25, %v6642_v51 }
0x1225   : > { %v7549_v49 = vmul.f32 %v13339_v58, %v7535_v45  ;;  %v13341_v9 = vpop.eup %13340  ;;  %v10655_v45 = vmul.f32 -1.442695, %v16070_v60  ;;  %v16098_v58 = vadd.f32 %v16030_v33, %v7104_v42 }
0x1226   : > { %7556 = vrot.lane.b32.xlu1 %v7548_v37, %s17016_s30  ;;  %v13343_v35 = vpop.eup %13342  ;;  %v6866_v30 = vadd.f32 1.0, %v13341_v9  ;;  %v10653_v25 = vmul.f32 -1.442695, %v16086_v13 }
0x1227   : > { %7558 = vrot.lane.b32.xlu0 %v7549_v49, %s17016_s30  ;;  %v13345_v6 = vpop.eup %13344  ;;  %v6868_v40 = vadd.f32 1.0, %v13343_v35  ;;  %13360 = vpow2.f32 %v10655_v45  ;;  %v10676_v49 = vmul.f32 -1.442695, %v16098_v58 }
0x1228   : > { %v13347_v22 = vpop.eup %13346  ;;  %13362 = vpow2.f32 %v10654_v62  ;;  %v6865_v55 = vadd.f32 1.0, %v13345_v6 }
0x1229   : > { %13364 = vrcp.f32 %v6866_v30  ;;  %v13349_v37 = vpop.eup %13348  ;;  %v6864_v51 = vadd.f32 1.0, %v13347_v22 }
0x122a   : > { %13366 = vpow2.f32 %v10653_v25  ;;  %v13351_v2 = vpop.eup %13350  ;;  %v6863_v54 = vadd.f32 1.0, %v13349_v37 }
0x122b   : > { %13368 = vrcp.f32 %v6868_v40  ;;  %v6862_v9 = vadd.f32 1.0, %v13351_v2  ;;  %v13353_v33 = vpop.eup %13352 }
0x122c   : > { %13370 = vpow2.f32 %v10675_v14  ;;  %v13355_v42 = vpop.eup %13354  ;;  %v6875_v45 = vadd.f32 1.0, %v13353_v33 }
0x122d   : > { %13372 = vrcp.f32 %v6865_v55  ;;  %v13357_v24 = vpop.eup %13356  ;;  %v6874_v62 = vadd.f32 1.0, %v13355_v42 }
0x122e   : > { %13374 = vpow2.f32 %v10652_v47  ;;  %v13359_v35 = vpop.eup %13358  ;;  %v6909_v14 = vmul.f32 %v13357_v24, %v16035_v57 }
0x122f   : > { %13376 = vrcp.f32 %v6864_v51  ;;  %v6873_v40 = vadd.f32 1.0, %v13359_v35  ;;  %v16106_v51 = vrot.slane %v16081_v17, %v14586_v31 }
0x1230   : > { %13378 = vpow2.f32 %v10676_v49 }
0x1231   : > { %13380 = vrcp.f32 %v6863_v54  ;;  %v6927_v57 = vmul.f32 %v16106_v51, %v6909_v14 }
0x1232   : > { %13382 = vrcp.f32 %v6862_v9 }
0x1233   : > { %13384 = vrcp.f32 %v6875_v45 }
0x1234   : > { %v13361_v30 = vpop.eup %13360  ;;  %13386 = vrcp.f32 %v6874_v62 }
0x1235   : > { %v13363_v6 = vpop.eup %13362  ;;  %v6872_v55 = vadd.f32 1.0, %v13361_v30  ;;  %13388 = vrcp.f32 %v6873_v40 }
0x1236   : > { %v13365_v25 = vpop.eup %13364  ;;  %v6871_v2 = vadd.f32 1.0, %v13363_v6 }
0x1237   : > { %v13367_v22 = vpop.eup %13366  ;;  %v6908_v33 = vmul.f32 %v13365_v25, %v16038_v20  ;;  %13390 = vrcp.f32 %v6872_v55 }
0x1238   : > { %v13369_v37 = vpop.eup %13368  ;;  %v6870_v54 = vadd.f32 1.0, %v13367_v22  ;;  %13392 = vrcp.f32 %v6871_v2  ;;  %v6951_v22 = vsel %vm1164_vm2, %v6927_v57, 0.0 }
0x1239   : > { %v13371_v47 = vpop.eup %13370  ;;  %v6910_v42 = vmul.f32 %v13369_v37, %v16040_v34  ;;  %v6926_v20 = vmul.f32 %v16106_v51, %v6908_v33 }
0x123a   : > { %v13373_v49 = vpop.eup %13372  ;;  %v7113_v35 = vadd.f32 1.0, %v13371_v47  ;;  %13394 = vrcp.f32 %v6870_v54 }
0x123b   : > { %v13375_v9 = vpop.eup %13374  ;;  %v6907_v30 = vmul.f32 %v13373_v49, %v16042_v63  ;;  %v6928_v34 = vmul.f32 %v16106_v51, %v6910_v42  ;;  %v6948_v37 = vsel %vm1164_vm2, %v6926_v20, 0.0 }
0x123c   : > { %v13377_v24 = vpop.eup %13376  ;;  %v6869_v6 = vadd.f32 1.0, %v13375_v9  ;;  %13396 = vrcp.f32 %v7113_v35 }
0x123d   : > { %v13379_v45 = vpop.eup %13378  ;;  %v6906_v40 = vmul.f32 %v13377_v24, %v16046_v11  ;;  %v6954_v47 = vsel %vm1164_vm2, %v6928_v34, 0.0  ;;  %v6925_v2 = vmul.f32 %v16106_v51, %v6907_v30 }
0x123e   : > { %v13381_v62 = vpop.eup %13380  ;;  %v7114_v25 = vadd.f32 1.0, %v13379_v45  ;;  %13398 = vrcp.f32 %v6869_v6 }
0x123f   : > { %v13383_v18 = vpop.eup %13382  ;;  %v6905_v14 = vmul.f32 %v13381_v62, %v16050_v10  ;;  %v6924_v11 = vmul.f32 %v16106_v51, %v6906_v40  ;;  %v6945_v42 = vsel %vm1164_vm2, %v6925_v2, 0.0 }
0x1240   : > { %v6904_v55 = vmul.f32 %v13383_v18, %v16054_v29  ;;  %v13385_v63 = vpop.eup %13384  ;;  %13400 = vrcp.f32 %v7114_v25 }
0x1241   : > { %v13387_v49 = vpop.eup %13386  ;;  %v6923_v10 = vmul.f32 %v16106_v51, %v6905_v14  ;;  %v6917_v18 = vmul.f32 %v13385_v63, %v16060_v8  ;;  %v6942_v33 = vsel %vm1164_vm2, %v6924_v11, 0.0 }
0x1242   : > { %v6922_v54 = vmul.f32 %v16106_v51, %v6904_v55  ;;  %v13389_v9 = vpop.eup %13388  ;;  %v6916_v29 = vmul.f32 %v13387_v49, %v16063_v15 }
0x1243   : > { %v6939_v35 = vsel %vm1164_vm2, %v6923_v10, 0.0  ;;  %v6915_v30 = vmul.f32 %v13389_v9, %v16066_v53  ;;  %v6935_v15 = vmul.f32 %v16106_v51, %v6917_v18 }
0x1244   : > { %v13391_v57 = vpop.eup %13390  ;;  %v6936_v45 = vsel %vm1164_vm2, %v6922_v54, 0.0  ;;  %v6934_v8 = vmul.f32 %v16106_v51, %v6916_v29 }
0x1245   : > { %v13393_v24 = vpop.eup %13392  ;;  %v6914_v6 = vmul.f32 %v13391_v57, %v16070_v60  ;;  %v6975_v14 = vsel %vm1164_vm2, %v6935_v15, 0.0  ;;  %v6933_v60 = vmul.f32 %v16106_v51, %v6915_v30 }
0x1246   : > { %6952 = vadd.xlane.f32.xlu0 %v6951_v22  ;;  %v6913_v22 = vmul.f32 %v13393_v24, %v16074_v56  ;;  %v6972_v25 = vsel %vm1164_vm2, %v6934_v8, 0.0  ;;  %v16145_v56 = vld [vmem:[%s17003_s12 + $0x28] sm:$0x3]  ;;  %v17017_v24 = vmov 0.0  }
0x1247   : > { %v13395_v62 = vpop.eup %13394  ;;  %v6932_v53 = vmul.f32 %v16106_v51, %v6914_v6 }
0x1248   : > { %v6912_v20 = vmul.f32 %v13395_v62, %v16086_v13  ;;  %v6931_v2 = vmul.f32 %v16106_v51, %v6913_v22 }
0x1249   : > { %v13397_v40 = vpop.eup %13396 }
0x124a   : > { %6949 = vadd.xlane.f32.xlu0 %v6948_v37  ;;  %6955 = vadd.xlane.f32.xlu1 %v6954_v47  ;;  %v7119_v55 = vmul.f32 %v13397_v40, %v16090_v38  ;;  %v6966_v37 = vsel %vm1164_vm2, %v6932_v53, 0.0  ;;  %v6969_v47 = vsel %vm1164_vm2, %v6933_v60, 0.0  ;;  %v6930_v11 = vmul.f32 %v16106_v51, %v6912_v20 }
0x124b   : > { %v13399_v34 = vpop.eup %13398  ;;  %v7124_v38 = vrot.slane %v16145_v56, %v14185_v28  ;;  %v6963_v54 = vsel %vm1164_vm2, %v6931_v2, 0.0  ;;  %v13638_v2 = vld [vmem:[%s16997_s6] sm:$0xff] }
0x124c   : > { %v6911_v63 = vmul.f32 %v13399_v34, %v16094_v16  ;;  %v6960_v49 = vsel %vm1164_vm2, %v6930_v11, 0.0 }
0x124d   : > { %v13401_v13 = vpop.eup %13400  ;;  %v7125_v10 = vmul.f32 %v7124_v38, %v7119_v55 }
0x124e   : > { %6943 = vadd.xlane.f32.xlu0 %v6942_v33  ;;  %6946 = vadd.xlane.f32.xlu1 %v6945_v42  ;;  %v7120_v16 = vmul.f32 %v13401_v13, %v16098_v58  ;;  %v6929_v9 = vmul.f32 %v16106_v51, %v6911_v63 }
0x124f   : > { %v7127_v18 = vsel %vm1164_vm2, %v7125_v10, 0.0 }
0x1250   : > { %v6957_v29 = vsel %vm1164_vm2, %v6929_v9, 0.0  ;;  %v7126_v33 = vmul.f32 %v7124_v38, %v7120_v16 }
0x1252   : > { %6937 = vadd.xlane.f32.xlu0 %v6936_v45  ;;  %6940 = vadd.xlane.f32.xlu1 %v6939_v35  ;;  %v7130_v42 = vsel %vm1164_vm2, %v7126_v33, 0.0 }
0x1256   : > { %6973 = vadd.xlane.f32.xlu0 %v6972_v25  ;;  %6976 = vadd.xlane.f32.xlu1 %v6975_v14 }
0x125a   : > { %6967 = vadd.xlane.f32.xlu0 %v6966_v37  ;;  %6970 = vadd.xlane.f32.xlu1 %v6969_v47 }
0x125e   : > { %6961 = vadd.xlane.f32.xlu0 %v6960_v49  ;;  %6964 = vadd.xlane.f32.xlu1 %v6963_v54  ;;  %v7136_v54 = vrot.slane %v16145_v56, %v14324_v4 }
0x1262   : > { %7128 = vadd.xlane.f32.xlu0 %v7127_v18  ;;  %6958 = vadd.xlane.f32.xlu1 %v6957_v29 }
0x1266   : > { %7131 = vadd.xlane.f32.xlu1 %v7130_v42 }
0x1298   : > { %v7557_v58 = vpop.permute.xlu1 %7556 }
0x1299   : > { %v7559_v57 = vpop.permute.xlu0 %7558  ;;  %12487 = vmatprep.mubr.msk.f32.mxu1 %vm1164_vm2, %v7557_v58 }
0x129a   : > { %12488 = vmatmul.mubr.msk.f32.vlgmr.msra.gmra.mxu1 %vm1164_vm2, %v7559_v57  ;;  %v7553_v57 = vrot.slane %v16081_v17, %v14690_v32  ;;  %v13643_v17 = vld [vmem:[%s16994_s3 + $0x20] sm:$0xff] }
0x129b   : > { %12515 = vmatprep.mubr.msk.f32.mxu1 %vm13731_vm1, %v17017_v24 }
0x12cf   : > { %v6953_v51 = vpop.xlane.xlu0 %6952 }
0x12d0   : > { %v6983_v62 = vmul.f32 %v6953_v51, %v15680_v61 }
0x12d2   : > { %v10664_v22 = vclamps-f32 %v6983_v62, 100.0 }
0x12d3   : > { %v6950_v45 = vpop.xlane.xlu0 %6949  ;;  %v6956_v35 = vpop.xlane.xlu1 %6955 }
0x12d4   : > { %v6984_v30 = vmul.f32 %v6956_v35, %v15685_v41  ;;  %v6982_v6 = vmul.f32 %v6950_v45, %v15675_v48 }
0x12d6   : > { %v10665_v8 = vclamps-f32 %v6984_v30, 100.0  ;;  %v10663_v34 = vclamps-f32 %v6982_v6, 100.0 }
0x12d7   : > { %v6944_v15 = vpop.xlane.xlu0 %6943  ;;  %v6947_v40 = vpop.xlane.xlu1 %6946 }
0x12d8   : > { %v6981_v20 = vmul.f32 %v6947_v40, %v15670_v50  ;;  %12418 = vmatpush3.msra.mxu0 %v10665_v8  ;;  %v6980_v25 = vmul.f32 %v6944_v15, %v15665_v43  ;;  %v13640_v8 = vld [vmem:[%s16994_s3 + $0x8] sm:$0xff]  ;;  %v13645_v40 = vld [vmem:[%s16994_s3 + $0x30] sm:$0xff] }
0x12d9   : > { %12419 = vmatprep.subr.mxu0 %v17017_v24  ;;  %v13644_v15 = vld [vmem:[%s16994_s3 + $0x28] sm:$0xff] }
0x12da   : > { %12420 = vmatpush3.msra.mxu0 %v10664_v22  ;;  %v10662_v41 = vclamps-f32 %v6981_v20, 100.0  ;;  %v10661_v53 = vclamps-f32 %v6980_v25, 100.0  ;;  %v13646_v22 = vld [vmem:[%s16994_s3 + $0x38] sm:$0xff]  ;;  %v13647_v20 = vld [vmem:[%s16994_s3 + $0x40] sm:$0xff]  ;;  %v13649_v25 = vld [vmem:[%s16994_s3 + $0x50] sm:$0xff] }
0x12db   : > { %v6938_v14 = vpop.xlane.xlu0 %6937  ;;  %12421 = vmatprep.subr.mxu0 %v17017_v24  ;;  %v6941_v61 = vpop.xlane.xlu1 %6940 }
0x12dc   : > { %v6979_v48 = vmul.f32 %v6941_v61, %v15660_v12  ;;  %12422 = vmatpush3.msra.mxu0 %v10663_v34  ;;  %v6978_v50 = vmul.f32 %v6938_v14, %v15655_v27  ;;  %v13648_v34 = vld [vmem:[%s16994_s3 + $0x48] sm:$0xff]  ;;  %v13650_v14 = vld [vmem:[%s16994_s3 + $0x58] sm:$0xff]  ;;  %v13651_v61 = vld [vmem:[%s16994_s3 + $0x60] sm:$0xff] }
0x12dd   : > { %12423 = vmatprep.subr.mxu0 %v17017_v24 }
0x12de   : > { %12424 = vmatpush3.msra.mxu0 %v10662_v41  ;;  %v10660_v43 = vclamps-f32 %v6979_v48, 100.0  ;;  %v10659_v13 = vclamps-f32 %v6978_v50, 100.0  ;;  %v13652_v41 = vld [vmem:[%s16994_s3 + $0x68] sm:$0xff] }
0x12df   : > { %v6974_v60 = vpop.xlane.xlu0 %6973  ;;  %v6977_v55 = vpop.xlane.xlu1 %6976  ;;  %12425 = vmatprep.subr.mxu0 %v17017_v24 }
0x12e0   : > { %v6991_v63 = vmul.f32 %v6977_v55, %v15723_v21  ;;  %12426 = vmatpush3.msra.mxu0 %v10661_v53  ;;  %v6990_v12 = vmul.f32 %v6974_v60, %v15715_v44  ;;  %v13653_v53 = vld [vmem:[%s14774_s24] sm:$0xff] }
0x12e1   : > { %12427 = vmatprep.subr.mxu0 %v17017_v24 }
0x12e2   : > { %12428 = vmatpush3.msra.mxu0 %v10660_v43  ;;  %v10672_v27 = vclamps-f32 %v6991_v63, 100.0  ;;  %v10671_v21 = vclamps-f32 %v6990_v12, 100.0  ;;  %v10694_v12 = vld [vmem:[%s17000_s9 + $0xf8] sm:$0xff] }
0x12e3   : > { %v6968_v37 = vpop.xlane.xlu0 %6967  ;;  %v6971_v47 = vpop.xlane.xlu1 %6970  ;;  %12429 = vmatprep.subr.mxu0 %v17017_v24 }
0x12e4   : > { %v6989_v11 = vmul.f32 %v6971_v47, %v15710_v52  ;;  %12430 = vmatpush3.msra.mxu0 %v10659_v13  ;;  %v6988_v44 = vmul.f32 %v6968_v37, %v15705_v0  ;;  %v13654_v13 = vld [vmem:[%s16995_s4] sm:$0xff]  ;;  %v13655_v37 = vld [vmem:[%s16995_s4 + $0x8] sm:$0xff]  ;;  %v10693_v47 = vld [vmem:[%s17000_s9 + $0xf0] sm:$0xff] }
0x12e5   : > { %12432 = vmatmul.mubr.msk.f32.vlgmr.msra.gmra.mxu0 %vm2446_vm4, %v13638_v2  ;;  %12451 = vmatprep.subr.mxu0 %v17017_v24 }
0x12e6   : > { %12452 = vmatpush3.msra.mxu0 %v10672_v27  ;;  %12465 = vmatprep.mubr.msk.f32.mxu0 %vm13731_vm1, %v17017_v24  ;;  %v10670_v52 = vclamps-f32 %v6989_v11, 100.0  ;;  %v10669_v10 = vclamps-f32 %v6988_v44, 100.0  ;;  %v10692_v27 = vld [vmem:[%s17000_s9 + $0xe8] sm:$0xff]  ;;  %v13657_v44 = vld [vmem:[%s16995_s4 + $0x10] sm:$0xff] }
0x12e7   : > { %v6962_v38 = vpop.xlane.xlu0 %6961  ;;  %v6965_v16 = vpop.xlane.xlu1 %6964  ;;  %12453 = vmatprep.subr.mxu0 %v17017_v24  ;;  %v13656_v11 = vld [vmem:[%s14774_s24 + $0x8] sm:$0xff] }
0x12e8   : > { %v6987_v49 = vmul.f32 %v6965_v16, %v15700_v19  ;;  %12454 = vmatpush3.msra.mxu0 %v10671_v21  ;;  %v6986_v0 = vmul.f32 %v6962_v38, %v15695_v23  ;;  %v10691_v38 = vld [vmem:[%s17000_s9 + $0xe0] sm:$0xff] }
0x12e9   : > { %12455 = vmatprep.subr.mxu0 %v17017_v24 }
0x12ea   : > { %12456 = vmatpush3.msra.mxu0 %v10670_v52  ;;  %v10668_v29 = vclamps-f32 %v6987_v49, 100.0  ;;  %v10667_v19 = vclamps-f32 %v6986_v0, 100.0  ;;  %v13660_v0 = vld [vmem:[%s16995_s4 + $0x28] sm:$0xff] }
0x12eb   : > { %v7129_v9 = vpop.xlane.xlu0 %7128  ;;  %v6959_v18 = vpop.xlane.xlu1 %6958  ;;  %12457 = vmatprep.subr.mxu0 %v17017_v24 }
0x12ec   : > { %v7137_v33 = vadd.f32 %v7136_v54, %v7129_v9  ;;  %v6985_v42 = vmul.f32 %v6959_v18, %v15690_v5  ;;  %12458 = vmatpush3.msra.mxu0 %v10669_v10  ;;  %v13639_v5 = vld [vmem:[%s16994_s3] sm:$0xff]  ;;  %v13658_v10 = vld [vmem:[%s16995_s4 + $0x18] sm:$0xff]  ;;  %v13661_v9 = vld [vmem:[%s16995_s4 + $0x30] sm:$0xff] }
0x12ed   : > { %12459 = vmatprep.subr.mxu0 %v17017_v24  ;;  %v10689_v18 = vld [vmem:[%s17000_s9 + $0xd0] sm:$0xff] }
0x12ee   : > { %7421 = vperm.xlu0 %12848, %v7137_v33   ;;  %12460 = vmatpush3.msra.mxu0 %v10668_v29  ;;  %v10666_v58 = vclamps-f32 %v6985_v42, 100.0  ;;  %v10688_v29 = vld [vmem:[%s17000_s9 + $0xc8] sm:$0xff]  ;;  %v10687_v33 = vld [vmem:[%s17000_s9 + $0xc0] sm:$0xff] }
0x12ef   : > { %v7132_v56 = vpop.xlane.xlu1 %7131  ;;  %12461 = vmatprep.subr.mxu0 %v17017_v24 }
0x12f0   : > { %v7138_v23 = vadd.f32 %v7136_v54, %v7132_v56  ;;  %12462 = vmatpush3.msra.mxu0 %v10667_v19  ;;  %v10690_v54 = vld [vmem:[%s17000_s9 + $0xd8] sm:$0xff] }
0x12f1   : > { %12463 = vmatprep.subr.mxu0 %v17017_v24 }
0x12f2   : > { %7426 = vperm.xlu1 %12849, %v7138_v23   ;;  %12464 = vmatpush3.msra.mxu0 %v10666_v58 }
0x12f3   : > { %12466 = vmatmul.mubr.msk.f32.vlgmr.msra.gmra.mxu0 %vm2446_vm4, %v13638_v2 }
0x12f4   : > { %12492 = vmatprep.mubr.msk.f32.mxu0 %vm573_vm0, %v13639_v5 }
0x135a   : > { %v12489_v51 = vpop.f32.mrf.mxu1 }
0x135b   : > { %v7636_v35 = vadd.f32 %v12489_v51, %v7553_v57 }
0x135c   : > { %v7630_v45 = vpop.f32.mrf.mxu1 }
0x135d   : > { %v7631_v62 = vadd.f32 %v7630_v45, %v7553_v57  ;;  %v16210_v6 = vadd.f32 %v7636_v35, %v15459_v36  ;;  %v13642_v36 = vld [vmem:[%s16994_s3 + $0x18] sm:$0xff] }
0x135f   : > { %v16207_v30 = vadd.f32 %v7631_v62, %v15456_v1  ;;  %v13641_v1 = vld [vmem:[%s16994_s3 + $0x10] sm:$0xff] }
0x1361   : > { %12490 = vmatprep.subr.mxu0 %v16207_v30 }
0x1362   : > { %12491 = vmatpush3.msra.mxu0 %v16207_v30 }
0x1363   : > { %12493 = vmatmul.mubr.msk.f32.vlgmr.msra.gmra.mxu0 %vm573_vm0, %v13640_v8  ;;  %12536 = vmatprep.subr.mxu0 %v16210_v6 }
0x1364   : > { %12537 = vmatpush3.msra.mxu0 %v16210_v6  ;;  %12495 = vmatprep.mubr.msk.f32.mxu0 %vm573_vm0, %v13641_v1 }
0x1365   : > { %12582 = vmatprep.subr.mxu0 %v10694_v12 }
0x1367   : > { %12496 = vmatmul.mubr.msk.f32.gmra.mxu0 %vm573_vm0, %v13642_v36 }
0x1368   : > { %12498 = vmatprep.mubr.msk.f32.mxu0 %vm573_vm0, %v13643_v17 }
0x1369   : > { %v7422_v48 = vpop.permute.xlu0 %7421 }
0x136a   : > { %v7429_v50 = vmul.f32 %v13653_v53, %v7422_v48 }
0x136b   : > { %12499 = vmatmul.mubr.msk.f32.gmra.mxu0 %vm573_vm0, %v13644_v15 }
0x136c   : > { %12501 = vmatprep.mubr.msk.f32.mxu0 %vm573_vm0, %v13645_v40 }
0x136f   : > { %12502 = vmatmul.mubr.msk.f32.gmra.mxu0 %vm573_vm0, %v13646_v22 }
0x1370   : > { %12504 = vmatprep.mubr.msk.f32.mxu0 %vm573_vm0, %v13647_v20 }
0x1373   : > { %12505 = vmatmul.mubr.msk.f32.gmra.mxu0 %vm573_vm0, %v13648_v34 }
0x1374   : > { %12507 = vmatprep.mubr.msk.f32.mxu0 %vm573_vm0, %v13649_v25 }
0x1377   : > { %12508 = vmatmul.mubr.msk.f32.gmra.mxu0 %vm573_vm0, %v13650_v14 }
0x1378   : > { %12510 = vmatprep.mubr.msk.f32.mxu0 %vm573_vm0, %v13651_v61 }
0x137b   : > { %12511 = vmatmul.mubr.msk.f32.gmra.mxu0 %vm573_vm0, %v13652_v41 }
0x137c   : > { %12538 = vmatprep.mubr.msk.f32.mxu0 %vm573_vm0, %v13639_v5 }
0x137f   : > { %12539 = vmatmul.mubr.msk.f32.vlgmr.msra.gmra.mxu0 %vm573_vm0, %v13640_v8 }
0x1380   : > { %12541 = vmatprep.mubr.msk.f32.mxu0 %vm573_vm0, %v13641_v1  ;;  %12583 = vmatpush3.msra.mxu0 %v10694_v12 }
0x1381   : > { %12584 = vmatprep.subr.mxu0 %v10693_v47 }
0x1382   : > { %12585 = vmatpush3.msra.mxu0 %v10693_v47 }
0x1383   : > { %12542 = vmatmul.mubr.msk.f32.gmra.mxu0 %vm573_vm0, %v13642_v36  ;;  %12586 = vmatprep.subr.mxu0 %v10692_v27 }
0x1384   : > { %12544 = vmatprep.mubr.msk.f32.mxu0 %vm573_vm0, %v13643_v17  ;;  %12587 = vmatpush3.msra.mxu0 %v10692_v27 }
0x1385   : > { %12588 = vmatprep.subr.mxu0 %v10691_v38 }
0x1386   : > { %12589 = vmatpush3.msra.mxu0 %v10691_v38 }
0x1387   : > { %12545 = vmatmul.mubr.msk.f32.gmra.mxu0 %vm573_vm0, %v13644_v15 }
0x1388   : > { %12547 = vmatprep.mubr.msk.f32.mxu0 %vm573_vm0, %v13645_v40 }
0x138b   : > { %12548 = vmatmul.mubr.msk.f32.gmra.mxu0 %vm573_vm0, %v13646_v22 }
0x138c   : > { %12550 = vmatprep.mubr.msk.f32.mxu0 %vm573_vm0, %v13647_v20 }
0x138f   : > { %12551 = vmatmul.mubr.msk.f32.gmra.mxu0 %vm573_vm0, %v13648_v34 }
0x1390   : > { %12553 = vmatprep.mubr.msk.f32.mxu0 %vm573_vm0, %v13649_v25 }
0x1393   : > { %12554 = vmatmul.mubr.msk.f32.gmra.mxu0 %vm573_vm0, %v13650_v14 }
0x1394   : > { %12556 = vmatprep.mubr.msk.f32.mxu0 %vm573_vm0, %v13651_v61 }
0x1397   : > { %12557 = vmatmul.mubr.msk.f32.gmra.mxu0 %vm573_vm0, %v13652_v41 }
0x13a5   : > { %v7275_v60 = vpop.f32.mrf.mxu0 }
0x13a6   : > { %v7431_v55 = vadd.f32 %v7429_v50, %v7275_v60 }
0x13a7   : > { %v12433_v43 = vpop.f32.mrf.mxu0 }
0x13a8   : > { %v16284_v63 = vadd.f32 %v7431_v55, %v15533_v59  ;;  %v7427_v59 = vpop.permute.xlu1 %7426 }
0x13a9   : > { %v7430_v2 = vmul.f32 %v13656_v11, %v7427_v59 }
0x13aa   : > { %12514 = vmatpush3.msra.mxu1 %v16284_v63 }
0x13ab   : > { %12516 = vmatmul.mubr.msk.f32.vlgmr.msra.gmra.mxu1 %vm573_vm0, %v13654_v13  ;;  %12559 = vmatprep.subr.mxu1 %v17017_v24 }
0x13ac   : > { %12518 = vmatprep.mubr.msk.f32.mxu1 %vm13731_vm1, %v17017_v24 }
0x13af   : > { %12519 = vmatmul.mubr.msk.f32.gmra.mxu1 %vm573_vm0, %v13655_v37 }
0x13b0   : > { %12521 = vmatprep.mubr.msk.f32.mxu1 %vm13731_vm1, %v17017_v24 }
0x13b3   : > { %v7415_v21 = vpop.f32.mrf.mxu0  ;;  %12522 = vmatmul.mubr.msk.f32.gmra.mxu1 %vm573_vm0, %v13657_v44 }
0x13b4   : > { %v7432_v16 = vadd.f32 %v7430_v2, %v7415_v21  ;;  %12524 = vmatprep.mubr.msk.f32.mxu1 %vm13731_vm1, %v17017_v24 }
0x13b5   : > { %v12467_v52 = vpop.f32.mrf.mxu0 }
0x13b6   : > { %v16320_v49 = vadd.f32 %v7432_v16, %v15569_v3  ;;  %v13659_v3 = vld [vmem:[%s16995_s4 + $0x20] sm:$0xff] }
0x13b7   : > { %12525 = vmatmul.mubr.msk.f32.gmra.mxu1 %vm573_vm0, %v13658_v10 }
0x13b8   : > { %12560 = vmatpush3.msra.mxu1 %v16320_v49  ;;  %12527 = vmatprep.mubr.msk.f32.mxu1 %vm13731_vm1, %v17017_v24 }
0x13b9   : > { %12611 = vmatprep.subr.mxu1 %v10690_v54 }
0x13bb   : > { %12528 = vmatmul.mubr.msk.f32.gmra.mxu1 %vm573_vm0, %v13659_v3 }
0x13bc   : > { %12530 = vmatprep.mubr.msk.f32.mxu1 %vm13731_vm1, %v17017_v24 }
0x13bf   : > { %12531 = vmatmul.mubr.msk.f32.gmra.mxu1 %vm573_vm0, %v13660_v0 }
0x13c0   : > { %12533 = vmatprep.mubr.msk.f32.mxu1 %vm13731_vm1, %v17017_v24 }
0x13c3   : > { %12534 = vmatmul.mubr.msk.f32.gmra.mxu1 %vm573_vm0, %v13661_v9 }
0x13c4   : > { %12561 = vmatprep.mubr.msk.f32.mxu1 %vm13731_vm1, %v17017_v24 }
0x13c7   : > { %12562 = vmatmul.mubr.msk.f32.vlgmr.msra.gmra.mxu1 %vm573_vm0, %v13654_v13 }
0x13c8   : > { %12564 = vmatprep.mubr.msk.f32.mxu1 %vm13731_vm1, %v17017_v24  ;;  %12612 = vmatpush3.msra.mxu1 %v10690_v54 }
0x13c9   : > { %12613 = vmatprep.subr.mxu1 %v10689_v18 }
0x13ca   : > { %12614 = vmatpush3.msra.mxu1 %v10689_v18 }
0x13cb   : > { %12565 = vmatmul.mubr.msk.f32.gmra.mxu1 %vm573_vm0, %v13655_v37  ;;  %12615 = vmatprep.subr.mxu1 %v10688_v29 }
0x13cc   : > { %12567 = vmatprep.mubr.msk.f32.mxu1 %vm13731_vm1, %v17017_v24  ;;  %12616 = vmatpush3.msra.mxu1 %v10688_v29 }
0x13cd   : > { %12617 = vmatprep.subr.mxu1 %v10687_v33 }
0x13ce   : > { %12618 = vmatpush3.msra.mxu1 %v10687_v33 }
0x13cf   : > { %12568 = vmatmul.mubr.msk.f32.gmra.mxu1 %vm573_vm0, %v13657_v44 }
0x13d0   : > { %12570 = vmatprep.mubr.msk.f32.mxu1 %vm13731_vm1, %v17017_v24 }
0x13d3   : > { %12571 = vmatmul.mubr.msk.f32.gmra.mxu1 %vm573_vm0, %v13658_v10 }
0x13d4   : > { %12573 = vmatprep.mubr.msk.f32.mxu1 %vm13731_vm1, %v17017_v24 }
0x13d7   : > { %12574 = vmatmul.mubr.msk.f32.gmra.mxu1 %vm573_vm0, %v13659_v3 }
0x13d8   : > { %12576 = vmatprep.mubr.msk.f32.mxu1 %vm13731_vm1, %v17017_v24 }
0x13db   : > { %12577 = vmatmul.mubr.msk.f32.gmra.mxu1 %vm573_vm0, %v13660_v0 }
0x13dc   : > { %12579 = vmatprep.mubr.msk.f32.mxu1 %vm13731_vm1, %v17017_v24 }
0x13df   : > { %12580 = vmatmul.mubr.msk.f32.gmra.mxu1 %vm573_vm0, %v13661_v9 }
0x1423   : > { %v12494_v42 = vpop.f32.mrf.mxu0 }
0x1425   : > { %v7741_v19 = vpop.f32.mrf.mxu0 }
0x1426   : > { %12619 = vmatprep.mubr.msk.f32.mxu1 %vm1164_vm2, %v7741_v19 }
0x1427   : > { %v12497_v56 = vpop.f32.mrf.mxu0  ;;  %12620 = vmatmul.mubr.msk.f32.vlgmr.msra.gmra.mxu1 %vm1164_vm2, %v12494_v42 }
0x1429   : > { %v7751_v58 = vpop.f32.mrf.mxu0 }
0x142a   : > { %12622 = vmatprep.mubr.msk.f32.mxu1 %vm1164_vm2, %v7751_v58 }
0x142b   : > { %v12500_v23 = vpop.f32.mrf.mxu0  ;;  %12623 = vmatmul.mubr.msk.f32.gmra.mxu1 %vm1164_vm2, %v12497_v56 }
0x142d   : > { %v7761_v5 = vpop.f32.mrf.mxu0 }
0x142e   : > { %12625 = vmatprep.mubr.msk.f32.mxu1 %vm1164_vm2, %v7761_v5 }
0x142f   : > { %v12503_v57 = vpop.f32.mrf.mxu0  ;;  %12626 = vmatmul.mubr.msk.f32.gmra.mxu1 %vm1164_vm2, %v12500_v23 }
0x1430   : > { %12590 = vmatprep.mubr.msk.f32.mxu0 %vm1164_vm2, %v12503_v57 }
0x1431   : > { %v7771_v51 = vpop.f32.mrf.mxu0 }
0x1432   : > { %12628 = vmatprep.mubr.msk.f32.mxu1 %vm1164_vm2, %v7771_v51 }
0x1433   : > { %v12506_v45 = vpop.f32.mrf.mxu0 }
0x1435   : > { %v7781_v35 = vpop.f32.mrf.mxu0 }
0x1436   : > { %12591 = vmatmul.mubr.msk.f32.vlgmr.msra.gmra.mxu0 %vm1164_vm2, %v7781_v35 }
0x1437   : > { %v12509_v62 = vpop.f32.mrf.mxu0  ;;  %12593 = vmatprep.mubr.msk.f32.mxu0 %vm1164_vm2, %v12506_v45 }
0x1439   : > { %v7791_v8 = vpop.f32.mrf.mxu0 }
0x143a   : > { %12594 = vmatmul.mubr.msk.f32.gmra.mxu0 %vm1164_vm2, %v7791_v8 }
0x143b   : > { %v12512_v1 = vpop.f32.mrf.mxu0  ;;  %12596 = vmatprep.mubr.msk.f32.mxu0 %vm1164_vm2, %v12509_v62 }
0x143d   : > { %v7801_v36 = vpop.f32.mrf.mxu0 }
0x143e   : > { %12597 = vmatmul.mubr.msk.f32.gmra.mxu0 %vm1164_vm2, %v7801_v36 }
0x143f   : > { %v12540_v17 = vpop.f32.mrf.mxu0  ;;  %12599 = vmatprep.mubr.msk.f32.mxu0 %vm1164_vm2, %v12512_v1 }
0x1441   : > { %v7976_v15 = vpop.f32.mrf.mxu0 }
0x1442   : > { %12629 = vmatmul.mubr.msk.f32.gmra.mxu1 %vm1164_vm2, %v7976_v15 }
0x1443   : > { %v12543_v40 = vpop.f32.mrf.mxu0  ;;  %12631 = vmatprep.mubr.msk.f32.mxu1 %vm1164_vm2, %v12540_v17 }
0x1445   : > { %v7986_v22 = vpop.f32.mrf.mxu0 }
0x1446   : > { %12632 = vmatmul.mubr.msk.f32.gmra.mxu1 %vm1164_vm2, %v7986_v22 }
0x1447   : > { %v12546_v20 = vpop.f32.mrf.mxu0  ;;  %12634 = vmatprep.mubr.msk.f32.mxu1 %vm1164_vm2, %v12543_v40 }
0x1449   : > { %v7996_v34 = vpop.f32.mrf.mxu0 }
0x144a   : > { %12635 = vmatmul.mubr.msk.f32.gmra.mxu1 %vm1164_vm2, %v7996_v34 }
0x144b   : > { %v12549_v25 = vpop.f32.mrf.mxu0  ;;  %12637 = vmatprep.mubr.msk.f32.mxu1 %vm1164_vm2, %v12546_v20 }
0x144c   : > { %12600 = vmatmul.mubr.msk.f32.gmra.mxu0 %vm1164_vm2, %v12549_v25 }
0x144d   : > { %v8006_v14 = vpop.f32.mrf.mxu0 }
0x144e   : > { %12638 = vmatmul.mubr.msk.f32.gmra.mxu1 %vm1164_vm2, %v8006_v14 }
0x144f   : > { %v12552_v61 = vpop.f32.mrf.mxu0 }
0x1451   : > { %v8016_v41 = vpop.f32.mrf.mxu0 }
0x1452   : > { %12602 = vmatprep.mubr.msk.f32.mxu0 %vm1164_vm2, %v8016_v41 }
0x1453   : > { %v12555_v48 = vpop.f32.mrf.mxu0  ;;  %12603 = vmatmul.mubr.msk.f32.gmra.mxu0 %vm1164_vm2, %v12552_v61 }
0x1455   : > { %v8026_v53 = vpop.f32.mrf.mxu0 }
0x1456   : > { %12605 = vmatprep.mubr.msk.f32.mxu0 %vm1164_vm2, %v8026_v53 }
0x1457   : > { %v12558_v50 = vpop.f32.mrf.mxu0  ;;  %12606 = vmatmul.mubr.msk.f32.gmra.mxu0 %vm1164_vm2, %v12555_v48 }
0x1459   : > { %v8036_v60 = vpop.f32.mrf.mxu0 }
0x145a   : > { %12608 = vmatprep.mubr.msk.f32.mxu0 %vm1164_vm2, %v8036_v60 }
0x145b   : > { %12609 = vmatmul.mubr.msk.f32.gmra.mxu0 %vm1164_vm2, %v12558_v50 }
0x146b   : > { %v16406_v55 = vpop.f32.mrf.mxu1 }
0x146c   : > { %v8145_v43 = vmul.f32 %v16406_v55, %v16406_v55 }
0x146d   : > { %v12517_v13 = vpop.f32.mrf.mxu1 }
0x146e   : > { %v8159_v12 = vsel %vm1121_vm3, %v8145_v43, 0.0  ;;  %v10702_v43 = vld [vmem:[%s17002_s11 + $0x198] sm:$0xff] }
0x146f   : > { %8160 = vadd.xlane.f32.xlu1 %v8159_v12  ;;  %v16411_v59 = vpop.f32.mrf.mxu1  ;;  %12640 = vmatprep.subr.mxu0 %v10702_v43 }
0x1470   : > { %v8146_v37 = vmul.f32 %v16411_v59, %v16411_v59  ;;  %12641 = vmatpush3.msra.mxu0 %v10702_v43 }
0x1471   : > { %v12520_v47 = vpop.f32.mrf.mxu1 }
0x1472   : > { %v8162_v27 = vsel %vm1121_vm3, %v8146_v37, 0.0  ;;  %v10701_v37 = vld [vmem:[%s17002_s11 + $0x190] sm:$0xff] }
0x1473   : > { %8163 = vadd.xlane.f32.xlu0 %v8162_v27  ;;  %v16416_v11 = vpop.f32.mrf.mxu1  ;;  %12642 = vmatprep.subr.mxu0 %v10701_v37 }
0x1474   : > { %v8147_v2 = vmul.f32 %v16416_v11, %v16416_v11  ;;  %12643 = vmatpush3.msra.mxu0 %v10701_v37 }
0x1475   : > { %v12523_v21 = vpop.f32.mrf.mxu1 }
0x1476   : > { %v8165_v44 = vsel %vm1121_vm3, %v8147_v2, 0.0  ;;  %v10700_v2 = vld [vmem:[%s17002_s11 + $0x188] sm:$0xff] }
0x1477   : > { %8166 = vadd.xlane.f32.xlu0 %v8165_v44  ;;  %v16421_v38 = vpop.f32.mrf.mxu1  ;;  %12644 = vmatprep.subr.mxu0 %v10700_v2  ;;  %v10699_v44 = vld [vmem:[%s17002_s11 + $0x180] sm:$0xff] }
0x1478   : > { %v8148_v16 = vmul.f32 %v16421_v38, %v16421_v38  ;;  %12645 = vmatpush3.msra.mxu0 %v10700_v2 }
0x1479   : > { %v12526_v52 = vpop.f32.mrf.mxu1  ;;  %12646 = vmatprep.subr.mxu0 %v10699_v44 }
0x147a   : > { %v8168_v54 = vsel %vm1121_vm3, %v8148_v16, 0.0  ;;  %12647 = vmatpush3.msra.mxu0 %v10699_v44  ;;  %v16491_v16 = vld [vmem:[%s17001_s10 + $0x78] sm:$0xff]  ;;  %v16497_v52 = vld [vmem:[%s17003_s12 + $0x30] sm:$0xff] }
0x147b   : > { %8169 = vadd.xlane.f32.xlu1 %v8168_v54  ;;  %v16426_v10 = vpop.f32.mrf.mxu1  ;;  %12698 = vmatprep.subr.mxu0 %v16491_v16 }
0x147c   : > { %v8149_v3 = vmul.f32 %v16426_v10, %v16426_v10 }
0x147d   : > { %v12529_v0 = vpop.f32.mrf.mxu1 }
0x147e   : > { %v8171_v9 = vsel %vm1121_vm3, %v8149_v3, 0.0  ;;  %v16501_v3 = vrot.slane %v16497_v52, %v14177_v26 }
0x147f   : > { %8172 = vadd.xlane.f32.xlu0 %v8171_v9  ;;  %v16431_v18 = vpop.f32.mrf.mxu1 }
0x1480   : > { %v8150_v29 = vmul.f32 %v16431_v18, %v16431_v18 }
0x1481   : > { %v12532_v33 = vpop.f32.mrf.mxu1 }
0x1482   : > { %v8174_v42 = vsel %vm1121_vm3, %v8150_v29, 0.0 }
0x1483   : > { %8175 = vadd.xlane.f32.xlu1 %v8174_v42  ;;  %v16436_v19 = vpop.f32.mrf.mxu1 }
0x1484   : > { %v8151_v56 = vmul.f32 %v16436_v19, %v16436_v19 }
0x1485   : > { %v12535_v58 = vpop.f32.mrf.mxu1 }
0x1486   : > { %v8177_v23 = vsel %vm1121_vm3, %v8151_v56, 0.0  ;;  %v16505_v56 = vrot.slane %v16497_v52, %v14185_v28 }
0x1487   : > { %8178 = vadd.xlane.f32.xlu0 %v8177_v23  ;;  %v16441_v5 = vpop.f32.mrf.mxu1 }
0x1488   : > { %v8152_v57 = vmul.f32 %v16441_v5, %v16441_v5 }
0x1489   : > { %v12563_v51 = vpop.f32.mrf.mxu1 }
0x148a   : > { %v8180_v45 = vsel %vm1121_vm3, %v8152_v57, 0.0 }
0x148b   : > { %8181 = vadd.xlane.f32.xlu1 %v8180_v45  ;;  %v16446_v35 = vpop.f32.mrf.mxu1 }
0x148c   : > { %v8153_v62 = vmul.f32 %v16446_v35, %v16446_v35 }
0x148d   : > { %v12566_v8 = vpop.f32.mrf.mxu1 }
0x148e   : > { %v8183_v1 = vsel %vm1121_vm3, %v8153_v62, 0.0 }
0x148f   : > { %8184 = vadd.xlane.f32.xlu0 %v8183_v1  ;;  %v16451_v36 = vpop.f32.mrf.mxu1 }
0x1490   : > { %v8154_v17 = vmul.f32 %v16451_v36, %v16451_v36 }
0x1491   : > { %v12569_v15 = vpop.f32.mrf.mxu1 }
0x1492   : > { %v8186_v40 = vsel %vm1121_vm3, %v8154_v17, 0.0 }
0x1493   : > { %8187 = vadd.xlane.f32.xlu1 %v8186_v40  ;;  %v16456_v22 = vpop.f32.mrf.mxu1 }
0x1494   : > { %v8155_v20 = vmul.f32 %v16456_v22, %v16456_v22 }
0x1495   : > { %v12572_v34 = vpop.f32.mrf.mxu1 }
0x1496   : > { %v8189_v25 = vsel %vm1121_vm3, %v8155_v20, 0.0 }
0x1497   : > { %8190 = vadd.xlane.f32.xlu0 %v8189_v25  ;;  %v16461_v14 = vpop.f32.mrf.mxu1 }
0x1498   : > { %v8156_v61 = vmul.f32 %v16461_v14, %v16461_v14 }
0x1499   : > { %v12575_v41 = vpop.f32.mrf.mxu1 }
0x149a   : > { %v8192_v48 = vsel %vm1121_vm3, %v8156_v61, 0.0 }
0x149b   : > { %8193 = vadd.xlane.f32.xlu1 %v8192_v48  ;;  %v16466_v53 = vpop.f32.mrf.mxu1 }
0x149c   : > { %v8157_v50 = vmul.f32 %v16466_v53, %v16466_v53 }
0x149d   : > { %v12578_v60 = vpop.f32.mrf.mxu1 }
0x149e   : > { %v8195_v13 = vsel %vm1121_vm3, %v8157_v50, 0.0 }
0x149f   : > { %8196 = vadd.xlane.f32.xlu0 %v8195_v13  ;;  %v16474_v12 = vpop.f32.mrf.mxu1 }
0x14a0   : > { %v8158_v47 = vmul.f32 %v16474_v12, %v16474_v12 }
0x14a1   : > { %v12581_v27 = vpop.f32.mrf.mxu1 }
0x14a2   : > { %v8198_v21 = vsel %vm1121_vm3, %v8158_v47, 0.0 }
0x14a3   : > { %8199 = vadd.xlane.f32.xlu1 %v8198_v21 }
0x14e7   : > { %v12621_v54 = vpop.f32.mrf.mxu1 }
0x14e9   : > { %v8486_v9 = vpop.f32.mrf.mxu1 }
0x14eb   : > { %v12624_v51 = vpop.f32.mrf.mxu1 }
0x14ed   : > { %v8496_v40 = vpop.f32.mrf.mxu1 }
0x14ef   : > { %v12627_v60 = vpop.f32.mrf.mxu1 }
0x14f1   : > { %v8506_v44 = vpop.f32.mrf.mxu1 }
0x14f6   : > { %v12592_v0 = vpop.f32.mrf.mxu0 }
0x14f7   : > { %v8492_v62 = vadd.f32 %v12621_v54, %v12592_v0 }
0x14f8   : > { %v8309_v29 = vpop.f32.mrf.mxu0  ;;  %v8161_v33 = vpop.xlane.xlu1 %8160 }
0x14f9   : > { %v8487_v42 = vadd.f32 %v8486_v9, %v8309_v29  ;;  %v8559_v58 = vmul.f32 %v16501_v3, %v8161_v33 }
0x14fa   : > { %v12595_v23 = vpop.f32.mrf.mxu0 }
0x14fb   : > { %v8573_v57 = vadd.f32 %v8559_v58, %v8487_v42  ;;  %v8502_v13 = vadd.f32 %v12624_v51, %v12595_v23 }
0x14fc   : > { %v8164_v45 = vpop.xlane.xlu0 %8163  ;;  %v8319_v1 = vpop.f32.mrf.mxu0 }
0x14fd   : > { %v16509_v8 = vadd.f32 %v16505_v56, %v8573_v57  ;;  %v8560_v26 = vmul.f32 %v16501_v3, %v8164_v45  ;;  %v8497_v34 = vadd.f32 %v8496_v40, %v8319_v1 }
0x14fe   : > { %v12598_v41 = vpop.f32.mrf.mxu0 }
0x14ff   : > { %v10787_v17 = vmul.f32 -1.442695, %v16509_v8  ;;  %v8574_v15 = vadd.f32 %v8560_v26, %v8492_v62  ;;  %v8512_v51 = vadd.f32 %v12627_v60, %v12598_v41 }
0x1500   : > { %v8167_v20 = vpop.xlane.xlu0 %8166  ;;  %v8329_v27 = vpop.f32.mrf.mxu0 }
0x1501   : > { %13402 = vpow2.f32 %v10787_v17  ;;  %v16514_v25 = vadd.f32 %v16505_v56, %v8574_v15  ;;  %v8561_v61 = vmul.f32 %v16501_v3, %v8167_v20  ;;  %v8507_v0 = vadd.f32 %v8506_v44, %v8329_v27 }
0x1502   : > { %v12630_v33 = vpop.f32.mrf.mxu1 }
0x1503   : > { %v10788_v48 = vmul.f32 -1.442695, %v16514_v25  ;;  %v8575_v50 = vadd.f32 %v8561_v61, %v8497_v34 }
0x1504   : > { %v8170_v43 = vpop.xlane.xlu1 %8169  ;;  %v8516_v17 = vpop.f32.mrf.mxu1 }
0x1505   : > { %13404 = vpow2.f32 %v10788_v48  ;;  %v16519_v37 = vadd.f32 %v16505_v56, %v8575_v50  ;;  %v8562_v47 = vmul.f32 %v16501_v3, %v8170_v43 }
0x1507   : > { %v10789_v2 = vmul.f32 -1.442695, %v16519_v37  ;;  %v8576_v21 = vadd.f32 %v8562_v47, %v8502_v13 }
0x1508   : > { %v8173_v54 = vpop.xlane.xlu0 %8172 }
0x1509   : > { %13406 = vpow2.f32 %v10789_v2  ;;  %v16524_v9 = vadd.f32 %v16505_v56, %v8576_v21  ;;  %v8563_v29 = vmul.f32 %v16501_v3, %v8173_v54  ;;  %v12633_v2 = vpop.f32.mrf.mxu1 }
0x150b   : > { %v10790_v42 = vmul.f32 -1.442695, %v16524_v9  ;;  %v8577_v58 = vadd.f32 %v8563_v29, %v8507_v0 }
0x150c   : > { %v8176_v23 = vpop.xlane.xlu1 %8175  ;;  %v12601_v57 = vpop.f32.mrf.mxu0 }
0x150d   : > { %13408 = vpow2.f32 %v10790_v42  ;;  %v16529_v45 = vadd.f32 %v16505_v56, %v8577_v58  ;;  %v8564_v62 = vmul.f32 %v16501_v3, %v8176_v23  ;;  %v8522_v21 = vadd.f32 %v12630_v33, %v12601_v57 }
0x150e   : > { %v13403_v26 = vpop.eup %13402  ;;  %v8339_v1 = vpop.f32.mrf.mxu0 }
0x150f   : > { %v8647_v15 = vadd.f32 1.0, %v13403_v26  ;;  %v10791_v40 = vmul.f32 -1.442695, %v16529_v45  ;;  %v8578_v20 = vadd.f32 %v8564_v62, %v8512_v51  ;;  %v8517_v48 = vadd.f32 %v8516_v17, %v8339_v1  ;;  %v8526_v51 = vpop.f32.mrf.mxu1 }
0x1510   : > { %v8179_v34 = vpop.xlane.xlu0 %8178 }
0x1511   : > { %13410 = vrcp.f32 %v8647_v15  ;;  %v16534_v61 = vadd.f32 %v16505_v56, %v8578_v20  ;;  %v8565_v41 = vmul.f32 %v16501_v3, %v8179_v34  ;;  %v12636_v34 = vpop.f32.mrf.mxu1 }
0x1512   : > { %v13405_v50 = vpop.eup %13404  ;;  %13412 = vpow2.f32 %v10791_v40 }
0x1513   : > { %v8648_v60 = vadd.f32 1.0, %v13405_v50  ;;  %v10792_v43 = vmul.f32 -1.442695, %v16534_v61  ;;  %v8579_v13 = vadd.f32 %v8565_v41, %v8517_v48  ;;  %v12604_v47 = vpop.f32.mrf.mxu0 }
0x1514   : > { %v8182_v27 = vpop.xlane.xlu1 %8181  ;;  %v8532_v48 = vadd.f32 %v12633_v2, %v12604_v47 }
0x1515   : > { %13414 = vrcp.f32 %v8648_v60  ;;  %v16539_v44 = vadd.f32 %v16505_v56, %v8579_v13  ;;  %v8566_v54 = vmul.f32 %v16501_v3, %v8182_v27  ;;  %v8349_v29 = vpop.f32.mrf.mxu0 }
0x1516   : > { %v13407_v0 = vpop.eup %13406  ;;  %13416 = vpow2.f32 %v10792_v43  ;;  %v8527_v1 = vadd.f32 %v8526_v51, %v8349_v29 }
0x1517   : > { %v8649_v42 = vadd.f32 1.0, %v13407_v0  ;;  %v10793_v58 = vmul.f32 -1.442695, %v16539_v44  ;;  %v8580_v23 = vadd.f32 %v8566_v54, %v8522_v21  ;;  %v12607_v17 = vpop.f32.mrf.mxu0 }
0x1518   : > { %v8185_v62 = vpop.xlane.xlu0 %8184 }
0x1519   : > { %13418 = vrcp.f32 %v8649_v42  ;;  %v16544_v26 = vadd.f32 %v16505_v56, %v8580_v23  ;;  %v8567_v33 = vmul.f32 %v16501_v3, %v8185_v62  ;;  %v8359_v13 = vpop.f32.mrf.mxu0  ;;  %v8536_v42 = vpop.f32.mrf.mxu1 }
0x151a   : > { %v13409_v57 = vpop.eup %13408  ;;  %13420 = vpow2.f32 %v10793_v58  ;;  %v8537_v23 = vadd.f32 %v8536_v42, %v8359_v13 }
0x151b   : > { %v8650_v15 = vadd.f32 1.0, %v13409_v57  ;;  %v10794_v40 = vmul.f32 -1.442695, %v16544_v26  ;;  %v8581_v20 = vadd.f32 %v8567_v33, %v8527_v1  ;;  %v12610_v62 = vpop.f32.mrf.mxu0 }
0x151c   : > { %v8188_v41 = vpop.xlane.xlu1 %8187 }
0x151d   : > { %13422 = vrcp.f32 %v8650_v15  ;;  %v16549_v50 = vadd.f32 %v16505_v56, %v8581_v20  ;;  %v8568_v60 = vmul.f32 %v16501_v3, %v8188_v41  ;;  %v10697_v41 = vld [vmem:[%s17001_s10 + $0x70] sm:$0xff]  ;;  %v8369_v13 = vpop.f32.mrf.mxu0 }
0x151e   : > { %v13411_v43 = vpop.eup %13410  ;;  %13424 = vpow2.f32 %v10794_v40  ;;  %v12639_v40 = vpop.f32.mrf.mxu1 }
0x151f   : > { %v13413_v27 = vpop.eup %13412  ;;  %v8689_v21 = vmul.f32 %v13411_v43, %v16509_v8  ;;  %v10795_v54 = vmul.f32 -1.442695, %v16549_v50  ;;  %v8582_v0 = vadd.f32 %v8568_v60, %v8532_v48  ;;  %v8542_v48 = vadd.f32 %v12636_v34, %v12607_v17 }
0x1520   : > { %v8651_v29 = vadd.f32 1.0, %v13413_v27  ;;  %v8191_v58 = vpop.xlane.xlu0 %8190  ;;  %v10696_v27 = vld [vmem:[%s17001_s10 + $0x68] sm:$0xff] }
0x1521   : > { %13426 = vpow2.f32 %v10795_v54  ;;  %v16555_v47 = vadd.f32 %v16505_v56, %v8582_v0  ;;  %v8569_v2 = vmul.f32 %v16501_v3, %v8191_v58  ;;  %12648 = vmatprep.mubr.msk.f32.mxu0 %vm1164_vm2, %v8689_v21  ;;  %v10695_v58 = vld [vmem:[%s17001_s10 + $0x60] sm:$0xff] }
0x1522   : > { %v13415_v51 = vpop.eup %13414  ;;  %13428 = vrcp.f32 %v8651_v29  ;;  %v8546_v29 = vpop.f32.mrf.mxu1 }
0x1523   : > { %v13417_v1 = vpop.eup %13416  ;;  %v8690_v8 = vmul.f32 %v13415_v51, %v16514_v25  ;;  %v10796_v33 = vmul.f32 -1.442695, %v16555_v47  ;;  %v8583_v57 = vadd.f32 %v8569_v2, %v8537_v23 }
0x1524   : > { %v8652_v15 = vadd.f32 1.0, %v13417_v1  ;;  %v8194_v20 = vpop.xlane.xlu1 %8193 }
0x1525   : > { %13430 = vpow2.f32 %v10796_v33  ;;  %v16565_v60 = vadd.f32 %v16505_v56, %v8583_v57  ;;  %v8570_v43 = vmul.f32 %v16501_v3, %v8194_v20  ;;  %12649 = vmatmul.mubr.msk.f32.vlgmr.msra.gmra.mxu0 %vm1164_vm2, %v8690_v8  ;;  %v8552_v20 = vadd.f32 %v12639_v40, %v12610_v62 }
0x1526   : > { %v13419_v25 = vpop.eup %13418  ;;  %13432 = vrcp.f32 %v8652_v15  ;;  %12699 = vmatpush3.msra.mxu0 %v16491_v16  ;;  %v8547_v16 = vadd.f32 %v8546_v29, %v8369_v13 }
0x1527   : > { %v13421_v21 = vpop.eup %13420  ;;  %v8691_v17 = vmul.f32 %v13419_v25, %v16519_v37  ;;  %v10797_v34 = vmul.f32 -1.442695, %v16565_v60  ;;  %v8584_v54 = vadd.f32 %v8570_v43, %v8542_v48  ;;  %12700 = vmatprep.subr.mxu0 %v10697_v41 }
0x1528   : > { %v8653_v0 = vadd.f32 1.0, %v13421_v21  ;;  %v8197_v42 = vpop.xlane.xlu0 %8196  ;;  %12701 = vmatpush3.msra.mxu0 %v10697_v41 }
0x1529   : > { %13434 = vpow2.f32 %v10797_v34  ;;  %v16579_v23 = vadd.f32 %v16505_v56, %v8584_v54  ;;  %v8571_v2 = vmul.f32 %v16501_v3, %v8197_v42  ;;  %12651 = vmatprep.mubr.msk.f32.mxu0 %vm1164_vm2, %v8691_v17  ;;  %12702 = vmatprep.subr.mxu0 %v10696_v27 }
0x152a   : > { %v13423_v37 = vpop.eup %13422  ;;  %13436 = vrcp.f32 %v8653_v0  ;;  %12703 = vmatpush3.msra.mxu0 %v10696_v27 }
0x152b   : > { %v13425_v51 = vpop.eup %13424  ;;  %v8692_v1 = vmul.f32 %v13423_v37, %v16524_v9  ;;  %v10798_v8 = vmul.f32 -1.442695, %v16579_v23  ;;  %v8585_v33 = vadd.f32 %v8571_v2, %v8547_v16  ;;  %12704 = vmatprep.subr.mxu0 %v10695_v58 }
0x152c   : > { %v8654_v57 = vadd.f32 1.0, %v13425_v51  ;;  %v8200_v15 = vpop.xlane.xlu1 %8199  ;;  %12705 = vmatpush3.msra.mxu0 %v10695_v58 }
0x152d   : > { %13438 = vpow2.f32 %v10798_v8  ;;  %v8603_v41 = vadd.f32 %v16505_v56, %v8585_v33  ;;  %v8572_v48 = vmul.f32 %v16501_v3, %v8200_v15  ;;  %12652 = vmatmul.mubr.msk.f32.gmra.mxu0 %vm1164_vm2, %v8692_v1  ;;  %12726 = vmatprep.subr.mxu0 %v17017_v24 }
0x152e   : > { %v13427_v43 = vpop.eup %13426  ;;  %13440 = vrcp.f32 %v8654_v57 }
0x152f   : > { %v13429_v9 = vpop.eup %13428  ;;  %v8655_v25 = vadd.f32 1.0, %v13427_v43  ;;  %v10799_v13 = vmul.f32 -1.442695, %v8603_v41  ;;  %v8586_v27 = vadd.f32 %v8572_v48, %v8552_v20 }
0x1530   : > { %v8693_v21 = vmul.f32 %v13429_v9, %v16529_v45 }
0x1531   : > { %13442 = vrcp.f32 %v8655_v25  ;;  %v8604_v62 = vadd.f32 %v16505_v56, %v8586_v27  ;;  %v10703_v25 = vld [vmem:[%s17002_s11 + $0x1a0] sm:$0xff] }
0x1532   : > { %v13431_v40 = vpop.eup %13430  ;;  %13444 = vpow2.f32 %v10799_v13  ;;  %12654 = vmatprep.mubr.msk.f32.mxu0 %vm1164_vm2, %v8693_v21  ;;  %v16629_v13 = vrot.slane %v16497_v52, %v14324_v4 }
0x1533   : > { %v13433_v3 = vpop.eup %13432  ;;  %v8656_v17 = vadd.f32 1.0, %v13431_v40  ;;  %v10800_v34 = vmul.f32 -1.442695, %v8604_v62 }
0x1534   : > { %v8694_v54 = vmul.f32 %v13433_v3, %v16534_v61 }
0x1535   : > { %13446 = vrcp.f32 %v8656_v17 }
0x1536   : > { %v13435_v0 = vpop.eup %13434  ;;  %13448 = vpow2.f32 %v10800_v34  ;;  %12655 = vmatmul.mubr.msk.f32.gmra.mxu0 %vm1164_vm2, %v8694_v54 }
0x1537   : > { %v13437_v29 = vpop.eup %13436  ;;  %v8657_v42 = vadd.f32 1.0, %v13435_v0 }
0x1538   : > { %v8695_v45 = vmul.f32 %v13437_v29, %v16539_v44 }
0x1539   : > { %13450 = vrcp.f32 %v8657_v42 }
0x153a   : > { %v13439_v56 = vpop.eup %13438  ;;  %12657 = vmatprep.mubr.msk.f32.mxu0 %vm1164_vm2, %v8695_v45 }
0x153b   : > { %v13441_v58 = vpop.eup %13440  ;;  %v8658_v16 = vadd.f32 1.0, %v13439_v56 }
0x153c   : > { %v8696_v2 = vmul.f32 %v13441_v58, %v16544_v26 }
0x153d   : > { %13452 = vrcp.f32 %v8658_v16 }
0x153e   : > { %v13443_v37 = vpop.eup %13442  ;;  %12658 = vmatmul.mubr.msk.f32.gmra.mxu0 %vm1164_vm2, %v8696_v2 }
0x153f   : > { %v13445_v61 = vpop.eup %13444  ;;  %v8697_v51 = vmul.f32 %v13443_v37, %v16549_v50 }
0x1540   : > { %v8659_v1 = vadd.f32 1.0, %v13445_v61 }
0x1541   : > { %12660 = vmatprep.mubr.msk.f32.mxu0 %vm1164_vm2, %v8697_v51 }
0x1542   : > { %v13447_v8 = vpop.eup %13446  ;;  %13454 = vrcp.f32 %v8659_v1 }
0x1543   : > { %v13449_v44 = vpop.eup %13448  ;;  %v8698_v33 = vmul.f32 %v13447_v8, %v16555_v47 }
0x1544   : > { %v8660_v57 = vadd.f32 1.0, %v13449_v44 }
0x1545   : > { %12661 = vmatmul.mubr.msk.f32.gmra.mxu0 %vm1164_vm2, %v8698_v33 }
0x1546   : > { %v13451_v15 = vpop.eup %13450  ;;  %13456 = vrcp.f32 %v8660_v57 }
0x1547   : > { %v8699_v26 = vmul.f32 %v13451_v15, %v16565_v60  ;;  %v10706_v60 = vld [vmem:[%s17002_s11 + $0x1b8] sm:$0xff] }
0x1548   : > { %12669 = vmatprep.subr.mxu1 %v10706_v60 }
0x1549   : > { %12663 = vmatprep.mubr.msk.f32.mxu0 %vm1164_vm2, %v8699_v26  ;;  %12670 = vmatpush3.msra.mxu1 %v10706_v60 }
0x154a   : > { %v13453_v20 = vpop.eup %13452 }
0x154b   : > { %v8700_v50 = vmul.f32 %v13453_v20, %v16579_v23  ;;  %v10705_v23 = vld [vmem:[%s17002_s11 + $0x1b0] sm:$0xff] }
0x154c   : > { %12671 = vmatprep.subr.mxu1 %v10705_v23 }
0x154d   : > { %12664 = vmatmul.mubr.msk.f32.gmra.mxu0 %vm1164_vm2, %v8700_v50  ;;  %12672 = vmatpush3.msra.mxu1 %v10705_v23 }
0x154f   : > { %v13455_v48 = vpop.eup %13454 }
0x1550   : > { %v8701_v43 = vmul.f32 %v13455_v48, %v8603_v41  ;;  %v10704_v41 = vld [vmem:[%s17002_s11 + $0x1a8] sm:$0xff] }
0x1551   : > { %12673 = vmatprep.subr.mxu1 %v10704_v41 }
0x1552   : > { %12666 = vmatprep.mubr.msk.f32.mxu0 %vm1164_vm2, %v8701_v43  ;;  %12674 = vmatpush3.msra.mxu1 %v10704_v41 }
0x1553   : > { %v13457_v9 = vpop.eup %13456  ;;  %12675 = vmatprep.subr.mxu1 %v10703_v25 }
0x1554   : > { %v8702_v47 = vmul.f32 %v13457_v9, %v8604_v62  ;;  %12676 = vmatpush3.msra.mxu1 %v10703_v25 }
0x1555   : > { %12709 = vmatprep.subr.mxu1 %v17017_v24 }
0x1556   : > { %12667 = vmatmul.mubr.msk.f32.gmra.mxu0 %vm1164_vm2, %v8702_v47 }
0x1557   : > { %12706 = vmatprep.mubr.msk.f32.mxu0 %vm1164_vm2, %v16207_v30 }
0x155a   : > { %12707 = vmatmul.mubr.msk.f32.vlgmr.msra.gmra.mxu0 %vm1164_vm2, %v16210_v6 }
0x155b   : > { %12740 = vmatprep.mubr.msk.f32.mxu0 %vm13731_vm1, %v17017_v24 }
0x15e5   : > { %v12650_v27 = vpop.f32.mrf.mxu0 }
0x15e6   : > { %v8821_v21 = vadd.f32 %v12650_v27, %v16629_v13 }
0x15e7   : > { %v8815_v62 = vpop.f32.mrf.mxu0 }
0x15e8   : > { %v10816_v40 = vmul.f32 -1.442695, %v8821_v21  ;;  %v8816_v3 = vadd.f32 %v8815_v62, %v16629_v13 }
0x15ea   : > { %13458 = vpow2.f32 %v10816_v40  ;;  %v10815_v17 = vmul.f32 -1.442695, %v8816_v3 }
0x15ec   : > { %13460 = vpow2.f32 %v10815_v17 }
0x15ed   : > { %v12653_v34 = vpop.f32.mrf.mxu0 }
0x15ee   : > { %v16634_v54 = vadd.f32 %v12653_v34, %v16629_v13 }
0x15ef   : > { %v8825_v0 = vpop.f32.mrf.mxu0 }
0x15f0   : > { %v10818_v29 = vmul.f32 -1.442695, %v16634_v54  ;;  %v8826_v42 = vadd.f32 %v8825_v0, %v16629_v13 }
0x15f2   : > { %13462 = vpow2.f32 %v10818_v29  ;;  %v10817_v45 = vmul.f32 -1.442695, %v8826_v42 }
0x15f4   : > { %13464 = vpow2.f32 %v10817_v45 }
0x15f6   : > { %v12656_v56 = vpop.f32.mrf.mxu0 }
0x15f7   : > { %v13459_v58 = vpop.eup %13458  ;;  %v16639_v16 = vadd.f32 %v12656_v56, %v16629_v13 }
0x15f8   : > { %v8927_v2 = vadd.f32 1.0, %v13459_v58  ;;  %v8835_v37 = vpop.f32.mrf.mxu0 }
0x15f9   : > { %v13461_v61 = vpop.eup %13460  ;;  %v10820_v51 = vmul.f32 -1.442695, %v16639_v16  ;;  %v16643_v1 = vadd.f32 %v8835_v37, %v16629_v13 }
0x15fa   : > { %13466 = vrcp.f32 %v8927_v2  ;;  %v8926_v8 = vadd.f32 1.0, %v13461_v61 }
0x15fb   : > { %13468 = vpow2.f32 %v10820_v51  ;;  %v10819_v44 = vmul.f32 -1.442695, %v16643_v1 }
0x15fc   : > { %13470 = vrcp.f32 %v8926_v8 }
0x15fd   : > { %13472 = vpow2.f32 %v10819_v44 }
0x15fe   : > { %v12659_v33 = vpop.f32.mrf.mxu0 }
0x15ff   : > { %v13463_v57 = vpop.eup %13462  ;;  %v16647_v15 = vadd.f32 %v12659_v33, %v16629_v13 }
0x1600   : > { %v8929_v26 = vadd.f32 1.0, %v13463_v57  ;;  %v8845_v20 = vpop.f32.mrf.mxu0 }
0x1601   : > { %v13465_v50 = vpop.eup %13464  ;;  %v10822_v48 = vmul.f32 -1.442695, %v16647_v15  ;;  %v16651_v43 = vadd.f32 %v8845_v20, %v16629_v13 }
0x1602   : > { %13474 = vrcp.f32 %v8929_v26  ;;  %v8928_v9 = vadd.f32 1.0, %v13465_v50 }
0x1603   : > { %13476 = vpow2.f32 %v10822_v48  ;;  %v10821_v47 = vmul.f32 -1.442695, %v16651_v43 }
0x1604   : > { %13478 = vrcp.f32 %v8928_v9 }
0x1605   : > { %13480 = vpow2.f32 %v10821_v47  ;;  %v12662_v60 = vpop.f32.mrf.mxu0 }
0x1606   : > { %v16655_v23 = vadd.f32 %v12662_v60, %v16629_v13 }
0x1607   : > { %v13467_v41 = vpop.eup %13466  ;;  %v8855_v25 = vpop.f32.mrf.mxu0 }
0x1608   : > { %v13469_v27 = vpop.eup %13468  ;;  %v10824_v62 = vmul.f32 -1.442695, %v16655_v23  ;;  %v16659_v40 = vadd.f32 %v8855_v25, %v16629_v13  ;;  %v16664_v56 = vmul.f32 %v13467_v41, %v8821_v21 }
0x1609   : > { %v13471_v17 = vpop.eup %13470  ;;  %v8931_v34 = vadd.f32 1.0, %v13469_v27 }
0x160a   : > { %v13473_v0 = vpop.eup %13472  ;;  %v16661_v29 = vmul.f32 %v13471_v17, %v8816_v3  ;;  %13482 = vpow2.f32 %v10824_v62  ;;  %v10823_v45 = vmul.f32 -1.442695, %v16659_v40 }
0x160b   : > { %13484 = vrcp.f32 %v8931_v34  ;;  %v8930_v58 = vadd.f32 1.0, %v13473_v0 }
0x160c   : > { %13486 = vpow2.f32 %v10823_v45  ;;  %12677 = vmatprep.mubr.msk.f32.mxu1 %vm1164_vm2, %v16661_v29 }
0x160d   : > { %13488 = vrcp.f32 %v8930_v58  ;;  %v12665_v2 = vpop.f32.mrf.mxu0  ;;  %12678 = vmatmul.mubr.msk.f32.vlgmr.msra.gmra.mxu1 %vm1164_vm2, %v16664_v56 }
0x160e   : > { %v16671_v37 = vadd.f32 %v12665_v2, %v16629_v13 }
0x160f   : > { %v13475_v3 = vpop.eup %13474  ;;  %v8865_v61 = vpop.f32.mrf.mxu0 }
0x1610   : > { %v13477_v51 = vpop.eup %13476  ;;  %v10826_v21 = vmul.f32 -1.442695, %v16671_v37  ;;  %v16675_v8 = vadd.f32 %v8865_v61, %v16629_v13  ;;  %v8971_v50 = vmul.f32 %v13475_v3, %v16634_v54 }
0x1611   : > { %v13479_v44 = vpop.eup %13478  ;;  %v8933_v33 = vadd.f32 1.0, %v13477_v51 }
0x1612   : > { %v13481_v57 = vpop.eup %13480  ;;  %v8970_v26 = vmul.f32 %v13479_v44, %v8826_v42  ;;  %13490 = vpow2.f32 %v10826_v21  ;;  %v10825_v20 = vmul.f32 -1.442695, %v16675_v8 }
0x1613   : > { %13492 = vrcp.f32 %v8933_v33  ;;  %v8932_v48 = vadd.f32 1.0, %v13481_v57 }
0x1614   : > { %13494 = vpow2.f32 %v10825_v20  ;;  %12680 = vmatprep.mubr.msk.f32.mxu1 %vm1164_vm2, %v8970_v26 }
0x1615   : > { %13496 = vrcp.f32 %v8932_v48  ;;  %12681 = vmatmul.mubr.msk.f32.gmra.mxu1 %vm1164_vm2, %v8971_v50 }
0x1616   : > { %v12668_v9 = vpop.f32.mrf.mxu0 }
0x1617   : > { %v13483_v47 = vpop.eup %13482  ;;  %v16682_v60 = vadd.f32 %v12668_v9, %v16629_v13 }
0x1618   : > { %v13485_v41 = vpop.eup %13484  ;;  %v8935_v42 = vadd.f32 1.0, %v13483_v47  ;;  %v8875_v25 = vpop.f32.mrf.mxu0 }
0x1619   : > { %v13487_v27 = vpop.eup %13486  ;;  %v10828_v62 = vmul.f32 -1.442695, %v16682_v60  ;;  %v8876_v54 = vadd.f32 %v8875_v25, %v16629_v13  ;;  %v8973_v58 = vmul.f32 %v13485_v41, %v16639_v16  ;;  %v10708_v25 = vld [vmem:[%s17002_s11 + $0x1c8] sm:$0xff] }
0x161a   : > { %v13489_v17 = vpop.eup %13488  ;;  %13498 = vrcp.f32 %v8935_v42  ;;  %v8934_v34 = vadd.f32 1.0, %v13487_v27  ;;  %v16746_v27 = vrot.slane %v16497_v52, %v14508_v7 }
0x161b   : > { %v8972_v0 = vmul.f32 %v13489_v17, %v16643_v1  ;;  %13500 = vpow2.f32 %v10828_v62  ;;  %v10827_v45 = vmul.f32 -1.442695, %v8876_v54 }
0x161c   : > { %13502 = vrcp.f32 %v8934_v34 }
0x161d   : > { %13504 = vpow2.f32 %v10827_v45  ;;  %12683 = vmatprep.mubr.msk.f32.mxu1 %vm1164_vm2, %v8972_v0 }
0x161e   : > { %12684 = vmatmul.mubr.msk.f32.gmra.mxu1 %vm1164_vm2, %v8973_v58 }
0x161f   : > { %v13491_v2 = vpop.eup %13490 }
0x1620   : > { %v13493_v3 = vpop.eup %13492  ;;  %v8937_v61 = vadd.f32 1.0, %v13491_v2 }
0x1621   : > { %v13495_v51 = vpop.eup %13494  ;;  %v8975_v1 = vmul.f32 %v13493_v3, %v16647_v15 }
0x1622   : > { %v13497_v13 = vpop.eup %13496  ;;  %v8936_v21 = vadd.f32 1.0, %v13495_v51  ;;  %13506 = vrcp.f32 %v8937_v61 }
0x1623   : > { %v8974_v44 = vmul.f32 %v13497_v13, %v16651_v43 }
0x1624   : > { %13508 = vrcp.f32 %v8936_v21 }
0x1625   : > { %12686 = vmatprep.mubr.msk.f32.mxu1 %vm1164_vm2, %v8974_v44  ;;  %12710 = vmatpush3.msra.mxu1 %v8974_v44 }
0x1626   : > { %12687 = vmatmul.mubr.msk.f32.gmra.mxu1 %vm1164_vm2, %v8975_v1  ;;  %12711 = vmatprep.subr.mxu1 %v17017_v24 }
0x1627   : > { %v13499_v16 = vpop.eup %13498  ;;  %12712 = vmatpush3.msra.mxu1 %v8973_v58 }
0x1628   : > { %v13501_v33 = vpop.eup %13500  ;;  %12713 = vmatprep.subr.mxu1 %v17017_v24  ;;  %v8977_v9 = vmul.f32 %v13499_v16, %v16655_v23 }
0x1629   : > { %v13503_v57 = vpop.eup %13502  ;;  %v8939_v20 = vadd.f32 1.0, %v13501_v33  ;;  %12714 = vmatpush3.msra.mxu1 %v8972_v0 }
0x162a   : > { %v13505_v43 = vpop.eup %13504  ;;  %v8976_v48 = vmul.f32 %v13503_v57, %v16659_v40  ;;  %12715 = vmatprep.subr.mxu1 %v17017_v24 }
0x162b   : > { %v8938_v15 = vadd.f32 1.0, %v13505_v43  ;;  %12716 = vmatpush3.msra.mxu1 %v8971_v50  ;;  %13510 = vrcp.f32 %v8939_v20 }
0x162c   : > { %12717 = vmatprep.subr.mxu1 %v17017_v24  ;;  %12689 = vmatprep.mubr.msk.f32.mxu1 %vm1164_vm2, %v8976_v48 }
0x162d   : > { %13512 = vrcp.f32 %v8938_v15  ;;  %12718 = vmatpush3.msra.mxu1 %v8970_v26 }
0x162e   : > { %12690 = vmatmul.mubr.msk.f32.gmra.mxu1 %vm1164_vm2, %v8977_v9  ;;  %12719 = vmatprep.subr.mxu1 %v17017_v24 }
0x162f   : > { %12720 = vmatpush3.msra.mxu1 %v16664_v56  ;;  %v13507_v40 = vpop.eup %13506 }
0x1630   : > { %12721 = vmatprep.subr.mxu1 %v17017_v24  ;;  %v8979_v50 = vmul.f32 %v13507_v40, %v16671_v37  ;;  %v9872_v37 = vrot.slane %v16497_v52, %v14481_v46  ;;  %v10707_v46 = vld [vmem:[%s17002_s11 + $0x1c0] sm:$0xff] }
0x1631   : > { %v13509_v47 = vpop.eup %13508  ;;  %12722 = vmatpush3.msra.mxu1 %v16661_v29  ;;  %v13662_v29 = vld [vmem:[%s16996_s5] sm:$0xff] }
0x1632   : > { %v8978_v23 = vmul.f32 %v13509_v47, %v16675_v8  ;;  %12743 = vmatprep.subr.mxu1 %v17017_v24  ;;  %9874 = vrot.lane.b32.xlu0 %v9872_v37, %s13732_s22  ;;  %v10710_v8 = vld [vmem:[%s17002_s11 + $0x1d8] sm:$0xff]  ;;  %v16776_v37 = vrot.slane %v16497_v52, %v14586_v31 }
0x1634   : > { %12692 = vmatprep.mubr.msk.f32.mxu1 %vm1164_vm2, %v8978_v23 }
0x1635   : > { %12693 = vmatmul.mubr.msk.f32.gmra.mxu1 %vm1164_vm2, %v8979_v50 }
0x1638   : > { %v13511_v26 = vpop.eup %13510 }
0x1639   : > { %v8981_v56 = vmul.f32 %v13511_v26, %v16682_v60  ;;  %v10709_v60 = vld [vmem:[%s17002_s11 + $0x1d0] sm:$0xff] }
0x163a   : > { %v13513_v41 = vpop.eup %13512 }
0x163b   : > { %v8980_v42 = vmul.f32 %v13513_v41, %v8876_v54 }
0x163d   : > { %12695 = vmatprep.mubr.msk.f32.mxu1 %vm1164_vm2, %v8980_v42 }
0x163e   : > { %12696 = vmatmul.mubr.msk.f32.gmra.mxu1 %vm1164_vm2, %v8981_v56 }
0x163f   : > { %12723 = vmatprep.mubr.msk.f32.mxu1 %vm13731_vm1, %v17017_v24 }
0x1642   : > { %12724 = vmatmul.mubr.msk.f32.vlgmr.msra.gmra.mxu1 %vm2446_vm4, %v13662_v29 }
0x1643   : > { %12744 = vmatpush3.msra.mxu1 %v8981_v56  ;;  %12757 = vmatprep.mubr.msk.f32.mxu1 %vm13731_vm1, %v17017_v24 }
0x1644   : > { %12745 = vmatprep.subr.mxu1 %v17017_v24 }
0x1645   : > { %12746 = vmatpush3.msra.mxu1 %v8980_v42 }
0x1646   : > { %12747 = vmatprep.subr.mxu1 %v17017_v24 }
0x1647   : > { %12748 = vmatpush3.msra.mxu1 %v8979_v50 }
0x1648   : > { %12749 = vmatprep.subr.mxu1 %v17017_v24 }
0x1649   : > { %12750 = vmatpush3.msra.mxu1 %v8978_v23 }
0x164a   : > { %12751 = vmatprep.subr.mxu1 %v17017_v24 }
0x164b   : > { %12752 = vmatpush3.msra.mxu1 %v8977_v9 }
0x164c   : > { %12753 = vmatprep.subr.mxu1 %v17017_v24 }
0x164d   : > { %12754 = vmatpush3.msra.mxu1 %v8976_v48 }
0x164e   : > { %12755 = vmatprep.subr.mxu1 %v17017_v24 }
0x164f   : > { %12756 = vmatpush3.msra.mxu1 %v8975_v1 }
0x1650   : > { %12758 = vmatmul.mubr.msk.f32.vlgmr.msra.gmra.mxu1 %vm2446_vm4, %v13662_v29  ;;  %12777 = vmatprep.subr.mxu1 %v10710_v8 }
0x1651   : > { %12778 = vmatpush3.msra.mxu1 %v10710_v8 }
0x1652   : > { %12779 = vmatprep.subr.mxu1 %v10709_v60 }
0x1653   : > { %12780 = vmatpush3.msra.mxu1 %v10709_v60 }
0x1654   : > { %12781 = vmatprep.subr.mxu1 %v10708_v25 }
0x1655   : > { %12782 = vmatpush3.msra.mxu1 %v10708_v25 }
0x1656   : > { %12783 = vmatprep.subr.mxu1 %v10707_v46 }
0x1657   : > { %12784 = vmatpush3.msra.mxu1 %v10707_v46 }
0x16cd   : > { %v12679_v62 = vpop.f32.mrf.mxu1 }
0x16ce   : > { %v9100_v54 = vadd.f32 %v12679_v62, %v16746_v27 }
0x16cf   : > { %v9094_v17 = vpop.f32.mrf.mxu1 }
0x16d0   : > { %v10844_v34 = vmul.f32 -1.442695, %v9100_v54  ;;  %v9095_v0 = vadd.f32 %v9094_v17, %v16746_v27 }
0x16d2   : > { %13514 = vpow2.f32 %v10844_v34  ;;  %v10843_v45 = vmul.f32 -1.442695, %v9095_v0 }
0x16d4   : > { %13516 = vpow2.f32 %v10843_v45 }
0x16d5   : > { %v12682_v58 = vpop.f32.mrf.mxu1 }
0x16d6   : > { %v16751_v2 = vadd.f32 %v12682_v58, %v16746_v27 }
0x16d7   : > { %v9104_v3 = vpop.f32.mrf.mxu1 }
0x16d8   : > { %v10846_v61 = vmul.f32 -1.442695, %v16751_v2  ;;  %v16755_v7 = vadd.f32 %v9104_v3, %v16746_v27 }
0x16da   : > { %13518 = vpow2.f32 %v10846_v61  ;;  %v10845_v51 = vmul.f32 -1.442695, %v16755_v7 }
0x16dc   : > { %13520 = vpow2.f32 %v10845_v51 }
0x16de   : > { %v12685_v13 = vpop.f32.mrf.mxu1 }
0x16df   : > { %v13515_v21 = vpop.eup %13514  ;;  %v16759_v44 = vadd.f32 %v12685_v13, %v16746_v27 }
0x16e0   : > { %v9206_v1 = vadd.f32 1.0, %v13515_v21  ;;  %v9114_v16 = vpop.f32.mrf.mxu1 }
0x16e1   : > { %v13517_v33 = vpop.eup %13516  ;;  %v10848_v57 = vmul.f32 -1.442695, %v16759_v44  ;;  %v16763_v20 = vadd.f32 %v9114_v16, %v16746_v27 }
0x16e2   : > { %13522 = vrcp.f32 %v9206_v1  ;;  %v9205_v43 = vadd.f32 1.0, %v13517_v33 }
0x16e3   : > { %13524 = vpow2.f32 %v10848_v57  ;;  %v10847_v48 = vmul.f32 -1.442695, %v16763_v20 }
0x16e4   : > { %13526 = vrcp.f32 %v9205_v43 }
0x16e5   : > { %13528 = vpow2.f32 %v10847_v48 }
0x16e6   : > { %v12688_v15 = vpop.f32.mrf.mxu1 }
0x16e7   : > { %v13519_v9 = vpop.eup %13518  ;;  %v16767_v40 = vadd.f32 %v12688_v15, %v16746_v27 }
0x16e8   : > { %v9208_v47 = vadd.f32 1.0, %v13519_v9  ;;  %v9124_v23 = vpop.f32.mrf.mxu1 }
0x16e9   : > { %v13521_v50 = vpop.eup %13520  ;;  %v10850_v26 = vmul.f32 -1.442695, %v16767_v40  ;;  %v16771_v41 = vadd.f32 %v9124_v23, %v16746_v27 }
0x16ea   : > { %13530 = vrcp.f32 %v9208_v47  ;;  %v9207_v42 = vadd.f32 1.0, %v13521_v50 }
0x16eb   : > { %13532 = vpow2.f32 %v10850_v26  ;;  %v10849_v56 = vmul.f32 -1.442695, %v16771_v41 }
0x16ec   : > { %13534 = vrcp.f32 %v9207_v42 }
0x16ed   : > { %13536 = vpow2.f32 %v10849_v56 }
0x16ee   : > { %v12691_v29 = vpop.f32.mrf.mxu1 }
0x16ef   : > { %v13523_v8 = vpop.eup %13522  ;;  %v16779_v60 = vadd.f32 %v12691_v29, %v16746_v27 }
0x16f0   : > { %v13525_v25 = vpop.eup %13524  ;;  %v9248_v46 = vmul.f32 %v13523_v8, %v9100_v54  ;;  %v9134_v62 = vpop.f32.mrf.mxu1 }
0x16f1   : > { %v13527_v17 = vpop.eup %13526  ;;  %v9210_v34 = vadd.f32 1.0, %v13525_v25  ;;  %v10852_v45 = vmul.f32 -1.442695, %v16779_v60  ;;  %v16783_v58 = vadd.f32 %v9134_v62, %v16746_v27 }
0x16f2   : > { %v13529_v3 = vpop.eup %13528  ;;  %v9247_v61 = vmul.f32 %v13527_v17, %v9095_v0  ;;  %v9266_v51 = vmul.f32 %v16776_v37, %v9248_v46 }
0x16f3   : > { %13538 = vrcp.f32 %v9210_v34  ;;  %v9209_v31 = vadd.f32 1.0, %v13529_v3  ;;  %v10851_v52 = vmul.f32 -1.442695, %v16783_v58 }
0x16f4   : > { %13540 = vpow2.f32 %v10852_v45  ;;  %v9282_v13 = vsel %vm1164_vm2, %v9266_v51, 0.0  ;;  %v9265_v54 = vmul.f32 %v16776_v37, %v9247_v61 }
0x16f5   : > { %13542 = vrcp.f32 %v9209_v31  ;;  %9283 = vadd.xlane.f32.xlu0 %v9282_v13  ;;  %v12694_v21 = vpop.f32.mrf.mxu1 }
0x16f6   : > { %13544 = vpow2.f32 %v10851_v52  ;;  %v16790_v1 = vadd.f32 %v12694_v21, %v16746_v27  ;;  %v9279_v0 = vsel %vm1164_vm2, %v9265_v54, 0.0 }
0x16f7   : > { %v13531_v16 = vpop.eup %13530  ;;  %v9144_v33 = vpop.f32.mrf.mxu1  ;;  %9280 = vadd.xlane.f32.xlu1 %v9279_v0 }
0x16f8   : > { %v13533_v57 = vpop.eup %13532  ;;  %v9250_v43 = vmul.f32 %v13531_v16, %v16751_v2  ;;  %v10854_v48 = vmul.f32 -1.442695, %v16790_v1  ;;  %v16796_v15 = vadd.f32 %v9144_v33, %v16746_v27 }
0x16f9   : > { %v13535_v9 = vpop.eup %13534  ;;  %v9212_v47 = vadd.f32 1.0, %v13533_v57 }
0x16fa   : > { %v13537_v23 = vpop.eup %13536  ;;  %v9249_v50 = vmul.f32 %v13535_v9, %v16755_v7  ;;  %13546 = vpow2.f32 %v10854_v48  ;;  %v10853_v26 = vmul.f32 -1.442695, %v16796_v15  ;;  %v9268_v42 = vmul.f32 %v16776_v37, %v9250_v43 }
0x16fb   : > { %13548 = vrcp.f32 %v9212_v47  ;;  %v9211_v56 = vadd.f32 1.0, %v13537_v23 }
0x16fc   : > { %13550 = vpow2.f32 %v10853_v26  ;;  %v9288_v2 = vsel %vm1164_vm2, %v9268_v42, 0.0  ;;  %v9267_v29 = vmul.f32 %v16776_v37, %v9249_v50 }
0x16fd   : > { %13552 = vrcp.f32 %v9211_v56  ;;  %9289 = vadd.xlane.f32.xlu0 %v9288_v2 }
0x16fe   : > { %v12697_v8 = vpop.f32.mrf.mxu1  ;;  %v9285_v25 = vsel %vm1164_vm2, %v9267_v29, 0.0 }
0x16ff   : > { %v16805_v46 = vadd.f32 %v12697_v8, %v16746_v27  ;;  %9286 = vadd.xlane.f32.xlu1 %v9285_v25 }
0x1700   : > { %v13539_v7 = vpop.eup %13538  ;;  %v9154_v62 = vpop.f32.mrf.mxu1 }
0x1701   : > { %v13541_v17 = vpop.eup %13540  ;;  %v9252_v34 = vmul.f32 %v13539_v7, %v16759_v44  ;;  %v10856_v45 = vmul.f32 -1.442695, %v16805_v46  ;;  %v9155_v3 = vadd.f32 %v9154_v62, %v16746_v27 }
0x1702   : > { %v13543_v61 = vpop.eup %13542  ;;  %v9214_v51 = vadd.f32 1.0, %v13541_v17  ;;  %v9548_v31 = vpop.f32.mrf.mxu1 }
0x1703   : > { %v13545_v52 = vpop.eup %13544  ;;  %v9251_v13 = vmul.f32 %v13543_v61, %v16763_v20  ;;  %13554 = vpow2.f32 %v10856_v45  ;;  %v10855_v54 = vmul.f32 -1.442695, %v9155_v3  ;;  %v9270_v21 = vmul.f32 %v16776_v37, %v9252_v34  ;;  %12785 = vmatprep.mubr.msk.f32.mxu1 %vm1164_vm2, %v9548_v31 }
0x1704   : > { %13556 = vrcp.f32 %v9214_v51  ;;  %v9213_v0 = vadd.f32 1.0, %v13545_v52  ;;  %v12725_v16 = vpop.f32.mrf.mxu1 }
0x1705   : > { %13558 = vpow2.f32 %v10855_v54  ;;  %v9294_v44 = vsel %vm1164_vm2, %v9270_v21, 0.0  ;;  %v9269_v27 = vmul.f32 %v16776_v37, %v9251_v13 }
0x1706   : > { %13560 = vrcp.f32 %v9213_v0  ;;  %9295 = vadd.xlane.f32.xlu1 %v9294_v44 }
0x1707   : > { %v13547_v33 = vpop.eup %13546  ;;  %v9291_v9 = vsel %vm1164_vm2, %v9269_v27, 0.0 }
0x1708   : > { %v13549_v57 = vpop.eup %13548  ;;  %v9216_v43 = vadd.f32 1.0, %v13547_v33 }
0x1709   : > { %v13551_v20 = vpop.eup %13550  ;;  %v9254_v48 = vmul.f32 %v13549_v57, %v16767_v40  ;;  %v16844_v57 = vpop.permute.xlu0 %9874 }
0x170a   : > { %v13553_v47 = vpop.eup %13552  ;;  %13562 = vrcp.f32 %v9216_v43  ;;  %v9215_v23 = vadd.f32 1.0, %v13551_v20  ;;  %9292 = vadd.xlane.f32.xlu1 %v9291_v9 }
0x170b   : > { %v9253_v50 = vmul.f32 %v13553_v47, %v16771_v41  ;;  %v16819_v26 = vmul.f32 %v16776_v37, %v9254_v48 }
0x170c   : > { %13564 = vrcp.f32 %v9215_v23 }
0x170d   : > { %v9271_v42 = vmul.f32 %v16776_v37, %v9253_v50 }
0x170f   : > { %v9297_v56 = vsel %vm1164_vm2, %v9271_v42, 0.0 }
0x1710   : > { %v13555_v2 = vpop.eup %13554  ;;  %v9688_v29 = vpop.f32.mrf.mxu1  ;;  %9298 = vadd.xlane.f32.xlu0 %v9297_v56 }
0x1711   : > { %v13557_v40 = vpop.eup %13556  ;;  %v9218_v8 = vadd.f32 1.0, %v13555_v2  ;;  %12786 = vmatmul.mubr.msk.f32.vlgmr.msra.gmra.mxu1 %vm1164_vm2, %v9688_v29 }
0x1712   : > { %v13559_v25 = vpop.eup %13558  ;;  %v9256_v7 = vmul.f32 %v13557_v40, %v16779_v60  ;;  %v12759_v62 = vpop.f32.mrf.mxu1 }
0x1713   : > { %v13561_v41 = vpop.eup %13560  ;;  %13566 = vrcp.f32 %v9218_v8  ;;  %v9217_v17 = vadd.f32 1.0, %v13559_v25 }
0x1714   : > { %v9255_v34 = vmul.f32 %v13561_v41, %v16783_v58  ;;  %v16827_v45 = vmul.f32 %v16776_v37, %v9256_v7 }
0x1715   : > { %13568 = vrcp.f32 %v9217_v17 }
0x1716   : > { %v16830_v61 = vmul.f32 %v16776_v37, %v9255_v34 }
0x1717   : > { %v13563_v51 = vpop.eup %13562 }
0x1718   : > { %v9258_v31 = vmul.f32 %v13563_v51, %v16790_v1 }
0x1719   : > { %v13565_v52 = vpop.eup %13564 }
0x171a   : > { %v9257_v13 = vmul.f32 %v13565_v52, %v16796_v15  ;;  %v9276_v60 = vmul.f32 %v16776_v37, %v9258_v31 }
0x171c   : > { %v9312_v54 = vsel %vm1164_vm2, %v9276_v60, 0.0  ;;  %v16837_v21 = vmul.f32 %v16776_v37, %v9257_v13  ;;  %v9300_v13 = vsel %vm1164_vm2, %v16819_v26, 0.0  ;;  %v9303_v60 = vsel %vm1164_vm2, %v16830_v61, 0.0  ;;  %v16890_v26 = vld [vmem:[%s17003_s12 + $0x30] sm:$0xff] }
0x171d   : > { %9313 = vadd.xlane.f32.xlu0 %v9312_v54  ;;  %v12708_v54 = vpop.f32.mrf.mxu0  ;;  %v9447_v61 = vrot.slane %v16890_v26, %v14544_v39 }
0x1720   : > { %v13567_v58 = vpop.eup %13566 }
0x1721   : > { %v9260_v0 = vmul.f32 %v13567_v58, %v16805_v46 }
0x1722   : > { %v13569_v16 = vpop.eup %13568 }
0x1723   : > { %v9259_v44 = vmul.f32 %v13569_v16, %v9155_v3  ;;  %v9278_v27 = vmul.f32 %v16776_v37, %v9260_v0  ;;  %v9435_v16 = vpop.f32.mrf.mxu0 }
0x1725   : > { %v9318_v1 = vsel %vm1164_vm2, %v9278_v27, 0.0  ;;  %v9277_v33 = vmul.f32 %v16776_v37, %v9259_v44 }
0x1726   : > { %9319 = vadd.xlane.f32.xlu0 %v9318_v1 }
0x1727   : > { %v9315_v15 = vsel %vm1164_vm2, %v9277_v33, 0.0 }
0x1728   : > { %9316 = vadd.xlane.f32.xlu1 %v9315_v15  ;;  %v9449_v15 = vadd.f32 %v12708_v54, %v9447_v61 }
0x177e   : > { %v9284_v48 = vpop.xlane.xlu0 %9283 }
0x177f   : > { %v9322_v8 = vmul.f32 %v9284_v48, %v16411_v59 }
0x1780   : > { %v9281_v43 = vpop.xlane.xlu1 %9280 }
0x1786   : > { %v9290_v47 = vpop.xlane.xlu0 %9289 }
0x1787   : > { %v9324_v56 = vmul.f32 %v9290_v47, %v16421_v38  ;;  %v10858_v38 = vclamps-f32 %v9322_v8, 100.0  ;;  %v10716_v8 = vld [vmem:[%s17003_s12 + $0x38] sm:$0x3] }
0x1788   : > { %v9287_v20 = vpop.xlane.xlu1 %9286 }
0x1789   : > { %v9323_v29 = vmul.f32 %v9287_v20, %v16416_v11  ;;  %v10874_v20 = vmul.f32 -1.442695, %v9449_v15 }
0x178f   : > { %v9296_v9 = vpop.xlane.xlu1 %9295 }
0x1790   : > { %v9326_v3 = vmul.f32 %v9296_v9, %v16431_v18  ;;  %v10860_v18 = vclamps-f32 %v9324_v56, 100.0 }
0x1792   : > { %v10862_v2 = vclamps-f32 %v9326_v3, 100.0 }
0x1793   : > { %v9293_v46 = vpop.xlane.xlu1 %9292 }
0x1794   : > { %v9325_v42 = vmul.f32 %v9293_v46, %v16426_v10  ;;  %v9321_v10 = vmul.f32 %v9281_v43, %v16406_v55  ;;  %v16863_v55 = vld [vmem:[%s16997_s6] sm:$0xff] }
0x1796   : > { %v10861_v40 = vclamps-f32 %v9325_v42, 100.0  ;;  %v10857_v11 = vclamps-f32 %v9321_v10, 100.0 }
0x1799   : > { %v9299_v23 = vpop.xlane.xlu0 %9298 }
0x179a   : > { %v9327_v50 = vmul.f32 %v9299_v23, %v16436_v19  ;;  %v10859_v19 = vclamps-f32 %v9323_v29, 100.0 }
0x179c   : > { %v10863_v37 = vclamps-f32 %v9327_v50, 100.0 }
0x179e   : > { %12727 = vmatpush3.msra.mxu0 %v10863_v37 }
0x179f   : > { %12728 = vmatprep.subr.mxu0 %v17017_v24 }
0x17a0   : > { %12729 = vmatpush3.msra.mxu0 %v10862_v2 }
0x17a1   : > { %12730 = vmatprep.subr.mxu0 %v17017_v24 }
0x17a2   : > { %12731 = vmatpush3.msra.mxu0 %v10861_v40 }
0x17a3   : > { %12732 = vmatprep.subr.mxu0 %v17017_v24 }
0x17a4   : > { %12733 = vmatpush3.msra.mxu0 %v10860_v18 }
0x17a5   : > { %12734 = vmatprep.subr.mxu0 %v17017_v24 }
0x17a6   : > { %12735 = vmatpush3.msra.mxu0 %v10859_v19  ;;  %v9314_v59 = vpop.xlane.xlu0 %9313 }
0x17a7   : > { %12736 = vmatprep.subr.mxu0 %v17017_v24  ;;  %v9332_v41 = vmul.f32 %v9314_v59, %v16461_v14  ;;  %v9306_v14 = vsel %vm1164_vm2, %v16827_v45, 0.0  ;;  %v9467_v59 = vrot.slane %v10716_v8, %v14185_v28  ;;  %v10714_v28 = vld [vmem:[%s17002_s11 + $0x1f8] sm:$0xff] }
0x17a8   : > { %12737 = vmatpush3.msra.mxu0 %v10858_v38 }
0x17a9   : > { %12738 = vmatprep.subr.mxu0 %v17017_v24  ;;  %v10868_v31 = vclamps-f32 %v9332_v41, 100.0 }
0x17aa   : > { %12739 = vmatpush3.msra.mxu0 %v10857_v11 }
0x17ab   : > { %12760 = vmatprep.subr.mxu0 %v17017_v24  ;;  %12741 = vmatmul.mubr.msk.f32.vlgmr.msra.gmra.mxu0 %vm2446_vm4, %v16863_v55 }
0x17ac   : > { %12774 = vmatprep.mubr.msk.f32.mxu0 %vm13731_vm1, %v17017_v24 }
0x17af   : > { %v9320_v25 = vpop.xlane.xlu0 %9319 }
0x17b0   : > { %v9334_v7 = vmul.f32 %v9320_v25, %v16474_v12 }
0x17b1   : > { %v9317_v62 = vpop.xlane.xlu1 %9316 }
0x17b2   : > { %v10870_v17 = vclamps-f32 %v9334_v7, 100.0  ;;  %v9333_v34 = vmul.f32 %v9317_v62, %v16466_v53  ;;  %v9309_v53 = vsel %vm1164_vm2, %v16837_v21, 0.0 }
0x17b4   : > { %v10869_v51 = vclamps-f32 %v9333_v34, 100.0  ;;  %12761 = vmatpush3.msra.mxu0 %v10870_v17 }
0x17b5   : > { %12762 = vmatprep.subr.mxu0 %v17017_v24 }
0x17b6   : > { %12763 = vmatpush3.msra.mxu0 %v10869_v51 }
0x17b7   : > { %12764 = vmatprep.subr.mxu0 %v17017_v24 }
0x17b8   : > { %12765 = vmatpush3.msra.mxu0 %v10868_v31 }
0x17b9   : > { %12766 = vmatprep.subr.mxu0 %v17017_v24 }
0x17d1   : > { %v12787_v52 = vpop.f32.mrf.mxu1 }
0x17d2   : > { %9863 = vrot.lane.b32.xlu1 %v12787_v52, %s13732_s22 }
0x17d3   : > { %v9850_v12 = vpop.f32.mrf.mxu1 }
0x17d4   : > { %9861 = vrot.lane.b32.xlu0 %v9850_v12, %s13732_s22  ;;  %v10712_v12 = vld [vmem:[%s17002_s11 + $0x1e8] sm:$0xff] }
0x17f3   : > { %9307 = vadd.xlane.f32.xlu0 %v9306_v14 }
0x17f6   : > { %9310 = vadd.xlane.f32.xlu1 %v9309_v53 }
0x17f7   : > { %9301 = vadd.xlane.f32.xlu0 %v9300_v13 }
0x17fa   : > { %9304 = vadd.xlane.f32.xlu1 %v9303_v60 }
0x1844   : > { %v9864_v58 = vpop.permute.xlu1 %9863 }
0x1845   : > { %v9868_v0 = vadd.f32 %v12708_v54, %v9864_v58  ;;  %v9479_v54 = vrot.slane %v10716_v8, %v14324_v4 }
0x1846   : > { %v9862_v44 = vpop.permute.xlu0 %9861 }
0x1847   : > { %v9878_v45 = vadd.f32 %v16844_v57, %v9868_v0  ;;  %v9867_v27 = vadd.f32 %v9862_v44, %v9435_v16 }
0x1849   : > { %v10882_v1 = vmul.f32 -1.442695, %v9878_v45  ;;  %v9877_v21 = vadd.f32 %v16844_v57, %v9867_v27  ;;  %v9448_v57 = vadd.f32 %v9447_v61, %v9435_v16 }
0x184b   : > { %13570 = vpow2.f32 %v10882_v1  ;;  %v10881_v33 = vmul.f32 -1.442695, %v9877_v21  ;;  %v10873_v46 = vmul.f32 -1.442695, %v9448_v57 }
0x184d   : > { %13572 = vpow2.f32 %v10881_v33  ;;  %v13665_v33 = vld [vmem:[%s14774_s24 + $0x8] sm:$0xff] }
0x1858   : > { %v13571_v43 = vpop.eup %13570 }
0x1859   : > { %v9886_v48 = vadd.f32 1.0, %v13571_v43 }
0x185a   : > { %v13573_v9 = vpop.eup %13572 }
0x185b   : > { %13574 = vrcp.f32 %v9886_v48  ;;  %v9885_v47 = vadd.f32 1.0, %v13573_v9 }
0x185c   : > { %13576 = vpow2.f32 %v10874_v20 }
0x185d   : > { %13578 = vrcp.f32 %v9885_v47 }
0x185e   : > { %13580 = vpow2.f32 %v10873_v46  ;;  %v9896_v46 = vrot.slane %v16890_v26, %v14690_v32 }
0x1868   : > { %v13575_v23 = vpop.eup %13574 }
0x1869   : > { %v13577_v3 = vpop.eup %13576  ;;  %v9892_v50 = vmul.f32 %v13575_v23, %v9878_v45 }
0x186a   : > { %v13579_v42 = vpop.eup %13578  ;;  %v9457_v39 = vadd.f32 1.0, %v13577_v3 }
0x186b   : > { %v9891_v37 = vmul.f32 %v13579_v42, %v9877_v21  ;;  %9901 = vrot.lane.b32.xlu0 %v9892_v50, %s17016_s30  ;;  %v13581_v56 = vpop.eup %13580 }
0x186c   : > { %13582 = vrcp.f32 %v9457_v39  ;;  %v9456_v2 = vadd.f32 1.0, %v13581_v56 }
0x186d   : > { %9899 = vrot.lane.b32.xlu1 %v9891_v37, %s17016_s30 }
0x186e   : > { %13584 = vrcp.f32 %v9456_v2 }
0x1879   : > { %v13583_v40 = vpop.eup %13582 }
0x187a   : > { %v9463_v38 = vmul.f32 %v13583_v40, %v9449_v15  ;;  %v13666_v15 = vld [vmem:[%s14774_s24] sm:$0xff]  ;;  %s464_s24 = sand.u32 1, %s13719_s26  }
0x187b   : > { %v13585_v34 = vpop.eup %13584  ;;  %s10114_s30 = sshll.u32 %s464_s24, 4  ;;  %s16951_s29 = scalar_lea.sflag [#allocation3], %s464_s24 }
0x187c   : > { %v9308_v29 = vpop.xlane.xlu0 %9307  ;;  %v9469_v51 = vmul.f32 %v9467_v59, %v9463_v38 }
0x187d   : > { %v9330_v10 = vmul.f32 %v9308_v29, %v16451_v36  ;;  %v9462_v36 = vmul.f32 %v13585_v34, %v9448_v57 }
0x187f   : > { %v9311_v18 = vpop.xlane.xlu1 %9310  ;;  %v10866_v62 = vclamps-f32 %v9330_v10, 100.0  ;;  %v9468_v52 = vmul.f32 %v9467_v59, %v9462_v36 }
0x1880   : > { %v9331_v19 = vmul.f32 %v9311_v18, %v16456_v22  ;;  %v9302_v11 = vpop.xlane.xlu0 %9301 }
0x1881   : > { %v9328_v41 = vmul.f32 %v9302_v11, %v16441_v5  ;;  %v9473_v5 = vsel %vm1164_vm2, %v9469_v51, 0.0  ;;  %v9470_v14 = vsel %vm1164_vm2, %v9468_v52, 0.0 }
0x1882   : > { %v10867_v25 = vclamps-f32 %v9331_v19, 100.0 }
0x1883   : > { %v9305_v7 = vpop.xlane.xlu1 %9304  ;;  %v10864_v22 = vclamps-f32 %v9328_v41, 100.0 }
0x1884   : > { %v9329_v17 = vmul.f32 %v9305_v7, %v16446_v35  ;;  %12767 = vmatpush3.msra.mxu0 %v10867_v25  ;;  %v10713_v35 = vld [vmem:[%s17002_s11 + $0x1f0] sm:$0xff] }
0x1885   : > { %12768 = vmatprep.subr.mxu0 %v17017_v24 }
0x1886   : > { %v10865_v31 = vclamps-f32 %v9329_v17, 100.0  ;;  %12769 = vmatpush3.msra.mxu0 %v10866_v62 }
0x1887   : > { %12770 = vmatprep.subr.mxu0 %v17017_v24 }
0x1888   : > { %12771 = vmatpush3.msra.mxu0 %v10865_v31 }
0x1889   : > { %12772 = vmatprep.subr.mxu0 %v17017_v24  ;;  %v10711_v24 = vld [vmem:[%s17002_s11 + $0x1e0] sm:$0xff] }
0x188a   : > { %9474 = vadd.xlane.f32.xlu0 %v9473_v5  ;;  %12773 = vmatpush3.msra.mxu0 %v10864_v22 }
0x188b   : > { %12775 = vmatmul.mubr.msk.f32.vlgmr.msra.gmra.mxu0 %vm2446_vm4, %v16863_v55  ;;  %12788 = vmatprep.subr.mxu0 %v10714_v28  ;;  %v9618_v55 = vpop.f32.mrf.mxu0 }
0x188c   : > { %12789 = vmatpush3.msra.mxu0 %v10714_v28 }
0x188d   : > { %12790 = vmatprep.subr.mxu0 %v10713_v35  ;;  %v12742_v53 = vpop.f32.mrf.mxu0 }
0x188e   : > { %12791 = vmatpush3.msra.mxu0 %v10713_v35 }
0x188f   : > { %12792 = vmatprep.subr.mxu0 %v10712_v12 }
0x1890   : > { %12793 = vmatpush3.msra.mxu0 %v10712_v12 }
0x1891   : > { %9471 = vadd.xlane.f32.xlu1 %v9470_v14  ;;  %12794 = vmatprep.subr.mxu0 %v10711_v24 }
0x1892   : > { %12795 = vmatpush3.msra.mxu0 %v10711_v24 }
0x18dd   : > { %v9902_v60 = vpop.permute.xlu0 %9901 }
0x18df   : > { %v9900_v13 = vpop.permute.xlu1 %9899 }
0x18e0   : > { %12796 = vmatprep.mubr.msk.f32.mxu0 %vm1164_vm2, %v9900_v13 }
0x18e1   : > { %12797 = vmatmul.mubr.msk.f32.vlgmr.msra.gmra.mxu0 %vm1164_vm2, %v9902_v60 }
0x1913   : > { %v9475_v58 = vpop.xlane.xlu0 %9474 }
0x1914   : > { %v9481_v0 = vadd.f32 %v9479_v54, %v9475_v58 }
0x1916   : > { %9769 = vperm.xlu0 %12848, %v9481_v0  }
0x191a   : > { %v9472_v16 = vpop.xlane.xlu1 %9471 }
0x191b   : > { %v9480_v44 = vadd.f32 %v9479_v54, %v9472_v16 }
0x191d   : > { %9764 = vperm.xlu1 %12849, %v9480_v44  }
0x194b   : > { %v9758_v45 = vpop.f32.mrf.mxu0 }
0x194d   : > { %v12776_v27 = vpop.f32.mrf.mxu0 }
0x1991   : > { %v9770_v1 = vpop.permute.xlu0 %9769 }
0x1992   : > { %v9773_v61 = vmul.f32 %v13665_v33, %v9770_v1 }
0x1994   : > { %v9775_v48 = vadd.f32 %v9773_v61, %v9758_v45 }
0x1996   : > { %v9777_v4 = vadd.f32 %v9775_v48, %v16320_v49 }
0x1998   : > { %v9765_v21 = vpop.permute.xlu1 %9764 }
0x1999   : > { %v9772_v43 = vmul.f32 %v13666_v15, %v9765_v21 }
0x199b   : > { %v9774_v20 = vadd.f32 %v9772_v43, %v9618_v55 }
0x199d   : > { %v9776_v9 = vadd.f32 %v9774_v20, %v16284_v63  ;;  %9994 = vrot.lane.b32.xlu0 %v9774_v20, %s13734_s23 }
0x199f   : > { %9986 = vrot.lane.b32.xlu1 %v9776_v9, %s13732_s22 }
0x19a1   : > { %v12798_v47 = vpop.f32.mrf.mxu0 }
0x19a2   : > { %v9979_v42 = vadd.f32 %v12798_v47, %v9896_v46 }
0x19a3   : > { %9988 = vrot.lane.b32.xlu1 %v9777_v4, %s13732_s22  ;;  %v9973_v57 = vpop.f32.mrf.mxu0  ;;  %s466_s22 = scalar_lea.vmem [#allocation2], %s10114_s30 }
0x19a4   : > { %v9974_v23 = vadd.f32 %v9973_v57, %v9896_v46  ;;  %s10024_s21 = sshll.u32 %s466_s22, 4  ;;  %v9983_v32 = vadd.f32 %v9979_v42, %v16210_v6  ;;  %s16942_s21 = int_to_ptr.vmem [resolvable:$true] %s10024_s21 }
0x19a5   : > { %s13667_s15 = scalar_lea.vmem %s16942_s21, 256 }
0x19a6   : > { %v9982_v63 = vadd.f32 %v9974_v23, %v16207_v30  ;;  %p13668_p11 = scmp.ne.s32.totalorder %s16942_s21, %s13667_s15 }
0x19a7   : > { %9996 = vrot.lane.b32.xlu1 %v9775_v48, %s13734_s23  ;;  %s13671_s23 = sshll.u32 %s13735_s20, 4  ;;  %s13672_s23 = int_to_ptr.vmem [resolvable:$false] %s13671_s23 }
0x19a8   : > { %p13669_p12 = pnand %p13668_p11, %p13846_p5  ;;  %s13673_s30 = scalar_lea.vmem %s13672_s23, 512 }
0x19a9   : > { %p13674_p0 = scmp.lt.s32.totalorder %s16942_s21, %s13672_s23  ;;  %p13675_p1 = scmp.lt.s32.totalorder %s13673_s30, %s13667_s15 }
0x19aa   : > { %p13670_p13 = pneg %p13669_p12 }
0x19ab   : > { %p13676_p2 = por %p13675_p1, %p13674_p0 }
0x19ad   : > { %p13677_p3 = pnand %p13676_p2, %p13670_p13 }
0x1a0f   : > { %v9995_v50 = vpop.permute.xlu0 %9994 }
0x1a11   : > { %v9987_v3 = vpop.permute.xlu1 %9986 }
0x1a12   : > { %v10000_v49 = vsel %vm1164_vm2, %v9982_v63, %v9987_v3 }
0x1a13   : > { %v10003_v37 = vsel %vm10002_vm5, %v10000_v49, %v9995_v50 }
0x1a14   : > { %v10006_v39 = vsel %vm10005_vm6, %v10003_v37, 0.0 }
0x1a15   : > { %v9989_v56 = vpop.permute.xlu1 %9988  ;;  %10008 = vst [vmem:[%s466_s22] sm:$0xff] %v10006_v39 }
0x1a16   : > { %v10001_v30 = vsel %vm1164_vm2, %v9983_v32, %v9989_v56 }
0x1a19   : > { %v9997_v26 = vpop.permute.xlu1 %9996 }
0x1a1a   : > { %v10004_v2 = vsel %vm10002_vm5, %v10001_v30, %v9997_v26 }
0x1a1b   : > { %v10007_v29 = vsel %vm10005_vm6, %v10004_v2, 0.0 }
0x1a1c   : > { %10009 = vst [vmem:[%s466_s22 + $0x8] sm:$0xff] %v10007_v29 }
0x1a1d   : > { %13680 = shalt.err (!%p13677_p3)
}
0x1a1e   : > { %s13681_s24 = scalar_lea.hbm %s16947_s17, 256  ;;  %s13685_s1 = scalar_lea.hbm %s17004_s13, 512 }
0x1a1f   : > { %p13682_p4 = scmp.ne.s32.totalorder %s16947_s17, %s13681_s24  ;;  %p13686_p9 = scmp.lt.s32.totalorder %s16947_s17, %s17004_s13 }
0x1a20   : > { %p13687_p10 = scmp.lt.s32.totalorder %s13685_s1, %s13681_s24 }
0x1a21   : > { %p13683_p7 = pnand %p13682_p4, %p13846_p5 }
0x1a22   : > { %p13688_p11 = por %p13687_p10, %p13686_p9 }
0x1a23   : > { %p13684_p8 = pneg %p13683_p7 }
0x1a25   : > { %p13689_p12 = pnand %p13688_p11, %p13684_p8 }
0x1a27   : > { %13692 = shalt.err (!%p13689_p12)
}
0x1a28   : > { %s13736_s15 = smov 128   ;;  %s13737_s23 = smov 8  }
0x1a29   : > { %12801 = dma.vmem_to_hbm [thread:$0]  (%p13846_p5), %s16942_s21, 256, %s16947_s17, %s16951_s29, %s13736_s15, %s13736_s15, %s13737_s23  }
0x1a2a PF: > { %p12807_p13 = scmp.ge.s32.totalorder %s13727_s28, 2  ;;  %s10039_s30 = sand.u32 1, %s13715_s25  }
0x1a2b   : > { %s10040_s24 = scalar_lea.sflag [#allocation3], %s10039_s30 }
0x1a2c   : > { %p12804_p0 = pnand %p12807_p13, %p13850_p6 }
0x1a2e   : > { %p12805_p1 = pneg %p12804_p0 }
0x1a30   : > { %13710 = dma.done.wait (%p12805_p1), %s10040_s24, 256  }
0x1a31   : > { %13712 = vsyncadd (%p12805_p1), %s10040_s24, 4294967040  ;;  %s17018_s22 = sld [smem:[#allocation5_spill]]  ;;  %p23_p2 = scmp.ge.s32.totalorder %s13833_s14, 4  }
0x1a32   : > { %s17019_s25 = smov %s13719_s26  ;;  %s17020_s26 = smov %s13723_s27 }
0x1a33   : > { %s17022_s28 = smov %s13833_s14  ;;  %25 = sbr.rel (!%p23_p2) target bundleno = 6 (0x6), region = 125 }
0x1a37   : > { %s17021_s27 = smov %s17018_s22 }
0x1a38   :  { %10045 = vsyncpa [#allocation3], 1 }
0x1a39   :  { %10047 = vsyncpa [#allocation3 + $0x1], 1 }

</bundles_post_ra>
